<compile_context>
chip_gen: v6e
topology: v6e:2x2x1
jax: 0.10.0
libtpu: 0.0.40
codegen_flags: <defaults>
</compile_context>

<pallas_src>
import jax
import jax.numpy as jnp
from jax import lax
from jax.experimental import pallas as pl
from jax.experimental.pallas import tpu as pltpu


def _doble_conv_kernel(xp_ref, w1_ref, b1_ref, w2_ref, b2_ref, g_ref, be_ref,
                       out_ref, y1p_ref):
    N, Hp, Wp, cin_p = xp_ref.shape
    H, W = Hp - 2, Wp - 2
    Cmid = w1_ref.shape[-1]
    Cout = w2_ref.shape[-1]
    M = N * H * W

    # Zero only the 1-pixel border of the padded conv1 buffer; the interior is
    # fully overwritten by the bulk store below.  The border is conv2's pad=1.
    y1p_ref[:, 0:1, :, :] = jnp.zeros((N, 1, Wp, Cmid), jnp.float32)
    y1p_ref[:, Hp - 1:Hp, :, :] = jnp.zeros((N, 1, Wp, Cmid), jnp.float32)
    y1p_ref[:, :, 0:1, :] = jnp.zeros((N, Hp, 1, Cmid), jnp.float32)
    y1p_ref[:, :, Wp - 1:Wp, :] = jnp.zeros((N, Hp, 1, Cmid), jnp.float32)

    # ---- conv1: 9 shift-and-matmul taps, each one large MXU dot
    #      (M, cin_p) @ (cin_p, Cmid), accumulated in f32 (static unroll).
    acc1 = jnp.zeros((M, Cmid), jnp.float32)
    for k in range(9):
        dy, dx = divmod(k, 3)
        tap = xp_ref[:, dy:dy + H, dx:dx + W, :].reshape(M, cin_p)
        acc1 = acc1 + jnp.dot(tap, w1_ref[k],
                              preferred_element_type=jnp.float32)
    acc1 = acc1 + b1_ref[...]                     # bias added once (hoisted)
    # single bulk store of the interior of the padded intermediate
    y1p_ref[:, 1:H + 1, 1:W + 1, :] = acc1.reshape(N, H, W, Cmid)

    # ---- conv2: same shift-and-matmul structure over the padded conv1 output.
    acc2 = jnp.zeros((M, Cout), jnp.float32)
    for k in range(9):
        dy, dx = divmod(k, 3)
        tap = y1p_ref[:, dy:dy + H, dx:dx + W, :].reshape(M, Cmid)
        acc2 = acc2 + jnp.dot(tap, w2_ref[k],
                              preferred_element_type=jnp.float32)
    acc2 = acc2 + b2_ref[...]

    # ---- BatchNorm2d (biased batch stats over N,H,W) + ReLU, as one post-pass
    # reduction over the resident conv2 result (no loop-carried accumulators).
    inv_cnt = jnp.float32(1.0 / M)
    mean = jnp.sum(acc2, axis=0, keepdims=True) * inv_cnt            # (1, Cout)
    var = jnp.sum(acc2 * acc2, axis=0, keepdims=True) * inv_cnt - mean * mean
    var = jnp.maximum(var, 0.0)                   # guard E[x^2]-E[x]^2 underflow
    scale = lax.rsqrt(var + 1e-5) * g_ref[...]
    shift = be_ref[...] - mean * scale
    y = jnp.maximum(acc2 * scale + shift, 0.0)
    out_ref[...] = y.reshape(N, H, W, Cout)


def doble_convolution(x_nchw, params):
    """Forward pass of DobleConvolution.  Input/output are NCHW float32."""
    N, Cin, H, W = x_nchw.shape
    w1_oihw, b1 = params["w1"], params["b1"]
    w2_oihw, b2 = params["w2"], params["b2"]
    gamma, beta = params["gamma"], params["beta"]
    Cmid = w1_oihw.shape[0]
    Cout = w2_oihw.shape[0]

    # NCHW -> NHWC, spatial pad=1, pad Cin up to a multiple of 8 (zero channels
    # do not change the result; keeps the matmul contraction aligned).
    cin_p = -(-Cin // 8) * 8
    x_nhwc = jnp.transpose(x_nchw, (0, 2, 3, 1)).astype(jnp.float32)
    xp = jnp.pad(x_nhwc, ((0, 0), (1, 1), (1, 1), (0, cin_p - Cin)))

    # OIHW -> (dy,dx,ci,co), flattened once to (9, Cin, Cout) tap matrices.
    w1_taps = jnp.transpose(w1_oihw, (2, 3, 1, 0))
    w1_taps = jnp.pad(w1_taps, ((0, 0), (0, 0), (0, cin_p - Cin), (0, 0)))
    w1_taps = w1_taps.reshape(9, cin_p, Cmid)
    w2_taps = jnp.transpose(w2_oihw, (2, 3, 1, 0)).reshape(9, Cmid, Cout)

    vmem_spec = pl.BlockSpec(memory_space=pltpu.MemorySpace.VMEM)
    out_nhwc = pl.pallas_call(
        _doble_conv_kernel,
        out_shape=jax.ShapeDtypeStruct((N, H, W, Cout), jnp.float32),
        in_specs=[vmem_spec] * 7,
        out_specs=vmem_spec,
        scratch_shapes=[
            pltpu.VMEM((N, H + 2, W + 2, Cmid), jnp.float32),  # padded conv1 out
        ],
    )(xp, w1_taps, b1.reshape(1, Cmid), w2_taps, b2.reshape(1, Cout),
      gamma.reshape(1, Cout), beta.reshape(1, Cout))

    return jnp.transpose(out_nhwc, (0, 3, 1, 2))  # back to NCHW


def init_params(key, in_channels, out_channels):
    """Deterministic synthetic parameters with PyTorch layouts (OIHW weights)."""
    k1, k2, k3, k4, k5, k6 = jax.random.split(key, 6)
    return dict(
        w1=0.1 * jax.random.normal(k1, (out_channels, in_channels, 3, 3), jnp.float32),
        b1=0.1 * jax.random.normal(k2, (out_channels,), jnp.float32),
        w2=0.1 * jax.random.normal(k3, (out_channels, out_channels, 3, 3), jnp.float32),
        b2=0.1 * jax.random.normal(k4, (out_channels,), jnp.float32),
        # PyTorch default BN init is weight=1, bias=0; perturb deterministically
        # so the affine part is actually exercised.
        gamma=1.0 + 0.1 * jax.random.normal(k5, (out_channels,), jnp.float32),
        beta=0.1 * jax.random.normal(k6, (out_channels,), jnp.float32),
    )


def reference(x_nchw, params, eps=1e-5):
    """Pure-JAX reference mirroring the PyTorch forward (NCHW, training-mode BN)."""
    dn = ("NCHW", "OIHW", "NCHW")
    hp = lax.Precision.HIGHEST
    y = lax.conv_general_dilated(x_nchw, params["w1"], (1, 1), ((1, 1), (1, 1)),
                                 dimension_numbers=dn, precision=hp)
    y = y + params["b1"][None, :, None, None]
    y = lax.conv_general_dilated(y, params["w2"], (1, 1), ((1, 1), (1, 1)),
                                 dimension_numbers=dn, precision=hp)
    y = y + params["b2"][None, :, None, None]
    mean = jnp.mean(y, axis=(0, 2, 3), keepdims=True)
    var = jnp.mean((y - mean) ** 2, axis=(0, 2, 3), keepdims=True)
    y = (y - mean) / jnp.sqrt(var + eps)
    y = y * params["gamma"][None, :, None, None] + params["beta"][None, :, None, None]
    return jnp.maximum(y, 0.0)


if __name__ == "__main__":
    key = jax.random.PRNGKey(0)
    kx, kp = jax.random.split(key)
    N, Cin, Cout, H, W = 2, 4, 8, 16, 16

    x = jax.random.normal(kx, (N, Cin, H, W), jnp.float32)
    params = init_params(kp, Cin, Cout)

    out = jax.jit(doble_convolution)(x, params)
    out = jax.block_until_ready(out)

    ref = reference(x, params)
    assert out.shape == ref.shape == (N, Cout, H, W), (out.shape, ref.shape)
    max_err = float(jnp.max(jnp.abs(out - ref)))
    if max_err > 1e-2:
        raise AssertionError(f"kernel/reference mismatch: max abs err = {max_err}")

    print("KERNEL_OK")
</pallas_src>

<mosaic_0001>
module attributes {stable_mosaic.version = 11 : i64} {
  func.func @_doble_conv_kernel(%arg0: memref<2x18x18x8xf32, #tpu.memory_space<vmem>>, %arg1: memref<9x8x8xf32, #tpu.memory_space<vmem>>, %arg2: memref<1x8xf32, #tpu.memory_space<vmem>>, %arg3: memref<9x8x8xf32, #tpu.memory_space<vmem>>, %arg4: memref<1x8xf32, #tpu.memory_space<vmem>>, %arg5: memref<1x8xf32, #tpu.memory_space<vmem>>, %arg6: memref<1x8xf32, #tpu.memory_space<vmem>>, %arg7: memref<2x16x16x8xf32, #tpu.memory_space<vmem>>, %arg8: memref<2x18x18x8xf32, #tpu.memory_space<vmem>>) attributes {dimension_semantics = [], scalar_prefetch = 0 : i64, scratch_operands = 1 : i64, tpu.core_type = #tpu.core_type<tc>} {
    %cst = arith.constant 0.000000e+00 : f32
    %0 = vector.broadcast %cst : f32 to vector<2x1x18x8xf32>
    %c0 = arith.constant 0 : index
    %c0_0 = arith.constant 0 : index
    %c0_1 = arith.constant 0 : index
    %c0_2 = arith.constant 0 : index
    %1 = vector.load %arg8[%c0, %c0_0, %c0_1, %c0_2] : memref<2x18x18x8xf32, #tpu.memory_space<vmem>>, vector<2x1x18x8xf32>
    tpu.vector_store %arg8[%c0, %c0_0, %c0_1, %c0_2], %0 {strides = array<i32>} : memref<2x18x18x8xf32, #tpu.memory_space<vmem>>, vector<2x1x18x8xf32>,
    %cst_3 = arith.constant 0.000000e+00 : f32
    %2 = vector.broadcast %cst_3 : f32 to vector<2x1x18x8xf32>
    %c0_4 = arith.constant 0 : index
    %c17 = arith.constant 17 : index
    %c0_5 = arith.constant 0 : index
    %c0_6 = arith.constant 0 : index
    %3 = vector.load %arg8[%c0_4, %c17, %c0_5, %c0_6] : memref<2x18x18x8xf32, #tpu.memory_space<vmem>>, vector<2x1x18x8xf32>
    tpu.vector_store %arg8[%c0_4, %c17, %c0_5, %c0_6], %2 {strides = array<i32>} : memref<2x18x18x8xf32, #tpu.memory_space<vmem>>, vector<2x1x18x8xf32>,
    %cst_7 = arith.constant 0.000000e+00 : f32
    %4 = vector.broadcast %cst_7 : f32 to vector<2x18x1x8xf32>
    %c0_8 = arith.constant 0 : index
    %c0_9 = arith.constant 0 : index
    %c0_10 = arith.constant 0 : index
    %c0_11 = arith.constant 0 : index
    %5 = vector.load %arg8[%c0_8, %c0_9, %c0_10, %c0_11] : memref<2x18x18x8xf32, #tpu.memory_space<vmem>>, vector<2x18x1x8xf32>
    tpu.vector_store %arg8[%c0_8, %c0_9, %c0_10, %c0_11], %4 {strides = array<i32>} : memref<2x18x18x8xf32, #tpu.memory_space<vmem>>, vector<2x18x1x8xf32>,
    %cst_12 = arith.constant 0.000000e+00 : f32
    %6 = vector.broadcast %cst_12 : f32 to vector<2x18x1x8xf32>
    %c0_13 = arith.constant 0 : index
    %c0_14 = arith.constant 0 : index
    %c17_15 = arith.constant 17 : index
    %c0_16 = arith.constant 0 : index
    %7 = vector.load %arg8[%c0_13, %c0_14, %c17_15, %c0_16] : memref<2x18x18x8xf32, #tpu.memory_space<vmem>>, vector<2x18x1x8xf32>
    tpu.vector_store %arg8[%c0_13, %c0_14, %c17_15, %c0_16], %6 {strides = array<i32>} : memref<2x18x18x8xf32, #tpu.memory_space<vmem>>, vector<2x18x1x8xf32>,
    %cst_17 = arith.constant 0.000000e+00 : f32
    %8 = vector.broadcast %cst_17 : f32 to vector<512x8xf32>
    %c0_18 = arith.constant 0 : index
    %c0_19 = arith.constant 0 : index
    %c0_20 = arith.constant 0 : index
    %c0_21 = arith.constant 0 : index
    %9 = vector.load %arg0[%c0_18, %c0_19, %c0_20, %c0_21] : memref<2x18x18x8xf32, #tpu.memory_space<vmem>>, vector<2x16x16x8xf32>
    %10 = vector.shape_cast %9 : vector<2x16x16x8xf32> to vector<512x8xf32>
    %c0_22 = arith.constant 0 : index
    %c0_23 = arith.constant 0 : index
    %c0_24 = arith.constant 0 : index
    %11 = vector.load %arg1[%c0_22, %c0_23, %c0_24] : memref<9x8x8xf32, #tpu.memory_space<vmem>>, vector<1x8x8xf32>
    %12 = vector.shape_cast %11 : vector<1x8x8xf32> to vector<8x8xf32>
    %cst_25 = arith.constant dense<0.000000e+00> : vector<512x8xf32>
    %13 = tpu.matmul %10, %12, %cst_25 {dimension_numbers = #tpu.dot_dimension_numbers<[1], [0], [0], [1], [0, 0, 1, 1], [], []>} : vector<512x8xf32>, vector<8x8xf32>, vector<512x8xf32> -> vector<512x8xf32>
    %14 = arith.addf %8, %13 : vector<512x8xf32>
    %c0_26 = arith.constant 0 : index
    %c0_27 = arith.constant 0 : index
    %c1 = arith.constant 1 : index
    %c0_28 = arith.constant 0 : index
    %15 = vector.load %arg0[%c0_26, %c0_27, %c1, %c0_28] : memref<2x18x18x8xf32, #tpu.memory_space<vmem>>, vector<2x16x16x8xf32>
    %16 = vector.shape_cast %15 : vector<2x16x16x8xf32> to vector<512x8xf32>
    %c1_29 = arith.constant 1 : index
    %c0_30 = arith.constant 0 : index
    %c0_31 = arith.constant 0 : index
    %17 = vector.load %arg1[%c1_29, %c0_30, %c0_31] : memref<9x8x8xf32, #tpu.memory_space<vmem>>, vector<1x8x8xf32>
    %18 = vector.shape_cast %17 : vector<1x8x8xf32> to vector<8x8xf32>
    %cst_32 = arith.constant dense<0.000000e+00> : vector<512x8xf32>
    %19 = tpu.matmul %16, %18, %cst_32 {dimension_numbers = #tpu.dot_dimension_numbers<[1], [0], [0], [1], [0, 0, 1, 1], [], []>} : vector<512x8xf32>, vector<8x8xf32>, vector<512x8xf32> -> vector<512x8xf32>
    %20 = arith.addf %14, %19 : vector<512x8xf32>
    %c0_33 = arith.constant 0 : index
    %c0_34 = arith.constant 0 : index
    %c2 = arith.constant 2 : index
    %c0_35 = arith.constant 0 : index
    %21 = vector.load %arg0[%c0_33, %c0_34, %c2, %c0_35] : memref<2x18x18x8xf32, #tpu.memory_space<vmem>>, vector<2x16x16x8xf32>
    %22 = vector.shape_cast %21 : vector<2x16x16x8xf32> to vector<512x8xf32>
    %c2_36 = arith.constant 2 : index
    %c0_37 = arith.constant 0 : index
    %c0_38 = arith.constant 0 : index
    %23 = vector.load %arg1[%c2_36, %c0_37, %c0_38] : memref<9x8x8xf32, #tpu.memory_space<vmem>>, vector<1x8x8xf32>
    %24 = vector.shape_cast %23 : vector<1x8x8xf32> to vector<8x8xf32>
    %cst_39 = arith.constant dense<0.000000e+00> : vector<512x8xf32>
    %25 = tpu.matmul %22, %24, %cst_39 {dimension_numbers = #tpu.dot_dimension_numbers<[1], [0], [0], [1], [0, 0, 1, 1], [], []>} : vector<512x8xf32>, vector<8x8xf32>, vector<512x8xf32> -> vector<512x8xf32>
    %26 = arith.addf %20, %25 : vector<512x8xf32>
    %c0_40 = arith.constant 0 : index
    %c1_41 = arith.constant 1 : index
    %c0_42 = arith.constant 0 : index
    %c0_43 = arith.constant 0 : index
    %27 = vector.load %arg0[%c0_40, %c1_41, %c0_42, %c0_43] : memref<2x18x18x8xf32, #tpu.memory_space<vmem>>, vector<2x16x16x8xf32>
    %28 = vector.shape_cast %27 : vector<2x16x16x8xf32> to vector<512x8xf32>
    %c3 = arith.constant 3 : index
    %c0_44 = arith.constant 0 : index
    %c0_45 = arith.constant 0 : index
    %29 = vector.load %arg1[%c3, %c0_44, %c0_45] : memref<9x8x8xf32, #tpu.memory_space<vmem>>, vector<1x8x8xf32>
    %30 = vector.shape_cast %29 : vector<1x8x8xf32> to vector<8x8xf32>
    %cst_46 = arith.constant dense<0.000000e+00> : vector<512x8xf32>
    %31 = tpu.matmul %28, %30, %cst_46 {dimension_numbers = #tpu.dot_dimension_numbers<[1], [0], [0], [1], [0, 0, 1, 1], [], []>} : vector<512x8xf32>, vector<8x8xf32>, vector<512x8xf32> -> vector<512x8xf32>
    %32 = arith.addf %26, %31 : vector<512x8xf32>
    %c0_47 = arith.constant 0 : index
    %c1_48 = arith.constant 1 : index
    %c1_49 = arith.constant 1 : index
    %c0_50 = arith.constant 0 : index
    %33 = vector.load %arg0[%c0_47, %c1_48, %c1_49, %c0_50] : memref<2x18x18x8xf32, #tpu.memory_space<vmem>>, vector<2x16x16x8xf32>
    %34 = vector.shape_cast %33 : vector<2x16x16x8xf32> to vector<512x8xf32>
    %c4 = arith.constant 4 : index
    %c0_51 = arith.constant 0 : index
    %c0_52 = arith.constant 0 : index
    %35 = vector.load %arg1[%c4, %c0_51, %c0_52] : memref<9x8x8xf32, #tpu.memory_space<vmem>>, vector<1x8x8xf32>
    %36 = vector.shape_cast %35 : vector<1x8x8xf32> to vector<8x8xf32>
    %cst_53 = arith.constant dense<0.000000e+00> : vector<512x8xf32>
    %37 = tpu.matmul %34, %36, %cst_53 {dimension_numbers = #tpu.dot_dimension_numbers<[1], [0], [0], [1], [0, 0, 1, 1], [], []>} : vector<512x8xf32>, vector<8x8xf32>, vector<512x8xf32> -> vector<512x8xf32>
    %38 = arith.addf %32, %37 : vector<512x8xf32>
    %c0_54 = arith.constant 0 : index
    %c1_55 = arith.constant 1 : index
    %c2_56 = arith.constant 2 : index
    %c0_57 = arith.constant 0 : index
    %39 = vector.load %arg0[%c0_54, %c1_55, %c2_56, %c0_57] : memref<2x18x18x8xf32, #tpu.memory_space<vmem>>, vector<2x16x16x8xf32>
    %40 = vector.shape_cast %39 : vector<2x16x16x8xf32> to vector<512x8xf32>
    %c5 = arith.constant 5 : index
    %c0_58 = arith.constant 0 : index
    %c0_59 = arith.constant 0 : index
    %41 = vector.load %arg1[%c5, %c0_58, %c0_59] : memref<9x8x8xf32, #tpu.memory_space<vmem>>, vector<1x8x8xf32>
    %42 = vector.shape_cast %41 : vector<1x8x8xf32> to vector<8x8xf32>
    %cst_60 = arith.constant dense<0.000000e+00> : vector<512x8xf32>
    %43 = tpu.matmul %40, %42, %cst_60 {dimension_numbers = #tpu.dot_dimension_numbers<[1], [0], [0], [1], [0, 0, 1, 1], [], []>} : vector<512x8xf32>, vector<8x8xf32>, vector<512x8xf32> -> vector<512x8xf32>
    %44 = arith.addf %38, %43 : vector<512x8xf32>
    %c0_61 = arith.constant 0 : index
    %c2_62 = arith.constant 2 : index
    %c0_63 = arith.constant 0 : index
    %c0_64 = arith.constant 0 : index
    %45 = vector.load %arg0[%c0_61, %c2_62, %c0_63, %c0_64] : memref<2x18x18x8xf32, #tpu.memory_space<vmem>>, vector<2x16x16x8xf32>
    %46 = vector.shape_cast %45 : vector<2x16x16x8xf32> to vector<512x8xf32>
    %c6 = arith.constant 6 : index
    %c0_65 = arith.constant 0 : index
    %c0_66 = arith.constant 0 : index
    %47 = vector.load %arg1[%c6, %c0_65, %c0_66] : memref<9x8x8xf32, #tpu.memory_space<vmem>>, vector<1x8x8xf32>
    %48 = vector.shape_cast %47 : vector<1x8x8xf32> to vector<8x8xf32>
    %cst_67 = arith.constant dense<0.000000e+00> : vector<512x8xf32>
    %49 = tpu.matmul %46, %48, %cst_67 {dimension_numbers = #tpu.dot_dimension_numbers<[1], [0], [0], [1], [0, 0, 1, 1], [], []>} : vector<512x8xf32>, vector<8x8xf32>, vector<512x8xf32> -> vector<512x8xf32>
    %50 = arith.addf %44, %49 : vector<512x8xf32>
    %c0_68 = arith.constant 0 : index
    %c2_69 = arith.constant 2 : index
    %c1_70 = arith.constant 1 : index
    %c0_71 = arith.constant 0 : index
    %51 = vector.load %arg0[%c0_68, %c2_69, %c1_70, %c0_71] : memref<2x18x18x8xf32, #tpu.memory_space<vmem>>, vector<2x16x16x8xf32>
    %52 = vector.shape_cast %51 : vector<2x16x16x8xf32> to vector<512x8xf32>
    %c7 = arith.constant 7 : index
    %c0_72 = arith.constant 0 : index
    %c0_73 = arith.constant 0 : index
    %53 = vector.load %arg1[%c7, %c0_72, %c0_73] : memref<9x8x8xf32, #tpu.memory_space<vmem>>, vector<1x8x8xf32>
    %54 = vector.shape_cast %53 : vector<1x8x8xf32> to vector<8x8xf32>
    %cst_74 = arith.constant dense<0.000000e+00> : vector<512x8xf32>
    %55 = tpu.matmul %52, %54, %cst_74 {dimension_numbers = #tpu.dot_dimension_numbers<[1], [0], [0], [1], [0, 0, 1, 1], [], []>} : vector<512x8xf32>, vector<8x8xf32>, vector<512x8xf32> -> vector<512x8xf32>
    %56 = arith.addf %50, %55 : vector<512x8xf32>
    %c0_75 = arith.constant 0 : index
    %c2_76 = arith.constant 2 : index
    %c2_77 = arith.constant 2 : index
    %c0_78 = arith.constant 0 : index
    %57 = vector.load %arg0[%c0_75, %c2_76, %c2_77, %c0_78] : memref<2x18x18x8xf32, #tpu.memory_space<vmem>>, vector<2x16x16x8xf32>
    %58 = vector.shape_cast %57 : vector<2x16x16x8xf32> to vector<512x8xf32>
    %c8 = arith.constant 8 : index
    %c0_79 = arith.constant 0 : index
    %c0_80 = arith.constant 0 : index
    %59 = vector.load %arg1[%c8, %c0_79, %c0_80] : memref<9x8x8xf32, #tpu.memory_space<vmem>>, vector<1x8x8xf32>
    %60 = vector.shape_cast %59 : vector<1x8x8xf32> to vector<8x8xf32>
    %cst_81 = arith.constant dense<0.000000e+00> : vector<512x8xf32>
    %61 = tpu.matmul %58, %60, %cst_81 {dimension_numbers = #tpu.dot_dimension_numbers<[1], [0], [0], [1], [0, 0, 1, 1], [], []>} : vector<512x8xf32>, vector<8x8xf32>, vector<512x8xf32> -> vector<512x8xf32>
    %62 = arith.addf %56, %61 : vector<512x8xf32>
    %c0_82 = arith.constant 0 : index
    %c0_83 = arith.constant 0 : index
    %63 = vector.load %arg2[%c0_82, %c0_83] : memref<1x8xf32, #tpu.memory_space<vmem>>, vector<1x8xf32>
    %64 = vector.broadcast %63 : vector<1x8xf32> to vector<512x8xf32>
    %65 = arith.addf %62, %64 : vector<512x8xf32>
    %66 = vector.shape_cast %65 : vector<512x8xf32> to vector<2x16x16x8xf32>
    %c0_84 = arith.constant 0 : index
    %c1_85 = arith.constant 1 : index
    %c1_86 = arith.constant 1 : index
    %c0_87 = arith.constant 0 : index
    %67 = vector.load %arg8[%c0_84, %c1_85, %c1_86, %c0_87] : memref<2x18x18x8xf32, #tpu.memory_space<vmem>>, vector<2x16x16x8xf32>
    tpu.vector_store %arg8[%c0_84, %c1_85, %c1_86, %c0_87], %66 {strides = array<i32>} : memref<2x18x18x8xf32, #tpu.memory_space<vmem>>, vector<2x16x16x8xf32>,
    %cst_88 = arith.constant 0.000000e+00 : f32
    %68 = vector.broadcast %cst_88 : f32 to vector<512x8xf32>
    %c0_89 = arith.constant 0 : index
    %c0_90 = arith.constant 0 : index
    %c0_91 = arith.constant 0 : index
    %c0_92 = arith.constant 0 : index
    %69 = vector.load %arg8[%c0_89, %c0_90, %c0_91, %c0_92] : memref<2x18x18x8xf32, #tpu.memory_space<vmem>>, vector<2x16x16x8xf32>
    %70 = vector.shape_cast %69 : vector<2x16x16x8xf32> to vector<512x8xf32>
    %c0_93 = arith.constant 0 : index
    %c0_94 = arith.constant 0 : index
    %c0_95 = arith.constant 0 : index
    %71 = vector.load %arg3[%c0_93, %c0_94, %c0_95] : memref<9x8x8xf32, #tpu.memory_space<vmem>>, vector<1x8x8xf32>
    %72 = vector.shape_cast %71 : vector<1x8x8xf32> to vector<8x8xf32>
    %cst_96 = arith.constant dense<0.000000e+00> : vector<512x8xf32>
    %73 = tpu.matmul %70, %72, %cst_96 {dimension_numbers = #tpu.dot_dimension_numbers<[1], [0], [0], [1], [0, 0, 1, 1], [], []>} : vector<512x8xf32>, vector<8x8xf32>, vector<512x8xf32> -> vector<512x8xf32>
    %74 = arith.addf %68, %73 : vector<512x8xf32>
    %c0_97 = arith.constant 0 : index
    %c0_98 = arith.constant 0 : index
    %c1_99 = arith.constant 1 : index
    %c0_100 = arith.constant 0 : index
    %75 = vector.load %arg8[%c0_97, %c0_98, %c1_99, %c0_100] : memref<2x18x18x8xf32, #tpu.memory_space<vmem>>, vector<2x16x16x8xf32>
    %76 = vector.shape_cast %75 : vector<2x16x16x8xf32> to vector<512x8xf32>
    %c1_101 = arith.constant 1 : index
    %c0_102 = arith.constant 0 : index
    %c0_103 = arith.constant 0 : index
    %77 = vector.load %arg3[%c1_101, %c0_102, %c0_103] : memref<9x8x8xf32, #tpu.memory_space<vmem>>, vector<1x8x8xf32>
    %78 = vector.shape_cast %77 : vector<1x8x8xf32> to vector<8x8xf32>
    %cst_104 = arith.constant dense<0.000000e+00> : vector<512x8xf32>
    %79 = tpu.matmul %76, %78, %cst_104 {dimension_numbers = #tpu.dot_dimension_numbers<[1], [0], [0], [1], [0, 0, 1, 1], [], []>} : vector<512x8xf32>, vector<8x8xf32>, vector<512x8xf32> -> vector<512x8xf32>
    %80 = arith.addf %74, %79 : vector<512x8xf32>
    %c0_105 = arith.constant 0 : index
    %c0_106 = arith.constant 0 : index
    %c2_107 = arith.constant 2 : index
    %c0_108 = arith.constant 0 : index
    %81 = vector.load %arg8[%c0_105, %c0_106, %c2_107, %c0_108] : memref<2x18x18x8xf32, #tpu.memory_space<vmem>>, vector<2x16x16x8xf32>
    %82 = vector.shape_cast %81 : vector<2x16x16x8xf32> to vector<512x8xf32>
    %c2_109 = arith.constant 2 : index
    %c0_110 = arith.constant 0 : index
    %c0_111 = arith.constant 0 : index
    %83 = vector.load %arg3[%c2_109, %c0_110, %c0_111] : memref<9x8x8xf32, #tpu.memory_space<vmem>>, vector<1x8x8xf32>
    %84 = vector.shape_cast %83 : vector<1x8x8xf32> to vector<8x8xf32>
    %cst_112 = arith.constant dense<0.000000e+00> : vector<512x8xf32>
    %85 = tpu.matmul %82, %84, %cst_112 {dimension_numbers = #tpu.dot_dimension_numbers<[1], [0], [0], [1], [0, 0, 1, 1], [], []>} : vector<512x8xf32>, vector<8x8xf32>, vector<512x8xf32> -> vector<512x8xf32>
    %86 = arith.addf %80, %85 : vector<512x8xf32>
    %c0_113 = arith.constant 0 : index
    %c1_114 = arith.constant 1 : index
    %c0_115 = arith.constant 0 : index
    %c0_116 = arith.constant 0 : index
    %87 = vector.load %arg8[%c0_113, %c1_114, %c0_115, %c0_116] : memref<2x18x18x8xf32, #tpu.memory_space<vmem>>, vector<2x16x16x8xf32>
    %88 = vector.shape_cast %87 : vector<2x16x16x8xf32> to vector<512x8xf32>
    %c3_117 = arith.constant 3 : index
    %c0_118 = arith.constant 0 : index
    %c0_119 = arith.constant 0 : index
    %89 = vector.load %arg3[%c3_117, %c0_118, %c0_119] : memref<9x8x8xf32, #tpu.memory_space<vmem>>, vector<1x8x8xf32>
    %90 = vector.shape_cast %89 : vector<1x8x8xf32> to vector<8x8xf32>
    %cst_120 = arith.constant dense<0.000000e+00> : vector<512x8xf32>
    %91 = tpu.matmul %88, %90, %cst_120 {dimension_numbers = #tpu.dot_dimension_numbers<[1], [0], [0], [1], [0, 0, 1, 1], [], []>} : vector<512x8xf32>, vector<8x8xf32>, vector<512x8xf32> -> vector<512x8xf32>
    %92 = arith.addf %86, %91 : vector<512x8xf32>
    %c0_121 = arith.constant 0 : index
    %c1_122 = arith.constant 1 : index
    %c1_123 = arith.constant 1 : index
    %c0_124 = arith.constant 0 : index
    %93 = vector.load %arg8[%c0_121, %c1_122, %c1_123, %c0_124] : memref<2x18x18x8xf32, #tpu.memory_space<vmem>>, vector<2x16x16x8xf32>
    %94 = vector.shape_cast %93 : vector<2x16x16x8xf32> to vector<512x8xf32>
    %c4_125 = arith.constant 4 : index
    %c0_126 = arith.constant 0 : index
    %c0_127 = arith.constant 0 : index
    %95 = vector.load %arg3[%c4_125, %c0_126, %c0_127] : memref<9x8x8xf32, #tpu.memory_space<vmem>>, vector<1x8x8xf32>
    %96 = vector.shape_cast %95 : vector<1x8x8xf32> to vector<8x8xf32>
    %cst_128 = arith.constant dense<0.000000e+00> : vector<512x8xf32>
    %97 = tpu.matmul %94, %96, %cst_128 {dimension_numbers = #tpu.dot_dimension_numbers<[1], [0], [0], [1], [0, 0, 1, 1], [], []>} : vector<512x8xf32>, vector<8x8xf32>, vector<512x8xf32> -> vector<512x8xf32>
    %98 = arith.addf %92, %97 : vector<512x8xf32>
    %c0_129 = arith.constant 0 : index
    %c1_130 = arith.constant 1 : index
    %c2_131 = arith.constant 2 : index
    %c0_132 = arith.constant 0 : index
    %99 = vector.load %arg8[%c0_129, %c1_130, %c2_131, %c0_132] : memref<2x18x18x8xf32, #tpu.memory_space<vmem>>, vector<2x16x16x8xf32>
    %100 = vector.shape_cast %99 : vector<2x16x16x8xf32> to vector<512x8xf32>
    %c5_133 = arith.constant 5 : index
    %c0_134 = arith.constant 0 : index
    %c0_135 = arith.constant 0 : index
    %101 = vector.load %arg3[%c5_133, %c0_134, %c0_135] : memref<9x8x8xf32, #tpu.memory_space<vmem>>, vector<1x8x8xf32>
    %102 = vector.shape_cast %101 : vector<1x8x8xf32> to vector<8x8xf32>
    %cst_136 = arith.constant dense<0.000000e+00> : vector<512x8xf32>
    %103 = tpu.matmul %100, %102, %cst_136 {dimension_numbers = #tpu.dot_dimension_numbers<[1], [0], [0], [1], [0, 0, 1, 1], [], []>} : vector<512x8xf32>, vector<8x8xf32>, vector<512x8xf32> -> vector<512x8xf32>
    %104 = arith.addf %98, %103 : vector<512x8xf32>
    %c0_137 = arith.constant 0 : index
    %c2_138 = arith.constant 2 : index
    %c0_139 = arith.constant 0 : index
    %c0_140 = arith.constant 0 : index
    %105 = vector.load %arg8[%c0_137, %c2_138, %c0_139, %c0_140] : memref<2x18x18x8xf32, #tpu.memory_space<vmem>>, vector<2x16x16x8xf32>
    %106 = vector.shape_cast %105 : vector<2x16x16x8xf32> to vector<512x8xf32>
    %c6_141 = arith.constant 6 : index
    %c0_142 = arith.constant 0 : index
    %c0_143 = arith.constant 0 : index
    %107 = vector.load %arg3[%c6_141, %c0_142, %c0_143] : memref<9x8x8xf32, #tpu.memory_space<vmem>>, vector<1x8x8xf32>
    %108 = vector.shape_cast %107 : vector<1x8x8xf32> to vector<8x8xf32>
    %cst_144 = arith.constant dense<0.000000e+00> : vector<512x8xf32>
    %109 = tpu.matmul %106, %108, %cst_144 {dimension_numbers = #tpu.dot_dimension_numbers<[1], [0], [0], [1], [0, 0, 1, 1], [], []>} : vector<512x8xf32>, vector<8x8xf32>, vector<512x8xf32> -> vector<512x8xf32>
    %110 = arith.addf %104, %109 : vector<512x8xf32>
    %c0_145 = arith.constant 0 : index
    %c2_146 = arith.constant 2 : index
    %c1_147 = arith.constant 1 : index
    %c0_148 = arith.constant 0 : index
    %111 = vector.load %arg8[%c0_145, %c2_146, %c1_147, %c0_148] : memref<2x18x18x8xf32, #tpu.memory_space<vmem>>, vector<2x16x16x8xf32>
    %112 = vector.shape_cast %111 : vector<2x16x16x8xf32> to vector<512x8xf32>
    %c7_149 = arith.constant 7 : index
    %c0_150 = arith.constant 0 : index
    %c0_151 = arith.constant 0 : index
    %113 = vector.load %arg3[%c7_149, %c0_150, %c0_151] : memref<9x8x8xf32, #tpu.memory_space<vmem>>, vector<1x8x8xf32>
    %114 = vector.shape_cast %113 : vector<1x8x8xf32> to vector<8x8xf32>
    %cst_152 = arith.constant dense<0.000000e+00> : vector<512x8xf32>
    %115 = tpu.matmul %112, %114, %cst_152 {dimension_numbers = #tpu.dot_dimension_numbers<[1], [0], [0], [1], [0, 0, 1, 1], [], []>} : vector<512x8xf32>, vector<8x8xf32>, vector<512x8xf32> -> vector<512x8xf32>
    %116 = arith.addf %110, %115 : vector<512x8xf32>
    %c0_153 = arith.constant 0 : index
    %c2_154 = arith.constant 2 : index
    %c2_155 = arith.constant 2 : index
    %c0_156 = arith.constant 0 : index
    %117 = vector.load %arg8[%c0_153, %c2_154, %c2_155, %c0_156] : memref<2x18x18x8xf32, #tpu.memory_space<vmem>>, vector<2x16x16x8xf32>
    %118 = vector.shape_cast %117 : vector<2x16x16x8xf32> to vector<512x8xf32>
    %c8_157 = arith.constant 8 : index
    %c0_158 = arith.constant 0 : index
    %c0_159 = arith.constant 0 : index
    %119 = vector.load %arg3[%c8_157, %c0_158, %c0_159] : memref<9x8x8xf32, #tpu.memory_space<vmem>>, vector<1x8x8xf32>
    %120 = vector.shape_cast %119 : vector<1x8x8xf32> to vector<8x8xf32>
    %cst_160 = arith.constant dense<0.000000e+00> : vector<512x8xf32>
    %121 = tpu.matmul %118, %120, %cst_160 {dimension_numbers = #tpu.dot_dimension_numbers<[1], [0], [0], [1], [0, 0, 1, 1], [], []>} : vector<512x8xf32>, vector<8x8xf32>, vector<512x8xf32> -> vector<512x8xf32>
    %122 = arith.addf %116, %121 : vector<512x8xf32>
    %c0_161 = arith.constant 0 : index
    %c0_162 = arith.constant 0 : index
    %123 = vector.load %arg4[%c0_161, %c0_162] : memref<1x8xf32, #tpu.memory_space<vmem>>, vector<1x8xf32>
    %124 = vector.broadcast %123 : vector<1x8xf32> to vector<512x8xf32>
    %125 = arith.addf %122, %124 : vector<512x8xf32>
    %cst_163 = arith.constant dense<0.000000e+00> : vector<8xf32>
    %126 = vector.multi_reduction <add>, %125, %cst_163 [0] : vector<512x8xf32> to vector<8xf32>
    %127 = vector.shape_cast %126 : vector<8xf32> to vector<1x8xf32>
    %cst_164 = arith.constant 0.001953125 : f32
    %128 = vector.broadcast %cst_164 : f32 to vector<1x8xf32>
    %129 = arith.mulf %127, %128 : vector<1x8xf32>
    %130 = arith.mulf %125, %125 : vector<512x8xf32>
    %cst_165 = arith.constant dense<0.000000e+00> : vector<8xf32>
    %131 = vector.multi_reduction <add>, %130, %cst_165 [0] : vector<512x8xf32> to vector<8xf32>
    %132 = vector.shape_cast %131 : vector<8xf32> to vector<1x8xf32>
    %cst_166 = arith.constant 0.001953125 : f32
    %133 = vector.broadcast %cst_166 : f32 to vector<1x8xf32>
    %134 = arith.mulf %132, %133 : vector<1x8xf32>
    %135 = arith.mulf %129, %129 : vector<1x8xf32>
    %136 = arith.subf %134, %135 : vector<1x8xf32>
    %cst_167 = arith.constant 0.000000e+00 : f32
    %137 = vector.broadcast %cst_167 : f32 to vector<1x8xf32>
    %138 = arith.maximumf %136, %137 : vector<1x8xf32>
    %cst_168 = arith.constant 9.99999974E-6 : f32
    %139 = vector.broadcast %cst_168 : f32 to vector<1x8xf32>
    %140 = arith.addf %138, %139 : vector<1x8xf32>
    %141 = math.rsqrt %140 : vector<1x8xf32>
    %c0_169 = arith.constant 0 : index
    %c0_170 = arith.constant 0 : index
    %142 = vector.load %arg5[%c0_169, %c0_170] : memref<1x8xf32, #tpu.memory_space<vmem>>, vector<1x8xf32>
    %143 = arith.mulf %141, %142 : vector<1x8xf32>
    %c0_171 = arith.constant 0 : index
    %c0_172 = arith.constant 0 : index
    %144 = vector.load %arg6[%c0_171, %c0_172] : memref<1x8xf32, #tpu.memory_space<vmem>>, vector<1x8xf32>
    %145 = arith.mulf %129, %143 : vector<1x8xf32>
    %146 = arith.subf %144, %145 : vector<1x8xf32>
    %147 = vector.broadcast %143 : vector<1x8xf32> to vector<512x8xf32>
    %148 = arith.mulf %125, %147 : vector<512x8xf32>
    %149 = vector.broadcast %146 : vector<1x8xf32> to vector<512x8xf32>
    %150 = arith.addf %148, %149 : vector<512x8xf32>
    %cst_173 = arith.constant 0.000000e+00 : f32
    %151 = vector.broadcast %cst_173 : f32 to vector<512x8xf32>
    %152 = arith.maximumf %150, %151 : vector<512x8xf32>
    %153 = vector.shape_cast %152 : vector<512x8xf32> to vector<2x16x16x8xf32>
    %c0_174 = arith.constant 0 : index
    %c0_175 = arith.constant 0 : index
    %c0_176 = arith.constant 0 : index
    %c0_177 = arith.constant 0 : index
    %154 = vector.load %arg7[%c0_174, %c0_175, %c0_176, %c0_177] : memref<2x16x16x8xf32, #tpu.memory_space<vmem>>, vector<2x16x16x8xf32>
    tpu.vector_store %arg7[%c0_174, %c0_175, %c0_176, %c0_177], %153 {strides = array<i32>} : memref<2x16x16x8xf32, #tpu.memory_space<vmem>>, vector<2x16x16x8xf32>,
    return
  }
}

</mosaic_0001>

<bundles_post_ra>
// kernel: doble_convolution.1
= control target key start
LH: loop header
LB: loop body
LE: loop exit
PB: predicated region body
PF: predicated region fallthrough
CT: control target
= control target key end

     0   :  { %vm26_vm0 = vcmask 64512   ;;  %vm41_vm1 = vcmask 57344   ;;  %vm29_vm2 = vcmask 58368   ;;  %s25371_s1 = inlined_call_operand.vmem [shape: f32[9,8,8], index: 1, kind: input, shape index: {}]   ;;  %s25372_s0 = inlined_call_operand.vmem [shape: f32[2,18,18,8], index: 0, kind: input, shape index: {}]   ;;  %s25373_s3 = inlined_call_operand.vmem [shape: f32[9,8,8], index: 3, kind: input, shape index: {}]   ;;  %s25374_s2 = inlined_call_operand.vmem [shape: f32[1,8], index: 2, kind: input, shape index: {}]   ;;  %s25375_s4 = inlined_call_operand.vmem [shape: f32[1,8], index: 4, kind: input, shape index: {}]   ;;  %s25376_s5 = inlined_call_operand.vmem [shape: f32[1,8], index: 5, kind: input, shape index: {}]   ;;  %s25377_s6 = inlined_call_operand.vmem [shape: f32[1,8], index: 6, kind: input, shape index: {}]   ;;  %s25378_s7 = inlined_call_operand.vmem [shape: f32[2,16,16,8], index: 7, kind: output, shape index: {}]  }
   0x1   :  { %v13404_v0 = vld [vmem:[%s25371_s1 + $0x8] sm:$0xff]  ;;  %v178_v1 = vld [vmem:[%s25371_s1] sm:$0xff]  ;;  %v13533_v6 = vld [vmem:[%s25371_s1 + $0x10] sm:$0xff] }
   0x2   :  { %v179_v2 = vld [vmem:[%s25372_s0 + $0x1] sm:$0xff]  ;;  %16128 = vmatprep.subr.mxu0 %v13404_v0  ;;  %16226 = vmatprep.subr.mxu1 %v178_v1  ;;  %v180_v4 = vld [vmem:[%s25372_s0 + $0x9] sm:$0xff]  ;;  %v181_v7 = vld [vmem:[%s25372_s0 + $0x19] sm:$0xff] }
   0x3   :  { %v114_v3 = vld [vmem:[%s25372_s0] sm:$0xff]  ;;  %v115_v5 = vld [vmem:[%s25372_s0 + $0x8] sm:$0xff]  ;;  %16129 = vmatpush3.msra.mxu0 %v13404_v0  ;;  %16130 = vmatprep.mubr.msk.f32.mxu0 %vm26_vm0, %v179_v2  ;;  %v17984_v8 = vld [vmem:[%s25372_s0 + $0x18] sm:$0xff] }
   0x4   :  { %16227 = vmatpush3.msra.mxu1 %v178_v1  ;;  %16228 = vmatprep.mubr.msk.f32.mxu1 %vm26_vm0, %v114_v3  ;;  %v182_v9 = vld [vmem:[%s25372_s0 + $0x21] sm:$0xff]  ;;  %v183_v11 = vld [vmem:[%s25372_s0 + $0x31] sm:$0xff]  ;;  %v184_v13 = vld [vmem:[%s25372_s0 + $0x39] sm:$0xff] }
   0x5   :  { %16131 = vmatmul.mubr.msk.f32.vlgmr.msra.gmra.mxu0 %vm26_vm0, %v180_v4  ;;  %16229 = vmatmul.mubr.msk.f32.vlgmr.msra.gmra.mxu1 %vm26_vm0, %v115_v5  ;;  %v17995_v10 = vld [vmem:[%s25372_s0 + $0x20] sm:$0xff]  ;;  %v18005_v12 = vld [vmem:[%s25372_s0 + $0x30] sm:$0xff]  ;;  %v18019_v14 = vld [vmem:[%s25372_s0 + $0x38] sm:$0xff] }
   0x6   :  { %16324 = vmatprep.subr.mxu0 %v13533_v6  ;;  %16133 = vmatprep.mubr.msk.f32.mxu0 %vm26_vm0, %v181_v7  ;;  %v185_v15 = vld [vmem:[%s25372_s0 + $0x49] sm:$0xff]  ;;  %v186_v17 = vld [vmem:[%s25372_s0 + $0x51] sm:$0xff]  ;;  %v187_v19 = vld [vmem:[%s25372_s0 + $0x61] sm:$0xff] }
   0x7   :  { %16325 = vmatpush3.msra.mxu0 %v13533_v6  ;;  %16231 = vmatprep.mubr.msk.f32.mxu1 %vm26_vm0, %v17984_v8  ;;  %v18027_v16 = vld [vmem:[%s25372_s0 + $0x48] sm:$0xff]  ;;  %v18041_v18 = vld [vmem:[%s25372_s0 + $0x50] sm:$0xff]  ;;  %v18049_v20 = vld [vmem:[%s25372_s0 + $0x60] sm:$0xff] }
   0x8   :  { %v188_v21 = vld [vmem:[%s25372_s0 + $0x69] sm:$0xff]  ;;  %v189_v23 = vld [vmem:[%s25372_s0 + $0x79] sm:$0xff]  ;;  %v190_v25 = vld [vmem:[%s25372_s0 + $0x81] sm:$0xff] }
   0x9   :  { %16134 = vmatmul.mubr.msk.f32.gmra.mxu0 %vm26_vm0, %v182_v9  ;;  %16232 = vmatmul.mubr.msk.f32.gmra.mxu1 %vm26_vm0, %v17995_v10  ;;  %v18063_v22 = vld [vmem:[%s25372_s0 + $0x68] sm:$0xff]  ;;  %v18071_v24 = vld [vmem:[%s25372_s0 + $0x78] sm:$0xff]  ;;  %v18085_v26 = vld [vmem:[%s25372_s0 + $0x80] sm:$0xff] }
   0xa   :  { %16136 = vmatprep.mubr.msk.f32.mxu0 %vm26_vm0, %v183_v11  ;;  %16234 = vmatprep.mubr.msk.f32.mxu1 %vm26_vm0, %v18005_v12  ;;  %v191_v27 = vld [vmem:[%s25372_s0 + $0x91] sm:$0xff]  ;;  %v192_v29 = vld [vmem:[%s25372_s0 + $0x99] sm:$0xff]  ;;  %v193_v31 = vld [vmem:[%s25372_s0 + $0xa9] sm:$0xff] }
   0xb   :  { %v18093_v28 = vld [vmem:[%s25372_s0 + $0x90] sm:$0xff]  ;;  %v18107_v30 = vld [vmem:[%s25372_s0 + $0x98] sm:$0xff]  ;;  %v18115_v32 = vld [vmem:[%s25372_s0 + $0xa8] sm:$0xff] }
   0xc   :  { %v194_v33 = vld [vmem:[%s25372_s0 + $0xb1] sm:$0xff]  ;;  %v195_v35 = vld [vmem:[%s25372_s0 + $0xc1] sm:$0xff]  ;;  %v196_v37 = vld [vmem:[%s25372_s0 + $0xc9] sm:$0xff] }
   0xd   :  { %16137 = vmatmul.mubr.msk.f32.gmra.mxu0 %vm26_vm0, %v184_v13  ;;  %16235 = vmatmul.mubr.msk.f32.gmra.mxu1 %vm26_vm0, %v18019_v14  ;;  %v18129_v34 = vld [vmem:[%s25372_s0 + $0xb0] sm:$0xff]  ;;  %v18137_v36 = vld [vmem:[%s25372_s0 + $0xc0] sm:$0xff]  ;;  %v18151_v38 = vld [vmem:[%s25372_s0 + $0xc8] sm:$0xff] }
   0xe   :  { %16139 = vmatprep.mubr.msk.f32.mxu0 %vm26_vm0, %v185_v15  ;;  %16237 = vmatprep.mubr.msk.f32.mxu1 %vm26_vm0, %v18027_v16  ;;  %v197_v39 = vld [vmem:[%s25372_s0 + $0xd9] sm:$0xff]  ;;  %v198_v41 = vld [vmem:[%s25372_s0 + $0xe1] sm:$0xff]  ;;  %v199_v43 = vld [vmem:[%s25372_s0 + $0xf1] sm:$0xff] }
   0xf   :  { %v18159_v40 = vld [vmem:[%s25372_s0 + $0xd8] sm:$0xff]  ;;  %v18173_v42 = vld [vmem:[%s25372_s0 + $0xe0] sm:$0xff]  ;;  %v18181_v44 = vld [vmem:[%s25372_s0 + $0xf0] sm:$0xff] }
  0x10   :  { %v200_v45 = vld [vmem:[%s25372_s0 + $0xf9] sm:$0xff]  ;;  %v201_v47 = vld [vmem:[%s25372_s0 + $0x109] sm:$0xff]  ;;  %v202_v51 = vld [vmem:[%s25372_s0 + $0x111] sm:$0xff] }
  0x11   :  { %16140 = vmatmul.mubr.msk.f32.gmra.mxu0 %vm26_vm0, %v186_v17  ;;  %16238 = vmatmul.mubr.msk.f32.gmra.mxu1 %vm26_vm0, %v18041_v18  ;;  %v18195_v46 = vld [vmem:[%s25372_s0 + $0xf8] sm:$0xff]  ;;  %v18203_v48 = vld [vmem:[%s25372_s0 + $0x108] sm:$0xff]  ;;  %v18214_v50 = vld [vmem:[%s25371_s1 + $0x20] sm:$0xff] }
  0x12   :  { %16142 = vmatprep.mubr.msk.f32.mxu0 %vm26_vm0, %v187_v19  ;;  %16240 = vmatprep.mubr.msk.f32.mxu1 %vm26_vm0, %v18049_v20  ;;  %v13662_v49 = vld [vmem:[%s25371_s1 + $0x18] sm:$0xff]  ;;  %v18225_v52 = vld [vmem:[%s25372_s0 + $0x110] sm:$0xff]  ;;  %v203_v53 = vld [vmem:[%s25372_s0 + $0x121] sm:$0xff] }
  0x13   :  { %v18233_v54 = vld [vmem:[%s25372_s0 + $0x120] sm:$0xff]  ;;  %16422 = vmatprep.subr.mxu1 %v13662_v49  ;;  %16520 = vmatprep.subr.mxu0 %v18214_v50  ;;  %v204_v55 = vld [vmem:[%s25372_s0 + $0x129] sm:$0xff]  ;;  %v18256_v58 = vld [vmem:[%s25372_s0 + $0x138] sm:$0xff] }
  0x14   :  { %16423 = vmatpush3.msra.mxu1 %v13662_v49  ;;  %v18248_v56 = vld [vmem:[%s25372_s0 + $0x128] sm:$0xff]  ;;  %v205_v57 = vld [vmem:[%s25372_s0 + $0x139] sm:$0xff]  ;;  %v207_v61 = vld [vmem:[%s25372_s0 + $0x151] sm:$0xff] }
  0x15   :  { %16143 = vmatmul.mubr.msk.f32.gmra.mxu0 %vm26_vm0, %v188_v21  ;;  %16241 = vmatmul.mubr.msk.f32.gmra.mxu1 %vm26_vm0, %v18063_v22  ;;  %v206_v59 = vld [vmem:[%s25372_s0 + $0x141] sm:$0xff]  ;;  %v18278_v62 = vld [vmem:[%s25372_s0 + $0x150] sm:$0xff]  ;;  %v208_v63 = vld [vmem:[%s25372_s0 + $0x159] sm:$0xff] }
  0x16   :  { %16145 = vmatprep.mubr.msk.f32.mxu0 %vm26_vm0, %v189_v23  ;;  %16243 = vmatprep.mubr.msk.f32.mxu1 %vm26_vm0, %v18071_v24  ;;  %v18270_v60 = vld [vmem:[%s25372_s0 + $0x140] sm:$0xff]  ;;  %v18292_v0 = vld [vmem:[%s25372_s0 + $0x158] sm:$0xff]  ;;  %v209_v1 = vld [vmem:[%s25372_s0 + $0x169] sm:$0xff] }
  0x17   :  { %v18300_v2 = vld [vmem:[%s25372_s0 + $0x168] sm:$0xff]  ;;  %v210_v3 = vld [vmem:[%s25372_s0 + $0x171] sm:$0xff]  ;;  %v212_v7 = vld [vmem:[%s25372_s0 + $0x1b9] sm:$0xff] }
  0x18   :  { %v18314_v4 = vld [vmem:[%s25372_s0 + $0x170] sm:$0xff]  ;;  %v147_v9 = vld [vmem:[%s25372_s0 + $0x1b8] sm:$0xff]  ;;  %v18339_v13 = vld [vmem:[%s25372_s0 + $0x1c8] sm:$0xff] }
  0x19   :  { %16146 = vmatmul.mubr.msk.f32.gmra.mxu0 %vm26_vm0, %v190_v25  ;;  %16244 = vmatmul.mubr.msk.f32.gmra.mxu1 %vm26_vm0, %v18085_v26  ;;  %v211_v5 = vld [vmem:[%s25372_s0 + $0x1b1] sm:$0xff]  ;;  %v213_v11 = vld [vmem:[%s25372_s0 + $0x1c9] sm:$0xff]  ;;  %v215_v19 = vld [vmem:[%s25372_s0 + $0x1e1] sm:$0xff] }
  0x1a   :  { %16148 = vmatprep.mubr.msk.f32.mxu0 %vm26_vm0, %v191_v27  ;;  %16246 = vmatprep.mubr.msk.f32.mxu1 %vm26_vm0, %v18093_v28  ;;  %v146_v6 = vld [vmem:[%s25372_s0 + $0x1b0] sm:$0xff]  ;;  %v18360_v21 = vld [vmem:[%s25372_s0 + $0x1e0] sm:$0xff]  ;;  %v18374_v25 = vld [vmem:[%s25372_s0 + $0x1e8] sm:$0xff] }
  0x1b   :  { %v214_v15 = vld [vmem:[%s25372_s0 + $0x1d1] sm:$0xff]  ;;  %v216_v23 = vld [vmem:[%s25372_s0 + $0x1e9] sm:$0xff]  ;;  %v217_v27 = vld [vmem:[%s25372_s0 + $0x1f9] sm:$0xff] }
  0x1c   :  { %v18352_v17 = vld [vmem:[%s25372_s0 + $0x1d0] sm:$0xff] }
  0x1d   :  { %16149 = vmatmul.mubr.msk.f32.gmra.mxu0 %vm26_vm0, %v192_v29  ;;  %16247 = vmatmul.mubr.msk.f32.gmra.mxu1 %vm26_vm0, %v18107_v30  ;;  %v18382_v29 = vld [vmem:[%s25372_s0 + $0x1f8] sm:$0xff]  ;;  %v18440_v49 = vld [vmem:[%s25372_s0 + $0x230] sm:$0xff] }
  0x1e   :  { %16151 = vmatprep.mubr.msk.f32.mxu0 %vm26_vm0, %v193_v31  ;;  %16249 = vmatprep.mubr.msk.f32.mxu1 %vm26_vm0, %v18115_v32  ;;  %v218_v31 = vld [vmem:[%s25372_s0 + $0x201] sm:$0xff] }
  0x21   :  { %16152 = vmatmul.mubr.msk.f32.gmra.mxu0 %vm26_vm0, %v194_v33  ;;  %16250 = vmatmul.mubr.msk.f32.gmra.mxu1 %vm26_vm0, %v18129_v34  ;;  %v18396_v33 = vld [vmem:[%s25372_s0 + $0x200] sm:$0xff] }
  0x22   :  { %16154 = vmatprep.mubr.msk.f32.mxu0 %vm26_vm0, %v195_v35  ;;  %16252 = vmatprep.mubr.msk.f32.mxu1 %vm26_vm0, %v18137_v36  ;;  %v219_v35 = vld [vmem:[%s25372_s0 + $0x211] sm:$0xff] }
  0x25   :  { %16155 = vmatmul.mubr.msk.f32.gmra.mxu0 %vm26_vm0, %v196_v37  ;;  %16253 = vmatmul.mubr.msk.f32.gmra.mxu1 %vm26_vm0, %v18151_v38  ;;  %v18404_v37 = vld [vmem:[%s25372_s0 + $0x210] sm:$0xff] }
  0x26   :  { %16157 = vmatprep.mubr.msk.f32.mxu0 %vm26_vm0, %v197_v39  ;;  %16255 = vmatprep.mubr.msk.f32.mxu1 %vm26_vm0, %v18159_v40  ;;  %v220_v39 = vld [vmem:[%s25372_s0 + $0x219] sm:$0xff] }
  0x29   :  { %16158 = vmatmul.mubr.msk.f32.gmra.mxu0 %vm26_vm0, %v198_v41  ;;  %16256 = vmatmul.mubr.msk.f32.gmra.mxu1 %vm26_vm0, %v18173_v42  ;;  %v18418_v41 = vld [vmem:[%s25372_s0 + $0x218] sm:$0xff] }
  0x2a   :  { %16160 = vmatprep.mubr.msk.f32.mxu0 %vm26_vm0, %v199_v43  ;;  %16258 = vmatprep.mubr.msk.f32.mxu1 %vm26_vm0, %v18181_v44  ;;  %v221_v43 = vld [vmem:[%s25372_s0 + $0x229] sm:$0xff] }
  0x2d   :  { %16161 = vmatmul.mubr.msk.f32.gmra.mxu0 %vm26_vm0, %v200_v45  ;;  %16259 = vmatmul.mubr.msk.f32.gmra.mxu1 %vm26_vm0, %v18195_v46  ;;  %v18426_v45 = vld [vmem:[%s25372_s0 + $0x228] sm:$0xff] }
  0x2e   :  { %16163 = vmatprep.mubr.msk.f32.mxu0 %vm26_vm0, %v201_v47  ;;  %16261 = vmatprep.mubr.msk.f32.mxu1 %vm26_vm0, %v18203_v48  ;;  %v222_v47 = vld [vmem:[%s25372_s0 + $0x231] sm:$0xff] }
  0x31   :  { %16164 = vmatmul.mubr.msk.f32.gmra.mxu0 %vm26_vm0, %v202_v51  ;;  %16262 = vmatmul.mubr.msk.f32.gmra.mxu1 %vm26_vm0, %v18225_v52  ;;  %v223_v51 = vld [vmem:[%s25372_s0 + $0x241] sm:$0xff] }
  0x32   :  { %16166 = vmatprep.mubr.msk.f32.mxu0 %vm26_vm0, %v203_v53  ;;  %16264 = vmatprep.mubr.msk.f32.mxu1 %vm26_vm0, %v18233_v54  ;;  %v18448_v53 = vld [vmem:[%s25372_s0 + $0x240] sm:$0xff] }
  0x35   :  { %16167 = vmatmul.mubr.msk.f32.gmra.mxu0 %vm26_vm0, %v204_v55  ;;  %16265 = vmatmul.mubr.msk.f32.gmra.mxu1 %vm26_vm0, %v18248_v56  ;;  %v224_v55 = vld [vmem:[%s25372_s0 + $0x249] sm:$0xff] }
  0x36   :  { %16169 = vmatprep.mubr.msk.f32.mxu0 %vm26_vm0, %v205_v57  ;;  %16267 = vmatprep.mubr.msk.f32.mxu1 %vm26_vm0, %v18256_v58  ;;  %v18462_v57 = vld [vmem:[%s25372_s0 + $0x248] sm:$0xff] }
  0x39   :  { %16170 = vmatmul.mubr.msk.f32.gmra.mxu0 %vm26_vm0, %v206_v59  ;;  %16268 = vmatmul.mubr.msk.f32.gmra.mxu1 %vm26_vm0, %v18270_v60  ;;  %v225_v59 = vld [vmem:[%s25372_s0 + $0x259] sm:$0xff] }
  0x3a   :  { %16172 = vmatprep.mubr.msk.f32.mxu0 %vm26_vm0, %v207_v61  ;;  %16270 = vmatprep.mubr.msk.f32.mxu1 %vm26_vm0, %v18278_v62  ;;  %v18470_v61 = vld [vmem:[%s25372_s0 + $0x258] sm:$0xff] }
  0x3d   :  { %16173 = vmatmul.mubr.msk.f32.gmra.mxu0 %vm26_vm0, %v208_v63  ;;  %16271 = vmatmul.mubr.msk.f32.gmra.mxu1 %vm26_vm0, %v18292_v0  ;;  %v226_v63 = vld [vmem:[%s25372_s0 + $0x261] sm:$0xff] }
  0x3e   :  { %16175 = vmatprep.mubr.msk.f32.mxu0 %vm26_vm0, %v209_v1  ;;  %16273 = vmatprep.mubr.msk.f32.mxu1 %vm26_vm0, %v18300_v2  ;;  %v18484_v1 = vld [vmem:[%s25372_s0 + $0x260] sm:$0xff] }
  0x41   :  { %16176 = vmatmul.mubr.msk.f32.gmra.mxu0 %vm26_vm0, %v210_v3  ;;  %16274 = vmatmul.mubr.msk.f32.gmra.mxu1 %vm26_vm0, %v18314_v4  ;;  %v227_v3 = vld [vmem:[%s25372_s0 + $0x271] sm:$0xff] }
  0x42   :  { %16178 = vmatprep.mubr.msk.f32.mxu0 %vm26_vm0, %v211_v5  ;;  %16276 = vmatprep.mubr.msk.f32.mxu1 %vm26_vm0, %v146_v6  ;;  %v18492_v5 = vld [vmem:[%s25372_s0 + $0x270] sm:$0xff]  ;;  %v228_v6 = vld [vmem:[%s25372_s0 + $0x279] sm:$0xff] }
  0x45   :  { %16179 = vmatmul.mubr.msk.f32.gmra.mxu0 %vm26_vm0, %v212_v7  ;;  %16277 = vmatmul.mubr.msk.f32.gmra.mxu1 %vm26_vm0, %v147_v9  ;;  %v18506_v7 = vld [vmem:[%s25372_s0 + $0x278] sm:$0xff]  ;;  %v229_v9 = vld [vmem:[%s25372_s0 + $0x289] sm:$0xff] }
  0x46   :  { %16181 = vmatprep.mubr.msk.f32.mxu0 %vm26_vm0, %v213_v11  ;;  %16279 = vmatprep.mubr.msk.f32.mxu1 %vm26_vm0, %v18339_v13  ;;  %v18514_v11 = vld [vmem:[%s25372_s0 + $0x288] sm:$0xff] }
  0x49   :  { %16182 = vmatmul.mubr.msk.f32.gmra.mxu0 %vm26_vm0, %v214_v15  ;;  %16280 = vmatmul.mubr.msk.f32.gmra.mxu1 %vm26_vm0, %v18352_v17  ;;  %v230_v15 = vld [vmem:[%s25372_s0 + $0x291] sm:$0xff] }
  0x4a   :  { %16184 = vmatprep.mubr.msk.f32.mxu0 %vm26_vm0, %v215_v19  ;;  %16282 = vmatprep.mubr.msk.f32.mxu1 %vm26_vm0, %v18360_v21  ;;  %v18528_v19 = vld [vmem:[%s25372_s0 + $0x290] sm:$0xff] }
  0x4d   :  { %16185 = vmatmul.mubr.msk.f32.gmra.mxu0 %vm26_vm0, %v216_v23  ;;  %16283 = vmatmul.mubr.msk.f32.gmra.mxu1 %vm26_vm0, %v18374_v25  ;;  %v231_v23 = vld [vmem:[%s25372_s0 + $0x2a1] sm:$0xff] }
  0x4e   :  { %16187 = vmatprep.mubr.msk.f32.mxu0 %vm26_vm0, %v217_v27  ;;  %16285 = vmatprep.mubr.msk.f32.mxu1 %vm26_vm0, %v18382_v29  ;;  %v18536_v27 = vld [vmem:[%s25372_s0 + $0x2a0] sm:$0xff] }
  0x51   :  { %16188 = vmatmul.mubr.msk.f32.gmra.mxu0 %vm26_vm0, %v218_v31  ;;  %16286 = vmatmul.mubr.msk.f32.gmra.mxu1 %vm26_vm0, %v18396_v33  ;;  %v232_v31 = vld [vmem:[%s25372_s0 + $0x2a9] sm:$0xff] }
  0x52   :  { %16190 = vmatprep.mubr.msk.f32.mxu0 %vm26_vm0, %v219_v35  ;;  %16288 = vmatprep.mubr.msk.f32.mxu1 %vm26_vm0, %v18404_v37  ;;  %v18550_v35 = vld [vmem:[%s25372_s0 + $0x2a8] sm:$0xff] }
  0x55   :  { %16191 = vmatmul.mubr.msk.f32.gmra.mxu0 %vm26_vm0, %v220_v39  ;;  %16289 = vmatmul.mubr.msk.f32.gmra.mxu1 %vm26_vm0, %v18418_v41  ;;  %v233_v39 = vld [vmem:[%s25372_s0 + $0x2b9] sm:$0xff] }
  0x56   :  { %16193 = vmatprep.mubr.msk.f32.mxu0 %vm26_vm0, %v221_v43  ;;  %16291 = vmatprep.mubr.msk.f32.mxu1 %vm26_vm0, %v18426_v45  ;;  %v18558_v43 = vld [vmem:[%s25372_s0 + $0x2b8] sm:$0xff] }
  0x59   :  { %16194 = vmatmul.mubr.msk.f32.gmra.mxu0 %vm26_vm0, %v222_v47  ;;  %16292 = vmatmul.mubr.msk.f32.gmra.mxu1 %vm26_vm0, %v18440_v49  ;;  %v234_v47 = vld [vmem:[%s25372_s0 + $0x2c1] sm:$0xff] }
  0x5a   :  { %16196 = vmatprep.mubr.msk.f32.mxu0 %vm26_vm0, %v223_v51  ;;  %16294 = vmatprep.mubr.msk.f32.mxu1 %vm26_vm0, %v18448_v53  ;;  %v18572_v51 = vld [vmem:[%s25372_s0 + $0x2c0] sm:$0xff] }
  0x5d   :  { %16197 = vmatmul.mubr.msk.f32.gmra.mxu0 %vm26_vm0, %v224_v55  ;;  %16295 = vmatmul.mubr.msk.f32.gmra.mxu1 %vm26_vm0, %v18462_v57  ;;  %v235_v55 = vld [vmem:[%s25372_s0 + $0x2d1] sm:$0xff] }
  0x5e   :  { %16199 = vmatprep.mubr.msk.f32.mxu0 %vm26_vm0, %v225_v59  ;;  %16297 = vmatprep.mubr.msk.f32.mxu1 %vm26_vm0, %v18470_v61  ;;  %v18580_v59 = vld [vmem:[%s25372_s0 + $0x2d0] sm:$0xff] }
  0x61   :  { %16200 = vmatmul.mubr.msk.f32.gmra.mxu0 %vm26_vm0, %v226_v63  ;;  %16298 = vmatmul.mubr.msk.f32.gmra.mxu1 %vm26_vm0, %v18484_v1  ;;  %v236_v63 = vld [vmem:[%s25372_s0 + $0x2d9] sm:$0xff] }
  0x62   :  { %16202 = vmatprep.mubr.msk.f32.mxu0 %vm26_vm0, %v227_v3  ;;  %16300 = vmatprep.mubr.msk.f32.mxu1 %vm26_vm0, %v18492_v5  ;;  %v18594_v3 = vld [vmem:[%s25372_s0 + $0x2d8] sm:$0xff] }
  0x65   :  { %16203 = vmatmul.mubr.msk.f32.gmra.mxu0 %vm26_vm0, %v228_v6  ;;  %16301 = vmatmul.mubr.msk.f32.gmra.mxu1 %vm26_vm0, %v18506_v7  ;;  %v237_v6 = vld [vmem:[%s25372_s0 + $0x2e9] sm:$0xff] }
  0x66   :  { %16205 = vmatprep.mubr.msk.f32.mxu0 %vm26_vm0, %v229_v9  ;;  %16303 = vmatprep.mubr.msk.f32.mxu1 %vm26_vm0, %v18514_v11  ;;  %v18602_v9 = vld [vmem:[%s25372_s0 + $0x2e8] sm:$0xff] }
  0x69   :  { %16206 = vmatmul.mubr.msk.f32.gmra.mxu0 %vm26_vm0, %v230_v15  ;;  %16304 = vmatmul.mubr.msk.f32.gmra.mxu1 %vm26_vm0, %v18528_v19  ;;  %v238_v15 = vld [vmem:[%s25372_s0 + $0x2f1] sm:$0xff] }
  0x6a   :  { %16208 = vmatprep.mubr.msk.f32.mxu0 %vm26_vm0, %v231_v23  ;;  %16306 = vmatprep.mubr.msk.f32.mxu1 %vm26_vm0, %v18536_v27  ;;  %v18616_v23 = vld [vmem:[%s25372_s0 + $0x2f0] sm:$0xff] }
  0x6d   :  { %16209 = vmatmul.mubr.msk.f32.gmra.mxu0 %vm26_vm0, %v232_v31  ;;  %16307 = vmatmul.mubr.msk.f32.gmra.mxu1 %vm26_vm0, %v18550_v35  ;;  %v239_v31 = vld [vmem:[%s25372_s0 + $0x301] sm:$0xff] }
  0x6e   :  { %16211 = vmatprep.mubr.msk.f32.mxu0 %vm26_vm0, %v233_v39  ;;  %16309 = vmatprep.mubr.msk.f32.mxu1 %vm26_vm0, %v18558_v43  ;;  %v18624_v39 = vld [vmem:[%s25372_s0 + $0x300] sm:$0xff] }
  0x71   :  { %16212 = vmatmul.mubr.msk.f32.gmra.mxu0 %vm26_vm0, %v234_v47  ;;  %16310 = vmatmul.mubr.msk.f32.gmra.mxu1 %vm26_vm0, %v18572_v51  ;;  %v240_v47 = vld [vmem:[%s25372_s0 + $0x309] sm:$0xff] }
  0x72   :  { %16214 = vmatprep.mubr.msk.f32.mxu0 %vm26_vm0, %v235_v55  ;;  %16312 = vmatprep.mubr.msk.f32.mxu1 %vm26_vm0, %v18580_v59  ;;  %v18638_v55 = vld [vmem:[%s25372_s0 + $0x308] sm:$0xff] }
  0x75   :  { %16215 = vmatmul.mubr.msk.f32.gmra.mxu0 %vm26_vm0, %v236_v63  ;;  %16313 = vmatmul.mubr.msk.f32.gmra.mxu1 %vm26_vm0, %v18594_v3  ;;  %v241_v63 = vld [vmem:[%s25372_s0 + $0x319] sm:$0xff] }
  0x76   :  { %16217 = vmatprep.mubr.msk.f32.mxu0 %vm26_vm0, %v237_v6  ;;  %16315 = vmatprep.mubr.msk.f32.mxu1 %vm26_vm0, %v18602_v9  ;;  %v18646_v6 = vld [vmem:[%s25372_s0 + $0x318] sm:$0xff] }
  0x77   :  { %25470 = vst [vmem:[#allocation3_spill] sm:$0xff] %v18646_v6 }
  0x79   :  { %16218 = vmatmul.mubr.msk.f32.gmra.mxu0 %vm26_vm0, %v238_v15  ;;  %16316 = vmatmul.mubr.msk.f32.gmra.mxu1 %vm26_vm0, %v18616_v23  ;;  %v242_v15 = vld [vmem:[%s25372_s0 + $0x321] sm:$0xff] }
  0x7a   :  { %16220 = vmatprep.mubr.msk.f32.mxu0 %vm26_vm0, %v239_v31  ;;  %16318 = vmatprep.mubr.msk.f32.mxu1 %vm26_vm0, %v18624_v39  ;;  %v18660_v31 = vld [vmem:[%s25372_s0 + $0x320] sm:$0xff] }
  0x7d   :  { %16221 = vmatmul.mubr.msk.f32.gmra.mxu0 %vm26_vm0, %v240_v47  ;;  %16319 = vmatmul.mubr.msk.f32.gmra.mxu1 %vm26_vm0, %v18638_v55  ;;  %v1399_v47 = vld [vmem:[%s25372_s0 + $0x2] sm:$0xff] }
  0x7e   :  { %16223 = vmatprep.mubr.msk.f32.mxu0 %vm26_vm0, %v241_v63  ;;  %16321 = vmatprep.mubr.msk.f32.mxu1 %vm26_vm0, %v18646_v6  ;;  %v1400_v63 = vld [vmem:[%s25372_s0 + $0xa] sm:$0xff]  ;;  %v18677_v6 = vld [vmem:[%s25372_s0 + $0x1a] sm:$0xff] }
  0x81   :  { %16224 = vmatmul.mubr.msk.f32.gmra.mxu0 %vm26_vm0, %v242_v15  ;;  %16322 = vmatmul.mubr.msk.f32.gmra.mxu1 %vm26_vm0, %v18660_v31  ;;  %v13920_v15 = vld [vmem:[%s25371_s1 + $0x28] sm:$0xff] }
  0x82   :  { %16326 = vmatprep.mubr.msk.f32.mxu0 %vm26_vm0, %v1399_v47  ;;  %16424 = vmatprep.mubr.msk.f32.mxu1 %vm26_vm0, %v17984_v8  ;;  %v18691_v8 = vld [vmem:[%s25372_s0 + $0x22] sm:$0xff]  ;;  %v18696_v47 = vld [vmem:[%s25371_s1 + $0x30] sm:$0xff] }
  0x83   :  { %16618 = vmatprep.subr.mxu1 %v13920_v15 }
  0x85   :  { %16327 = vmatmul.mubr.msk.f32.vlgmr.msra.gmra.mxu0 %vm26_vm0, %v1400_v63  ;;  %16425 = vmatmul.mubr.msk.f32.vlgmr.msra.gmra.mxu1 %vm26_vm0, %v17995_v10  ;;  %v18703_v10 = vld [vmem:[%s25372_s0 + $0x32] sm:$0xff]  ;;  %v13629_v63 = vld [vmem:[%s25372_s0 + $0x188] sm:$0xff] }
  0x86   :  { %16521 = vmatpush3.msra.mxu0 %v18214_v50  ;;  %16329 = vmatprep.mubr.msk.f32.mxu0 %vm26_vm0, %v18677_v6  ;;  %v18722_v50 = vld [vmem:[%s25372_s0 + $0x4a] sm:$0xff] }
  0x87   :  { %16427 = vmatprep.mubr.msk.f32.mxu1 %vm26_vm0, %v18005_v12  ;;  %16619 = vmatpush3.msra.mxu1 %v13920_v15  ;;  %v18715_v12 = vld [vmem:[%s25372_s0 + $0x3a] sm:$0xff]  ;;  %v1431_v15 = vld [vmem:[%s25372_s0 + $0x1b2] sm:$0xff] }
  0x88   :  { %16716 = vmatprep.subr.mxu0 %v18696_v47 }
  0x89   :  { %16330 = vmatmul.mubr.msk.f32.gmra.mxu0 %vm26_vm0, %v18691_v8  ;;  %16428 = vmatmul.mubr.msk.f32.gmra.mxu1 %vm26_vm0, %v18019_v14  ;;  %v18733_v14 = vld [vmem:[%s25372_s0 + $0x52] sm:$0xff] }
  0x8a   :  { %16332 = vmatprep.mubr.msk.f32.mxu0 %vm26_vm0, %v18703_v10  ;;  %16430 = vmatprep.mubr.msk.f32.mxu1 %vm26_vm0, %v18027_v16  ;;  %v18740_v16 = vld [vmem:[%s25372_s0 + $0x62] sm:$0xff] }
  0x8d   :  { %16333 = vmatmul.mubr.msk.f32.gmra.mxu0 %vm26_vm0, %v18715_v12  ;;  %16431 = vmatmul.mubr.msk.f32.gmra.mxu1 %vm26_vm0, %v18041_v18  ;;  %v18751_v18 = vld [vmem:[%s25372_s0 + $0x6a] sm:$0xff] }
  0x8e   :  { %16335 = vmatprep.mubr.msk.f32.mxu0 %vm26_vm0, %v18722_v50  ;;  %16433 = vmatprep.mubr.msk.f32.mxu1 %vm26_vm0, %v18049_v20  ;;  %v18758_v20 = vld [vmem:[%s25372_s0 + $0x7a] sm:$0xff] }
  0x91   :  { %16336 = vmatmul.mubr.msk.f32.gmra.mxu0 %vm26_vm0, %v18733_v14  ;;  %16434 = vmatmul.mubr.msk.f32.gmra.mxu1 %vm26_vm0, %v18063_v22  ;;  %v18769_v22 = vld [vmem:[%s25372_s0 + $0x82] sm:$0xff] }
  0x92   :  { %16338 = vmatprep.mubr.msk.f32.mxu0 %vm26_vm0, %v18740_v16  ;;  %16436 = vmatprep.mubr.msk.f32.mxu1 %vm26_vm0, %v18071_v24  ;;  %v18776_v24 = vld [vmem:[%s25372_s0 + $0x92] sm:$0xff] }
  0x95   :  { %16339 = vmatmul.mubr.msk.f32.gmra.mxu0 %vm26_vm0, %v18751_v18  ;;  %16437 = vmatmul.mubr.msk.f32.gmra.mxu1 %vm26_vm0, %v18085_v26  ;;  %v18787_v26 = vld [vmem:[%s25372_s0 + $0x9a] sm:$0xff] }
  0x96   :  { %16341 = vmatprep.mubr.msk.f32.mxu0 %vm26_vm0, %v18758_v20  ;;  %16439 = vmatprep.mubr.msk.f32.mxu1 %vm26_vm0, %v18093_v28  ;;  %v18794_v28 = vld [vmem:[%s25372_s0 + $0xaa] sm:$0xff] }
  0x99   :  { %16342 = vmatmul.mubr.msk.f32.gmra.mxu0 %vm26_vm0, %v18769_v22  ;;  %16440 = vmatmul.mubr.msk.f32.gmra.mxu1 %vm26_vm0, %v18107_v30  ;;  %v18805_v30 = vld [vmem:[%s25372_s0 + $0xb2] sm:$0xff] }
  0x9a   :  { %16344 = vmatprep.mubr.msk.f32.mxu0 %vm26_vm0, %v18776_v24  ;;  %16442 = vmatprep.mubr.msk.f32.mxu1 %vm26_vm0, %v18115_v32  ;;  %v18812_v32 = vld [vmem:[%s25372_s0 + $0xc2] sm:$0xff] }
  0x9d   :  { %16345 = vmatmul.mubr.msk.f32.gmra.mxu0 %vm26_vm0, %v18787_v26  ;;  %16443 = vmatmul.mubr.msk.f32.gmra.mxu1 %vm26_vm0, %v18129_v34  ;;  %v18823_v34 = vld [vmem:[%s25372_s0 + $0xca] sm:$0xff] }
  0x9e   :  { %16347 = vmatprep.mubr.msk.f32.mxu0 %vm26_vm0, %v18794_v28  ;;  %16445 = vmatprep.mubr.msk.f32.mxu1 %vm26_vm0, %v18137_v36  ;;  %v18830_v36 = vld [vmem:[%s25372_s0 + $0xda] sm:$0xff] }
  0xa1   :  { %16348 = vmatmul.mubr.msk.f32.gmra.mxu0 %vm26_vm0, %v18805_v30  ;;  %16446 = vmatmul.mubr.msk.f32.gmra.mxu1 %vm26_vm0, %v18151_v38  ;;  %v18841_v38 = vld [vmem:[%s25372_s0 + $0xe2] sm:$0xff] }
  0xa2   :  { %16350 = vmatprep.mubr.msk.f32.mxu0 %vm26_vm0, %v18812_v32  ;;  %16448 = vmatprep.mubr.msk.f32.mxu1 %vm26_vm0, %v18159_v40  ;;  %v18848_v40 = vld [vmem:[%s25372_s0 + $0xf2] sm:$0xff] }
  0xa5   :  { %16351 = vmatmul.mubr.msk.f32.gmra.mxu0 %vm26_vm0, %v18823_v34  ;;  %16449 = vmatmul.mubr.msk.f32.gmra.mxu1 %vm26_vm0, %v18173_v42  ;;  %v18859_v42 = vld [vmem:[%s25372_s0 + $0xfa] sm:$0xff] }
  0xa6   :  { %16353 = vmatprep.mubr.msk.f32.mxu0 %vm26_vm0, %v18830_v36  ;;  %16451 = vmatprep.mubr.msk.f32.mxu1 %vm26_vm0, %v18181_v44  ;;  %v18866_v44 = vld [vmem:[%s25372_s0 + $0x10a] sm:$0xff] }
  0xa9   :  { %16354 = vmatmul.mubr.msk.f32.gmra.mxu0 %vm26_vm0, %v18841_v38  ;;  %16452 = vmatmul.mubr.msk.f32.gmra.mxu1 %vm26_vm0, %v18195_v46  ;;  %v18877_v46 = vld [vmem:[%s25372_s0 + $0x112] sm:$0xff] }
  0xaa   :  { %16356 = vmatprep.mubr.msk.f32.mxu0 %vm26_vm0, %v18848_v40  ;;  %16454 = vmatprep.mubr.msk.f32.mxu1 %vm26_vm0, %v18203_v48  ;;  %v18884_v48 = vld [vmem:[%s25372_s0 + $0x122] sm:$0xff] }
  0xad   :  { %16357 = vmatmul.mubr.msk.f32.gmra.mxu0 %vm26_vm0, %v18859_v42  ;;  %16455 = vmatmul.mubr.msk.f32.gmra.mxu1 %vm26_vm0, %v18225_v52  ;;  %v18895_v52 = vld [vmem:[%s25372_s0 + $0x12a] sm:$0xff] }
  0xae   :  { %16359 = vmatprep.mubr.msk.f32.mxu0 %vm26_vm0, %v18866_v44  ;;  %16457 = vmatprep.mubr.msk.f32.mxu1 %vm26_vm0, %v18233_v54  ;;  %v18902_v54 = vld [vmem:[%s25372_s0 + $0x13a] sm:$0xff] }
  0xb1   :  { %16360 = vmatmul.mubr.msk.f32.gmra.mxu0 %vm26_vm0, %v18877_v46  ;;  %16458 = vmatmul.mubr.msk.f32.gmra.mxu1 %vm26_vm0, %v18248_v56  ;;  %v18913_v56 = vld [vmem:[%s25372_s0 + $0x142] sm:$0xff] }
  0xb2   :  { %16362 = vmatprep.mubr.msk.f32.mxu0 %vm26_vm0, %v18884_v48  ;;  %16460 = vmatprep.mubr.msk.f32.mxu1 %vm26_vm0, %v18256_v58  ;;  %v18920_v58 = vld [vmem:[%s25372_s0 + $0x152] sm:$0xff] }
  0xb5   :  { %16363 = vmatmul.mubr.msk.f32.gmra.mxu0 %vm26_vm0, %v18895_v52  ;;  %16461 = vmatmul.mubr.msk.f32.gmra.mxu1 %vm26_vm0, %v18270_v60  ;;  %v18931_v60 = vld [vmem:[%s25372_s0 + $0x15a] sm:$0xff] }
  0xb6   :  { %16365 = vmatprep.mubr.msk.f32.mxu0 %vm26_vm0, %v18902_v54  ;;  %16463 = vmatprep.mubr.msk.f32.mxu1 %vm26_vm0, %v18278_v62  ;;  %25471 = vst [vmem:[#allocation4_spill] sm:$0xff] %v18931_v60  ;;  %v18938_v62 = vld [vmem:[%s25372_s0 + $0x16a] sm:$0xff] }
  0xb7   :  { %25472 = vst [vmem:[#allocation5_spill] sm:$0xff] %v18938_v62 }
  0xb9   :  { %16366 = vmatmul.mubr.msk.f32.gmra.mxu0 %vm26_vm0, %v18913_v56  ;;  %16464 = vmatmul.mubr.msk.f32.gmra.mxu1 %vm26_vm0, %v18292_v0  ;;  %v13628_v0 = vld [vmem:[%s25372_s0 + $0x180] sm:$0xff] }
  0xba   :  { %16368 = vmatprep.mubr.msk.f32.mxu0 %vm26_vm0, %v18920_v58  ;;  %16466 = vmatprep.mubr.msk.f32.mxu1 %vm26_vm0, %v18300_v2  ;;  %v18952_v2 = vld [vmem:[%s25372_s0 + $0x172] sm:$0xff] }
  0xbb   :  { %25473 = vst [vmem:[#allocation6_spill] sm:$0xff] %v18952_v2 }
  0xbd   :  { %16369 = vmatmul.mubr.msk.f32.gmra.mxu0 %vm26_vm0, %v18931_v60  ;;  %16467 = vmatmul.mubr.msk.f32.gmra.mxu1 %vm26_vm0, %v18314_v4  ;;  %v1432_v4 = vld [vmem:[%s25372_s0 + $0x1ba] sm:$0xff] }
  0xbe   :  { %16371 = vmatprep.mubr.msk.f32.mxu0 %vm26_vm0, %v18938_v62  ;;  %16469 = vmatprep.mubr.msk.f32.mxu1 %vm26_vm0, %v13628_v0  ;;  %v18973_v0 = vld [vmem:[%s25372_s0 + $0x1ca] sm:$0xff] }
  0xc1   :  { %16372 = vmatmul.mubr.msk.f32.gmra.mxu0 %vm26_vm0, %v18952_v2  ;;  %16470 = vmatmul.mubr.msk.f32.gmra.mxu1 %vm26_vm0, %v13629_v63 }
  0xc2   :  { %16374 = vmatprep.mubr.msk.f32.mxu0 %vm26_vm0, %v1431_v15  ;;  %16472 = vmatprep.mubr.msk.f32.mxu1 %vm26_vm0, %v18339_v13  ;;  %v18985_v13 = vld [vmem:[%s25372_s0 + $0x1d2] sm:$0xff] }
  0xc5   :  { %v16132_v62 = vpop.f32.mrf.mxu0  ;;  %v16230_v60 = vpop.f32.mrf.mxu1  ;;  %16375 = vmatmul.mubr.msk.f32.gmra.mxu0 %vm26_vm0, %v1432_v4  ;;  %16473 = vmatmul.mubr.msk.f32.gmra.mxu1 %vm26_vm0, %v18352_v17  ;;  %v18992_v4 = vld [vmem:[%s25372_s0 + $0x1e2] sm:$0xff] }
  0xc6   :  { %v18978_v63 = vadd.f32 %v16230_v60, %v16132_v62  ;;  %16377 = vmatprep.mubr.msk.f32.mxu0 %vm26_vm0, %v18973_v0  ;;  %16475 = vmatprep.mubr.msk.f32.mxu1 %vm26_vm0, %v18360_v21  ;;  %v19007_v21 = vld [vmem:[%s25372_s0 + $0x1ea] sm:$0xff] }
  0xc7   :  { %v503_v15 = vpop.f32.mrf.mxu0  ;;  %v1080_v2 = vpop.f32.mrf.mxu1 }
  0xc8   :  { %25474 = vst [vmem:[#allocation7_spill] sm:$0xff] %v18978_v63  ;;  %v18994_v17 = vadd.f32 %v1080_v2, %v503_v15 }
  0xc9   :  { %v16135_v60 = vpop.f32.mrf.mxu0  ;;  %v16233_v62 = vpop.f32.mrf.mxu1  ;;  %16378 = vmatmul.mubr.msk.f32.gmra.mxu0 %vm26_vm0, %v18985_v13  ;;  %16476 = vmatmul.mubr.msk.f32.gmra.mxu1 %vm26_vm0, %v18374_v25 }
  0xca   :  { %25475 = vst [vmem:[#allocation8_spill] sm:$0xff] %v18994_v17  ;;  %v19000_v63 = vadd.f32 %v16233_v62, %v16135_v60  ;;  %16380 = vmatprep.mubr.msk.f32.mxu0 %vm26_vm0, %v18992_v4  ;;  %16478 = vmatprep.mubr.msk.f32.mxu1 %vm26_vm0, %v18382_v29  ;;  %v19014_v17 = vld [vmem:[%s25372_s0 + $0x1fa] sm:$0xff]  ;;  %v19029_v29 = vld [vmem:[%s25372_s0 + $0x202] sm:$0xff] }
  0xcb   :  { %v513_v2 = vpop.f32.mrf.mxu0  ;;  %v1090_v15 = vpop.f32.mrf.mxu1 }
  0xcc   :  { %25476 = vst [vmem:[#allocation9_spill] sm:$0xff] %v19000_v63  ;;  %v19016_v25 = vadd.f32 %v1090_v15, %v513_v2 }
  0xcd   :  { %v16138_v60 = vpop.f32.mrf.mxu0  ;;  %v16236_v62 = vpop.f32.mrf.mxu1  ;;  %16381 = vmatmul.mubr.msk.f32.gmra.mxu0 %vm26_vm0, %v19007_v21  ;;  %16479 = vmatmul.mubr.msk.f32.gmra.mxu1 %vm26_vm0, %v18396_v33 }
  0xce   :  { %25477 = vst [vmem:[#allocation10_spill] sm:$0xff] %v19016_v25  ;;  %v19022_v63 = vadd.f32 %v16236_v62, %v16138_v60  ;;  %16383 = vmatprep.mubr.msk.f32.mxu0 %vm26_vm0, %v19014_v17  ;;  %16481 = vmatprep.mubr.msk.f32.mxu1 %vm26_vm0, %v18404_v37  ;;  %v19036_v25 = vld [vmem:[%s25372_s0 + $0x212] sm:$0xff]  ;;  %v19051_v37 = vld [vmem:[%s25372_s0 + $0x21a] sm:$0xff] }
  0xcf   :  { %v523_v2 = vpop.f32.mrf.mxu0  ;;  %v1100_v15 = vpop.f32.mrf.mxu1 }
  0xd0   :  { %25478 = vst [vmem:[#allocation11_spill] sm:$0xff] %v19022_v63  ;;  %v19038_v33 = vadd.f32 %v1100_v15, %v523_v2 }
  0xd1   :  { %v16141_v60 = vpop.f32.mrf.mxu0  ;;  %v16239_v62 = vpop.f32.mrf.mxu1  ;;  %16384 = vmatmul.mubr.msk.f32.gmra.mxu0 %vm26_vm0, %v19029_v29  ;;  %16482 = vmatmul.mubr.msk.f32.gmra.mxu1 %vm26_vm0, %v18418_v41 }
  0xd2   :  { %25479 = vst [vmem:[#allocation12_spill] sm:$0xff] %v19038_v33  ;;  %v19044_v63 = vadd.f32 %v16239_v62, %v16141_v60  ;;  %16386 = vmatprep.mubr.msk.f32.mxu0 %vm26_vm0, %v19036_v25  ;;  %16484 = vmatprep.mubr.msk.f32.mxu1 %vm26_vm0, %v18426_v45  ;;  %v19058_v33 = vld [vmem:[%s25372_s0 + $0x22a] sm:$0xff]  ;;  %v19073_v45 = vld [vmem:[%s25372_s0 + $0x232] sm:$0xff] }
  0xd3   :  { %v533_v2 = vpop.f32.mrf.mxu0  ;;  %v1110_v15 = vpop.f32.mrf.mxu1 }
  0xd4   :  { %25480 = vst [vmem:[#allocation13_spill] sm:$0xff] %v19044_v63  ;;  %v19060_v41 = vadd.f32 %v1110_v15, %v533_v2 }
  0xd5   :  { %v16144_v60 = vpop.f32.mrf.mxu0  ;;  %v16242_v62 = vpop.f32.mrf.mxu1  ;;  %16387 = vmatmul.mubr.msk.f32.gmra.mxu0 %vm26_vm0, %v19051_v37  ;;  %16485 = vmatmul.mubr.msk.f32.gmra.mxu1 %vm26_vm0, %v18440_v49 }
  0xd6   :  { %25481 = vst [vmem:[#allocation14_spill] sm:$0xff] %v19060_v41  ;;  %v19066_v63 = vadd.f32 %v16242_v62, %v16144_v60  ;;  %16389 = vmatprep.mubr.msk.f32.mxu0 %vm26_vm0, %v19058_v33  ;;  %16487 = vmatprep.mubr.msk.f32.mxu1 %vm26_vm0, %v18448_v53  ;;  %v19080_v41 = vld [vmem:[%s25372_s0 + $0x242] sm:$0xff]  ;;  %v19095_v53 = vld [vmem:[%s25372_s0 + $0x24a] sm:$0xff] }
  0xd7   :  { %v543_v2 = vpop.f32.mrf.mxu0  ;;  %v1120_v15 = vpop.f32.mrf.mxu1 }
  0xd8   :  { %25482 = vst [vmem:[#allocation15_spill] sm:$0xff] %v19066_v63  ;;  %v19082_v49 = vadd.f32 %v1120_v15, %v543_v2 }
  0xd9   :  { %v16147_v60 = vpop.f32.mrf.mxu0  ;;  %v16245_v62 = vpop.f32.mrf.mxu1  ;;  %16390 = vmatmul.mubr.msk.f32.gmra.mxu0 %vm26_vm0, %v19073_v45  ;;  %16488 = vmatmul.mubr.msk.f32.gmra.mxu1 %vm26_vm0, %v18462_v57 }
  0xda   :  { %25483 = vst [vmem:[#allocation16_spill] sm:$0xff] %v19082_v49  ;;  %v19088_v63 = vadd.f32 %v16245_v62, %v16147_v60  ;;  %16392 = vmatprep.mubr.msk.f32.mxu0 %vm26_vm0, %v19080_v41  ;;  %16490 = vmatprep.mubr.msk.f32.mxu1 %vm26_vm0, %v18470_v61  ;;  %v19102_v49 = vld [vmem:[%s25372_s0 + $0x25a] sm:$0xff]  ;;  %v19117_v61 = vld [vmem:[%s25372_s0 + $0x262] sm:$0xff] }
  0xdb   :  { %v553_v2 = vpop.f32.mrf.mxu0  ;;  %v1130_v15 = vpop.f32.mrf.mxu1 }
  0xdc   :  { %25484 = vst [vmem:[#allocation17_spill] sm:$0xff] %v19088_v63  ;;  %v19104_v57 = vadd.f32 %v1130_v15, %v553_v2 }
  0xdd   :  { %v16150_v60 = vpop.f32.mrf.mxu0  ;;  %v16248_v62 = vpop.f32.mrf.mxu1  ;;  %16393 = vmatmul.mubr.msk.f32.gmra.mxu0 %vm26_vm0, %v19095_v53  ;;  %16491 = vmatmul.mubr.msk.f32.gmra.mxu1 %vm26_vm0, %v18484_v1 }
  0xde   :  { %25485 = vst [vmem:[#allocation18_spill] sm:$0xff] %v19104_v57  ;;  %v19110_v63 = vadd.f32 %v16248_v62, %v16150_v60  ;;  %16395 = vmatprep.mubr.msk.f32.mxu0 %vm26_vm0, %v19102_v49  ;;  %16493 = vmatprep.mubr.msk.f32.mxu1 %vm26_vm0, %v18492_v5  ;;  %v19124_v57 = vld [vmem:[%s25372_s0 + $0x272] sm:$0xff]  ;;  %v19139_v5 = vld [vmem:[%s25372_s0 + $0x27a] sm:$0xff] }
  0xdf   :  { %v563_v2 = vpop.f32.mrf.mxu0  ;;  %v1140_v15 = vpop.f32.mrf.mxu1 }
  0xe0   :  { %25486 = vst [vmem:[#allocation19_spill] sm:$0xff] %v19110_v63  ;;  %v19126_v1 = vadd.f32 %v1140_v15, %v563_v2 }
  0xe1   :  { %v16153_v60 = vpop.f32.mrf.mxu0  ;;  %v16251_v62 = vpop.f32.mrf.mxu1  ;;  %16396 = vmatmul.mubr.msk.f32.gmra.mxu0 %vm26_vm0, %v19117_v61  ;;  %16494 = vmatmul.mubr.msk.f32.gmra.mxu1 %vm26_vm0, %v18506_v7 }
  0xe2   :  { %25487 = vst [vmem:[#allocation20_spill] sm:$0xff] %v19126_v1  ;;  %v19132_v63 = vadd.f32 %v16251_v62, %v16153_v60  ;;  %16398 = vmatprep.mubr.msk.f32.mxu0 %vm26_vm0, %v19124_v57  ;;  %16496 = vmatprep.mubr.msk.f32.mxu1 %vm26_vm0, %v18514_v11  ;;  %v19146_v1 = vld [vmem:[%s25372_s0 + $0x28a] sm:$0xff]  ;;  %v19161_v11 = vld [vmem:[%s25372_s0 + $0x292] sm:$0xff] }
  0xe3   :  { %v573_v2 = vpop.f32.mrf.mxu0  ;;  %v1150_v15 = vpop.f32.mrf.mxu1 }
  0xe4   :  { %25488 = vst [vmem:[#allocation21_spill] sm:$0xff] %v19132_v63  ;;  %v19148_v7 = vadd.f32 %v1150_v15, %v573_v2 }
  0xe5   :  { %v16156_v60 = vpop.f32.mrf.mxu0  ;;  %v16254_v62 = vpop.f32.mrf.mxu1  ;;  %16399 = vmatmul.mubr.msk.f32.gmra.mxu0 %vm26_vm0, %v19139_v5  ;;  %16497 = vmatmul.mubr.msk.f32.gmra.mxu1 %vm26_vm0, %v18528_v19 }
  0xe6   :  { %25489 = vst [vmem:[#allocation22_spill] sm:$0xff] %v19148_v7  ;;  %v19154_v63 = vadd.f32 %v16254_v62, %v16156_v60  ;;  %16401 = vmatprep.mubr.msk.f32.mxu0 %vm26_vm0, %v19146_v1  ;;  %16499 = vmatprep.mubr.msk.f32.mxu1 %vm26_vm0, %v18536_v27  ;;  %v19168_v7 = vld [vmem:[%s25372_s0 + $0x2a2] sm:$0xff]  ;;  %v19183_v27 = vld [vmem:[%s25372_s0 + $0x2aa] sm:$0xff] }
  0xe7   :  { %v583_v2 = vpop.f32.mrf.mxu0  ;;  %v1160_v15 = vpop.f32.mrf.mxu1 }
  0xe8   :  { %25490 = vst [vmem:[#allocation23_spill] sm:$0xff] %v19154_v63  ;;  %v19170_v19 = vadd.f32 %v1160_v15, %v583_v2 }
  0xe9   :  { %v16159_v60 = vpop.f32.mrf.mxu0  ;;  %v16257_v62 = vpop.f32.mrf.mxu1  ;;  %16402 = vmatmul.mubr.msk.f32.gmra.mxu0 %vm26_vm0, %v19161_v11  ;;  %16500 = vmatmul.mubr.msk.f32.gmra.mxu1 %vm26_vm0, %v18550_v35 }
  0xea   :  { %25491 = vst [vmem:[#allocation24_spill] sm:$0xff] %v19170_v19  ;;  %v19176_v63 = vadd.f32 %v16257_v62, %v16159_v60  ;;  %16404 = vmatprep.mubr.msk.f32.mxu0 %vm26_vm0, %v19168_v7  ;;  %16502 = vmatprep.mubr.msk.f32.mxu1 %vm26_vm0, %v18558_v43  ;;  %v19190_v19 = vld [vmem:[%s25372_s0 + $0x2ba] sm:$0xff]  ;;  %v19205_v43 = vld [vmem:[%s25372_s0 + $0x2c2] sm:$0xff] }
  0xeb   :  { %v593_v2 = vpop.f32.mrf.mxu0  ;;  %v1170_v15 = vpop.f32.mrf.mxu1 }
  0xec   :  { %25492 = vst [vmem:[#allocation25_spill] sm:$0xff] %v19176_v63  ;;  %v19192_v35 = vadd.f32 %v1170_v15, %v593_v2 }
  0xed   :  { %v16162_v60 = vpop.f32.mrf.mxu0  ;;  %v16260_v62 = vpop.f32.mrf.mxu1  ;;  %16405 = vmatmul.mubr.msk.f32.gmra.mxu0 %vm26_vm0, %v19183_v27  ;;  %16503 = vmatmul.mubr.msk.f32.gmra.mxu1 %vm26_vm0, %v18572_v51 }
  0xee   :  { %25493 = vst [vmem:[#allocation26_spill] sm:$0xff] %v19192_v35  ;;  %v19198_v63 = vadd.f32 %v16260_v62, %v16162_v60  ;;  %16407 = vmatprep.mubr.msk.f32.mxu0 %vm26_vm0, %v19190_v19  ;;  %16505 = vmatprep.mubr.msk.f32.mxu1 %vm26_vm0, %v18580_v59  ;;  %v19212_v35 = vld [vmem:[%s25372_s0 + $0x2d2] sm:$0xff]  ;;  %v19227_v59 = vld [vmem:[%s25372_s0 + $0x2da] sm:$0xff] }
  0xef   :  { %v603_v2 = vpop.f32.mrf.mxu0  ;;  %v1180_v15 = vpop.f32.mrf.mxu1 }
  0xf0   :  { %25494 = vst [vmem:[#allocation27_spill] sm:$0xff] %v19198_v63  ;;  %v19214_v51 = vadd.f32 %v1180_v15, %v603_v2 }
  0xf1   :  { %v16165_v60 = vpop.f32.mrf.mxu0  ;;  %v16263_v62 = vpop.f32.mrf.mxu1  ;;  %16408 = vmatmul.mubr.msk.f32.gmra.mxu0 %vm26_vm0, %v19205_v43  ;;  %16506 = vmatmul.mubr.msk.f32.gmra.mxu1 %vm26_vm0, %v18594_v3 }
  0xf2   :  { %25495 = vst [vmem:[#allocation28_spill] sm:$0xff] %v19214_v51  ;;  %v19220_v63 = vadd.f32 %v16263_v62, %v16165_v60  ;;  %16410 = vmatprep.mubr.msk.f32.mxu0 %vm26_vm0, %v19212_v35  ;;  %16508 = vmatprep.mubr.msk.f32.mxu1 %vm26_vm0, %v18602_v9  ;;  %v19234_v51 = vld [vmem:[%s25372_s0 + $0x2ea] sm:$0xff]  ;;  %v19249_v9 = vld [vmem:[%s25372_s0 + $0x2f2] sm:$0xff] }
  0xf3   :  { %v613_v2 = vpop.f32.mrf.mxu0  ;;  %v1190_v15 = vpop.f32.mrf.mxu1  ;;  %25499 = vst [vmem:[#allocation32_spill] sm:$0xff] %v19249_v9 }
  0xf4   :  { %25496 = vst [vmem:[#allocation29_spill] sm:$0xff] %v19220_v63  ;;  %v19236_v3 = vadd.f32 %v1190_v15, %v613_v2 }
  0xf5   :  { %v16168_v60 = vpop.f32.mrf.mxu0  ;;  %v16266_v62 = vpop.f32.mrf.mxu1  ;;  %16411 = vmatmul.mubr.msk.f32.gmra.mxu0 %vm26_vm0, %v19227_v59  ;;  %16509 = vmatmul.mubr.msk.f32.gmra.mxu1 %vm26_vm0, %v18616_v23 }
  0xf6   :  { %25497 = vst [vmem:[#allocation30_spill] sm:$0xff] %v19236_v3  ;;  %v19242_v63 = vadd.f32 %v16266_v62, %v16168_v60  ;;  %16413 = vmatprep.mubr.msk.f32.mxu0 %vm26_vm0, %v19234_v51  ;;  %16511 = vmatprep.mubr.msk.f32.mxu1 %vm26_vm0, %v18624_v39  ;;  %v19256_v3 = vld [vmem:[%s25372_s0 + $0x302] sm:$0xff]  ;;  %v19271_v39 = vld [vmem:[%s25372_s0 + $0x30a] sm:$0xff] }
  0xf7   :  { %v623_v2 = vpop.f32.mrf.mxu0  ;;  %v1200_v15 = vpop.f32.mrf.mxu1  ;;  %25500 = vst [vmem:[#allocation33_spill] sm:$0xff] %v19256_v3 }
  0xf8   :  { %25498 = vst [vmem:[#allocation31_spill] sm:$0xff] %v19242_v63  ;;  %v19258_v23 = vadd.f32 %v1200_v15, %v623_v2  ;;  %v25503_v2 = vld [vmem:[#allocation3_spill] sm:$0xff] }
  0xf9   :  { %v16171_v60 = vpop.f32.mrf.mxu0  ;;  %v16269_v62 = vpop.f32.mrf.mxu1  ;;  %16414 = vmatmul.mubr.msk.f32.gmra.mxu0 %vm26_vm0, %v19249_v9  ;;  %16512 = vmatmul.mubr.msk.f32.gmra.mxu1 %vm26_vm0, %v18638_v55  ;;  %v19278_v9 = vld [vmem:[%s25372_s0 + $0x31a] sm:$0xff]  ;;  %v13660_v55 = vld [vmem:[%s25372_s0 + $0x330] sm:$0xff] }
  0xfa   :  { %25501 = vst [vmem:[#allocation34_spill] sm:$0xff] %v19258_v23  ;;  %v19264_v63 = vadd.f32 %v16269_v62, %v16171_v60  ;;  %16416 = vmatprep.mubr.msk.f32.mxu0 %vm26_vm0, %v19256_v3  ;;  %16514 = vmatprep.mubr.msk.f32.mxu1 %vm26_vm0, %v25503_v2  ;;  %25504 = vst [vmem:[#allocation3_spill] sm:$0xff] %v19278_v9  ;;  %v19296_v3 = vld [vmem:[%s25372_s0 + $0x322] sm:$0xff] }
  0xfb   :  { %v633_v15 = vpop.f32.mrf.mxu0  ;;  %v1210_v23 = vpop.f32.mrf.mxu1  ;;  %25507 = vst [vmem:[#allocation38_spill] sm:$0xff] %v19296_v3 }
  0xfc   :  { %25502 = vst [vmem:[#allocation35_spill] sm:$0xff] %v19264_v63  ;;  %v19283_v60 = vadd.f32 %v1210_v23, %v633_v15  ;;  %v13661_v23 = vld [vmem:[%s25372_s0 + $0x338] sm:$0xff] }
  0xfd   :  { %v16174_v62 = vpop.f32.mrf.mxu0  ;;  %v16272_v63 = vpop.f32.mrf.mxu1  ;;  %16417 = vmatmul.mubr.msk.f32.gmra.mxu0 %vm26_vm0, %v19271_v39  ;;  %16515 = vmatmul.mubr.msk.f32.gmra.mxu1 %vm26_vm0, %v18660_v31  ;;  %v13727_v31 = vld [vmem:[%s25372_s0 + $0x19] sm:$0xff] }
  0xfe   :  { %25505 = vst [vmem:[#allocation36_spill] sm:$0xff] %v19283_v60  ;;  %v19289_v2 = vadd.f32 %v16272_v63, %v16174_v62  ;;  %16419 = vmatprep.mubr.msk.f32.mxu0 %vm26_vm0, %v19278_v9  ;;  %16517 = vmatprep.mubr.msk.f32.mxu1 %vm26_vm0, %v13660_v55  ;;  %v13728_v9 = vld [vmem:[%s25372_s0 + $0x21] sm:$0xff] }
  0xff   :  { %v643_v15 = vpop.f32.mrf.mxu0  ;;  %v1220_v60 = vpop.f32.mrf.mxu1 }
 0x100   :  { %25506 = vst [vmem:[#allocation37_spill] sm:$0xff] %v19289_v2  ;;  %v19305_v63 = vadd.f32 %v1220_v60, %v643_v15 }
 0x101   :  { %v16177_v62 = vpop.f32.mrf.mxu0  ;;  %v16275_v2 = vpop.f32.mrf.mxu1  ;;  %16420 = vmatmul.mubr.msk.f32.gmra.mxu0 %vm26_vm0, %v19296_v3  ;;  %16518 = vmatmul.mubr.msk.f32.gmra.mxu1 %vm26_vm0, %v13661_v23 }
 0x102   :  { %25508 = vst [vmem:[#allocation39_spill] sm:$0xff] %v19305_v63  ;;  %v19310_v55 = vadd.f32 %v16275_v2, %v16177_v62  ;;  %16522 = vmatprep.mubr.msk.f32.mxu0 %vm26_vm0, %v13727_v31  ;;  %16620 = vmatprep.mubr.msk.f32.mxu1 %vm26_vm0, %v18677_v6  ;;  %v19321_v63 = vld [vmem:[%s25372_s0 + $0x31] sm:$0xff]  ;;  %v19339_v62 = vld [vmem:[%s25372_s0 + $0x39] sm:$0xff] }
 0x103   :  { %v653_v60 = vpop.f32.mrf.mxu0  ;;  %v1230_v15 = vpop.f32.mrf.mxu1  ;;  %v14178_v2 = vld [vmem:[%s25371_s1 + $0x38] sm:$0xff] }
 0x104   :  { %v19323_v3 = vadd.f32 %v1230_v15, %v653_v60  ;;  %v19344_v60 = vld [vmem:[%s25371_s1 + $0x40] sm:$0xff]  ;;  %16814 = vmatprep.subr.mxu1 %v14178_v2 }
 0x105   :  { %v16180_v23 = vpop.f32.mrf.mxu0  ;;  %v16278_v31 = vpop.f32.mrf.mxu1  ;;  %16523 = vmatmul.mubr.msk.f32.vlgmr.msra.gmra.mxu0 %vm26_vm0, %v13728_v9  ;;  %16621 = vmatmul.mubr.msk.f32.vlgmr.msra.gmra.mxu1 %vm26_vm0, %v18691_v8  ;;  %v19351_v8 = vld [vmem:[%s25372_s0 + $0x49] sm:$0xff] }
 0x106   :  { %v19331_v6 = vadd.f32 %v16278_v31, %v16180_v23  ;;  %16717 = vmatpush3.msra.mxu0 %v18696_v47  ;;  %16525 = vmatprep.mubr.msk.f32.mxu0 %vm26_vm0, %v19321_v63 }
 0x107   :  { %v663_v9 = vpop.f32.mrf.mxu0  ;;  %v1240_v15 = vpop.f32.mrf.mxu1  ;;  %16623 = vmatprep.mubr.msk.f32.mxu1 %vm26_vm0, %v18703_v10  ;;  %16815 = vmatpush3.msra.mxu1 %v14178_v2 }
 0x108   :  { %v19353_v47 = vadd.f32 %v1240_v15, %v663_v9  ;;  %16912 = vmatprep.subr.mxu0 %v19344_v60  ;;  %v19367_v9 = vld [vmem:[%s25372_s0 + $0x51] sm:$0xff] }
 0x109   :  { %v16183_v23 = vpop.f32.mrf.mxu0  ;;  %v16281_v31 = vpop.f32.mrf.mxu1  ;;  %16526 = vmatmul.mubr.msk.f32.gmra.mxu0 %vm26_vm0, %v19339_v62  ;;  %16624 = vmatmul.mubr.msk.f32.gmra.mxu1 %vm26_vm0, %v18715_v12 }
 0x10a   :  { %25509 = vst [vmem:[#allocation40_spill] sm:$0xff] %v19353_v47  ;;  %v19360_v10 = vadd.f32 %v16281_v31, %v16183_v23  ;;  %16528 = vmatprep.mubr.msk.f32.mxu0 %vm26_vm0, %v19351_v8  ;;  %16626 = vmatprep.mubr.msk.f32.mxu1 %vm26_vm0, %v18722_v50  ;;  %v19374_v47 = vld [vmem:[%s25372_s0 + $0x61] sm:$0xff]  ;;  %v19389_v50 = vld [vmem:[%s25372_s0 + $0x69] sm:$0xff] }
 0x10b   :  { %v673_v2 = vpop.f32.mrf.mxu0  ;;  %v1250_v15 = vpop.f32.mrf.mxu1 }
 0x10c   :  { %25510 = vst [vmem:[#allocation41_spill] sm:$0xff] %v19360_v10  ;;  %v19376_v12 = vadd.f32 %v1250_v15, %v673_v2 }
 0x10d   :  { %v16186_v23 = vpop.f32.mrf.mxu0  ;;  %v16284_v31 = vpop.f32.mrf.mxu1  ;;  %16529 = vmatmul.mubr.msk.f32.gmra.mxu0 %vm26_vm0, %v19367_v9  ;;  %16627 = vmatmul.mubr.msk.f32.gmra.mxu1 %vm26_vm0, %v18733_v14 }
 0x10e   :  { %25511 = vst [vmem:[#allocation42_spill] sm:$0xff] %v19376_v12  ;;  %v19382_v10 = vadd.f32 %v16284_v31, %v16186_v23  ;;  %16531 = vmatprep.mubr.msk.f32.mxu0 %vm26_vm0, %v19374_v47  ;;  %16629 = vmatprep.mubr.msk.f32.mxu1 %vm26_vm0, %v18740_v16  ;;  %v19396_v12 = vld [vmem:[%s25372_s0 + $0x79] sm:$0xff]  ;;  %v19411_v16 = vld [vmem:[%s25372_s0 + $0x81] sm:$0xff] }
 0x10f   :  { %v683_v2 = vpop.f32.mrf.mxu0  ;;  %v1260_v15 = vpop.f32.mrf.mxu1 }
 0x110   :  { %25512 = vst [vmem:[#allocation43_spill] sm:$0xff] %v19382_v10  ;;  %v19398_v14 = vadd.f32 %v1260_v15, %v683_v2 }
 0x111   :  { %v16189_v23 = vpop.f32.mrf.mxu0  ;;  %v16287_v31 = vpop.f32.mrf.mxu1  ;;  %16532 = vmatmul.mubr.msk.f32.gmra.mxu0 %vm26_vm0, %v19389_v50  ;;  %16630 = vmatmul.mubr.msk.f32.gmra.mxu1 %vm26_vm0, %v18751_v18 }
 0x112   :  { %25513 = vst [vmem:[#allocation44_spill] sm:$0xff] %v19398_v14  ;;  %v19404_v10 = vadd.f32 %v16287_v31, %v16189_v23  ;;  %16534 = vmatprep.mubr.msk.f32.mxu0 %vm26_vm0, %v19396_v12  ;;  %16632 = vmatprep.mubr.msk.f32.mxu1 %vm26_vm0, %v18758_v20  ;;  %v19418_v14 = vld [vmem:[%s25372_s0 + $0x91] sm:$0xff]  ;;  %v19433_v20 = vld [vmem:[%s25372_s0 + $0x99] sm:$0xff] }
 0x113   :  { %v693_v2 = vpop.f32.mrf.mxu0  ;;  %v1270_v15 = vpop.f32.mrf.mxu1 }
 0x114   :  { %25514 = vst [vmem:[#allocation45_spill] sm:$0xff] %v19404_v10  ;;  %v19420_v18 = vadd.f32 %v1270_v15, %v693_v2 }
 0x115   :  { %v16192_v23 = vpop.f32.mrf.mxu0  ;;  %v16290_v31 = vpop.f32.mrf.mxu1  ;;  %16535 = vmatmul.mubr.msk.f32.gmra.mxu0 %vm26_vm0, %v19411_v16  ;;  %16633 = vmatmul.mubr.msk.f32.gmra.mxu1 %vm26_vm0, %v18769_v22 }
 0x116   :  { %25515 = vst [vmem:[#allocation46_spill] sm:$0xff] %v19420_v18  ;;  %v19426_v10 = vadd.f32 %v16290_v31, %v16192_v23  ;;  %16537 = vmatprep.mubr.msk.f32.mxu0 %vm26_vm0, %v19418_v14  ;;  %16635 = vmatprep.mubr.msk.f32.mxu1 %vm26_vm0, %v18776_v24  ;;  %v19440_v18 = vld [vmem:[%s25372_s0 + $0xa9] sm:$0xff]  ;;  %v19455_v24 = vld [vmem:[%s25372_s0 + $0xb1] sm:$0xff] }
 0x117   :  { %v703_v2 = vpop.f32.mrf.mxu0  ;;  %v1280_v15 = vpop.f32.mrf.mxu1 }
 0x118   :  { %25516 = vst [vmem:[#allocation47_spill] sm:$0xff] %v19426_v10  ;;  %v19442_v22 = vadd.f32 %v1280_v15, %v703_v2 }
 0x119   :  { %v16195_v23 = vpop.f32.mrf.mxu0  ;;  %v16293_v31 = vpop.f32.mrf.mxu1  ;;  %16538 = vmatmul.mubr.msk.f32.gmra.mxu0 %vm26_vm0, %v19433_v20  ;;  %16636 = vmatmul.mubr.msk.f32.gmra.mxu1 %vm26_vm0, %v18787_v26 }
 0x11a   :  { %25517 = vst [vmem:[#allocation48_spill] sm:$0xff] %v19442_v22  ;;  %v19448_v10 = vadd.f32 %v16293_v31, %v16195_v23  ;;  %16540 = vmatprep.mubr.msk.f32.mxu0 %vm26_vm0, %v19440_v18  ;;  %16638 = vmatprep.mubr.msk.f32.mxu1 %vm26_vm0, %v18794_v28  ;;  %v19462_v22 = vld [vmem:[%s25372_s0 + $0xc1] sm:$0xff]  ;;  %v19477_v28 = vld [vmem:[%s25372_s0 + $0xc9] sm:$0xff] }
 0x11b   :  { %v713_v2 = vpop.f32.mrf.mxu0  ;;  %v1290_v15 = vpop.f32.mrf.mxu1 }
 0x11c   :  { %25518 = vst [vmem:[#allocation49_spill] sm:$0xff] %v19448_v10  ;;  %v19464_v26 = vadd.f32 %v1290_v15, %v713_v2 }
 0x11d   :  { %v16198_v23 = vpop.f32.mrf.mxu0  ;;  %v16296_v31 = vpop.f32.mrf.mxu1  ;;  %16541 = vmatmul.mubr.msk.f32.gmra.mxu0 %vm26_vm0, %v19455_v24  ;;  %16639 = vmatmul.mubr.msk.f32.gmra.mxu1 %vm26_vm0, %v18805_v30 }
 0x11e   :  { %25519 = vst [vmem:[#allocation50_spill] sm:$0xff] %v19464_v26  ;;  %v19470_v10 = vadd.f32 %v16296_v31, %v16198_v23  ;;  %16543 = vmatprep.mubr.msk.f32.mxu0 %vm26_vm0, %v19462_v22  ;;  %16641 = vmatprep.mubr.msk.f32.mxu1 %vm26_vm0, %v18812_v32  ;;  %v19484_v26 = vld [vmem:[%s25372_s0 + $0xd9] sm:$0xff]  ;;  %v19499_v32 = vld [vmem:[%s25372_s0 + $0xe1] sm:$0xff] }
 0x11f   :  { %v723_v2 = vpop.f32.mrf.mxu0  ;;  %v1300_v15 = vpop.f32.mrf.mxu1 }
 0x120   :  { %25520 = vst [vmem:[#allocation51_spill] sm:$0xff] %v19470_v10  ;;  %v19486_v30 = vadd.f32 %v1300_v15, %v723_v2 }
 0x121   :  { %v16201_v23 = vpop.f32.mrf.mxu0  ;;  %v16299_v31 = vpop.f32.mrf.mxu1  ;;  %16544 = vmatmul.mubr.msk.f32.gmra.mxu0 %vm26_vm0, %v19477_v28  ;;  %16642 = vmatmul.mubr.msk.f32.gmra.mxu1 %vm26_vm0, %v18823_v34 }
 0x122   :  { %25521 = vst [vmem:[#allocation52_spill] sm:$0xff] %v19486_v30  ;;  %v19492_v10 = vadd.f32 %v16299_v31, %v16201_v23  ;;  %16546 = vmatprep.mubr.msk.f32.mxu0 %vm26_vm0, %v19484_v26  ;;  %16644 = vmatprep.mubr.msk.f32.mxu1 %vm26_vm0, %v18830_v36  ;;  %v19506_v30 = vld [vmem:[%s25372_s0 + $0xf1] sm:$0xff]  ;;  %v19521_v36 = vld [vmem:[%s25372_s0 + $0xf9] sm:$0xff] }
 0x123   :  { %v733_v2 = vpop.f32.mrf.mxu0  ;;  %v1310_v15 = vpop.f32.mrf.mxu1 }
 0x124   :  { %25522 = vst [vmem:[#allocation53_spill] sm:$0xff] %v19492_v10  ;;  %v19508_v34 = vadd.f32 %v1310_v15, %v733_v2 }
 0x125   :  { %v16204_v23 = vpop.f32.mrf.mxu0  ;;  %v16302_v31 = vpop.f32.mrf.mxu1  ;;  %16547 = vmatmul.mubr.msk.f32.gmra.mxu0 %vm26_vm0, %v19499_v32  ;;  %16645 = vmatmul.mubr.msk.f32.gmra.mxu1 %vm26_vm0, %v18841_v38 }
 0x126   :  { %25523 = vst [vmem:[#allocation54_spill] sm:$0xff] %v19508_v34  ;;  %v19514_v10 = vadd.f32 %v16302_v31, %v16204_v23  ;;  %16549 = vmatprep.mubr.msk.f32.mxu0 %vm26_vm0, %v19506_v30  ;;  %16647 = vmatprep.mubr.msk.f32.mxu1 %vm26_vm0, %v18848_v40  ;;  %v19528_v34 = vld [vmem:[%s25372_s0 + $0x109] sm:$0xff]  ;;  %v19543_v40 = vld [vmem:[%s25372_s0 + $0x111] sm:$0xff] }
 0x127   :  { %v743_v2 = vpop.f32.mrf.mxu0  ;;  %v1320_v15 = vpop.f32.mrf.mxu1 }
 0x128   :  { %25524 = vst [vmem:[#allocation55_spill] sm:$0xff] %v19514_v10  ;;  %v19530_v38 = vadd.f32 %v1320_v15, %v743_v2 }
 0x129   :  { %v16207_v23 = vpop.f32.mrf.mxu0  ;;  %v16305_v31 = vpop.f32.mrf.mxu1  ;;  %16550 = vmatmul.mubr.msk.f32.gmra.mxu0 %vm26_vm0, %v19521_v36  ;;  %16648 = vmatmul.mubr.msk.f32.gmra.mxu1 %vm26_vm0, %v18859_v42 }
 0x12a   :  { %25525 = vst [vmem:[#allocation56_spill] sm:$0xff] %v19530_v38  ;;  %v19536_v10 = vadd.f32 %v16305_v31, %v16207_v23  ;;  %16552 = vmatprep.mubr.msk.f32.mxu0 %vm26_vm0, %v19528_v34  ;;  %16650 = vmatprep.mubr.msk.f32.mxu1 %vm26_vm0, %v18866_v44  ;;  %v19550_v38 = vld [vmem:[%s25372_s0 + $0x121] sm:$0xff]  ;;  %v19565_v44 = vld [vmem:[%s25372_s0 + $0x129] sm:$0xff] }
 0x12b   :  { %v753_v2 = vpop.f32.mrf.mxu0  ;;  %v1330_v15 = vpop.f32.mrf.mxu1 }
 0x12c   :  { %25526 = vst [vmem:[#allocation57_spill] sm:$0xff] %v19536_v10  ;;  %v19552_v42 = vadd.f32 %v1330_v15, %v753_v2 }
 0x12d   :  { %v16210_v23 = vpop.f32.mrf.mxu0  ;;  %v16308_v31 = vpop.f32.mrf.mxu1  ;;  %16553 = vmatmul.mubr.msk.f32.gmra.mxu0 %vm26_vm0, %v19543_v40  ;;  %16651 = vmatmul.mubr.msk.f32.gmra.mxu1 %vm26_vm0, %v18877_v46 }
 0x12e   :  { %25527 = vst [vmem:[#allocation58_spill] sm:$0xff] %v19552_v42  ;;  %v19558_v10 = vadd.f32 %v16308_v31, %v16210_v23  ;;  %16555 = vmatprep.mubr.msk.f32.mxu0 %vm26_vm0, %v19550_v38  ;;  %16653 = vmatprep.mubr.msk.f32.mxu1 %vm26_vm0, %v18884_v48  ;;  %v19572_v42 = vld [vmem:[%s25372_s0 + $0x139] sm:$0xff]  ;;  %v19587_v48 = vld [vmem:[%s25372_s0 + $0x141] sm:$0xff] }
 0x12f   :  { %v763_v2 = vpop.f32.mrf.mxu0  ;;  %v1340_v15 = vpop.f32.mrf.mxu1  ;;  %25531 = vst [vmem:[#allocation62_spill] sm:$0xff] %v19587_v48 }
 0x130   :  { %25528 = vst [vmem:[#allocation59_spill] sm:$0xff] %v19558_v10  ;;  %v19574_v46 = vadd.f32 %v1340_v15, %v763_v2 }
 0x131   :  { %v16213_v23 = vpop.f32.mrf.mxu0  ;;  %v16311_v31 = vpop.f32.mrf.mxu1  ;;  %16556 = vmatmul.mubr.msk.f32.gmra.mxu0 %vm26_vm0, %v19565_v44  ;;  %16654 = vmatmul.mubr.msk.f32.gmra.mxu1 %vm26_vm0, %v18895_v52 }
 0x132   :  { %25529 = vst [vmem:[#allocation60_spill] sm:$0xff] %v19574_v46  ;;  %v19580_v10 = vadd.f32 %v16311_v31, %v16213_v23  ;;  %16558 = vmatprep.mubr.msk.f32.mxu0 %vm26_vm0, %v19572_v42  ;;  %16656 = vmatprep.mubr.msk.f32.mxu1 %vm26_vm0, %v18902_v54  ;;  %v19594_v46 = vld [vmem:[%s25372_s0 + $0x151] sm:$0xff]  ;;  %v19609_v54 = vld [vmem:[%s25372_s0 + $0x159] sm:$0xff] }
 0x133   :  { %v773_v2 = vpop.f32.mrf.mxu0  ;;  %v1350_v15 = vpop.f32.mrf.mxu1  ;;  %25532 = vst [vmem:[#allocation63_spill] sm:$0xff] %v19594_v46  ;;  %25535 = vst [vmem:[#allocation66_spill] sm:$0xff] %v19609_v54 }
 0x134   :  { %25530 = vst [vmem:[#allocation61_spill] sm:$0xff] %v19580_v10  ;;  %v19596_v52 = vadd.f32 %v1350_v15, %v773_v2 }
 0x135   :  { %v16216_v23 = vpop.f32.mrf.mxu0  ;;  %v16314_v31 = vpop.f32.mrf.mxu1  ;;  %16559 = vmatmul.mubr.msk.f32.gmra.mxu0 %vm26_vm0, %v19587_v48  ;;  %16657 = vmatmul.mubr.msk.f32.gmra.mxu1 %vm26_vm0, %v18913_v56  ;;  %v19656_v48 = vld [vmem:[%s25372_s0 + $0x189] sm:$0xff] }
 0x136   :  { %25533 = vst [vmem:[#allocation64_spill] sm:$0xff] %v19596_v52  ;;  %v19602_v10 = vadd.f32 %v16314_v31, %v16216_v23  ;;  %16561 = vmatprep.mubr.msk.f32.mxu0 %vm26_vm0, %v19594_v46  ;;  %16659 = vmatprep.mubr.msk.f32.mxu1 %vm26_vm0, %v18920_v58  ;;  %v19616_v52 = vld [vmem:[%s25372_s0 + $0x169] sm:$0xff]  ;;  %v19631_v58 = vld [vmem:[%s25372_s0 + $0x171] sm:$0xff]  ;;  %25546 = vst [vmem:[#allocation71_spill] sm:$0xff] %v19656_v48 }
 0x137   :  { %v783_v2 = vpop.f32.mrf.mxu0  ;;  %v1360_v15 = vpop.f32.mrf.mxu1  ;;  %25536 = vst [vmem:[#allocation67_spill] sm:$0xff] %v19616_v52  ;;  %25540 = vst [vmem:[#allocation69_spill] sm:$0xff] %v19631_v58 }
 0x138   :  { %25534 = vst [vmem:[#allocation65_spill] sm:$0xff] %v19602_v10  ;;  %v19618_v56 = vadd.f32 %v1360_v15, %v783_v2  ;;  %v25538_v10 = vld [vmem:[#allocation4_spill] sm:$0xff]  ;;  %v25541_v2 = vld [vmem:[#allocation5_spill] sm:$0xff] }
 0x139   :  { %v16219_v23 = vpop.f32.mrf.mxu0  ;;  %v16317_v31 = vpop.f32.mrf.mxu1  ;;  %16562 = vmatmul.mubr.msk.f32.gmra.mxu0 %vm26_vm0, %v19609_v54  ;;  %16660 = vmatmul.mubr.msk.f32.gmra.mxu1 %vm26_vm0, %v25538_v10  ;;  %v19638_v54 = vld [vmem:[%s25372_s0 + $0x181] sm:$0xff] }
 0x13a   :  { %25537 = vst [vmem:[#allocation68_spill] sm:$0xff] %v19618_v56  ;;  %v19624_v46 = vadd.f32 %v16317_v31, %v16219_v23  ;;  %16564 = vmatprep.mubr.msk.f32.mxu0 %vm26_vm0, %v19616_v52  ;;  %16662 = vmatprep.mubr.msk.f32.mxu1 %vm26_vm0, %v25541_v2  ;;  %25542 = vst [vmem:[#allocation5_spill] sm:$0xff] %v19638_v54  ;;  %v13886_v10 = vld [vmem:[%s25372_s0 + $0x182] sm:$0xff]  ;;  %v25544_v52 = vld [vmem:[#allocation6_spill] sm:$0xff] }
 0x13b   :  { %v793_v15 = vpop.f32.mrf.mxu0  ;;  %v1370_v56 = vpop.f32.mrf.mxu1 }
 0x13c   :  { %25539 = vst [vmem:[#allocation4_spill] sm:$0xff] %v19624_v46  ;;  %v19643_v23 = vadd.f32 %v1370_v56, %v793_v15  ;;  %v13887_v56 = vld [vmem:[%s25372_s0 + $0x18a] sm:$0xff] }
 0x13d   :  { %v16222_v31 = vpop.f32.mrf.mxu0  ;;  %v16320_v46 = vpop.f32.mrf.mxu1  ;;  %16565 = vmatmul.mubr.msk.f32.gmra.mxu0 %vm26_vm0, %v19631_v58  ;;  %16663 = vmatmul.mubr.msk.f32.gmra.mxu1 %vm26_vm0, %v25544_v52 }
 0x13e   :  { %25543 = vst [vmem:[#allocation70_spill] sm:$0xff] %v19643_v23  ;;  %v19649_v2 = vadd.f32 %v16320_v46, %v16222_v31  ;;  %16567 = vmatprep.mubr.msk.f32.mxu0 %vm26_vm0, %v19638_v54  ;;  %16665 = vmatprep.mubr.msk.f32.mxu1 %vm26_vm0, %v13886_v10  ;;  %v13759_v46 = vld [vmem:[%s25372_s0 + $0x1c9] sm:$0xff]  ;;  %v13760_v54 = vld [vmem:[%s25372_s0 + $0x1d1] sm:$0xff] }
 0x13f   :  { %v803_v15 = vpop.f32.mrf.mxu0  ;;  %v1380_v23 = vpop.f32.mrf.mxu1 }
 0x140   :  { %25545 = vst [vmem:[#allocation6_spill] sm:$0xff] %v19649_v2  ;;  %v19665_v52 = vadd.f32 %v1380_v23, %v803_v15 }
 0x141   :  { %v16225_v31 = vpop.f32.mrf.mxu0  ;;  %v16323_v2 = vpop.f32.mrf.mxu1  ;;  %16568 = vmatmul.mubr.msk.f32.gmra.mxu0 %vm26_vm0, %v19656_v48  ;;  %16666 = vmatmul.mubr.msk.f32.gmra.mxu1 %vm26_vm0, %v13887_v56 }
 0x142   :  { %25547 = vst [vmem:[#allocation72_spill] sm:$0xff] %v19665_v52  ;;  %v19670_v10 = vadd.f32 %v16323_v2, %v16225_v31  ;;  %16570 = vmatprep.mubr.msk.f32.mxu0 %vm26_vm0, %v13759_v46  ;;  %16668 = vmatprep.mubr.msk.f32.mxu1 %vm26_vm0, %v18973_v0  ;;  %v19681_v52 = vld [vmem:[%s25372_s0 + $0x1e1] sm:$0xff]  ;;  %v19694_v0 = vld [vmem:[%s25372_s0 + $0x1e9] sm:$0xff] }
 0x143   :  { %v813_v23 = vpop.f32.mrf.mxu0  ;;  %v1390_v15 = vpop.f32.mrf.mxu1  ;;  %25549 = vst [vmem:[#allocation74_spill] sm:$0xff] %v19681_v52  ;;  %v25551_v46 = vld [vmem:[#allocation7_spill] sm:$0xff] }
 0x144   :  { %25548 = vst [vmem:[#allocation73_spill] sm:$0xff] %v19670_v10  ;;  %v19683_v48 = vadd.f32 %v1390_v15, %v813_v23 }
 0x145   :  { %v16328_v2 = vpop.f32.mrf.mxu0  ;;  %16571 = vmatmul.mubr.msk.f32.gmra.mxu0 %vm26_vm0, %v13760_v54  ;;  %v16426_v56 = vpop.f32.mrf.mxu1  ;;  %16669 = vmatmul.mubr.msk.f32.gmra.mxu1 %vm26_vm0, %v18985_v13  ;;  %v19701_v54 = vld [vmem:[%s25372_s0 + $0x1f9] sm:$0xff]  ;;  %v25553_v13 = vld [vmem:[#allocation8_spill] sm:$0xff] }
 0x146   :  { %25550 = vst [vmem:[#allocation75_spill] sm:$0xff] %v19683_v48  ;;  %v2043_v31 = vadd.f32 %v16328_v2, %v25551_v46  ;;  %16573 = vmatprep.mubr.msk.f32.mxu0 %vm26_vm0, %v19681_v52  ;;  %16671 = vmatprep.mubr.msk.f32.mxu1 %vm26_vm0, %v18992_v4  ;;  %25552 = vst [vmem:[#allocation7_spill] sm:$0xff] %v19701_v54  ;;  %v25554_v4 = vld [vmem:[#allocation9_spill] sm:$0xff] }
 0x147   :  { %v1723_v23 = vpop.f32.mrf.mxu0  ;;  %v2431_v15 = vpop.f32.mrf.mxu1 }
 0x148   :  { %v2042_v2 = vadd.f32 %v1723_v23, %v25553_v13  ;;  %v19704_v46 = vadd.f32 %v16426_v56, %v2043_v31  ;;  %v19718_v56 = vld [vmem:[%s25372_s0 + $0x201] sm:$0xff] }
 0x149   :  { %v16331_v48 = vpop.f32.mrf.mxu0  ;;  %16574 = vmatmul.mubr.msk.f32.gmra.mxu0 %vm26_vm0, %v19694_v0  ;;  %v16429_v52 = vpop.f32.mrf.mxu1  ;;  %16672 = vmatmul.mubr.msk.f32.gmra.mxu1 %vm26_vm0, %v19007_v21  ;;  %v19725_v21 = vld [vmem:[%s25372_s0 + $0x211] sm:$0xff] }
 0x14a   :  { %v2045_v10 = vadd.f32 %v16331_v48, %v25554_v4  ;;  %v19711_v58 = vadd.f32 %v2431_v15, %v2042_v2  ;;  %16576 = vmatprep.mubr.msk.f32.mxu0 %vm26_vm0, %v19701_v54  ;;  %16674 = vmatprep.mubr.msk.f32.mxu1 %vm26_vm0, %v19014_v17  ;;  %25556 = vst [vmem:[#allocation9_spill] sm:$0xff] %v19725_v21  ;;  %v25557_v48 = vld [vmem:[#allocation10_spill] sm:$0xff]  ;;  %v25558_v17 = vld [vmem:[#allocation11_spill] sm:$0xff] }
 0x14b   :  { %v1733_v31 = vpop.f32.mrf.mxu0  ;;  %v2441_v23 = vpop.f32.mrf.mxu1 }
 0x14c   :  { %25555 = vst [vmem:[#allocation8_spill] sm:$0xff] %v19711_v58  ;;  %v2044_v15 = vadd.f32 %v1733_v31, %v25557_v48  ;;  %v19728_v13 = vadd.f32 %v16429_v52, %v2045_v10  ;;  %v19742_v52 = vld [vmem:[%s25372_s0 + $0x219] sm:$0xff] }
 0x14d   :  { %v16334_v2 = vpop.f32.mrf.mxu0  ;;  %16577 = vmatmul.mubr.msk.f32.gmra.mxu0 %vm26_vm0, %v19718_v56  ;;  %v16432_v4 = vpop.f32.mrf.mxu1  ;;  %16675 = vmatmul.mubr.msk.f32.gmra.mxu1 %vm26_vm0, %v19029_v29  ;;  %v19749_v29 = vld [vmem:[%s25372_s0 + $0x229] sm:$0xff] }
 0x14e   :  { %v2047_v58 = vadd.f32 %v16334_v2, %v25558_v17  ;;  %v19735_v54 = vadd.f32 %v2441_v23, %v2044_v15  ;;  %16579 = vmatprep.mubr.msk.f32.mxu0 %vm26_vm0, %v19725_v21  ;;  %16677 = vmatprep.mubr.msk.f32.mxu1 %vm26_vm0, %v19036_v25  ;;  %25560 = vst [vmem:[#allocation11_spill] sm:$0xff] %v19749_v29  ;;  %v25561_v23 = vld [vmem:[#allocation12_spill] sm:$0xff]  ;;  %v25562_v25 = vld [vmem:[#allocation13_spill] sm:$0xff] }
 0x14f   :  { %v1743_v10 = vpop.f32.mrf.mxu0  ;;  %v2451_v31 = vpop.f32.mrf.mxu1 }
 0x150   :  { %25559 = vst [vmem:[#allocation10_spill] sm:$0xff] %v19735_v54  ;;  %v2046_v48 = vadd.f32 %v1743_v10, %v25561_v23  ;;  %v19752_v15 = vadd.f32 %v16432_v4, %v2047_v58  ;;  %v19766_v58 = vld [vmem:[%s25372_s0 + $0x231] sm:$0xff] }
 0x151   :  { %v16337_v2 = vpop.f32.mrf.mxu0  ;;  %16580 = vmatmul.mubr.msk.f32.gmra.mxu0 %vm26_vm0, %v19742_v52  ;;  %v16435_v17 = vpop.f32.mrf.mxu1  ;;  %16678 = vmatmul.mubr.msk.f32.gmra.mxu1 %vm26_vm0, %v19051_v37  ;;  %v19773_v37 = vld [vmem:[%s25372_s0 + $0x241] sm:$0xff] }
 0x152   :  { %v2049_v54 = vadd.f32 %v16337_v2, %v25562_v25  ;;  %v19759_v21 = vadd.f32 %v2451_v31, %v2046_v48  ;;  %16582 = vmatprep.mubr.msk.f32.mxu0 %vm26_vm0, %v19749_v29  ;;  %16680 = vmatprep.mubr.msk.f32.mxu1 %vm26_vm0, %v19058_v33  ;;  %25564 = vst [vmem:[#allocation13_spill] sm:$0xff] %v19773_v37  ;;  %v25565_v31 = vld [vmem:[#allocation14_spill] sm:$0xff]  ;;  %v25566_v33 = vld [vmem:[#allocation15_spill] sm:$0xff] }
 0x153   :  { %v1753_v4 = vpop.f32.mrf.mxu0  ;;  %v2461_v10 = vpop.f32.mrf.mxu1 }
 0x154   :  { %25563 = vst [vmem:[#allocation12_spill] sm:$0xff] %v19759_v21  ;;  %v2048_v23 = vadd.f32 %v1753_v4, %v25565_v31  ;;  %v19776_v48 = vadd.f32 %v16435_v17, %v2049_v54  ;;  %v19790_v54 = vld [vmem:[%s25372_s0 + $0x249] sm:$0xff] }
 0x155   :  { %v16340_v2 = vpop.f32.mrf.mxu0  ;;  %16583 = vmatmul.mubr.msk.f32.gmra.mxu0 %vm26_vm0, %v19766_v58  ;;  %v16438_v25 = vpop.f32.mrf.mxu1  ;;  %16681 = vmatmul.mubr.msk.f32.gmra.mxu1 %vm26_vm0, %v19073_v45  ;;  %v19797_v45 = vld [vmem:[%s25372_s0 + $0x259] sm:$0xff] }
 0x156   :  { %v2051_v21 = vadd.f32 %v16340_v2, %v25566_v33  ;;  %v19783_v29 = vadd.f32 %v2461_v10, %v2048_v23  ;;  %16585 = vmatprep.mubr.msk.f32.mxu0 %vm26_vm0, %v19773_v37  ;;  %16683 = vmatprep.mubr.msk.f32.mxu1 %vm26_vm0, %v19080_v41  ;;  %25568 = vst [vmem:[#allocation15_spill] sm:$0xff] %v19797_v45  ;;  %v25569_v10 = vld [vmem:[#allocation16_spill] sm:$0xff]  ;;  %v25570_v41 = vld [vmem:[#allocation17_spill] sm:$0xff] }
 0x157   :  { %v1763_v17 = vpop.f32.mrf.mxu0  ;;  %v2471_v4 = vpop.f32.mrf.mxu1 }
 0x158   :  { %25567 = vst [vmem:[#allocation14_spill] sm:$0xff] %v19783_v29  ;;  %v2050_v31 = vadd.f32 %v1763_v17, %v25569_v10  ;;  %v19800_v23 = vadd.f32 %v16438_v25, %v2051_v21  ;;  %v19814_v21 = vld [vmem:[%s25372_s0 + $0x261] sm:$0xff] }
 0x159   :  { %v16343_v2 = vpop.f32.mrf.mxu0  ;;  %16586 = vmatmul.mubr.msk.f32.gmra.mxu0 %vm26_vm0, %v19790_v54  ;;  %v16441_v33 = vpop.f32.mrf.mxu1  ;;  %16684 = vmatmul.mubr.msk.f32.gmra.mxu1 %vm26_vm0, %v19095_v53  ;;  %v19821_v53 = vld [vmem:[%s25372_s0 + $0x271] sm:$0xff] }
 0x15a   :  { %v2053_v29 = vadd.f32 %v16343_v2, %v25570_v41  ;;  %v19807_v37 = vadd.f32 %v2471_v4, %v2050_v31  ;;  %16588 = vmatprep.mubr.msk.f32.mxu0 %vm26_vm0, %v19797_v45  ;;  %16686 = vmatprep.mubr.msk.f32.mxu1 %vm26_vm0, %v19102_v49  ;;  %25572 = vst [vmem:[#allocation17_spill] sm:$0xff] %v19821_v53  ;;  %v25573_v4 = vld [vmem:[#allocation18_spill] sm:$0xff]  ;;  %v25574_v49 = vld [vmem:[#allocation19_spill] sm:$0xff] }
 0x15b   :  { %v1773_v25 = vpop.f32.mrf.mxu0  ;;  %v2481_v17 = vpop.f32.mrf.mxu1 }
 0x15c   :  { %25571 = vst [vmem:[#allocation16_spill] sm:$0xff] %v19807_v37  ;;  %v2052_v10 = vadd.f32 %v1773_v25, %v25573_v4  ;;  %v19824_v31 = vadd.f32 %v16441_v33, %v2053_v29  ;;  %v19838_v29 = vld [vmem:[%s25372_s0 + $0x279] sm:$0xff] }
 0x15d   :  { %v16346_v2 = vpop.f32.mrf.mxu0  ;;  %16589 = vmatmul.mubr.msk.f32.gmra.mxu0 %vm26_vm0, %v19814_v21  ;;  %v16444_v41 = vpop.f32.mrf.mxu1  ;;  %16687 = vmatmul.mubr.msk.f32.gmra.mxu1 %vm26_vm0, %v19117_v61  ;;  %v19845_v61 = vld [vmem:[%s25372_s0 + $0x289] sm:$0xff] }
 0x15e   :  { %v2055_v37 = vadd.f32 %v16346_v2, %v25574_v49  ;;  %v19831_v45 = vadd.f32 %v2481_v17, %v2052_v10  ;;  %16591 = vmatprep.mubr.msk.f32.mxu0 %vm26_vm0, %v19821_v53  ;;  %16689 = vmatprep.mubr.msk.f32.mxu1 %vm26_vm0, %v19124_v57  ;;  %25576 = vst [vmem:[#allocation19_spill] sm:$0xff] %v19845_v61  ;;  %v25577_v17 = vld [vmem:[#allocation20_spill] sm:$0xff]  ;;  %v25578_v57 = vld [vmem:[#allocation21_spill] sm:$0xff] }
 0x15f   :  { %v1783_v33 = vpop.f32.mrf.mxu0  ;;  %v2491_v25 = vpop.f32.mrf.mxu1 }
 0x160   :  { %25575 = vst [vmem:[#allocation18_spill] sm:$0xff] %v19831_v45  ;;  %v2054_v4 = vadd.f32 %v1783_v33, %v25577_v17  ;;  %v19848_v10 = vadd.f32 %v16444_v41, %v2055_v37  ;;  %v19862_v37 = vld [vmem:[%s25372_s0 + $0x291] sm:$0xff] }
 0x161   :  { %v16349_v2 = vpop.f32.mrf.mxu0  ;;  %16592 = vmatmul.mubr.msk.f32.gmra.mxu0 %vm26_vm0, %v19838_v29  ;;  %v16447_v49 = vpop.f32.mrf.mxu1  ;;  %16690 = vmatmul.mubr.msk.f32.gmra.mxu1 %vm26_vm0, %v19139_v5  ;;  %v19869_v5 = vld [vmem:[%s25372_s0 + $0x2a1] sm:$0xff] }
 0x162   :  { %v2057_v45 = vadd.f32 %v16349_v2, %v25578_v57  ;;  %v19855_v53 = vadd.f32 %v2491_v25, %v2054_v4  ;;  %16594 = vmatprep.mubr.msk.f32.mxu0 %vm26_vm0, %v19845_v61  ;;  %16692 = vmatprep.mubr.msk.f32.mxu1 %vm26_vm0, %v19146_v1  ;;  %25580 = vst [vmem:[#allocation21_spill] sm:$0xff] %v19869_v5  ;;  %v25581_v25 = vld [vmem:[#allocation22_spill] sm:$0xff]  ;;  %v25582_v1 = vld [vmem:[#allocation23_spill] sm:$0xff] }
 0x163   :  { %v1793_v41 = vpop.f32.mrf.mxu0  ;;  %v2501_v33 = vpop.f32.mrf.mxu1 }
 0x164   :  { %25579 = vst [vmem:[#allocation20_spill] sm:$0xff] %v19855_v53  ;;  %v2056_v17 = vadd.f32 %v1793_v41, %v25581_v25  ;;  %v19872_v4 = vadd.f32 %v16447_v49, %v2057_v45  ;;  %v19886_v45 = vld [vmem:[%s25372_s0 + $0x2a9] sm:$0xff] }
 0x165   :  { %v16352_v2 = vpop.f32.mrf.mxu0  ;;  %16595 = vmatmul.mubr.msk.f32.gmra.mxu0 %vm26_vm0, %v19862_v37  ;;  %v16450_v57 = vpop.f32.mrf.mxu1  ;;  %16693 = vmatmul.mubr.msk.f32.gmra.mxu1 %vm26_vm0, %v19161_v11  ;;  %v19893_v11 = vld [vmem:[%s25372_s0 + $0x2b9] sm:$0xff] }
 0x166   :  { %v2059_v53 = vadd.f32 %v16352_v2, %v25582_v1  ;;  %v19879_v61 = vadd.f32 %v2501_v33, %v2056_v17  ;;  %16597 = vmatprep.mubr.msk.f32.mxu0 %vm26_vm0, %v19869_v5  ;;  %16695 = vmatprep.mubr.msk.f32.mxu1 %vm26_vm0, %v19168_v7  ;;  %25584 = vst [vmem:[#allocation23_spill] sm:$0xff] %v19893_v11  ;;  %v25585_v33 = vld [vmem:[#allocation24_spill] sm:$0xff]  ;;  %v25586_v7 = vld [vmem:[#allocation25_spill] sm:$0xff] }
 0x167   :  { %v1803_v49 = vpop.f32.mrf.mxu0  ;;  %v2511_v41 = vpop.f32.mrf.mxu1 }
 0x168   :  { %25583 = vst [vmem:[#allocation22_spill] sm:$0xff] %v19879_v61  ;;  %v2058_v25 = vadd.f32 %v1803_v49, %v25585_v33  ;;  %v19896_v17 = vadd.f32 %v16450_v57, %v2059_v53  ;;  %v19910_v53 = vld [vmem:[%s25372_s0 + $0x2c1] sm:$0xff] }
 0x169   :  { %v16355_v2 = vpop.f32.mrf.mxu0  ;;  %16598 = vmatmul.mubr.msk.f32.gmra.mxu0 %vm26_vm0, %v19886_v45  ;;  %v16453_v1 = vpop.f32.mrf.mxu1  ;;  %16696 = vmatmul.mubr.msk.f32.gmra.mxu1 %vm26_vm0, %v19183_v27  ;;  %v19917_v27 = vld [vmem:[%s25372_s0 + $0x2d1] sm:$0xff] }
 0x16a   :  { %v2061_v61 = vadd.f32 %v16355_v2, %v25586_v7  ;;  %v19903_v5 = vadd.f32 %v2511_v41, %v2058_v25  ;;  %16600 = vmatprep.mubr.msk.f32.mxu0 %vm26_vm0, %v19893_v11  ;;  %16698 = vmatprep.mubr.msk.f32.mxu1 %vm26_vm0, %v19190_v19  ;;  %25588 = vst [vmem:[#allocation25_spill] sm:$0xff] %v19917_v27  ;;  %v25589_v41 = vld [vmem:[#allocation26_spill] sm:$0xff]  ;;  %v25590_v19 = vld [vmem:[#allocation27_spill] sm:$0xff] }
 0x16b   :  { %v1813_v57 = vpop.f32.mrf.mxu0  ;;  %v2521_v49 = vpop.f32.mrf.mxu1 }
 0x16c   :  { %25587 = vst [vmem:[#allocation24_spill] sm:$0xff] %v19903_v5  ;;  %v2060_v33 = vadd.f32 %v1813_v57, %v25589_v41  ;;  %v19920_v25 = vadd.f32 %v16453_v1, %v2061_v61  ;;  %v19934_v61 = vld [vmem:[%s25372_s0 + $0x2d9] sm:$0xff] }
 0x16d   :  { %v16358_v2 = vpop.f32.mrf.mxu0  ;;  %16601 = vmatmul.mubr.msk.f32.gmra.mxu0 %vm26_vm0, %v19910_v53  ;;  %v16456_v7 = vpop.f32.mrf.mxu1  ;;  %16699 = vmatmul.mubr.msk.f32.gmra.mxu1 %vm26_vm0, %v19205_v43  ;;  %v19941_v43 = vld [vmem:[%s25372_s0 + $0x2e9] sm:$0xff] }
 0x16e   :  { %v2063_v5 = vadd.f32 %v16358_v2, %v25590_v19  ;;  %v19927_v11 = vadd.f32 %v2521_v49, %v2060_v33  ;;  %16603 = vmatprep.mubr.msk.f32.mxu0 %vm26_vm0, %v19917_v27  ;;  %16701 = vmatprep.mubr.msk.f32.mxu1 %vm26_vm0, %v19212_v35  ;;  %25592 = vst [vmem:[#allocation27_spill] sm:$0xff] %v19941_v43  ;;  %v25593_v49 = vld [vmem:[#allocation28_spill] sm:$0xff]  ;;  %v25595_v35 = vld [vmem:[#allocation29_spill] sm:$0xff] }
 0x16f   :  { %v1823_v1 = vpop.f32.mrf.mxu0  ;;  %v2531_v57 = vpop.f32.mrf.mxu1 }
 0x170   :  { %25591 = vst [vmem:[#allocation26_spill] sm:$0xff] %v19927_v11  ;;  %v2062_v41 = vadd.f32 %v1823_v1, %v25593_v49  ;;  %v19944_v33 = vadd.f32 %v16456_v7, %v2063_v5  ;;  %v19958_v5 = vld [vmem:[%s25372_s0 + $0x2f1] sm:$0xff] }
 0x171   :  { %v16361_v2 = vpop.f32.mrf.mxu0  ;;  %16604 = vmatmul.mubr.msk.f32.gmra.mxu0 %vm26_vm0, %v19934_v61  ;;  %v16459_v19 = vpop.f32.mrf.mxu1  ;;  %16702 = vmatmul.mubr.msk.f32.gmra.mxu1 %vm26_vm0, %v19227_v59  ;;  %25597 = vst [vmem:[#allocation76_spill] sm:$0xff] %v19958_v5  ;;  %v19965_v59 = vld [vmem:[%s25372_s0 + $0x301] sm:$0xff] }
 0x172   :  { %25594 = vst [vmem:[#allocation28_spill] sm:$0xff] %v19944_v33  ;;  %v2065_v11 = vadd.f32 %v16361_v2, %v25595_v35  ;;  %v19951_v27 = vadd.f32 %v2531_v57, %v2062_v41  ;;  %16606 = vmatprep.mubr.msk.f32.mxu0 %vm26_vm0, %v19941_v43  ;;  %16704 = vmatprep.mubr.msk.f32.mxu1 %vm26_vm0, %v19234_v51  ;;  %25598 = vst [vmem:[#allocation77_spill] sm:$0xff] %v19965_v59  ;;  %v25599_v57 = vld [vmem:[#allocation30_spill] sm:$0xff]  ;;  %v25602_v51 = vld [vmem:[#allocation31_spill] sm:$0xff] }
 0x173   :  { %v1833_v7 = vpop.f32.mrf.mxu0  ;;  %v2541_v1 = vpop.f32.mrf.mxu1 }
 0x174   :  { %25596 = vst [vmem:[#allocation29_spill] sm:$0xff] %v19951_v27  ;;  %v2064_v49 = vadd.f32 %v1833_v7, %v25599_v57  ;;  %v19968_v41 = vadd.f32 %v16459_v19, %v2065_v11  ;;  %v25601_v27 = vld [vmem:[#allocation32_spill] sm:$0xff]  ;;  %v25605_v19 = vld [vmem:[#allocation33_spill] sm:$0xff] }
 0x175   :  { %v16364_v2 = vpop.f32.mrf.mxu0  ;;  %16607 = vmatmul.mubr.msk.f32.gmra.mxu0 %vm26_vm0, %v19958_v5  ;;  %v16462_v35 = vpop.f32.mrf.mxu1  ;;  %16705 = vmatmul.mubr.msk.f32.gmra.mxu1 %vm26_vm0, %v25601_v27  ;;  %v19982_v11 = vld [vmem:[%s25372_s0 + $0x309] sm:$0xff]  ;;  %v19989_v27 = vld [vmem:[%s25372_s0 + $0x319] sm:$0xff] }
 0x176   :  { %25600 = vst [vmem:[#allocation30_spill] sm:$0xff] %v19968_v41  ;;  %v2067_v43 = vadd.f32 %v16364_v2, %v25602_v51  ;;  %v19975_v33 = vadd.f32 %v2541_v1, %v2064_v49  ;;  %16609 = vmatprep.mubr.msk.f32.mxu0 %vm26_vm0, %v19965_v59  ;;  %25604 = vst [vmem:[#allocation31_spill] sm:$0xff] %v19982_v11  ;;  %16707 = vmatprep.mubr.msk.f32.mxu1 %vm26_vm0, %v25605_v19  ;;  %v25607_v1 = vld [vmem:[#allocation34_spill] sm:$0xff]  ;;  %v25609_v19 = vld [vmem:[#allocation35_spill] sm:$0xff] }
 0x177   :  { %v1843_v7 = vpop.f32.mrf.mxu0  ;;  %v2551_v57 = vpop.f32.mrf.mxu1  ;;  %25606 = vst [vmem:[#allocation33_spill] sm:$0xff] %v19989_v27 }
 0x178   :  { %25603 = vst [vmem:[#allocation32_spill] sm:$0xff] %v19975_v33  ;;  %v2066_v49 = vadd.f32 %v1843_v7, %v25607_v1  ;;  %v19992_v2 = vadd.f32 %v16462_v35, %v2067_v43  ;;  %v20006_v43 = vld [vmem:[%s25372_s0 + $0x321] sm:$0xff] }
 0x179   :  { %v16367_v51 = vpop.f32.mrf.mxu0  ;;  %16610 = vmatmul.mubr.msk.f32.gmra.mxu0 %vm26_vm0, %v19982_v11  ;;  %v16465_v33 = vpop.f32.mrf.mxu1  ;;  %16708 = vmatmul.mubr.msk.f32.gmra.mxu1 %vm26_vm0, %v19271_v39  ;;  %v25611_v35 = vld [vmem:[#allocation3_spill] sm:$0xff]  ;;  %v20013_v39 = vld [vmem:[%s25372_s0 + $0x331] sm:$0xff] }
 0x17a   :  { %25608 = vst [vmem:[#allocation34_spill] sm:$0xff] %v19992_v2  ;;  %v2069_v59 = vadd.f32 %v16367_v51, %v25609_v19  ;;  %v19999_v41 = vadd.f32 %v2551_v57, %v2066_v49  ;;  %16612 = vmatprep.mubr.msk.f32.mxu0 %vm26_vm0, %v19989_v27  ;;  %16710 = vmatprep.mubr.msk.f32.mxu1 %vm26_vm0, %v25611_v35  ;;  %25612 = vst [vmem:[#allocation3_spill] sm:$0xff] %v20013_v39  ;;  %v13918_v57 = vld [vmem:[%s25372_s0 + $0x332] sm:$0xff]  ;;  %v25613_v49 = vld [vmem:[#allocation36_spill] sm:$0xff] }
 0x17b   :  { %v1853_v7 = vpop.f32.mrf.mxu0  ;;  %v2561_v1 = vpop.f32.mrf.mxu1  ;;  %v25615_v27 = vld [vmem:[#allocation38_spill] sm:$0xff]  ;;  %v25616_v2 = vld [vmem:[#allocation37_spill] sm:$0xff] }
 0x17c   :  { %25610 = vst [vmem:[#allocation35_spill] sm:$0xff] %v19999_v41  ;;  %v2068_v51 = vadd.f32 %v1853_v7, %v25613_v49  ;;  %v20019_v19 = vadd.f32 %v16465_v33, %v2069_v59  ;;  %v20033_v33 = vld [vmem:[%s25372_s0 + $0x339] sm:$0xff] }
 0x17d   :  { %v16370_v41 = vpop.f32.mrf.mxu0  ;;  %16613 = vmatmul.mubr.msk.f32.gmra.mxu0 %vm26_vm0, %v20006_v43  ;;  %v16468_v35 = vpop.f32.mrf.mxu1  ;;  %16711 = vmatmul.mubr.msk.f32.gmra.mxu1 %vm26_vm0, %v25615_v27  ;;  %v13919_v59 = vld [vmem:[%s25372_s0 + $0x33a] sm:$0xff] }
 0x17e   :  { %25614 = vst [vmem:[#allocation36_spill] sm:$0xff] %v20019_v19  ;;  %v2071_v11 = vadd.f32 %v16370_v41, %v25616_v2  ;;  %v20026_v5 = vadd.f32 %v2561_v1, %v2068_v51  ;;  %16615 = vmatprep.mubr.msk.f32.mxu0 %vm26_vm0, %v20013_v39  ;;  %16713 = vmatprep.mubr.msk.f32.mxu1 %vm26_vm0, %v13918_v57  ;;  %v13985_v41 = vld [vmem:[%s25372_s0 + $0x30] sm:$0xff]  ;;  %v25618_v2 = vld [vmem:[#allocation39_spill] sm:$0xff]  ;;  %v13986_v19 = vld [vmem:[%s25372_s0 + $0x38] sm:$0xff] }
 0x17f   :  { %v1863_v7 = vpop.f32.mrf.mxu0  ;;  %v2571_v27 = vpop.f32.mrf.mxu1 }
 0x180   :  { %25617 = vst [vmem:[#allocation38_spill] sm:$0xff] %v20026_v5  ;;  %v2070_v1 = vadd.f32 %v1863_v7, %v25618_v2  ;;  %v20043_v49 = vadd.f32 %v16468_v35, %v2071_v11  ;;  %v13987_v7 = vld [vmem:[%s25372_s0 + $0x48] sm:$0xff] }
 0x181   :  { %v16373_v51 = vpop.f32.mrf.mxu0  ;;  %16616 = vmatmul.mubr.msk.f32.gmra.mxu0 %vm26_vm0, %v20033_v33  ;;  %v16471_v5 = vpop.f32.mrf.mxu1  ;;  %16714 = vmatmul.mubr.msk.f32.gmra.mxu1 %vm26_vm0, %v13919_v59 }
 0x182   :  { %v2073_v57 = vadd.f32 %v16373_v51, %v19310_v55  ;;  %v20049_v39 = vadd.f32 %v2571_v27, %v2070_v1  ;;  %16718 = vmatprep.mubr.msk.f32.mxu0 %vm26_vm0, %v13985_v41  ;;  %16816 = vmatprep.mubr.msk.f32.mxu1 %vm26_vm0, %v19321_v63 }
 0x183   :  { %v1873_v11 = vpop.f32.mrf.mxu0  ;;  %v2581_v35 = vpop.f32.mrf.mxu1 }
 0x184   :  { %v2072_v59 = vadd.f32 %v1873_v11, %v19323_v3  ;;  %v20061_v55 = vadd.f32 %v16471_v5, %v2073_v57  ;;  %v13988_v3 = vld [vmem:[%s25372_s0 + $0x50] sm:$0xff] }
 0x185   :  { %v16376_v27 = vpop.f32.mrf.mxu0  ;;  %16719 = vmatmul.mubr.msk.f32.vlgmr.msra.gmra.mxu0 %vm26_vm0, %v13986_v19  ;;  %v16474_v41 = vpop.f32.mrf.mxu1  ;;  %16817 = vmatmul.mubr.msk.f32.vlgmr.msra.gmra.mxu1 %vm26_vm0, %v19339_v62  ;;  %v13989_v62 = vld [vmem:[%s25372_s0 + $0x60] sm:$0xff]  ;;  %v25620_v11 = vld [vmem:[#allocation41_spill] sm:$0xff] }
 0x186   :  { %v2075_v2 = vadd.f32 %v16376_v27, %v19331_v6  ;;  %v20067_v63 = vadd.f32 %v2581_v35, %v2072_v59  ;;  %16913 = vmatpush3.msra.mxu0 %v19344_v60  ;;  %16721 = vmatprep.mubr.msk.f32.mxu0 %vm26_vm0, %v13987_v7  ;;  %v25619_v6 = vld [vmem:[#allocation40_spill] sm:$0xff] }
 0x187   :  { %v1883_v5 = vpop.f32.mrf.mxu0  ;;  %v2591_v1 = vpop.f32.mrf.mxu1  ;;  %16819 = vmatprep.mubr.msk.f32.mxu1 %vm26_vm0, %v19351_v8  ;;  %v13990_v8 = vld [vmem:[%s25372_s0 + $0x68] sm:$0xff] }
 0x188   :  { %v2074_v19 = vadd.f32 %v1883_v5, %v25619_v6  ;;  %v20080_v51 = vadd.f32 %v16474_v41, %v2075_v2  ;;  %v13991_v41 = vld [vmem:[%s25372_s0 + $0x78] sm:$0xff] }
 0x189   :  { %v16379_v60 = vpop.f32.mrf.mxu0  ;;  %16722 = vmatmul.mubr.msk.f32.gmra.mxu0 %vm26_vm0, %v13988_v3  ;;  %v16477_v57 = vpop.f32.mrf.mxu1  ;;  %16820 = vmatmul.mubr.msk.f32.gmra.mxu1 %vm26_vm0, %v19367_v9  ;;  %v25621_v9 = vld [vmem:[#allocation42_spill] sm:$0xff] }
 0x18a   :  { %v2077_v35 = vadd.f32 %v16379_v60, %v25620_v11  ;;  %v20086_v7 = vadd.f32 %v2591_v1, %v2074_v19  ;;  %16724 = vmatprep.mubr.msk.f32.mxu0 %vm26_vm0, %v13989_v62  ;;  %16822 = vmatprep.mubr.msk.f32.mxu1 %vm26_vm0, %v19374_v47  ;;  %v25622_v62 = vld [vmem:[#allocation43_spill] sm:$0xff]  ;;  %v13993_v11 = vld [vmem:[%s25372_s0 + $0x90] sm:$0xff] }
 0x18b   :  { %v1893_v59 = vpop.f32.mrf.mxu0  ;;  %v2601_v27 = vpop.f32.mrf.mxu1  ;;  %v13992_v19 = vld [vmem:[%s25372_s0 + $0x80] sm:$0xff] }
 0x18c   :  { %v2076_v2 = vadd.f32 %v1893_v59, %v25621_v9  ;;  %v20098_v3 = vadd.f32 %v16477_v57, %v2077_v35 }
 0x18d   :  { %v16382_v5 = vpop.f32.mrf.mxu0  ;;  %16725 = vmatmul.mubr.msk.f32.gmra.mxu0 %vm26_vm0, %v13990_v8  ;;  %v16480_v1 = vpop.f32.mrf.mxu1  ;;  %16823 = vmatmul.mubr.msk.f32.gmra.mxu1 %vm26_vm0, %v19389_v50  ;;  %v25623_v50 = vld [vmem:[#allocation44_spill] sm:$0xff] }
 0x18e   :  { %v2079_v6 = vadd.f32 %v16382_v5, %v25622_v62  ;;  %v20104_v47 = vadd.f32 %v2601_v27, %v2076_v2  ;;  %16727 = vmatprep.mubr.msk.f32.mxu0 %vm26_vm0, %v13991_v41  ;;  %16825 = vmatprep.mubr.msk.f32.mxu1 %vm26_vm0, %v19396_v12  ;;  %v25624_v41 = vld [vmem:[#allocation45_spill] sm:$0xff]  ;;  %v13994_v2 = vld [vmem:[%s25372_s0 + $0x98] sm:$0xff]  ;;  %v13995_v62 = vld [vmem:[%s25372_s0 + $0xa8] sm:$0xff] }
 0x18f   :  { %v1903_v60 = vpop.f32.mrf.mxu0  ;;  %v2611_v57 = vpop.f32.mrf.mxu1 }
 0x190   :  { %v2078_v35 = vadd.f32 %v1903_v60, %v25623_v50  ;;  %v20116_v8 = vadd.f32 %v16480_v1, %v2079_v6 }
 0x191   :  { %v16385_v59 = vpop.f32.mrf.mxu0  ;;  %16728 = vmatmul.mubr.msk.f32.gmra.mxu0 %vm26_vm0, %v13992_v19  ;;  %v16483_v27 = vpop.f32.mrf.mxu1  ;;  %16826 = vmatmul.mubr.msk.f32.gmra.mxu1 %vm26_vm0, %v19411_v16  ;;  %v25625_v16 = vld [vmem:[#allocation46_spill] sm:$0xff] }
 0x192   :  { %v2081_v9 = vadd.f32 %v16385_v59, %v25624_v41  ;;  %v20122_v12 = vadd.f32 %v2611_v57, %v2078_v35  ;;  %16730 = vmatprep.mubr.msk.f32.mxu0 %vm26_vm0, %v13993_v11  ;;  %16828 = vmatprep.mubr.msk.f32.mxu1 %vm26_vm0, %v19418_v14  ;;  %v25626_v11 = vld [vmem:[#allocation47_spill] sm:$0xff]  ;;  %v13996_v35 = vld [vmem:[%s25372_s0 + $0xb0] sm:$0xff] }
 0x193   :  { %v1913_v5 = vpop.f32.mrf.mxu0  ;;  %v2621_v1 = vpop.f32.mrf.mxu1  ;;  %v13997_v41 = vld [vmem:[%s25372_s0 + $0xc0] sm:$0xff] }
 0x194   :  { %v2080_v6 = vadd.f32 %v1913_v5, %v25625_v16  ;;  %v20134_v19 = vadd.f32 %v16483_v27, %v2081_v9 }
 0x195   :  { %v16388_v60 = vpop.f32.mrf.mxu0  ;;  %16731 = vmatmul.mubr.msk.f32.gmra.mxu0 %vm26_vm0, %v13994_v2  ;;  %v16486_v57 = vpop.f32.mrf.mxu1  ;;  %16829 = vmatmul.mubr.msk.f32.gmra.mxu1 %vm26_vm0, %v19433_v20  ;;  %v25627_v20 = vld [vmem:[#allocation48_spill] sm:$0xff] }
 0x196   :  { %v2083_v50 = vadd.f32 %v16388_v60, %v25626_v11  ;;  %v20140_v14 = vadd.f32 %v2621_v1, %v2080_v6  ;;  %16733 = vmatprep.mubr.msk.f32.mxu0 %vm26_vm0, %v13995_v62  ;;  %16831 = vmatprep.mubr.msk.f32.mxu1 %vm26_vm0, %v19440_v18  ;;  %v25628_v62 = vld [vmem:[#allocation49_spill] sm:$0xff]  ;;  %v13998_v6 = vld [vmem:[%s25372_s0 + $0xc8] sm:$0xff]  ;;  %v13999_v11 = vld [vmem:[%s25372_s0 + $0xd8] sm:$0xff] }
 0x197   :  { %v1923_v59 = vpop.f32.mrf.mxu0  ;;  %v2631_v27 = vpop.f32.mrf.mxu1 }
 0x198   :  { %v2082_v9 = vadd.f32 %v1923_v59, %v25627_v20  ;;  %v20152_v2 = vadd.f32 %v16486_v57, %v2083_v50 }
 0x199   :  { %v16391_v5 = vpop.f32.mrf.mxu0  ;;  %16734 = vmatmul.mubr.msk.f32.gmra.mxu0 %vm26_vm0, %v13996_v35  ;;  %v16489_v1 = vpop.f32.mrf.mxu1  ;;  %16832 = vmatmul.mubr.msk.f32.gmra.mxu1 %vm26_vm0, %v19455_v24  ;;  %v25629_v24 = vld [vmem:[#allocation50_spill] sm:$0xff] }
 0x19a   :  { %v2085_v16 = vadd.f32 %v16391_v5, %v25628_v62  ;;  %v20158_v18 = vadd.f32 %v2631_v27, %v2082_v9  ;;  %16736 = vmatprep.mubr.msk.f32.mxu0 %vm26_vm0, %v13997_v41  ;;  %16834 = vmatprep.mubr.msk.f32.mxu1 %vm26_vm0, %v19462_v22  ;;  %v25630_v41 = vld [vmem:[#allocation51_spill] sm:$0xff]  ;;  %v14001_v62 = vld [vmem:[%s25372_s0 + $0xf0] sm:$0xff] }
 0x19b   :  { %v1933_v60 = vpop.f32.mrf.mxu0  ;;  %v2641_v57 = vpop.f32.mrf.mxu1  ;;  %v14000_v9 = vld [vmem:[%s25372_s0 + $0xe0] sm:$0xff] }
 0x19c   :  { %v2084_v50 = vadd.f32 %v1933_v60, %v25629_v24  ;;  %v20170_v35 = vadd.f32 %v16489_v1, %v2085_v16 }
 0x19d   :  { %v16394_v59 = vpop.f32.mrf.mxu0  ;;  %16737 = vmatmul.mubr.msk.f32.gmra.mxu0 %vm26_vm0, %v13998_v6  ;;  %v16492_v27 = vpop.f32.mrf.mxu1  ;;  %16835 = vmatmul.mubr.msk.f32.gmra.mxu1 %vm26_vm0, %v19477_v28  ;;  %v25631_v28 = vld [vmem:[#allocation52_spill] sm:$0xff] }
 0x19e   :  { %v2087_v20 = vadd.f32 %v16394_v59, %v25630_v41  ;;  %v20176_v22 = vadd.f32 %v2641_v57, %v2084_v50  ;;  %16739 = vmatprep.mubr.msk.f32.mxu0 %vm26_vm0, %v13999_v11  ;;  %16837 = vmatprep.mubr.msk.f32.mxu1 %vm26_vm0, %v19484_v26  ;;  %v25632_v11 = vld [vmem:[#allocation53_spill] sm:$0xff]  ;;  %v14002_v50 = vld [vmem:[%s25372_s0 + $0xf8] sm:$0xff]  ;;  %v14003_v41 = vld [vmem:[%s25372_s0 + $0x108] sm:$0xff] }
 0x19f   :  { %v1943_v5 = vpop.f32.mrf.mxu0  ;;  %v2651_v1 = vpop.f32.mrf.mxu1 }
 0x1a0   :  { %v2086_v16 = vadd.f32 %v1943_v5, %v25631_v28  ;;  %v20188_v6 = vadd.f32 %v16492_v27, %v2087_v20 }
 0x1a1   :  { %v16397_v60 = vpop.f32.mrf.mxu0  ;;  %16740 = vmatmul.mubr.msk.f32.gmra.mxu0 %vm26_vm0, %v14000_v9  ;;  %v16495_v57 = vpop.f32.mrf.mxu1  ;;  %16838 = vmatmul.mubr.msk.f32.gmra.mxu1 %vm26_vm0, %v19499_v32  ;;  %v25633_v32 = vld [vmem:[#allocation54_spill] sm:$0xff] }
 0x1a2   :  { %v2089_v24 = vadd.f32 %v16397_v60, %v25632_v11  ;;  %v20194_v26 = vadd.f32 %v2651_v1, %v2086_v16  ;;  %16742 = vmatprep.mubr.msk.f32.mxu0 %vm26_vm0, %v14001_v62  ;;  %16840 = vmatprep.mubr.msk.f32.mxu1 %vm26_vm0, %v19506_v30  ;;  %v25634_v62 = vld [vmem:[#allocation55_spill] sm:$0xff]  ;;  %v14004_v16 = vld [vmem:[%s25372_s0 + $0x110] sm:$0xff] }
 0x1a3   :  { %v1953_v59 = vpop.f32.mrf.mxu0  ;;  %v2661_v27 = vpop.f32.mrf.mxu1  ;;  %v14005_v11 = vld [vmem:[%s25372_s0 + $0x120] sm:$0xff] }
 0x1a4   :  { %v2088_v20 = vadd.f32 %v1953_v59, %v25633_v32  ;;  %v20206_v9 = vadd.f32 %v16495_v57, %v2089_v24 }
 0x1a5   :  { %v16400_v5 = vpop.f32.mrf.mxu0  ;;  %16743 = vmatmul.mubr.msk.f32.gmra.mxu0 %vm26_vm0, %v14002_v50  ;;  %v16498_v1 = vpop.f32.mrf.mxu1  ;;  %16841 = vmatmul.mubr.msk.f32.gmra.mxu1 %vm26_vm0, %v19521_v36  ;;  %v25635_v36 = vld [vmem:[#allocation56_spill] sm:$0xff] }
 0x1a6   :  { %v2091_v28 = vadd.f32 %v16400_v5, %v25634_v62  ;;  %v20212_v30 = vadd.f32 %v2661_v27, %v2088_v20  ;;  %16745 = vmatprep.mubr.msk.f32.mxu0 %vm26_vm0, %v14003_v41  ;;  %16843 = vmatprep.mubr.msk.f32.mxu1 %vm26_vm0, %v19528_v34  ;;  %v25636_v41 = vld [vmem:[#allocation57_spill] sm:$0xff]  ;;  %v14006_v20 = vld [vmem:[%s25372_s0 + $0x128] sm:$0xff]  ;;  %v14007_v62 = vld [vmem:[%s25372_s0 + $0x138] sm:$0xff] }
 0x1a7   :  { %v1963_v60 = vpop.f32.mrf.mxu0  ;;  %v2671_v57 = vpop.f32.mrf.mxu1 }
 0x1a8   :  { %v2090_v24 = vadd.f32 %v1963_v60, %v25635_v36  ;;  %v20224_v50 = vadd.f32 %v16498_v1, %v2091_v28 }
 0x1a9   :  { %v16403_v59 = vpop.f32.mrf.mxu0  ;;  %16746 = vmatmul.mubr.msk.f32.gmra.mxu0 %vm26_vm0, %v14004_v16  ;;  %v16501_v27 = vpop.f32.mrf.mxu1  ;;  %16844 = vmatmul.mubr.msk.f32.gmra.mxu1 %vm26_vm0, %v19543_v40  ;;  %v25637_v40 = vld [vmem:[#allocation58_spill] sm:$0xff] }
 0x1aa   :  { %v2093_v32 = vadd.f32 %v16403_v59, %v25636_v41  ;;  %v20230_v34 = vadd.f32 %v2671_v57, %v2090_v24  ;;  %16748 = vmatprep.mubr.msk.f32.mxu0 %vm26_vm0, %v14005_v11  ;;  %16846 = vmatprep.mubr.msk.f32.mxu1 %vm26_vm0, %v19550_v38  ;;  %v25638_v11 = vld [vmem:[#allocation59_spill] sm:$0xff]  ;;  %v14009_v41 = vld [vmem:[%s25372_s0 + $0x150] sm:$0xff] }
 0x1ab   :  { %v1973_v5 = vpop.f32.mrf.mxu0  ;;  %v2681_v1 = vpop.f32.mrf.mxu1  ;;  %v14008_v24 = vld [vmem:[%s25372_s0 + $0x140] sm:$0xff] }
 0x1ac   :  { %v2092_v28 = vadd.f32 %v1973_v5, %v25637_v40  ;;  %v20242_v16 = vadd.f32 %v16501_v27, %v2093_v32  ;;  %v25642_v40 = vld [vmem:[#allocation61_spill] sm:$0xff] }
 0x1ad   :  { %v16406_v60 = vpop.f32.mrf.mxu0  ;;  %16749 = vmatmul.mubr.msk.f32.gmra.mxu0 %vm26_vm0, %v14006_v20  ;;  %v16504_v57 = vpop.f32.mrf.mxu1  ;;  %16847 = vmatmul.mubr.msk.f32.gmra.mxu1 %vm26_vm0, %v19565_v44  ;;  %v25639_v44 = vld [vmem:[#allocation60_spill] sm:$0xff] }
 0x1ae   :  { %v2095_v36 = vadd.f32 %v16406_v60, %v25638_v11  ;;  %v20248_v38 = vadd.f32 %v2681_v1, %v2092_v28  ;;  %16751 = vmatprep.mubr.msk.f32.mxu0 %vm26_vm0, %v14007_v62  ;;  %16849 = vmatprep.mubr.msk.f32.mxu1 %vm26_vm0, %v19572_v42  ;;  %v25641_v62 = vld [vmem:[#allocation62_spill] sm:$0xff]  ;;  %v25644_v11 = vld [vmem:[#allocation63_spill] sm:$0xff] }
 0x1af   :  { %v1983_v59 = vpop.f32.mrf.mxu0  ;;  %v2691_v27 = vpop.f32.mrf.mxu1  ;;  %v14010_v60 = vld [vmem:[%s25372_s0 + $0x158] sm:$0xff] }
 0x1b0   :  { %v2094_v32 = vadd.f32 %v1983_v59, %v25639_v44  ;;  %v20260_v20 = vadd.f32 %v16504_v57, %v2095_v36  ;;  %v25645_v59 = vld [vmem:[#allocation64_spill] sm:$0xff] }
 0x1b1   :  { %v16409_v5 = vpop.f32.mrf.mxu0  ;;  %16752 = vmatmul.mubr.msk.f32.gmra.mxu0 %vm26_vm0, %v14008_v24  ;;  %v16507_v1 = vpop.f32.mrf.mxu1  ;;  %16850 = vmatmul.mubr.msk.f32.gmra.mxu1 %vm26_vm0, %v25641_v62  ;;  %v14011_v24 = vld [vmem:[%s25372_s0 + $0x168] sm:$0xff]  ;;  %v25648_v62 = vld [vmem:[#allocation65_spill] sm:$0xff] }
 0x1b2   :  { %25640 = vst [vmem:[#allocation37_spill] sm:$0xff] %v20260_v20  ;;  %v2097_v28 = vadd.f32 %v16409_v5, %v25642_v40  ;;  %v20266_v42 = vadd.f32 %v2691_v27, %v2094_v32  ;;  %16754 = vmatprep.mubr.msk.f32.mxu0 %vm26_vm0, %v14009_v41  ;;  %16852 = vmatprep.mubr.msk.f32.mxu1 %vm26_vm0, %v25644_v11  ;;  %v25647_v32 = vld [vmem:[#allocation66_spill] sm:$0xff]  ;;  %v14016_v20 = vld [vmem:[%s25372_s0 + $0x1a0] sm:$0xff] }
 0x1b3   :  { %v1993_v57 = vpop.f32.mrf.mxu0  ;;  %v2701_v36 = vpop.f32.mrf.mxu1 }
 0x1b4   :  { %25643 = vst [vmem:[#allocation39_spill] sm:$0xff] %v20266_v42  ;;  %v2096_v44 = vadd.f32 %v1993_v57, %v25645_v59  ;;  %v20278_v5 = vadd.f32 %v16507_v1, %v2097_v28  ;;  %v14012_v42 = vld [vmem:[%s25372_s0 + $0x170] sm:$0xff]  ;;  %v25650_v57 = vld [vmem:[#allocation67_spill] sm:$0xff]  ;;  %v25651_v59 = vld [vmem:[#allocation68_spill] sm:$0xff] }
 0x1b5   :  { %v16412_v27 = vpop.f32.mrf.mxu0  ;;  %16755 = vmatmul.mubr.msk.f32.gmra.mxu0 %vm26_vm0, %v14010_v60  ;;  %v16510_v41 = vpop.f32.mrf.mxu1  ;;  %16853 = vmatmul.mubr.msk.f32.gmra.mxu1 %vm26_vm0, %v25647_v32  ;;  %v14013_v60 = vld [vmem:[%s25372_s0 + $0x180] sm:$0xff] }
 0x1b6   :  { %25646 = vst [vmem:[#allocation40_spill] sm:$0xff] %v20278_v5  ;;  %v2099_v40 = vadd.f32 %v16412_v27, %v25648_v62  ;;  %v20284_v11 = vadd.f32 %v2701_v36, %v2096_v44  ;;  %16757 = vmatprep.mubr.msk.f32.mxu0 %vm26_vm0, %v14011_v24  ;;  %16855 = vmatprep.mubr.msk.f32.mxu1 %vm26_vm0, %v25650_v57  ;;  %v25653_v44 = vld [vmem:[#allocation69_spill] sm:$0xff]  ;;  %v25654_v62 = vld [vmem:[#allocation4_spill] sm:$0xff] }
 0x1b7   :  { %v2003_v1 = vpop.f32.mrf.mxu0  ;;  %v2711_v28 = vpop.f32.mrf.mxu1  ;;  %v14014_v5 = vld [vmem:[%s25372_s0 + $0x188] sm:$0xff] }
 0x1b8   :  { %25649 = vst [vmem:[#allocation41_spill] sm:$0xff] %v20284_v11  ;;  %v2098_v32 = vadd.f32 %v2003_v1, %v25651_v59  ;;  %v20296_v27 = vadd.f32 %v16510_v41, %v2099_v40  ;;  %v25656_v1 = vld [vmem:[#allocation5_spill] sm:$0xff]  ;;  %v25657_v59 = vld [vmem:[#allocation70_spill] sm:$0xff] }
 0x1b9   :  { %v16415_v36 = vpop.f32.mrf.mxu0  ;;  %16758 = vmatmul.mubr.msk.f32.gmra.mxu0 %vm26_vm0, %v14012_v42  ;;  %v16513_v24 = vpop.f32.mrf.mxu1  ;;  %16856 = vmatmul.mubr.msk.f32.gmra.mxu1 %vm26_vm0, %v25653_v44  ;;  %v14015_v42 = vld [vmem:[%s25372_s0 + $0x198] sm:$0xff] }
 0x1ba   :  { %25652 = vst [vmem:[#allocation42_spill] sm:$0xff] %v20296_v27  ;;  %v2101_v11 = vadd.f32 %v16415_v36, %v25654_v62  ;;  %v20302_v57 = vadd.f32 %v2711_v28, %v2098_v32  ;;  %16760 = vmatprep.mubr.msk.f32.mxu0 %vm26_vm0, %v14013_v60  ;;  %16858 = vmatprep.mubr.msk.f32.mxu1 %vm26_vm0, %v25656_v1  ;;  %v14144_v28 = vld [vmem:[%s25372_s0 + $0x199] sm:$0xff] }
 0x1bb   :  { %v2013_v41 = vpop.f32.mrf.mxu0  ;;  %v2721_v40 = vpop.f32.mrf.mxu1  ;;  %v25659_v62 = vld [vmem:[#allocation71_spill] sm:$0xff]  ;;  %v25660_v1 = vld [vmem:[#allocation6_spill] sm:$0xff] }
 0x1bc   :  { %25655 = vst [vmem:[#allocation43_spill] sm:$0xff] %v20302_v57  ;;  %v2100_v32 = vadd.f32 %v2013_v41, %v25657_v59  ;;  %v20317_v60 = vadd.f32 %v16513_v24, %v2101_v11  ;;  %v14017_v41 = vld [vmem:[%s25372_s0 + $0x1e0] sm:$0xff] }
 0x1bd   :  { %v16418_v36 = vpop.f32.mrf.mxu0  ;;  %16761 = vmatmul.mubr.msk.f32.gmra.mxu0 %vm26_vm0, %v14014_v5  ;;  %v16516_v44 = vpop.f32.mrf.mxu1  ;;  %16859 = vmatmul.mubr.msk.f32.gmra.mxu1 %vm26_vm0, %v25659_v62  ;;  %v14145_v5 = vld [vmem:[%s25372_s0 + $0x1a1] sm:$0xff] }
 0x1be   :  { %25658 = vst [vmem:[#allocation44_spill] sm:$0xff] %v20317_v60  ;;  %v2103_v57 = vadd.f32 %v16418_v36, %v25660_v1  ;;  %v20323_v27 = vadd.f32 %v2721_v40, %v2100_v32  ;;  %16763 = vmatprep.mubr.msk.f32.mxu0 %vm26_vm0, %v14015_v42  ;;  %16861 = vmatprep.mubr.msk.f32.mxu1 %vm26_vm0, %v14144_v28  ;;  %v25662_v40 = vld [vmem:[#allocation72_spill] sm:$0xff]  ;;  %v25663_v28 = vld [vmem:[#allocation73_spill] sm:$0xff]  ;;  %v25664_v60 = vld [vmem:[#allocation74_spill] sm:$0xff] }
 0x1bf   :  { %v2023_v11 = vpop.f32.mrf.mxu0  ;;  %v2731_v24 = vpop.f32.mrf.mxu1 }
 0x1c0   :  { %25661 = vst [vmem:[#allocation45_spill] sm:$0xff] %v20323_v27  ;;  %v2102_v59 = vadd.f32 %v2023_v11, %v25662_v40  ;;  %v20337_v32 = vadd.f32 %v16516_v44, %v2103_v57  ;;  %v14018_v27 = vld [vmem:[%s25372_s0 + $0x1e8] sm:$0xff] }
 0x1c1   :  { %v16421_v42 = vpop.f32.mrf.mxu0  ;;  %16764 = vmatmul.mubr.msk.f32.gmra.mxu0 %vm26_vm0, %v14016_v20  ;;  %v16519_v36 = vpop.f32.mrf.mxu1  ;;  %16862 = vmatmul.mubr.msk.f32.gmra.mxu1 %vm26_vm0, %v14145_v5  ;;  %v14019_v20 = vld [vmem:[%s25372_s0 + $0x1f8] sm:$0xff]  ;;  %v25665_v5 = vld [vmem:[#allocation75_spill] sm:$0xff] }
 0x1c2   :  { %v2105_v62 = vadd.f32 %v16421_v42, %v25663_v28  ;;  %v20342_v1 = vadd.f32 %v2731_v24, %v2102_v59  ;;  %16766 = vmatprep.mubr.msk.f32.mxu0 %vm26_vm0, %v14017_v41  ;;  %16864 = vmatprep.mubr.msk.f32.mxu1 %vm26_vm0, %v25664_v60  ;;  %v14020_v42 = vld [vmem:[%s25372_s0 + $0x200] sm:$0xff] }
 0x1c3   :  { %v2033_v57 = vpop.f32.mrf.mxu0  ;;  %v2741_v44 = vpop.f32.mrf.mxu1  ;;  %v25666_v28 = vld [vmem:[#allocation7_spill] sm:$0xff] }
 0x1c4   :  { %v2104_v11 = vadd.f32 %v2033_v57, %v25665_v5  ;;  %v20354_v40 = vadd.f32 %v16519_v36, %v2105_v62 }
 0x1c5   :  { %v16524_v24 = vpop.f32.mrf.mxu0  ;;  %16767 = vmatmul.mubr.msk.f32.gmra.mxu0 %vm26_vm0, %v14018_v27  ;;  %v16622_v41 = vpop.f32.mrf.mxu1  ;;  %16865 = vmatmul.mubr.msk.f32.gmra.mxu1 %vm26_vm0, %v19694_v0  ;;  %v14021_v27 = vld [vmem:[%s25372_s0 + $0x210] sm:$0xff]  ;;  %v25667_v0 = vld [vmem:[#allocation8_spill] sm:$0xff] }
 0x1c6   :  { %v20359_v59 = vadd.f32 %v2741_v44, %v2104_v11  ;;  %v3458_v60 = vadd.f32 %v16524_v24, %v19704_v46  ;;  %16769 = vmatprep.mubr.msk.f32.mxu0 %vm26_vm0, %v14019_v20  ;;  %16867 = vmatprep.mubr.msk.f32.mxu1 %vm26_vm0, %v25666_v28  ;;  %v14022_v24 = vld [vmem:[%s25372_s0 + $0x218] sm:$0xff]  ;;  %v25668_v28 = vld [vmem:[#allocation9_spill] sm:$0xff] }
 0x1c7   :  { %v3138_v36 = vpop.f32.mrf.mxu0  ;;  %v3845_v62 = vpop.f32.mrf.mxu1 }
 0x1c8   :  { %v3457_v57 = vadd.f32 %v3138_v36, %v25667_v0  ;;  %v20372_v44 = vadd.f32 %v16622_v41, %v3458_v60 }
 0x1c9   :  { %v16527_v46 = vpop.f32.mrf.mxu0  ;;  %16770 = vmatmul.mubr.msk.f32.gmra.mxu0 %vm26_vm0, %v14020_v42  ;;  %v16625_v20 = vpop.f32.mrf.mxu1  ;;  %16868 = vmatmul.mubr.msk.f32.gmra.mxu1 %vm26_vm0, %v19718_v56  ;;  %v14023_v42 = vld [vmem:[%s25372_s0 + $0x228] sm:$0xff]  ;;  %v25669_v56 = vld [vmem:[#allocation10_spill] sm:$0xff] }
 0x1ca   :  { %v3460_v5 = vadd.f32 %v16527_v46, %v19728_v13  ;;  %v20378_v11 = vadd.f32 %v3845_v62, %v3457_v57  ;;  %16772 = vmatprep.mubr.msk.f32.mxu0 %vm26_vm0, %v14021_v27  ;;  %16870 = vmatprep.mubr.msk.f32.mxu1 %vm26_vm0, %v25668_v28  ;;  %v14024_v46 = vld [vmem:[%s25372_s0 + $0x230] sm:$0xff]  ;;  %v25670_v28 = vld [vmem:[#allocation11_spill] sm:$0xff] }
 0x1cb   :  { %v3148_v41 = vpop.f32.mrf.mxu0  ;;  %v3855_v60 = vpop.f32.mrf.mxu1 }
 0x1cc   :  { %v3459_v36 = vadd.f32 %v3148_v41, %v25669_v56  ;;  %v20390_v13 = vadd.f32 %v16625_v20, %v3460_v5 }
 0x1cd   :  { %v16530_v62 = vpop.f32.mrf.mxu0  ;;  %16773 = vmatmul.mubr.msk.f32.gmra.mxu0 %vm26_vm0, %v14022_v24  ;;  %v16628_v27 = vpop.f32.mrf.mxu1  ;;  %16871 = vmatmul.mubr.msk.f32.gmra.mxu1 %vm26_vm0, %v19742_v52  ;;  %v14025_v24 = vld [vmem:[%s25372_s0 + $0x240] sm:$0xff]  ;;  %v25671_v52 = vld [vmem:[#allocation12_spill] sm:$0xff] }
 0x1ce   :  { %v3462_v0 = vadd.f32 %v16530_v62, %v19752_v15  ;;  %v20396_v57 = vadd.f32 %v3855_v60, %v3459_v36  ;;  %16775 = vmatprep.mubr.msk.f32.mxu0 %vm26_vm0, %v14023_v42  ;;  %16873 = vmatprep.mubr.msk.f32.mxu1 %vm26_vm0, %v25670_v28  ;;  %v14026_v62 = vld [vmem:[%s25372_s0 + $0x248] sm:$0xff]  ;;  %v25672_v28 = vld [vmem:[#allocation13_spill] sm:$0xff] }
 0x1cf   :  { %v3158_v20 = vpop.f32.mrf.mxu0  ;;  %v3865_v5 = vpop.f32.mrf.mxu1 }
 0x1d0   :  { %v3461_v41 = vadd.f32 %v3158_v20, %v25671_v52  ;;  %v20408_v15 = vadd.f32 %v16628_v27, %v3462_v0 }
 0x1d1   :  { %v16533_v60 = vpop.f32.mrf.mxu0  ;;  %16776 = vmatmul.mubr.msk.f32.gmra.mxu0 %vm26_vm0, %v14024_v46  ;;  %v16631_v42 = vpop.f32.mrf.mxu1  ;;  %16874 = vmatmul.mubr.msk.f32.gmra.mxu1 %vm26_vm0, %v19766_v58  ;;  %v14027_v46 = vld [vmem:[%s25372_s0 + $0x258] sm:$0xff]  ;;  %v14373_v58 = vld [vmem:[%s25373_s3 + $0x8] sm:$0xff] }
 0x1d2   :  { %v3464_v56 = vadd.f32 %v16533_v60, %v19776_v48  ;;  %v20414_v36 = vadd.f32 %v3865_v5, %v3461_v41  ;;  %16778 = vmatprep.mubr.msk.f32.mxu0 %vm26_vm0, %v14025_v24  ;;  %16876 = vmatprep.mubr.msk.f32.mxu1 %vm26_vm0, %v25672_v28  ;;  %v25673_v48 = vld [vmem:[#allocation14_spill] sm:$0xff]  ;;  %v14028_v28 = vld [vmem:[%s25372_s0 + $0x260] sm:$0xff] }
 0x1d3   :  { %v3168_v27 = vpop.f32.mrf.mxu0  ;;  %v3875_v0 = vpop.f32.mrf.mxu1  ;;  %17010 = vmatprep.subr.mxu1 %v14373_v58 }
 0x1d4   :  { %v3463_v20 = vadd.f32 %v3168_v27, %v25673_v48  ;;  %v20429_v5 = vadd.f32 %v16631_v42, %v3464_v56  ;;  %v25674_v42 = vld [vmem:[#allocation15_spill] sm:$0xff]  ;;  %17011 = vmatpush3.msra.mxu1 %v14373_v58  ;;  %v14030_v58 = vld [vmem:[%s25372_s0 + $0x278] sm:$0xff] }
 0x1d5   :  { %v16536_v24 = vpop.f32.mrf.mxu0  ;;  %16779 = vmatmul.mubr.msk.f32.gmra.mxu0 %vm26_vm0, %v14026_v62  ;;  %v16634_v52 = vpop.f32.mrf.mxu1  ;;  %16877 = vmatmul.mubr.msk.f32.gmra.mxu1 %vm26_vm0, %v19790_v54  ;;  %v14029_v62 = vld [vmem:[%s25372_s0 + $0x270] sm:$0xff]  ;;  %v25675_v54 = vld [vmem:[#allocation16_spill] sm:$0xff] }
 0x1d6   :  { %v3466_v41 = vadd.f32 %v16536_v24, %v19800_v23  ;;  %v20435_v60 = vadd.f32 %v3875_v0, %v3463_v20  ;;  %16781 = vmatprep.mubr.msk.f32.mxu0 %vm26_vm0, %v14027_v46  ;;  %16879 = vmatprep.mubr.msk.f32.mxu1 %vm26_vm0, %v25674_v42  ;;  %v25676_v42 = vld [vmem:[#allocation17_spill] sm:$0xff] }
 0x1d7   :  { %v3178_v56 = vpop.f32.mrf.mxu0  ;;  %v3885_v27 = vpop.f32.mrf.mxu1 }
 0x1d8   :  { %v3465_v23 = vadd.f32 %v3178_v56, %v25675_v54  ;;  %v20447_v0 = vadd.f32 %v16634_v52, %v3466_v41 }
 0x1d9   :  { %v16539_v48 = vpop.f32.mrf.mxu0  ;;  %16782 = vmatmul.mubr.msk.f32.gmra.mxu0 %vm26_vm0, %v14028_v28  ;;  %v16637_v46 = vpop.f32.mrf.mxu1  ;;  %16880 = vmatmul.mubr.msk.f32.gmra.mxu1 %vm26_vm0, %v19814_v21  ;;  %v14031_v28 = vld [vmem:[%s25372_s0 + $0x288] sm:$0xff]  ;;  %v25677_v21 = vld [vmem:[#allocation18_spill] sm:$0xff] }
 0x1da   :  { %v3468_v20 = vadd.f32 %v16539_v48, %v19824_v31  ;;  %v20453_v24 = vadd.f32 %v3885_v27, %v3465_v23  ;;  %16784 = vmatprep.mubr.msk.f32.mxu0 %vm26_vm0, %v14029_v62  ;;  %16882 = vmatprep.mubr.msk.f32.mxu1 %vm26_vm0, %v25676_v42  ;;  %v14032_v48 = vld [vmem:[%s25372_s0 + $0x290] sm:$0xff]  ;;  %v25678_v42 = vld [vmem:[#allocation19_spill] sm:$0xff] }
 0x1db   :  { %v3188_v52 = vpop.f32.mrf.mxu0  ;;  %v3895_v41 = vpop.f32.mrf.mxu1 }
 0x1dc   :  { %v3467_v56 = vadd.f32 %v3188_v52, %v25677_v21  ;;  %v20465_v31 = vadd.f32 %v16637_v46, %v3468_v20 }
 0x1dd   :  { %v16542_v27 = vpop.f32.mrf.mxu0  ;;  %16785 = vmatmul.mubr.msk.f32.gmra.mxu0 %vm26_vm0, %v14030_v58  ;;  %v16640_v62 = vpop.f32.mrf.mxu1  ;;  %16883 = vmatmul.mubr.msk.f32.gmra.mxu1 %vm26_vm0, %v19838_v29  ;;  %v14033_v58 = vld [vmem:[%s25372_s0 + $0x2a0] sm:$0xff]  ;;  %v25679_v29 = vld [vmem:[#allocation20_spill] sm:$0xff] }
 0x1de   :  { %v3470_v54 = vadd.f32 %v16542_v27, %v19848_v10  ;;  %v20471_v23 = vadd.f32 %v3895_v41, %v3467_v56  ;;  %16787 = vmatprep.mubr.msk.f32.mxu0 %vm26_vm0, %v14031_v28  ;;  %16885 = vmatprep.mubr.msk.f32.mxu1 %vm26_vm0, %v25678_v42  ;;  %v14034_v27 = vld [vmem:[%s25372_s0 + $0x2a8] sm:$0xff]  ;;  %v25680_v42 = vld [vmem:[#allocation21_spill] sm:$0xff] }
 0x1df   :  { %v3198_v46 = vpop.f32.mrf.mxu0  ;;  %v3905_v20 = vpop.f32.mrf.mxu1 }
 0x1e0   :  { %v3469_v52 = vadd.f32 %v3198_v46, %v25679_v29  ;;  %v20483_v10 = vadd.f32 %v16640_v62, %v3470_v54 }
 0x1e1   :  { %v16545_v41 = vpop.f32.mrf.mxu0  ;;  %16788 = vmatmul.mubr.msk.f32.gmra.mxu0 %vm26_vm0, %v14032_v48  ;;  %v16643_v28 = vpop.f32.mrf.mxu1  ;;  %16886 = vmatmul.mubr.msk.f32.gmra.mxu1 %vm26_vm0, %v19862_v37  ;;  %v14035_v48 = vld [vmem:[%s25372_s0 + $0x2b8] sm:$0xff] }
 0x1e2   :  { %v3472_v21 = vadd.f32 %v16545_v41, %v19872_v4  ;;  %v20489_v56 = vadd.f32 %v3905_v20, %v3469_v52  ;;  %16790 = vmatprep.mubr.msk.f32.mxu0 %vm26_vm0, %v14033_v58  ;;  %16888 = vmatprep.mubr.msk.f32.mxu1 %vm26_vm0, %v25680_v42  ;;  %v25681_v37 = vld [vmem:[#allocation22_spill] sm:$0xff]  ;;  %v14036_v41 = vld [vmem:[%s25372_s0 + $0x2c0] sm:$0xff] }
 0x1e3   :  { %v3208_v62 = vpop.f32.mrf.mxu0  ;;  %v3915_v54 = vpop.f32.mrf.mxu1  ;;  %v25682_v42 = vld [vmem:[#allocation23_spill] sm:$0xff] }
 0x1e4   :  { %v3471_v46 = vadd.f32 %v3208_v62, %v25681_v37  ;;  %v20501_v4 = vadd.f32 %v16643_v28, %v3472_v21 }
 0x1e5   :  { %v16548_v20 = vpop.f32.mrf.mxu0  ;;  %16791 = vmatmul.mubr.msk.f32.gmra.mxu0 %vm26_vm0, %v14034_v27  ;;  %v16646_v58 = vpop.f32.mrf.mxu1  ;;  %16889 = vmatmul.mubr.msk.f32.gmra.mxu1 %vm26_vm0, %v19886_v45  ;;  %v14037_v45 = vld [vmem:[%s25372_s0 + $0x2d0] sm:$0xff]  ;;  %v25683_v27 = vld [vmem:[#allocation24_spill] sm:$0xff] }
 0x1e6   :  { %v3474_v29 = vadd.f32 %v16548_v20, %v19896_v17  ;;  %v20507_v52 = vadd.f32 %v3915_v54, %v3471_v46  ;;  %16793 = vmatprep.mubr.msk.f32.mxu0 %vm26_vm0, %v14035_v48  ;;  %16891 = vmatprep.mubr.msk.f32.mxu1 %vm26_vm0, %v25682_v42  ;;  %v14038_v46 = vld [vmem:[%s25372_s0 + $0x2d8] sm:$0xff]  ;;  %v25684_v20 = vld [vmem:[#allocation25_spill] sm:$0xff] }
 0x1e7   :  { %v3218_v28 = vpop.f32.mrf.mxu0  ;;  %v20515_v21 = vpop.f32.mrf.mxu1  ;;  %v25686_v42 = vld [vmem:[#allocation26_spill] sm:$0xff] }
 0x1e8   :  { %v20521_v17 = vadd.f32 %v3218_v28, %v25683_v27  ;;  %v20523_v62 = vadd.f32 %v16646_v58, %v3474_v29  ;;  %v25689_v27 = vld [vmem:[#allocation28_spill] sm:$0xff] }
 0x1e9   :  { %v16551_v54 = vpop.f32.mrf.mxu0  ;;  %16794 = vmatmul.mubr.msk.f32.gmra.mxu0 %vm26_vm0, %v14036_v41  ;;  %v16649_v48 = vpop.f32.mrf.mxu1  ;;  %16892 = vmatmul.mubr.msk.f32.gmra.mxu1 %vm26_vm0, %v19910_v53  ;;  %v14039_v41 = vld [vmem:[%s25372_s0 + $0x2e8] sm:$0xff] }
 0x1ea   :  { %v3476_v37 = vadd.f32 %v16551_v54, %v19920_v25  ;;  %16796 = vmatprep.mubr.msk.f32.mxu0 %vm26_vm0, %v14037_v45  ;;  %16894 = vmatprep.mubr.msk.f32.mxu1 %vm26_vm0, %v25684_v20  ;;  %v14040_v20 = vld [vmem:[%s25372_s0 + $0x2f0] sm:$0xff] }
 0x1eb   :  { %v3228_v58 = vpop.f32.mrf.mxu0  ;;  %v20535_v29 = vpop.f32.mrf.mxu1 }
 0x1ec   :  { %25685 = vst [vmem:[#allocation46_spill] sm:$0xff] %v20535_v29  ;;  %v20541_v53 = vadd.f32 %v3228_v58, %v25686_v42  ;;  %v20543_v25 = vadd.f32 %v16649_v48, %v3476_v37  ;;  %v25690_v29 = vld [vmem:[#allocation27_spill] sm:$0xff]  ;;  %v25692_v58 = vld [vmem:[#allocation29_spill] sm:$0xff] }
 0x1ed   :  { %v16554_v28 = vpop.f32.mrf.mxu0  ;;  %16797 = vmatmul.mubr.msk.f32.gmra.mxu0 %vm26_vm0, %v14038_v46  ;;  %v16652_v45 = vpop.f32.mrf.mxu1  ;;  %16895 = vmatmul.mubr.msk.f32.gmra.mxu1 %vm26_vm0, %v19934_v61  ;;  %v14041_v46 = vld [vmem:[%s25372_s0 + $0x300] sm:$0xff] }
 0x1ee   :  { %25687 = vst [vmem:[#allocation47_spill] sm:$0xff] %v20541_v53  ;;  %25688 = vst [vmem:[#allocation48_spill] sm:$0xff] %v20543_v25  ;;  %v3478_v54 = vadd.f32 %v16554_v28, %v25689_v27  ;;  %16799 = vmatprep.mubr.msk.f32.mxu0 %vm26_vm0, %v14039_v41  ;;  %16897 = vmatprep.mubr.msk.f32.mxu1 %vm26_vm0, %v25690_v29  ;;  %v25695_v27 = vld [vmem:[#allocation76_spill] sm:$0xff]  ;;  %v25696_v29 = vld [vmem:[#allocation30_spill] sm:$0xff] }
 0x1ef   :  { %v3238_v48 = vpop.f32.mrf.mxu0  ;;  %v20555_v37 = vpop.f32.mrf.mxu1  ;;  %v25697_v25 = vld [vmem:[#allocation77_spill] sm:$0xff] }
 0x1f0   :  { %25691 = vst [vmem:[#allocation49_spill] sm:$0xff] %v20555_v37  ;;  %v20561_v61 = vadd.f32 %v3238_v48, %v25692_v58  ;;  %v20563_v42 = vadd.f32 %v16652_v45, %v3478_v54  ;;  %v14042_v37 = vld [vmem:[%s25372_s0 + $0x308] sm:$0xff] }
 0x1f1   :  { %v16557_v41 = vpop.f32.mrf.mxu0  ;;  %16800 = vmatmul.mubr.msk.f32.gmra.mxu0 %vm26_vm0, %v14040_v20  ;;  %v16655_v28 = vpop.f32.mrf.mxu1  ;;  %16898 = vmatmul.mubr.msk.f32.gmra.mxu1 %vm26_vm0, %v25695_v27  ;;  %v14043_v20 = vld [vmem:[%s25372_s0 + $0x318] sm:$0xff]  ;;  %v25699_v48 = vld [vmem:[#allocation32_spill] sm:$0xff] }
 0x1f2   :  { %25693 = vst [vmem:[#allocation50_spill] sm:$0xff] %v20561_v61  ;;  %25694 = vst [vmem:[#allocation51_spill] sm:$0xff] %v20563_v42  ;;  %v3480_v53 = vadd.f32 %v16557_v41, %v25696_v29  ;;  %16802 = vmatprep.mubr.msk.f32.mxu0 %vm26_vm0, %v14041_v46  ;;  %16900 = vmatprep.mubr.msk.f32.mxu1 %vm26_vm0, %v25697_v25  ;;  %v25701_v29 = vld [vmem:[#allocation31_spill] sm:$0xff]  ;;  %v25702_v25 = vld [vmem:[#allocation34_spill] sm:$0xff] }
 0x1f3   :  { %v3248_v45 = vpop.f32.mrf.mxu0  ;;  %v20575_v54 = vpop.f32.mrf.mxu1  ;;  %v25703_v42 = vld [vmem:[#allocation33_spill] sm:$0xff] }
 0x1f4   :  { %25698 = vst [vmem:[#allocation52_spill] sm:$0xff] %v20575_v54  ;;  %v20581_v58 = vadd.f32 %v3248_v45, %v25699_v48  ;;  %v20583_v41 = vadd.f32 %v16655_v28, %v3480_v53  ;;  %v14044_v54 = vld [vmem:[%s25372_s0 + $0x320] sm:$0xff] }
 0x1f5   :  { %v16560_v46 = vpop.f32.mrf.mxu0  ;;  %16803 = vmatmul.mubr.msk.f32.gmra.mxu0 %vm26_vm0, %v14042_v37  ;;  %v16658_v27 = vpop.f32.mrf.mxu1  ;;  %16901 = vmatmul.mubr.msk.f32.gmra.mxu1 %vm26_vm0, %v25701_v29  ;;  %v14045_v37 = vld [vmem:[%s25372_s0 + $0x330] sm:$0xff]  ;;  %v25705_v45 = vld [vmem:[#allocation35_spill] sm:$0xff] }
 0x1f6   :  { %25700 = vst [vmem:[#allocation53_spill] sm:$0xff] %v20581_v58  ;;  %v3482_v61 = vadd.f32 %v16560_v46, %v25702_v25  ;;  %16805 = vmatprep.mubr.msk.f32.mxu0 %vm26_vm0, %v14043_v20  ;;  %16903 = vmatprep.mubr.msk.f32.mxu1 %vm26_vm0, %v25703_v42  ;;  %v25707_v42 = vld [vmem:[#allocation36_spill] sm:$0xff]  ;;  %v25708_v58 = vld [vmem:[#allocation3_spill] sm:$0xff] }
 0x1f7   :  { %v3258_v53 = vpop.f32.mrf.mxu0  ;;  %v20595_v28 = vpop.f32.mrf.mxu1 }
 0x1f8   :  { %25704 = vst [vmem:[#allocation54_spill] sm:$0xff] %v20595_v28  ;;  %v20601_v48 = vadd.f32 %v3258_v53, %v25705_v45  ;;  %v20603_v46 = vadd.f32 %v16658_v27, %v3482_v61  ;;  %v14046_v28 = vld [vmem:[%s25372_s0 + $0x338] sm:$0xff] }
 0x1f9   :  { %v16563_v20 = vpop.f32.mrf.mxu0  ;;  %16806 = vmatmul.mubr.msk.f32.gmra.mxu0 %vm26_vm0, %v14044_v54  ;;  %v16661_v29 = vpop.f32.mrf.mxu1  ;;  %16904 = vmatmul.mubr.msk.f32.gmra.mxu1 %vm26_vm0, %v20006_v43  ;;  %v14047_v54 = vld [vmem:[%s25372_s0 + $0x348] sm:$0xff]  ;;  %v25710_v53 = vld [vmem:[#allocation38_spill] sm:$0xff] }
 0x1fa   :  { %25706 = vst [vmem:[#allocation55_spill] sm:$0xff] %v20601_v48  ;;  %v3484_v25 = vadd.f32 %v16563_v20, %v25707_v42  ;;  %16808 = vmatprep.mubr.msk.f32.mxu0 %vm26_vm0, %v14045_v37  ;;  %16906 = vmatprep.mubr.msk.f32.mxu1 %vm26_vm0, %v25708_v58  ;;  %v14176_v43 = vld [vmem:[%s25372_s0 + $0x349] sm:$0xff] }
 0x1fb   :  { %v3268_v61 = vpop.f32.mrf.mxu0  ;;  %v20615_v27 = vpop.f32.mrf.mxu1 }
 0x1fc   :  { %25709 = vst [vmem:[#allocation56_spill] sm:$0xff] %v20615_v27  ;;  %v20624_v37 = vadd.f32 %v3268_v61, %v25710_v53  ;;  %v20626_v45 = vadd.f32 %v16661_v29, %v3484_v25  ;;  %v14048_v27 = vld [vmem:[%s25372_s0 + $0x350] sm:$0xff] }
 0x1fd   :  { %v16566_v20 = vpop.f32.mrf.mxu0  ;;  %16809 = vmatmul.mubr.msk.f32.gmra.mxu0 %vm26_vm0, %v14046_v28  ;;  %v16664_v58 = vpop.f32.mrf.mxu1  ;;  %16907 = vmatmul.mubr.msk.f32.gmra.mxu1 %vm26_vm0, %v20033_v33  ;;  %v14177_v29 = vld [vmem:[%s25372_s0 + $0x351] sm:$0xff] }
 0x1fe   :  { %25711 = vst [vmem:[#allocation57_spill] sm:$0xff] %v20624_v37  ;;  %v3486_v42 = vadd.f32 %v16566_v20, %v20043_v49  ;;  %16811 = vmatprep.mubr.msk.f32.mxu0 %vm26_vm0, %v14047_v54  ;;  %16909 = vmatprep.mubr.msk.f32.mxu1 %vm26_vm0, %v14176_v43  ;;  %v14243_v33 = vld [vmem:[%s25372_s0 + $0x32] sm:$0xff]  ;;  %v14244_v20 = vld [vmem:[%s25372_s0 + $0x3a] sm:$0xff] }
 0x1ff   :  { %v3278_v25 = vpop.f32.mrf.mxu0  ;;  %v20640_v28 = vpop.f32.mrf.mxu1 }
 0x200   :  { %25712 = vst [vmem:[#allocation58_spill] sm:$0xff] %v20640_v28  ;;  %v20646_v49 = vadd.f32 %v3278_v25, %v20049_v39  ;;  %v20648_v61 = vadd.f32 %v16664_v58, %v3486_v42  ;;  %v14245_v39 = vld [vmem:[%s25372_s0 + $0x4a] sm:$0xff]  ;;  %v14246_v25 = vld [vmem:[%s25372_s0 + $0x52] sm:$0xff] }
 0x201   :  { %v16569_v54 = vpop.f32.mrf.mxu0  ;;  %16812 = vmatmul.mubr.msk.f32.gmra.mxu0 %vm26_vm0, %v14048_v27  ;;  %v16667_v43 = vpop.f32.mrf.mxu1  ;;  %16910 = vmatmul.mubr.msk.f32.gmra.mxu1 %vm26_vm0, %v14177_v29 }
 0x202   :  { %25713 = vst [vmem:[#allocation59_spill] sm:$0xff] %v20646_v49  ;;  %v3488_v53 = vadd.f32 %v16569_v54, %v20061_v55  ;;  %16914 = vmatprep.mubr.msk.f32.mxu0 %vm26_vm0, %v14243_v33  ;;  %v14301_v49 = vld [vmem:[%s25372_s0 + $0x31a] sm:$0xff] }
 0x203   :  { %v3288_v28 = vpop.f32.mrf.mxu0  ;;  %v20657_v37 = vpop.f32.mrf.mxu1 }
 0x204   :  { %25714 = vst [vmem:[#allocation60_spill] sm:$0xff] %v20657_v37  ;;  %v20663_v27 = vadd.f32 %v3288_v28, %v20067_v63  ;;  %v20665_v58 = vadd.f32 %v16667_v43, %v3488_v53  ;;  %v14247_v63 = vld [vmem:[%s25372_s0 + $0x62] sm:$0xff] }
 0x205   :  { %v16572_v42 = vpop.f32.mrf.mxu0  ;;  %16915 = vmatmul.mubr.msk.f32.vlgmr.msra.gmra.mxu0 %vm26_vm0, %v14244_v20  ;;  %v16670_v55 = vpop.f32.mrf.mxu1  ;;  %v14299_v37 = vld [vmem:[%s25372_s0 + $0x302] sm:$0xff] }
 0x206   :  { %25715 = vst [vmem:[#allocation62_spill] sm:$0xff] %v20663_v27  ;;  %v3490_v29 = vadd.f32 %v16572_v42, %v20080_v51  ;;  %16917 = vmatprep.mubr.msk.f32.mxu0 %vm26_vm0, %v14245_v39  ;;  %v14248_v39 = vld [vmem:[%s25372_s0 + $0x6a] sm:$0xff] }
 0x207   :  { %v3298_v33 = vpop.f32.mrf.mxu0  ;;  %v20673_v54 = vpop.f32.mrf.mxu1 }
 0x208   :  { %25716 = vst [vmem:[#allocation61_spill] sm:$0xff] %v20673_v54  ;;  %v20679_v28 = vadd.f32 %v3298_v33, %v20086_v7  ;;  %v20681_v43 = vadd.f32 %v16670_v55, %v3490_v29  ;;  %v14249_v7 = vld [vmem:[%s25372_s0 + $0x7a] sm:$0xff] }
 0x209   :  { %v16575_v53 = vpop.f32.mrf.mxu0  ;;  %16918 = vmatmul.mubr.msk.f32.gmra.mxu0 %vm26_vm0, %v14246_v25  ;;  %v16673_v51 = vpop.f32.mrf.mxu1 }
 0x20a   :  { %25717 = vst [vmem:[#allocation63_spill] sm:$0xff] %v20679_v28  ;;  %v3492_v20 = vadd.f32 %v16575_v53, %v20098_v3  ;;  %16920 = vmatprep.mubr.msk.f32.mxu0 %vm26_vm0, %v14247_v63  ;;  %v14250_v63 = vld [vmem:[%s25372_s0 + $0x82] sm:$0xff] }
 0x20b   :  { %v3308_v42 = vpop.f32.mrf.mxu0  ;;  %v20689_v54 = vpop.f32.mrf.mxu1 }
 0x20c   :  { %25718 = vst [vmem:[#allocation64_spill] sm:$0xff] %v20689_v54  ;;  %v20695_v55 = vadd.f32 %v3308_v42, %v20104_v47  ;;  %v20697_v29 = vadd.f32 %v16673_v51, %v3492_v20  ;;  %v14251_v47 = vld [vmem:[%s25372_s0 + $0x92] sm:$0xff] }
 0x20d   :  { %v16578_v25 = vpop.f32.mrf.mxu0  ;;  %16921 = vmatmul.mubr.msk.f32.gmra.mxu0 %vm26_vm0, %v14248_v39  ;;  %v16676_v3 = vpop.f32.mrf.mxu1 }
 0x20e   :  { %25719 = vst [vmem:[#allocation66_spill] sm:$0xff] %v20695_v55  ;;  %v3494_v33 = vadd.f32 %v16578_v25, %v20116_v8  ;;  %16923 = vmatprep.mubr.msk.f32.mxu0 %vm26_vm0, %v14249_v7  ;;  %v14252_v7 = vld [vmem:[%s25372_s0 + $0x9a] sm:$0xff] }
 0x20f   :  { %v3318_v53 = vpop.f32.mrf.mxu0  ;;  %v20705_v54 = vpop.f32.mrf.mxu1 }
 0x210   :  { %25720 = vst [vmem:[#allocation65_spill] sm:$0xff] %v20705_v54  ;;  %v20711_v51 = vadd.f32 %v3318_v53, %v20122_v12  ;;  %v20713_v20 = vadd.f32 %v16676_v3, %v3494_v33  ;;  %v14253_v12 = vld [vmem:[%s25372_s0 + $0xaa] sm:$0xff] }
 0x211   :  { %v16581_v39 = vpop.f32.mrf.mxu0  ;;  %16924 = vmatmul.mubr.msk.f32.gmra.mxu0 %vm26_vm0, %v14250_v63  ;;  %v16679_v8 = vpop.f32.mrf.mxu1 }
 0x212   :  { %25721 = vst [vmem:[#allocation67_spill] sm:$0xff] %v20711_v51  ;;  %v3496_v42 = vadd.f32 %v16581_v39, %v20134_v19  ;;  %16926 = vmatprep.mubr.msk.f32.mxu0 %vm26_vm0, %v14251_v47  ;;  %v14254_v47 = vld [vmem:[%s25372_s0 + $0xb2] sm:$0xff] }
 0x213   :  { %v3328_v25 = vpop.f32.mrf.mxu0  ;;  %v20721_v54 = vpop.f32.mrf.mxu1 }
 0x214   :  { %25722 = vst [vmem:[#allocation68_spill] sm:$0xff] %v20721_v54  ;;  %v20727_v3 = vadd.f32 %v3328_v25, %v20140_v14  ;;  %v20729_v33 = vadd.f32 %v16679_v8, %v3496_v42  ;;  %v14255_v14 = vld [vmem:[%s25372_s0 + $0xc2] sm:$0xff] }
 0x215   :  { %v16584_v63 = vpop.f32.mrf.mxu0  ;;  %16927 = vmatmul.mubr.msk.f32.gmra.mxu0 %vm26_vm0, %v14252_v7  ;;  %v16682_v19 = vpop.f32.mrf.mxu1 }
 0x216   :  { %25723 = vst [vmem:[#allocation69_spill] sm:$0xff] %v20727_v3  ;;  %v3498_v53 = vadd.f32 %v16584_v63, %v20152_v2  ;;  %16929 = vmatprep.mubr.msk.f32.mxu0 %vm26_vm0, %v14253_v12  ;;  %v14256_v12 = vld [vmem:[%s25372_s0 + $0xca] sm:$0xff] }
 0x217   :  { %v3338_v39 = vpop.f32.mrf.mxu0  ;;  %v20737_v54 = vpop.f32.mrf.mxu1 }
 0x218   :  { %25724 = vst [vmem:[#allocation4_spill] sm:$0xff] %v20737_v54  ;;  %v20743_v8 = vadd.f32 %v3338_v39, %v20158_v18  ;;  %v20745_v42 = vadd.f32 %v16682_v19, %v3498_v53  ;;  %v14257_v18 = vld [vmem:[%s25372_s0 + $0xda] sm:$0xff] }
 0x219   :  { %v16587_v7 = vpop.f32.mrf.mxu0  ;;  %16930 = vmatmul.mubr.msk.f32.gmra.mxu0 %vm26_vm0, %v14254_v47  ;;  %v16685_v2 = vpop.f32.mrf.mxu1 }
 0x21a   :  { %25725 = vst [vmem:[#allocation5_spill] sm:$0xff] %v20743_v8  ;;  %v3500_v25 = vadd.f32 %v16587_v7, %v20170_v35  ;;  %16932 = vmatprep.mubr.msk.f32.mxu0 %vm26_vm0, %v14255_v14  ;;  %v14258_v14 = vld [vmem:[%s25372_s0 + $0xe2] sm:$0xff] }
 0x21b   :  { %v3348_v63 = vpop.f32.mrf.mxu0  ;;  %v20753_v54 = vpop.f32.mrf.mxu1 }
 0x21c   :  { %25726 = vst [vmem:[#allocation70_spill] sm:$0xff] %v20753_v54  ;;  %v20759_v19 = vadd.f32 %v3348_v63, %v20176_v22  ;;  %v20761_v53 = vadd.f32 %v16685_v2, %v3500_v25  ;;  %v14259_v22 = vld [vmem:[%s25372_s0 + $0xf2] sm:$0xff] }
 0x21d   :  { %v16590_v47 = vpop.f32.mrf.mxu0  ;;  %16933 = vmatmul.mubr.msk.f32.gmra.mxu0 %vm26_vm0, %v14256_v12  ;;  %v16688_v35 = vpop.f32.mrf.mxu1 }
 0x21e   :  { %25727 = vst [vmem:[#allocation71_spill] sm:$0xff] %v20759_v19  ;;  %v3502_v39 = vadd.f32 %v16590_v47, %v20188_v6  ;;  %16935 = vmatprep.mubr.msk.f32.mxu0 %vm26_vm0, %v14257_v18  ;;  %v14260_v18 = vld [vmem:[%s25372_s0 + $0xfa] sm:$0xff] }
 0x21f   :  { %v3358_v7 = vpop.f32.mrf.mxu0  ;;  %v20769_v54 = vpop.f32.mrf.mxu1 }
 0x220   :  { %25728 = vst [vmem:[#allocation6_spill] sm:$0xff] %v20769_v54  ;;  %v20775_v2 = vadd.f32 %v3358_v7, %v20194_v26  ;;  %v20777_v25 = vadd.f32 %v16688_v35, %v3502_v39  ;;  %v14261_v26 = vld [vmem:[%s25372_s0 + $0x10a] sm:$0xff] }
 0x221   :  { %v16593_v12 = vpop.f32.mrf.mxu0  ;;  %16936 = vmatmul.mubr.msk.f32.gmra.mxu0 %vm26_vm0, %v14258_v14  ;;  %v16691_v6 = vpop.f32.mrf.mxu1 }
 0x222   :  { %25729 = vst [vmem:[#allocation72_spill] sm:$0xff] %v20775_v2  ;;  %v3504_v63 = vadd.f32 %v16593_v12, %v20206_v9  ;;  %16938 = vmatprep.mubr.msk.f32.mxu0 %vm26_vm0, %v14259_v22  ;;  %v14262_v22 = vld [vmem:[%s25372_s0 + $0x112] sm:$0xff] }
 0x223   :  { %v3368_v47 = vpop.f32.mrf.mxu0  ;;  %v20785_v54 = vpop.f32.mrf.mxu1 }
 0x224   :  { %25730 = vst [vmem:[#allocation73_spill] sm:$0xff] %v20785_v54  ;;  %v20791_v35 = vadd.f32 %v3368_v47, %v20212_v30  ;;  %v20793_v39 = vadd.f32 %v16691_v6, %v3504_v63  ;;  %v14263_v30 = vld [vmem:[%s25372_s0 + $0x122] sm:$0xff] }
 0x225   :  { %v16596_v14 = vpop.f32.mrf.mxu0  ;;  %16939 = vmatmul.mubr.msk.f32.gmra.mxu0 %vm26_vm0, %v14260_v18  ;;  %v16694_v9 = vpop.f32.mrf.mxu1 }
 0x226   :  { %25731 = vst [vmem:[#allocation74_spill] sm:$0xff] %v20791_v35  ;;  %v3506_v7 = vadd.f32 %v16596_v14, %v20224_v50  ;;  %16941 = vmatprep.mubr.msk.f32.mxu0 %vm26_vm0, %v14261_v26  ;;  %v14264_v26 = vld [vmem:[%s25372_s0 + $0x12a] sm:$0xff] }
 0x227   :  { %v3378_v12 = vpop.f32.mrf.mxu0  ;;  %v20801_v54 = vpop.f32.mrf.mxu1 }
 0x228   :  { %25732 = vst [vmem:[#allocation75_spill] sm:$0xff] %v20801_v54  ;;  %v20807_v6 = vadd.f32 %v3378_v12, %v20230_v34  ;;  %v20809_v63 = vadd.f32 %v16694_v9, %v3506_v7  ;;  %v14265_v34 = vld [vmem:[%s25372_s0 + $0x13a] sm:$0xff]  ;;  %v25736_v12 = vld [vmem:[#allocation37_spill] sm:$0xff] }
 0x229   :  { %v16599_v18 = vpop.f32.mrf.mxu0  ;;  %16942 = vmatmul.mubr.msk.f32.gmra.mxu0 %vm26_vm0, %v14262_v22  ;;  %v16697_v50 = vpop.f32.mrf.mxu1 }
 0x22a   :  { %25733 = vst [vmem:[#allocation7_spill] sm:$0xff] %v20807_v6  ;;  %v3508_v47 = vadd.f32 %v16599_v18, %v20242_v16  ;;  %16944 = vmatprep.mubr.msk.f32.mxu0 %vm26_vm0, %v14263_v30  ;;  %v14266_v18 = vld [vmem:[%s25372_s0 + $0x142] sm:$0xff] }
 0x22b   :  { %v3388_v14 = vpop.f32.mrf.mxu0  ;;  %v20817_v54 = vpop.f32.mrf.mxu1 }
 0x22c   :  { %25734 = vst [vmem:[#allocation8_spill] sm:$0xff] %v20817_v54  ;;  %v20823_v9 = vadd.f32 %v3388_v14, %v20248_v38  ;;  %v20825_v7 = vadd.f32 %v16697_v50, %v3508_v47  ;;  %v14267_v38 = vld [vmem:[%s25372_s0 + $0x152] sm:$0xff]  ;;  %v25738_v50 = vld [vmem:[#allocation39_spill] sm:$0xff] }
 0x22d   :  { %v16602_v22 = vpop.f32.mrf.mxu0  ;;  %16945 = vmatmul.mubr.msk.f32.gmra.mxu0 %vm26_vm0, %v14264_v26  ;;  %v16700_v16 = vpop.f32.mrf.mxu1 }
 0x22e   :  { %25735 = vst [vmem:[#allocation9_spill] sm:$0xff] %v20823_v9  ;;  %v3510_v30 = vadd.f32 %v16602_v22, %v25736_v12  ;;  %16947 = vmatprep.mubr.msk.f32.mxu0 %vm26_vm0, %v14265_v34  ;;  %v25740_v22 = vld [vmem:[#allocation40_spill] sm:$0xff] }
 0x22f   :  { %v3398_v54 = vpop.f32.mrf.mxu0  ;;  %v20833_v6 = vpop.f32.mrf.mxu1 }
 0x230   :  { %25737 = vst [vmem:[#allocation10_spill] sm:$0xff] %v20833_v6  ;;  %v20839_v47 = vadd.f32 %v3398_v54, %v25738_v50  ;;  %v20841_v26 = vadd.f32 %v16700_v16, %v3510_v30  ;;  %v14268_v6 = vld [vmem:[%s25372_s0 + $0x15a] sm:$0xff]  ;;  %v14269_v54 = vld [vmem:[%s25372_s0 + $0x16a] sm:$0xff] }
 0x231   :  { %v16605_v14 = vpop.f32.mrf.mxu0  ;;  %16948 = vmatmul.mubr.msk.f32.gmra.mxu0 %vm26_vm0, %v14266_v18  ;;  %v16703_v34 = vpop.f32.mrf.mxu1  ;;  %v25742_v16 = vld [vmem:[#allocation41_spill] sm:$0xff] }
 0x232   :  { %25739 = vst [vmem:[#allocation11_spill] sm:$0xff] %v20839_v47  ;;  %v3512_v12 = vadd.f32 %v16605_v14, %v25740_v22  ;;  %16950 = vmatprep.mubr.msk.f32.mxu0 %vm26_vm0, %v14267_v38  ;;  %v25744_v14 = vld [vmem:[#allocation42_spill] sm:$0xff] }
 0x233   :  { %v3408_v9 = vpop.f32.mrf.mxu0  ;;  %v20849_v35 = vpop.f32.mrf.mxu1 }
 0x234   :  { %25741 = vst [vmem:[#allocation12_spill] sm:$0xff] %v20849_v35  ;;  %v20855_v30 = vadd.f32 %v3408_v9, %v25742_v16  ;;  %v20857_v18 = vadd.f32 %v16703_v34, %v3512_v12  ;;  %v14270_v35 = vld [vmem:[%s25372_s0 + $0x172] sm:$0xff]  ;;  %v14271_v9 = vld [vmem:[%s25372_s0 + $0x182] sm:$0xff] }
 0x235   :  { %v16608_v50 = vpop.f32.mrf.mxu0  ;;  %16951 = vmatmul.mubr.msk.f32.gmra.mxu0 %vm26_vm0, %v14268_v6  ;;  %v16706_v38 = vpop.f32.mrf.mxu1  ;;  %v25746_v34 = vld [vmem:[#allocation43_spill] sm:$0xff] }
 0x236   :  { %25743 = vst [vmem:[#allocation13_spill] sm:$0xff] %v20855_v30  ;;  %v3514_v22 = vadd.f32 %v16608_v50, %v25744_v14  ;;  %16953 = vmatprep.mubr.msk.f32.mxu0 %vm26_vm0, %v14269_v54  ;;  %v25748_v50 = vld [vmem:[#allocation44_spill] sm:$0xff] }
 0x237   :  { %v3418_v47 = vpop.f32.mrf.mxu0  ;;  %v20865_v2 = vpop.f32.mrf.mxu1 }
 0x238   :  { %25745 = vst [vmem:[#allocation14_spill] sm:$0xff] %v20865_v2  ;;  %v20871_v12 = vadd.f32 %v3418_v47, %v25746_v34  ;;  %v20873_v6 = vadd.f32 %v16706_v38, %v3514_v22  ;;  %v14272_v2 = vld [vmem:[%s25372_s0 + $0x18a] sm:$0xff]  ;;  %v14273_v47 = vld [vmem:[%s25372_s0 + $0x19a] sm:$0xff] }
 0x239   :  { %v16611_v16 = vpop.f32.mrf.mxu0  ;;  %16954 = vmatmul.mubr.msk.f32.gmra.mxu0 %vm26_vm0, %v14270_v35  ;;  %v16709_v54 = vpop.f32.mrf.mxu1  ;;  %v25750_v38 = vld [vmem:[#allocation45_spill] sm:$0xff] }
 0x23a   :  { %25747 = vst [vmem:[#allocation15_spill] sm:$0xff] %v20871_v12  ;;  %v3516_v14 = vadd.f32 %v16611_v16, %v25748_v50  ;;  %16956 = vmatprep.mubr.msk.f32.mxu0 %vm26_vm0, %v14271_v9  ;;  %v14274_v50 = vld [vmem:[%s25372_s0 + $0x1a2] sm:$0xff] }
 0x23b   :  { %v3428_v30 = vpop.f32.mrf.mxu0  ;;  %v20881_v19 = vpop.f32.mrf.mxu1 }
 0x23c   :  { %25749 = vst [vmem:[#allocation16_spill] sm:$0xff] %v20881_v19  ;;  %v20887_v22 = vadd.f32 %v3428_v30, %v25750_v38  ;;  %v20889_v35 = vadd.f32 %v16709_v54, %v3516_v14  ;;  %v14275_v30 = vld [vmem:[%s25372_s0 + $0x1e2] sm:$0xff]  ;;  %v14276_v38 = vld [vmem:[%s25372_s0 + $0x1ea] sm:$0xff] }
 0x23d   :  { %v16614_v34 = vpop.f32.mrf.mxu0  ;;  %16957 = vmatmul.mubr.msk.f32.gmra.mxu0 %vm26_vm0, %v14272_v2  ;;  %v16712_v9 = vpop.f32.mrf.mxu1 }
 0x23e   :  { %25751 = vst [vmem:[#allocation17_spill] sm:$0xff] %v20887_v22  ;;  %v3518_v16 = vadd.f32 %v16614_v34, %v20337_v32  ;;  %16959 = vmatprep.mubr.msk.f32.mxu0 %vm26_vm0, %v14273_v47 }
 0x23f   :  { %v3438_v19 = vpop.f32.mrf.mxu0  ;;  %v20897_v12 = vpop.f32.mrf.mxu1 }
 0x240   :  { %25752 = vst [vmem:[#allocation18_spill] sm:$0xff] %v20897_v12  ;;  %v20903_v54 = vadd.f32 %v3438_v19, %v20342_v1  ;;  %v20905_v2 = vadd.f32 %v16712_v9, %v3518_v16  ;;  %v14277_v1 = vld [vmem:[%s25372_s0 + $0x1fa] sm:$0xff] }
 0x241   :  { %v16617_v14 = vpop.f32.mrf.mxu0  ;;  %16960 = vmatmul.mubr.msk.f32.gmra.mxu0 %vm26_vm0, %v14274_v50  ;;  %v16715_v32 = vpop.f32.mrf.mxu1  ;;  %v17914_v50 = vmov 0.0  }
 0x242   :  { %25753 = vst [vmem:[#allocation19_spill] sm:$0xff] %v20903_v54  ;;  %v3520_v47 = vadd.f32 %v16617_v14, %v20354_v40  ;;  %16962 = vmatprep.mubr.msk.f32.mxu0 %vm26_vm0, %v14275_v30  ;;  %27 = vst.msk [vmem:[#allocation2] sm:$0xff] %vm26_vm0, %v17914_v50  ;;  %v20949_v30 = vld [vmem:[%s25372_s0 + $0x202] sm:$0xff] }
 0x243   :  { %v3448_v34 = vpop.f32.mrf.mxu0  ;;  %v20913_v12 = vpop.f32.mrf.mxu1  ;;  %28 = vst.msk [vmem:[#allocation2 + $0x8] sm:$0xff] %vm26_vm0, %v17914_v50  ;;  %31 = vst.msk [vmem:[#allocation2 + $0x1b0] sm:$0xff] %vm26_vm0, %v17914_v50 }
 0x244   :  { %25754 = vst [vmem:[#allocation20_spill] sm:$0xff] %v20913_v12  ;;  %v20919_v19 = vadd.f32 %v3448_v34, %v20359_v59  ;;  %v20921_v9 = vadd.f32 %v16715_v32, %v3520_v47  ;;  %32 = vst.msk [vmem:[#allocation2 + $0x1b8] sm:$0xff] %vm26_vm0, %v17914_v50  ;;  %v14279_v32 = vld [vmem:[%s25372_s0 + $0x212] sm:$0xff] }
 0x245   :  { %v16720_v16 = vpop.f32.mrf.mxu0  ;;  %16963 = vmatmul.mubr.msk.f32.gmra.mxu0 %vm26_vm0, %v14276_v38  ;;  %v20924_v40 = vpop.f32.mrf.mxu1  ;;  %35 = vst.msk [vmem:[#allocation2 + $0x198] sm:$0xff] %vm26_vm0, %v17914_v50  ;;  %36 = vst.msk [vmem:[#allocation2 + $0x1a0] sm:$0xff] %vm26_vm0, %v17914_v50  ;;  %v14282_v12 = vld [vmem:[%s25372_s0 + $0x232] sm:$0xff] }
 0x246   :  { %25755 = vst [vmem:[#allocation21_spill] sm:$0xff] %v20919_v19  ;;  %38 = vst.msk [vmem:[#allocation2 + $0x348] sm:$0xff] %vm26_vm0, %v17914_v50  ;;  %v20943_v59 = vadd.f32 %v16720_v16, %v20372_v44  ;;  %16965 = vmatprep.mubr.msk.f32.mxu0 %vm26_vm0, %v14277_v1 }
 0x247   :  { %39 = vst.msk [vmem:[#allocation2 + $0x350] sm:$0xff] %vm26_vm0, %v17914_v50  ;;  %v4553_v44 = vpop.f32.mrf.mxu0  ;;  %v21087_v14 = vpop.f32.mrf.mxu1 }
 0x248   :  { %42 = vst.msk [vmem:[#allocation2] sm:$0x1] %vm41_vm1, %v17914_v50  ;;  %43 = vst.msk [vmem:[#allocation2 + $0x18] sm:$0x1] %vm41_vm1, %v17914_v50  ;;  %v21097_v47 = vadd.f32 %v4553_v44, %v20378_v11  ;;  %v14280_v11 = vld [vmem:[%s25372_s0 + $0x21a] sm:$0xff] }
 0x249   :  { %44 = vst.msk [vmem:[#allocation2 + $0x30] sm:$0x1] %vm41_vm1, %v17914_v50  ;;  %45 = vst.msk [vmem:[#allocation2 + $0x48] sm:$0x1] %vm41_vm1, %v17914_v50  ;;  %v16723_v38 = vpop.f32.mrf.mxu0  ;;  %16966 = vmatmul.mubr.msk.f32.gmra.mxu0 %vm26_vm0, %v20949_v30  ;;  %v21116_v16 = vpop.f32.mrf.mxu1 }
 0x24a   :  { %46 = vst.msk [vmem:[#allocation2 + $0x60] sm:$0x1] %vm41_vm1, %v17914_v50  ;;  %47 = vst.msk [vmem:[#allocation2 + $0x78] sm:$0x1] %vm41_vm1, %v17914_v50  ;;  %v21110_v34 = vadd.f32 %v16723_v38, %v20390_v13  ;;  %16968 = vmatprep.mubr.msk.f32.mxu0 %vm26_vm0, %v14279_v32  ;;  %v6550_v13 = vld [vmem:[%s25373_s3] sm:$0xff] }
 0x24b   :  { %48 = vst.msk [vmem:[#allocation2 + $0x90] sm:$0x1] %vm41_vm1, %v17914_v50  ;;  %49 = vst.msk [vmem:[#allocation2 + $0xa8] sm:$0x1] %vm41_vm1, %v17914_v50  ;;  %v4563_v1 = vpop.f32.mrf.mxu0  ;;  %17108 = vmatprep.subr.mxu0 %v6550_v13  ;;  %v6551_v32 = vld [vmem:[#allocation2 + $0x1] sm:$0xff] }
 0x24c   :  { %50 = vst.msk [vmem:[#allocation2 + $0xc0] sm:$0x1] %vm41_vm1, %v17914_v50  ;;  %51 = vst.msk [vmem:[#allocation2 + $0xd8] sm:$0x1] %vm41_vm1, %v17914_v50  ;;  %v21122_v44 = vadd.f32 %v4563_v1, %v20396_v57  ;;  %17012 = vmatprep.mubr.msk.f32.mxu1 %vm26_vm0, %v6551_v32  ;;  %v21136_v1 = vpop.f32.mrf.mxu1  ;;  %17109 = vmatpush3.msra.mxu0 %v6550_v13  ;;  %v14284_v32 = vld [vmem:[%s25372_s0 + $0x24a] sm:$0xff] }
 0x24d   :  { %52 = vst.msk [vmem:[#allocation2 + $0xf0] sm:$0x1] %vm41_vm1, %v17914_v50  ;;  %53 = vst.msk [vmem:[#allocation2 + $0x108] sm:$0x1] %vm41_vm1, %v17914_v50  ;;  %v16726_v30 = vpop.f32.mrf.mxu0  ;;  %16969 = vmatmul.mubr.msk.f32.gmra.mxu0 %vm26_vm0, %v14280_v11  ;;  %v14283_v11 = vld [vmem:[%s25372_s0 + $0x242] sm:$0xff] }
 0x24e   :  { %54 = vst.msk [vmem:[#allocation2 + $0x120] sm:$0x1] %vm41_vm1, %v17914_v50  ;;  %55 = vst.msk [vmem:[#allocation2 + $0x138] sm:$0x1] %vm41_vm1, %v17914_v50  ;;  %v21129_v38 = vadd.f32 %v16726_v30, %v20408_v15  ;;  %v21153_v54 = vpop.f32.mrf.mxu1 }
 0x24f   :  { %56 = vst.msk [vmem:[#allocation2 + $0x150] sm:$0x1] %vm41_vm1, %v17914_v50  ;;  %57 = vst.msk [vmem:[#allocation2 + $0x168] sm:$0x1] %vm41_vm1, %v17914_v50  ;;  %v4573_v19 = vpop.f32.mrf.mxu0 }
 0x250   :  { %58 = vst.msk [vmem:[#allocation2 + $0x180] sm:$0x1] %vm41_vm1, %v17914_v50  ;;  %59 = vst.msk [vmem:[#allocation2 + $0x198] sm:$0x1] %vm41_vm1, %v17914_v50  ;;  %v21143_v15 = vadd.f32 %v4573_v19, %v20414_v36  ;;  %v14285_v36 = vld [vmem:[%s25372_s0 + $0x25a] sm:$0xff] }
 0x251   :  { %60 = vst.msk [vmem:[#allocation2 + $0x1b0] sm:$0x1] %vm41_vm1, %v17914_v50  ;;  %61 = vst.msk [vmem:[#allocation2 + $0x1c8] sm:$0x1] %vm41_vm1, %v17914_v50 }
 0x252   :  { %62 = vst.msk [vmem:[#allocation2 + $0x1e0] sm:$0x1] %vm41_vm1, %v17914_v50  ;;  %63 = vst.msk [vmem:[#allocation2 + $0x1f8] sm:$0x1] %vm41_vm1, %v17914_v50 }
 0x253   :  { %64 = vst.msk [vmem:[#allocation2 + $0x210] sm:$0x1] %vm41_vm1, %v17914_v50  ;;  %65 = vst.msk [vmem:[#allocation2 + $0x228] sm:$0x1] %vm41_vm1, %v17914_v50 }
 0x254   :  { %66 = vst.msk [vmem:[#allocation2 + $0x240] sm:$0x1] %vm41_vm1, %v17914_v50  ;;  %67 = vst.msk [vmem:[#allocation2 + $0x258] sm:$0x1] %vm41_vm1, %v17914_v50 }
 0x255   :  { %68 = vst.msk [vmem:[#allocation2 + $0x270] sm:$0x1] %vm41_vm1, %v17914_v50  ;;  %69 = vst.msk [vmem:[#allocation2 + $0x288] sm:$0x1] %vm41_vm1, %v17914_v50 }
 0x256   :  { %70 = vst.msk [vmem:[#allocation2 + $0x2a0] sm:$0x1] %vm41_vm1, %v17914_v50  ;;  %71 = vst.msk [vmem:[#allocation2 + $0x2b8] sm:$0x1] %vm41_vm1, %v17914_v50 }
 0x257   :  { %72 = vst.msk [vmem:[#allocation2 + $0x2d0] sm:$0x1] %vm41_vm1, %v17914_v50  ;;  %73 = vst.msk [vmem:[#allocation2 + $0x2e8] sm:$0x1] %vm41_vm1, %v17914_v50 }
 0x258   :  { %74 = vst.msk [vmem:[#allocation2 + $0x300] sm:$0x1] %vm41_vm1, %v17914_v50  ;;  %75 = vst.msk [vmem:[#allocation2 + $0x318] sm:$0x1] %vm41_vm1, %v17914_v50 }
 0x259   :  { %76 = vst.msk [vmem:[#allocation2 + $0x330] sm:$0x1] %vm41_vm1, %v17914_v50  ;;  %77 = vst.msk [vmem:[#allocation2 + $0x348] sm:$0x1] %vm41_vm1, %v17914_v50 }
 0x25a   :  { %79 = vst.msk [vmem:[#allocation2 + $0x29] sm:$0x1] %vm41_vm1, %v17914_v50  ;;  %80 = vst.msk [vmem:[#allocation2 + $0x41] sm:$0x1] %vm41_vm1, %v17914_v50 }
 0x25b   :  { %81 = vst.msk [vmem:[#allocation2 + $0x59] sm:$0x1] %vm41_vm1, %v17914_v50  ;;  %82 = vst.msk [vmem:[#allocation2 + $0x71] sm:$0x1] %vm41_vm1, %v17914_v50 }
 0x25c   :  { %83 = vst.msk [vmem:[#allocation2 + $0x89] sm:$0x1] %vm41_vm1, %v17914_v50  ;;  %84 = vst.msk [vmem:[#allocation2 + $0xa1] sm:$0x1] %vm41_vm1, %v17914_v50 }
 0x25d   :  { %85 = vst.msk [vmem:[#allocation2 + $0xb9] sm:$0x1] %vm41_vm1, %v17914_v50  ;;  %86 = vst.msk [vmem:[#allocation2 + $0xd1] sm:$0x1] %vm41_vm1, %v17914_v50 }
 0x25e   :  { %87 = vst.msk [vmem:[#allocation2 + $0xe9] sm:$0x1] %vm41_vm1, %v17914_v50  ;;  %88 = vst.msk [vmem:[#allocation2 + $0x101] sm:$0x1] %vm41_vm1, %v17914_v50 }
 0x25f   :  { %89 = vst.msk [vmem:[#allocation2 + $0x119] sm:$0x1] %vm41_vm1, %v17914_v50  ;;  %90 = vst.msk [vmem:[#allocation2 + $0x131] sm:$0x1] %vm41_vm1, %v17914_v50 }
 0x260   :  { %91 = vst.msk [vmem:[#allocation2 + $0x149] sm:$0x1] %vm41_vm1, %v17914_v50  ;;  %92 = vst.msk [vmem:[#allocation2 + $0x161] sm:$0x1] %vm41_vm1, %v17914_v50 }
 0x261   :  { %93 = vst.msk [vmem:[#allocation2 + $0x179] sm:$0x1] %vm41_vm1, %v17914_v50  ;;  %94 = vst.msk [vmem:[#allocation2 + $0x191] sm:$0x1] %vm41_vm1, %v17914_v50 }
 0x262   :  { %97 = vst.msk [vmem:[#allocation2 + $0x1d9] sm:$0x1] %vm41_vm1, %v17914_v50  ;;  %98 = vst.msk [vmem:[#allocation2 + $0x1f1] sm:$0x1] %vm41_vm1, %v17914_v50 }
 0x263   :  { %99 = vst.msk [vmem:[#allocation2 + $0x209] sm:$0x1] %vm41_vm1, %v17914_v50  ;;  %100 = vst.msk [vmem:[#allocation2 + $0x221] sm:$0x1] %vm41_vm1, %v17914_v50 }
 0x264   :  { %101 = vst.msk [vmem:[#allocation2 + $0x239] sm:$0x1] %vm41_vm1, %v17914_v50  ;;  %102 = vst.msk [vmem:[#allocation2 + $0x251] sm:$0x1] %vm41_vm1, %v17914_v50 }
 0x265   :  { %103 = vst.msk [vmem:[#allocation2 + $0x269] sm:$0x1] %vm41_vm1, %v17914_v50  ;;  %104 = vst.msk [vmem:[#allocation2 + $0x281] sm:$0x1] %vm41_vm1, %v17914_v50 }
 0x266   :  { %105 = vst.msk [vmem:[#allocation2 + $0x299] sm:$0x1] %vm41_vm1, %v17914_v50  ;;  %106 = vst.msk [vmem:[#allocation2 + $0x2b1] sm:$0x1] %vm41_vm1, %v17914_v50 }
 0x267   :  { %107 = vst.msk [vmem:[#allocation2 + $0x2c9] sm:$0x1] %vm41_vm1, %v17914_v50  ;;  %108 = vst.msk [vmem:[#allocation2 + $0x2e1] sm:$0x1] %vm41_vm1, %v17914_v50 }
 0x268   :  { %109 = vst.msk [vmem:[#allocation2 + $0x2f9] sm:$0x1] %vm41_vm1, %v17914_v50  ;;  %110 = vst.msk [vmem:[#allocation2 + $0x311] sm:$0x1] %vm41_vm1, %v17914_v50 }
 0x269   :  { %111 = vst.msk [vmem:[#allocation2 + $0x329] sm:$0x1] %vm41_vm1, %v17914_v50  ;;  %112 = vst.msk [vmem:[#allocation2 + $0x341] sm:$0x1] %vm41_vm1, %v17914_v50 }
 0x26a   :  { %30 = vst.msk [vmem:[#allocation2 + $0x10] sm:$0x3] %vm29_vm2, %v17914_v50  ;;  %33 = vst.msk [vmem:[#allocation2 + $0x1c0] sm:$0x3] %vm29_vm2, %v17914_v50 }
 0x26b   :  { %37 = vst.msk [vmem:[#allocation2 + $0x1a8] sm:$0x3] %vm29_vm2, %v17914_v50  ;;  %40 = vst.msk [vmem:[#allocation2 + $0x358] sm:$0x3] %vm29_vm2, %v17914_v50 }
 0x26c   :  { %78 = vst.msk [vmem:[#allocation2 + $0x11] sm:$0x1] %vm41_vm1, %v17914_v50  ;;  %95 = vst.msk [vmem:[#allocation2 + $0x1a9] sm:$0x1] %vm41_vm1, %v17914_v50 }
 0x26d   :  { %96 = vst.msk [vmem:[#allocation2 + $0x1c1] sm:$0x1] %vm41_vm1, %v17914_v50  ;;  %113 = vst.msk [vmem:[#allocation2 + $0x359] sm:$0x1] %vm41_vm1, %v17914_v50  ;;  %v14281_v50 = vld [vmem:[%s25372_s0 + $0x22a] sm:$0xff] }
 0x26e   :  { %16971 = vmatprep.mubr.msk.f32.mxu0 %vm26_vm0, %v14281_v50  ;;  %v16729_v50 = vpop.f32.mrf.mxu0 }
 0x26f   :  { %16972 = vmatmul.mubr.msk.f32.gmra.mxu0 %vm26_vm0, %v14282_v12  ;;  %v21147_v30 = vadd.f32 %v16729_v50, %v20429_v5  ;;  %v21172_v50 = vpop.f32.mrf.mxu1 }
 0x270   :  { %16974 = vmatprep.mubr.msk.f32.mxu0 %vm26_vm0, %v14283_v11  ;;  %v4583_v13 = vpop.f32.mrf.mxu0  ;;  %v14502_v11 = vld [vmem:[%s25373_s3 + $0x10] sm:$0xff] }
 0x271   :  { %v6552_v57 = vld [vmem:[#allocation2 + $0x9] sm:$0xff]  ;;  %v21159_v19 = vadd.f32 %v4583_v13, %v20435_v60  ;;  %17206 = vmatprep.subr.mxu1 %v14502_v11  ;;  %v21188_v22 = vpop.f32.mrf.mxu1 }
 0x272   :  { %17013 = vmatmul.mubr.msk.f32.vlgmr.msra.gmra.mxu1 %vm26_vm0, %v6552_v57  ;;  %v16732_v12 = vpop.f32.mrf.mxu0  ;;  %v14286_v57 = vld [vmem:[%s25372_s0 + $0x262] sm:$0xff] }
 0x273   :  { %16975 = vmatmul.mubr.msk.f32.gmra.mxu0 %vm26_vm0, %v14284_v32  ;;  %v21163_v5 = vadd.f32 %v16732_v12, %v20447_v0  ;;  %v14287_v32 = vld [vmem:[%s25372_s0 + $0x272] sm:$0xff]  ;;  %17207 = vmatpush3.msra.mxu1 %v14502_v11  ;;  %v14288_v12 = vld [vmem:[%s25372_s0 + $0x27a] sm:$0xff] }
 0x274   :  { %16977 = vmatprep.mubr.msk.f32.mxu0 %vm26_vm0, %v14285_v36  ;;  %v4593_v60 = vpop.f32.mrf.mxu0 }
 0x275   :  { %v21178_v0 = vadd.f32 %v4593_v60, %v20453_v24  ;;  %v14289_v24 = vld [vmem:[%s25372_s0 + $0x28a] sm:$0xff]  ;;  %v14290_v60 = vld [vmem:[%s25372_s0 + $0x292] sm:$0xff] }
 0x276   :  { %v16735_v13 = vpop.f32.mrf.mxu0 }
 0x277   :  { %16978 = vmatmul.mubr.msk.f32.gmra.mxu0 %vm26_vm0, %v14286_v57  ;;  %v21182_v36 = vadd.f32 %v16735_v13, %v20465_v31 }
 0x278   :  { %16980 = vmatprep.mubr.msk.f32.mxu0 %vm26_vm0, %v14287_v32  ;;  %v4603_v8 = vpop.f32.mrf.mxu0  ;;  %v21204_v32 = vpop.f32.mrf.mxu1 }
 0x279   :  { %v21194_v11 = vadd.f32 %v4603_v8, %v20471_v23  ;;  %v14291_v23 = vld [vmem:[%s25372_s0 + $0x2a2] sm:$0xff] }
 0x27a   :  { %v16738_v57 = vpop.f32.mrf.mxu0 }
 0x27b   :  { %16981 = vmatmul.mubr.msk.f32.gmra.mxu0 %vm26_vm0, %v14288_v12  ;;  %v21198_v31 = vadd.f32 %v16738_v57, %v20483_v10  ;;  %v21220_v57 = vpop.f32.mrf.mxu1 }
 0x27c   :  { %16983 = vmatprep.mubr.msk.f32.mxu0 %vm26_vm0, %v14289_v24  ;;  %v4613_v13 = vpop.f32.mrf.mxu0  ;;  %v14292_v24 = vld [vmem:[%s25372_s0 + $0x2aa] sm:$0xff] }
 0x27d   :  { %v21210_v8 = vadd.f32 %v4613_v13, %v20489_v56  ;;  %v14293_v56 = vld [vmem:[%s25372_s0 + $0x2ba] sm:$0xff]  ;;  %v21238_v51 = vpop.f32.mrf.mxu1 }
 0x27e   :  { %v16741_v12 = vpop.f32.mrf.mxu0 }
 0x27f   :  { %16984 = vmatmul.mubr.msk.f32.gmra.mxu0 %vm26_vm0, %v14290_v60  ;;  %v21214_v10 = vadd.f32 %v16741_v12, %v20501_v4  ;;  %v4180_v4 = vadd.f32 %v20515_v21, %v20521_v17  ;;  %v14294_v12 = vld [vmem:[%s25372_s0 + $0x2c2] sm:$0xff] }
 0x280   :  { %16986 = vmatprep.mubr.msk.f32.mxu0 %vm26_vm0, %v14291_v23  ;;  %v4623_v3 = vpop.f32.mrf.mxu0  ;;  %v25756_v21 = vld [vmem:[#allocation48_spill] sm:$0xff] }
 0x281   :  { %v21226_v13 = vadd.f32 %v4623_v3, %v20507_v52  ;;  %v14295_v52 = vld [vmem:[%s25372_s0 + $0x2d2] sm:$0xff] }
 0x282   :  { %v16744_v60 = vpop.f32.mrf.mxu0 }
 0x283   :  { %16987 = vmatmul.mubr.msk.f32.gmra.mxu0 %vm26_vm0, %v14292_v24  ;;  %v21232_v23 = vadd.f32 %v16744_v60, %v20523_v62  ;;  %v14296_v62 = vld [vmem:[%s25372_s0 + $0x2da] sm:$0xff] }
 0x284   :  { %16989 = vmatprep.mubr.msk.f32.mxu0 %vm26_vm0, %v14293_v56  ;;  %v4633_v55 = vpop.f32.mrf.mxu0  ;;  %v21253_v56 = vpop.f32.mrf.mxu1 }
 0x285   :  { %v21243_v3 = vadd.f32 %v4633_v55, %v4180_v4  ;;  %v14297_v55 = vld [vmem:[%s25372_s0 + $0x2ea] sm:$0xff] }
 0x286   :  { %v16747_v24 = vpop.f32.mrf.mxu0 }
 0x287   :  { %16990 = vmatmul.mubr.msk.f32.gmra.mxu0 %vm26_vm0, %v14294_v12  ;;  %v21247_v17 = vadd.f32 %v16747_v24, %v25756_v21  ;;  %v25757_v12 = vld [vmem:[#allocation51_spill] sm:$0xff]  ;;  %v21268_v21 = vpop.f32.mrf.mxu1 }
 0x288   :  { %16992 = vmatprep.mubr.msk.f32.mxu0 %vm26_vm0, %v14295_v52  ;;  %v21255_v60 = vpop.f32.mrf.mxu0  ;;  %v14298_v52 = vld [vmem:[%s25372_s0 + $0x2f2] sm:$0xff] }
 0x28a   :  { %v16750_v4 = vpop.f32.mrf.mxu0 }
 0x28b   :  { %16993 = vmatmul.mubr.msk.f32.gmra.mxu0 %vm26_vm0, %v14296_v62  ;;  %v21262_v24 = vadd.f32 %v16750_v4, %v25757_v12  ;;  %v21283_v4 = vpop.f32.mrf.mxu1 }
 0x28c   :  { %16995 = vmatprep.mubr.msk.f32.mxu0 %vm26_vm0, %v14297_v55  ;;  %v21270_v28 = vpop.f32.mrf.mxu0  ;;  %v14300_v55 = vld [vmem:[%s25372_s0 + $0x30a] sm:$0xff] }
 0x28d   :  { %25758 = vst [vmem:[#allocation22_spill] sm:$0xff] %v21262_v24  ;;  %25759 = vst [vmem:[#allocation23_spill] sm:$0xff] %v21270_v28 }
 0x28e   :  { %v16753_v27 = vpop.f32.mrf.mxu0 }
 0x28f   :  { %16996 = vmatmul.mubr.msk.f32.gmra.mxu0 %vm26_vm0, %v14298_v52  ;;  %v21277_v62 = vadd.f32 %v16753_v27, %v20583_v41  ;;  %v21298_v27 = vpop.f32.mrf.mxu1 }
 0x290   :  { %16998 = vmatprep.mubr.msk.f32.mxu0 %vm26_vm0, %v14299_v37  ;;  %v21285_v12 = vpop.f32.mrf.mxu0  ;;  %v14302_v37 = vld [vmem:[%s25372_s0 + $0x322] sm:$0xff] }
 0x291   :  { %25760 = vst [vmem:[#allocation24_spill] sm:$0xff] %v21277_v62  ;;  %25761 = vst [vmem:[#allocation25_spill] sm:$0xff] %v21285_v12  ;;  %v14303_v62 = vld [vmem:[%s25372_s0 + $0x332] sm:$0xff] }
 0x292   :  { %v16756_v48 = vpop.f32.mrf.mxu0 }
 0x293   :  { %16999 = vmatmul.mubr.msk.f32.gmra.mxu0 %vm26_vm0, %v14300_v55  ;;  %v21292_v41 = vadd.f32 %v16756_v48, %v20603_v46  ;;  %v14304_v46 = vld [vmem:[%s25372_s0 + $0x33a] sm:$0xff] }
 0x294   :  { %17001 = vmatprep.mubr.msk.f32.mxu0 %vm26_vm0, %v14301_v49  ;;  %v21300_v52 = vpop.f32.mrf.mxu0  ;;  %v21313_v49 = vpop.f32.mrf.mxu1 }
 0x295   :  { %25762 = vst [vmem:[#allocation26_spill] sm:$0xff] %v21292_v41  ;;  %25763 = vst [vmem:[#allocation28_spill] sm:$0xff] %v21300_v52  ;;  %v14305_v41 = vld [vmem:[%s25372_s0 + $0x34a] sm:$0xff] }
 0x296   :  { %v16759_v12 = vpop.f32.mrf.mxu0 }
 0x297   :  { %17002 = vmatmul.mubr.msk.f32.gmra.mxu0 %vm26_vm0, %v14302_v37  ;;  %v21307_v48 = vadd.f32 %v16759_v12, %v20626_v45  ;;  %v21328_v12 = vpop.f32.mrf.mxu1 }
 0x298   :  { %17004 = vmatprep.mubr.msk.f32.mxu0 %vm26_vm0, %v14303_v62  ;;  %v21315_v55 = vpop.f32.mrf.mxu0  ;;  %v14306_v62 = vld [vmem:[%s25372_s0 + $0x352] sm:$0xff] }
 0x299   :  { %25764 = vst [vmem:[#allocation27_spill] sm:$0xff] %v21307_v48  ;;  %25765 = vst [vmem:[#allocation29_spill] sm:$0xff] %v21315_v55  ;;  %v6486_v48 = vld [vmem:[#allocation2] sm:$0xff] }
 0x29a   :  { %v16762_v52 = vpop.f32.mrf.mxu0 }
 0x29b   :  { %17005 = vmatmul.mubr.msk.f32.gmra.mxu0 %vm26_vm0, %v14304_v46  ;;  %v21322_v45 = vadd.f32 %v16762_v52, %v20648_v61  ;;  %v6487_v61 = vld [vmem:[#allocation2 + $0x8] sm:$0xff]  ;;  %v21337_v52 = vpop.f32.mrf.mxu1 }
 0x29c   :  { %17007 = vmatprep.mubr.msk.f32.mxu0 %vm26_vm0, %v14305_v41  ;;  %v21330_v37 = vpop.f32.mrf.mxu0 }
 0x29d   :  { %25766 = vst [vmem:[#allocation76_spill] sm:$0xff] %v21322_v45  ;;  %25767 = vst [vmem:[#allocation30_spill] sm:$0xff] %v21330_v37  ;;  %v21345_v37 = vpop.f32.mrf.mxu1 }
 0x29e   :  { %v16765_v55 = vpop.f32.mrf.mxu0 }
 0x29f   :  { %17008 = vmatmul.mubr.msk.f32.gmra.mxu0 %vm26_vm0, %v14306_v62  ;;  %v21334_v24 = vadd.f32 %v16765_v55, %v20665_v58 }
 0x2a0   :  { %17110 = vmatprep.mubr.msk.f32.mxu0 %vm26_vm0, %v6486_v48  ;;  %v21339_v41 = vpop.f32.mrf.mxu0  ;;  %v21352_v48 = vpop.f32.mrf.mxu1 }
 0x2a1   :  { %25768 = vst [vmem:[#allocation77_spill] sm:$0xff] %v21334_v24  ;;  %25769 = vst [vmem:[#allocation32_spill] sm:$0xff] %v21339_v41 }
 0x2a2   :  { %v16768_v46 = vpop.f32.mrf.mxu0 }
 0x2a3   :  { %17111 = vmatmul.mubr.msk.f32.vlgmr.msra.gmra.mxu0 %vm26_vm0, %v6487_v61  ;;  %v21343_v45 = vadd.f32 %v16768_v46, %v20681_v43  ;;  %v21359_v61 = vpop.f32.mrf.mxu1 }
 0x2a4   :  { %v21347_v28 = vpop.f32.mrf.mxu0 }
 0x2a5   :  { %25770 = vst [vmem:[#allocation31_spill] sm:$0xff] %v21343_v45  ;;  %25771 = vst [vmem:[#allocation34_spill] sm:$0xff] %v21347_v28  ;;  %v21366_v28 = vpop.f32.mrf.mxu1 }
 0x2a6   :  { %v16771_v62 = vpop.f32.mrf.mxu0 }
 0x2a7   :  { %v21350_v58 = vadd.f32 %v16771_v62, %v20697_v29 }
 0x2a8   :  { %v21354_v55 = vpop.f32.mrf.mxu0 }
 0x2a9   :  { %25772 = vst [vmem:[#allocation33_spill] sm:$0xff] %v21350_v58  ;;  %25773 = vst [vmem:[#allocation35_spill] sm:$0xff] %v21354_v55  ;;  %v21373_v55 = vpop.f32.mrf.mxu1 }
 0x2aa   :  { %v16774_v24 = vpop.f32.mrf.mxu0 }
 0x2ab   :  { %v21357_v41 = vadd.f32 %v16774_v24, %v20713_v20 }
 0x2ac   :  { %v21361_v43 = vpop.f32.mrf.mxu0 }
 0x2ad   :  { %25774 = vst [vmem:[#allocation36_spill] sm:$0xff] %v21357_v41  ;;  %25775 = vst [vmem:[#allocation3_spill] sm:$0xff] %v21361_v43  ;;  %v21380_v43 = vpop.f32.mrf.mxu1 }
 0x2ae   :  { %v16777_v46 = vpop.f32.mrf.mxu0 }
 0x2af   :  { %v21364_v45 = vadd.f32 %v16777_v46, %v20729_v33 }
 0x2b0   :  { %v21368_v29 = vpop.f32.mrf.mxu0 }
 0x2b1   :  { %25776 = vst [vmem:[#allocation38_spill] sm:$0xff] %v21364_v45  ;;  %25777 = vst [vmem:[#allocation37_spill] sm:$0xff] %v21368_v29  ;;  %v21387_v29 = vpop.f32.mrf.mxu1 }
 0x2b2   :  { %v16780_v62 = vpop.f32.mrf.mxu0 }
 0x2b3   :  { %v21371_v58 = vadd.f32 %v16780_v62, %v20745_v42 }
 0x2b4   :  { %v21375_v20 = vpop.f32.mrf.mxu0 }
 0x2b5   :  { %25778 = vst [vmem:[#allocation39_spill] sm:$0xff] %v21371_v58  ;;  %25779 = vst [vmem:[#allocation40_spill] sm:$0xff] %v21375_v20  ;;  %v21394_v20 = vpop.f32.mrf.mxu1 }
 0x2b6   :  { %v16783_v24 = vpop.f32.mrf.mxu0 }
 0x2b7   :  { %v21378_v41 = vadd.f32 %v16783_v24, %v20761_v53 }
 0x2b8   :  { %v21382_v33 = vpop.f32.mrf.mxu0 }
 0x2b9   :  { %25780 = vst [vmem:[#allocation41_spill] sm:$0xff] %v21378_v41  ;;  %25781 = vst [vmem:[#allocation42_spill] sm:$0xff] %v21382_v33  ;;  %v21401_v33 = vpop.f32.mrf.mxu1 }
 0x2ba   :  { %v16786_v46 = vpop.f32.mrf.mxu0 }
 0x2bb   :  { %v21385_v45 = vadd.f32 %v16786_v46, %v20777_v25 }
 0x2bc   :  { %v21389_v42 = vpop.f32.mrf.mxu0 }
 0x2bd   :  { %25782 = vst [vmem:[#allocation43_spill] sm:$0xff] %v21385_v45  ;;  %25783 = vst [vmem:[#allocation44_spill] sm:$0xff] %v21389_v42  ;;  %v21408_v42 = vpop.f32.mrf.mxu1 }
 0x2be   :  { %v16789_v62 = vpop.f32.mrf.mxu0 }
 0x2bf   :  { %v21392_v58 = vadd.f32 %v16789_v62, %v20793_v39 }
 0x2c0   :  { %v21396_v53 = vpop.f32.mrf.mxu0 }
 0x2c1   :  { %25784 = vst [vmem:[#allocation45_spill] sm:$0xff] %v21392_v58  ;;  %25785 = vst [vmem:[#allocation48_spill] sm:$0xff] %v21396_v53  ;;  %v21415_v53 = vpop.f32.mrf.mxu1 }
 0x2c2   :  { %v16792_v24 = vpop.f32.mrf.mxu0 }
 0x2c3   :  { %v21399_v41 = vadd.f32 %v16792_v24, %v20809_v63 }
 0x2c4   :  { %v21403_v25 = vpop.f32.mrf.mxu0 }
 0x2c5   :  { %25786 = vst [vmem:[#allocation51_spill] sm:$0xff] %v21399_v41  ;;  %25787 = vst [vmem:[#allocation78_spill] sm:$0xff] %v21403_v25  ;;  %v21422_v25 = vpop.f32.mrf.mxu1 }
 0x2c6   :  { %v16795_v46 = vpop.f32.mrf.mxu0 }
 0x2c7   :  { %v21406_v45 = vadd.f32 %v16795_v46, %v20825_v7 }
 0x2c8   :  { %v21410_v39 = vpop.f32.mrf.mxu0 }
 0x2c9   :  { %25788 = vst [vmem:[#allocation79_spill] sm:$0xff] %v21406_v45  ;;  %25789 = vst [vmem:[#allocation80_spill] sm:$0xff] %v21410_v39  ;;  %v21429_v39 = vpop.f32.mrf.mxu1 }
 0x2ca   :  { %v16798_v62 = vpop.f32.mrf.mxu0 }
 0x2cb   :  { %v21413_v58 = vadd.f32 %v16798_v62, %v20841_v26 }
 0x2cc   :  { %v21417_v63 = vpop.f32.mrf.mxu0 }
 0x2cd   :  { %25790 = vst [vmem:[#allocation81_spill] sm:$0xff] %v21413_v58  ;;  %25791 = vst [vmem:[#allocation82_spill] sm:$0xff] %v21417_v63  ;;  %v21436_v63 = vpop.f32.mrf.mxu1 }
 0x2ce   :  { %v16801_v24 = vpop.f32.mrf.mxu0 }
 0x2cf   :  { %v21420_v41 = vadd.f32 %v16801_v24, %v20857_v18 }
 0x2d0   :  { %v21424_v7 = vpop.f32.mrf.mxu0 }
 0x2d1   :  { %25792 = vst [vmem:[#allocation83_spill] sm:$0xff] %v21420_v41  ;;  %25793 = vst [vmem:[#allocation84_spill] sm:$0xff] %v21424_v7  ;;  %v21443_v7 = vpop.f32.mrf.mxu1 }
 0x2d2   :  { %v16804_v46 = vpop.f32.mrf.mxu0 }
 0x2d3   :  { %v21427_v45 = vadd.f32 %v16804_v46, %v20873_v6 }
 0x2d4   :  { %v21431_v26 = vpop.f32.mrf.mxu0 }
 0x2d5   :  { %25794 = vst [vmem:[#allocation85_spill] sm:$0xff] %v21427_v45  ;;  %25795 = vst [vmem:[#allocation86_spill] sm:$0xff] %v21431_v26  ;;  %v21450_v26 = vpop.f32.mrf.mxu1 }
 0x2d6   :  { %v16807_v62 = vpop.f32.mrf.mxu0  ;;  %25801 = vst [vmem:[#allocation92_spill] sm:$0xff] %v21450_v26 }
 0x2d7   :  { %v21434_v58 = vadd.f32 %v16807_v62, %v20889_v35  ;;  %v5580_v62 = vadd.f32 %v20924_v40, %v20943_v59  ;;  %v5581_v59 = vadd.f32 %v21136_v1, %v21122_v44  ;;  %v5583_v44 = vadd.f32 %v21172_v50, %v21143_v15 }
 0x2d8   :  { %v21438_v18 = vpop.f32.mrf.mxu0 }
 0x2d9   :  { %25796 = vst [vmem:[#allocation87_spill] sm:$0xff] %v21434_v58  ;;  %25797 = vst [vmem:[#allocation88_spill] sm:$0xff] %v21438_v18 }
 0x2da   :  { %v16810_v24 = vpop.f32.mrf.mxu0 }
 0x2db   :  { %v21441_v41 = vadd.f32 %v16810_v24, %v20905_v2  ;;  %v21459_v2 = vld [vmem:[%s25374_s2] ss:$0 sm:$0xff]  ;;  %v5579_v24 = vadd.f32 %v21087_v14, %v21097_v47 }
 0x2dc   :  { %v21445_v6 = vpop.f32.mrf.mxu0 }
 0x2dd   :  { %25798 = vst [vmem:[#allocation89_spill] sm:$0xff] %v21441_v41  ;;  %25799 = vst [vmem:[#allocation90_spill] sm:$0xff] %v21445_v6  ;;  %v21463_v6 = vpop.f32.mrf.mxu1 }
 0x2de   :  { %v16813_v46 = vpop.f32.mrf.mxu0 }
 0x2df   :  { %v21448_v45 = vadd.f32 %v16813_v46, %v20921_v9  ;;  %v5582_v46 = vadd.f32 %v21116_v16, %v21110_v34  ;;  %v21472_v14 = vpop.f32.mrf.mxu1 }
 0x2e0   :  { %v21452_v35 = vpop.f32.mrf.mxu0 }
 0x2e1   :  { %25800 = vst [vmem:[#allocation91_spill] sm:$0xff] %v21448_v45  ;;  %25802 = vst [vmem:[#allocation93_spill] sm:$0xff] %v21452_v35 }
 0x2e2   :  { %v16916_v58 = vpop.f32.mrf.mxu0 }
 0x2e3   :  { %v6287_v41 = vadd.f32 %v16916_v58, %v5580_v62  ;;  %v5584_v58 = vadd.f32 %v21153_v54, %v21129_v38  ;;  %v21485_v62 = vpop.f32.mrf.mxu1  ;;  %v5586_v38 = vadd.f32 %v21188_v22, %v21147_v30 }
 0x2e4   :  { %v5967_v9 = vpop.f32.mrf.mxu0 }
 0x2e5   :  { %v6358_v45 = vadd.f32 %v21459_v2, %v6287_v41  ;;  %v6286_v35 = vadd.f32 %v5967_v9, %v5579_v24  ;;  %v5585_v24 = vadd.f32 %v21204_v32, %v21159_v19  ;;  %v21498_v22 = vpop.f32.mrf.mxu1 }
 0x2e6   :  { %v16919_v40 = vpop.f32.mrf.mxu0 }
 0x2e7   :  { %6423 = vst.msk [vmem:[#allocation2 + $0x21] sm:$0xff] %vm26_vm0, %v6358_v45  ;;  %v6357_v18 = vadd.f32 %v21459_v2, %v6286_v35  ;;  %v6289_v26 = vadd.f32 %v16919_v40, %v5582_v46  ;;  %v14567_v35 = vld [vmem:[%s25373_s3 + $0x18] sm:$0xff] }
 0x2e8   :  { %v5977_v47 = vpop.f32.mrf.mxu0  ;;  %17304 = vmatprep.subr.mxu0 %v14567_v35 }
 0x2e9   :  { %6422 = vst.msk [vmem:[#allocation2 + $0x19] sm:$0xff] %vm26_vm0, %v6357_v18  ;;  %v6360_v34 = vadd.f32 %v21459_v2, %v6289_v26  ;;  %v6288_v16 = vadd.f32 %v5977_v47, %v5581_v59  ;;  %17305 = vmatpush3.msra.mxu0 %v14567_v35  ;;  %v14632_v18 = vld [vmem:[%s25373_s3 + $0x20] sm:$0xff] }
 0x2ea   :  { %v16922_v41 = vpop.f32.mrf.mxu0  ;;  %17402 = vmatprep.subr.mxu1 %v14632_v18 }
 0x2eb   :  { %6425 = vst.msk [vmem:[#allocation2 + $0x39] sm:$0xff] %vm26_vm0, %v6360_v34  ;;  %v6359_v1 = vadd.f32 %v21459_v2, %v6288_v16  ;;  %v6291_v45 = vadd.f32 %v16922_v41, %v5584_v58  ;;  %v5588_v58 = vadd.f32 %v21220_v57, %v21163_v5  ;;  %v5587_v41 = vadd.f32 %v21238_v51, %v21178_v0 }
 0x2ec   :  { %v5987_v54 = vpop.f32.mrf.mxu0 }
 0x2ed   :  { %6424 = vst.msk [vmem:[#allocation2 + $0x31] sm:$0xff] %vm26_vm0, %v6359_v1  ;;  %v6362_v15 = vadd.f32 %v21459_v2, %v6291_v45  ;;  %v6290_v50 = vadd.f32 %v5987_v54, %v5583_v44  ;;  %v21512_v44 = vpop.f32.mrf.mxu1 }
 0x2ee   :  { %v16925_v26 = vpop.f32.mrf.mxu0  ;;  %v6554_v32 = vld [vmem:[#allocation2 + $0x21] sm:$0xff] }
 0x2ef   :  { %6427 = vst.msk [vmem:[#allocation2 + $0x51] sm:$0xff] %vm26_vm0, %v6362_v15  ;;  %v6361_v9 = vadd.f32 %v21459_v2, %v6290_v50  ;;  %v6293_v46 = vadd.f32 %v16925_v26, %v5586_v38  ;;  %v5590_v38 = vadd.f32 %v21253_v56, %v21182_v36  ;;  %v5589_v26 = vadd.f32 %v21268_v21, %v21194_v11  ;;  %v21526_v18 = vpop.f32.mrf.mxu1 }
 0x2f0   :  { %v5997_v30 = vpop.f32.mrf.mxu0  ;;  %v6553_v40 = vld [vmem:[#allocation2 + $0x19] sm:$0xff] }
 0x2f1   :  { %v6488_v59 = vld [vmem:[#allocation2 + $0x18] sm:$0xff]  ;;  %v6489_v47 = vld [vmem:[#allocation2 + $0x20] sm:$0xff]  ;;  %6426 = vst.msk [vmem:[#allocation2 + $0x49] sm:$0xff] %vm26_vm0, %v6361_v9  ;;  %v6364_v34 = vadd.f32 %v21459_v2, %v6293_v46  ;;  %v6292_v19 = vadd.f32 %v5997_v30, %v5585_v24  ;;  %17015 = vmatprep.mubr.msk.f32.mxu1 %vm26_vm0, %v6553_v40  ;;  %v5592_v40 = vadd.f32 %v21283_v4, %v21198_v31 }
 0x2f2   :  { %17113 = vmatprep.mubr.msk.f32.mxu0 %vm26_vm0, %v6488_v59  ;;  %v16928_v16 = vpop.f32.mrf.mxu0  ;;  %17016 = vmatmul.mubr.msk.f32.gmra.mxu1 %vm26_vm0, %v6554_v32  ;;  %v6556_v51 = vld [vmem:[#allocation2 + $0x39] sm:$0xff] }
 0x2f3   :  { %17114 = vmatmul.mubr.msk.f32.gmra.mxu0 %vm26_vm0, %v6489_v47  ;;  %6429 = vst.msk [vmem:[#allocation2 + $0x69] sm:$0xff] %vm26_vm0, %v6364_v34  ;;  %v6363_v5 = vadd.f32 %v21459_v2, %v6292_v19  ;;  %v6295_v57 = vadd.f32 %v16928_v16, %v5588_v58  ;;  %v5591_v58 = vadd.f32 %v21298_v27, %v21210_v8  ;;  %v21540_v34 = vpop.f32.mrf.mxu1 }
 0x2f4   :  { %v6007_v1 = vpop.f32.mrf.mxu0  ;;  %v6555_v45 = vld [vmem:[#allocation2 + $0x31] sm:$0xff] }
 0x2f5   :  { %v6490_v35 = vld [vmem:[#allocation2 + $0x30] sm:$0xff]  ;;  %v6491_v54 = vld [vmem:[#allocation2 + $0x38] sm:$0xff]  ;;  %6428 = vst.msk [vmem:[#allocation2 + $0x61] sm:$0xff] %vm26_vm0, %v6363_v5  ;;  %v6366_v15 = vadd.f32 %v21459_v2, %v6295_v57  ;;  %v6294_v50 = vadd.f32 %v6007_v1, %v5587_v41  ;;  %17018 = vmatprep.mubr.msk.f32.mxu1 %vm26_vm0, %v6555_v45  ;;  %v5594_v5 = vadd.f32 %v21313_v49, %v21214_v10 }
 0x2f6   :  { %17116 = vmatprep.mubr.msk.f32.mxu0 %vm26_vm0, %v6490_v35  ;;  %v16931_v0 = vpop.f32.mrf.mxu0  ;;  %17019 = vmatmul.mubr.msk.f32.gmra.mxu1 %vm26_vm0, %v6556_v51  ;;  %v6558_v11 = vld [vmem:[#allocation2 + $0x51] sm:$0xff]  ;;  %v5593_v45 = vadd.f32 %v21328_v12, %v21226_v13  ;;  %v25803_v35 = vld [vmem:[#allocation47_spill] sm:$0xff] }
 0x2f7   :  { %17117 = vmatmul.mubr.msk.f32.gmra.mxu0 %vm26_vm0, %v6491_v54  ;;  %6431 = vst.msk [vmem:[#allocation2 + $0x81] sm:$0xff] %vm26_vm0, %v6366_v15  ;;  %v6365_v36 = vadd.f32 %v21459_v2, %v6294_v50  ;;  %v6297_v56 = vadd.f32 %v16931_v0, %v5590_v38  ;;  %v25804_v54 = vld [vmem:[#allocation46_spill] sm:$0xff]  ;;  %v21556_v15 = vpop.f32.mrf.mxu1 }
 0x2f8   :  { %v6017_v24 = vpop.f32.mrf.mxu0  ;;  %v6557_v9 = vld [vmem:[#allocation2 + $0x49] sm:$0xff]  ;;  %v4182_v38 = vadd.f32 %v25804_v54, %v25803_v35  ;;  %v25810_v35 = vld [vmem:[#allocation22_spill] sm:$0xff] }
 0x2f9   :  { %v6492_v46 = vld [vmem:[#allocation2 + $0x48] sm:$0xff]  ;;  %v6493_v30 = vld [vmem:[#allocation2 + $0x50] sm:$0xff]  ;;  %6430 = vst.msk [vmem:[#allocation2 + $0x79] sm:$0xff] %vm26_vm0, %v6365_v36  ;;  %v6368_v59 = vadd.f32 %v21459_v2, %v6297_v56  ;;  %v6296_v47 = vadd.f32 %v6017_v24, %v5589_v26  ;;  %17021 = vmatprep.mubr.msk.f32.mxu1 %vm26_vm0, %v6557_v9  ;;  %v5596_v36 = vadd.f32 %v21337_v52, %v21232_v23 }
 0x2fa   :  { %17119 = vmatprep.mubr.msk.f32.mxu0 %vm26_vm0, %v6492_v46  ;;  %v16934_v21 = vpop.f32.mrf.mxu0  ;;  %17022 = vmatmul.mubr.msk.f32.gmra.mxu1 %vm26_vm0, %v6558_v11  ;;  %v6560_v8 = vld [vmem:[#allocation2 + $0x69] sm:$0xff]  ;;  %v5595_v9 = vadd.f32 %v21345_v37, %v21243_v3  ;;  %v4890_v23 = vadd.f32 %v21255_v60, %v4182_v38  ;;  %v5600_v54 = vadd.f32 %v21366_v28, %v25810_v35 }
 0x2fb   :  { %17120 = vmatmul.mubr.msk.f32.gmra.mxu0 %vm26_vm0, %v6493_v30  ;;  %6433 = vst.msk [vmem:[#allocation2 + $0x99] sm:$0xff] %vm26_vm0, %v6368_v59  ;;  %v6367_v31 = vadd.f32 %v21459_v2, %v6296_v47  ;;  %v6299_v4 = vadd.f32 %v16934_v21, %v5592_v40  ;;  %v25805_v30 = vld [vmem:[#allocation50_spill] sm:$0xff]  ;;  %v25806_v40 = vld [vmem:[#allocation49_spill] sm:$0xff]  ;;  %v21573_v47 = vpop.f32.mrf.mxu1 }
 0x2fc   :  { %v6027_v19 = vpop.f32.mrf.mxu0  ;;  %v6559_v32 = vld [vmem:[#allocation2 + $0x61] sm:$0xff]  ;;  %v4184_v59 = vadd.f32 %v25806_v40, %v25805_v30 }
 0x2fd   :  { %v6494_v16 = vld [vmem:[#allocation2 + $0x60] sm:$0xff]  ;;  %v6495_v41 = vld [vmem:[#allocation2 + $0x68] sm:$0xff]  ;;  %6432 = vst.msk [vmem:[#allocation2 + $0x91] sm:$0xff] %vm26_vm0, %v6367_v31  ;;  %v6370_v57 = vadd.f32 %v21459_v2, %v6299_v4  ;;  %v6298_v1 = vadd.f32 %v6027_v19, %v5591_v58  ;;  %17024 = vmatprep.mubr.msk.f32.mxu1 %vm26_vm0, %v6559_v32  ;;  %v5598_v4 = vadd.f32 %v21352_v48, %v21247_v17 }
 0x2fe   :  { %17122 = vmatprep.mubr.msk.f32.mxu0 %vm26_vm0, %v6494_v16  ;;  %v16937_v27 = vpop.f32.mrf.mxu0  ;;  %17025 = vmatmul.mubr.msk.f32.gmra.mxu1 %vm26_vm0, %v6560_v8  ;;  %v6562_v56 = vld [vmem:[#allocation2 + $0x81] sm:$0xff]  ;;  %v5597_v32 = vadd.f32 %v21359_v61, %v4890_v23  ;;  %v21589_v8 = vpop.f32.mrf.mxu1 }
 0x2ff   :  { %17123 = vmatmul.mubr.msk.f32.gmra.mxu0 %vm26_vm0, %v6495_v41  ;;  %6435 = vst.msk [vmem:[#allocation2 + $0xb1] sm:$0xff] %vm26_vm0, %v6370_v57  ;;  %v6369_v10 = vadd.f32 %v21459_v2, %v6298_v1  ;;  %v6301_v49 = vadd.f32 %v16937_v27, %v5594_v5  ;;  %v25807_v16 = vld [vmem:[#allocation23_spill] sm:$0xff]  ;;  %v25808_v5 = vld [vmem:[#allocation53_spill] sm:$0xff]  ;;  %v25809_v57 = vld [vmem:[#allocation52_spill] sm:$0xff] }
 0x300   :  { %v6037_v50 = vpop.f32.mrf.mxu0  ;;  %v6561_v51 = vld [vmem:[#allocation2 + $0x79] sm:$0xff]  ;;  %v4892_v41 = vadd.f32 %v25807_v16, %v4184_v59  ;;  %v4186_v1 = vadd.f32 %v25809_v57, %v25808_v5  ;;  %v25814_v40 = vld [vmem:[#allocation24_spill] sm:$0xff] }
 0x301   :  { %v6496_v0 = vld [vmem:[#allocation2 + $0x78] sm:$0xff]  ;;  %v6497_v26 = vld [vmem:[#allocation2 + $0x80] sm:$0xff]  ;;  %6434 = vst.msk [vmem:[#allocation2 + $0xa9] sm:$0xff] %vm26_vm0, %v6369_v10  ;;  %v6372_v13 = vadd.f32 %v21459_v2, %v6301_v49  ;;  %v6300_v12 = vadd.f32 %v6037_v50, %v5593_v45  ;;  %17027 = vmatprep.mubr.msk.f32.mxu1 %vm26_vm0, %v6561_v51  ;;  %v5602_v59 = vadd.f32 %v21380_v43, %v25814_v40 }
 0x302   :  { %17125 = vmatprep.mubr.msk.f32.mxu0 %vm26_vm0, %v6496_v0  ;;  %v16940_v24 = vpop.f32.mrf.mxu0  ;;  %17028 = vmatmul.mubr.msk.f32.gmra.mxu1 %vm26_vm0, %v6562_v56  ;;  %v6564_v37 = vld [vmem:[#allocation2 + $0x99] sm:$0xff]  ;;  %v5599_v0 = vadd.f32 %v21373_v55, %v4892_v41 }
 0x303   :  { %17126 = vmatmul.mubr.msk.f32.gmra.mxu0 %vm26_vm0, %v6497_v26  ;;  %6437 = vst.msk [vmem:[#allocation2 + $0xc9] sm:$0xff] %vm26_vm0, %v6372_v13  ;;  %v6371_v52 = vadd.f32 %v21459_v2, %v6300_v12  ;;  %v6303_v46 = vadd.f32 %v16940_v24, %v5596_v36  ;;  %v25811_v26 = vld [vmem:[#allocation25_spill] sm:$0xff]  ;;  %v25812_v12 = vld [vmem:[#allocation55_spill] sm:$0xff]  ;;  %v25813_v56 = vld [vmem:[#allocation54_spill] sm:$0xff] }
 0x304   :  { %v6047_v11 = vpop.f32.mrf.mxu0  ;;  %v6563_v21 = vld [vmem:[#allocation2 + $0x91] sm:$0xff]  ;;  %v4894_v36 = vadd.f32 %v25811_v26, %v4186_v1  ;;  %v4188_v24 = vadd.f32 %v25813_v56, %v25812_v12  ;;  %v25822_v12 = vld [vmem:[#allocation27_spill] sm:$0xff] }
 0x305   :  { %v6498_v58 = vld [vmem:[#allocation2 + $0x90] sm:$0xff]  ;;  %v6499_v31 = vld [vmem:[#allocation2 + $0x98] sm:$0xff]  ;;  %6436 = vst.msk [vmem:[#allocation2 + $0xc1] sm:$0xff] %vm26_vm0, %v6371_v52  ;;  %v6374_v3 = vadd.f32 %v21459_v2, %v6303_v46  ;;  %v6302_v60 = vadd.f32 %v6047_v11, %v5595_v9  ;;  %17030 = vmatprep.mubr.msk.f32.mxu1 %vm26_vm0, %v6563_v21  ;;  %v21605_v9 = vpop.f32.mrf.mxu1 }
 0x306   :  { %17128 = vmatprep.mubr.msk.f32.mxu0 %vm26_vm0, %v6498_v58  ;;  %v16943_v19 = vpop.f32.mrf.mxu0  ;;  %17031 = vmatmul.mubr.msk.f32.gmra.mxu1 %vm26_vm0, %v6564_v37  ;;  %v6566_v50 = vld [vmem:[#allocation2 + $0xb1] sm:$0xff] }
 0x307   :  { %17129 = vmatmul.mubr.msk.f32.gmra.mxu0 %vm26_vm0, %v6499_v31  ;;  %6439 = vst.msk [vmem:[#allocation2 + $0xe1] sm:$0xff] %vm26_vm0, %v6374_v3  ;;  %v6373_v17 = vadd.f32 %v21459_v2, %v6302_v60  ;;  %v6305_v48 = vadd.f32 %v16943_v19, %v5598_v4  ;;  %v5601_v31 = vadd.f32 %v21387_v29, %v4894_v36  ;;  %v25815_v4 = vld [vmem:[#allocation28_spill] sm:$0xff]  ;;  %v25816_v37 = vld [vmem:[#allocation57_spill] sm:$0xff]  ;;  %v21621_v16 = vpop.f32.mrf.mxu1  ;;  %v25818_v57 = vld [vmem:[#allocation26_spill] sm:$0xff] }
 0x308   :  { %v6057_v27 = vpop.f32.mrf.mxu0  ;;  %v6565_v45 = vld [vmem:[#allocation2 + $0xa9] sm:$0xff]  ;;  %v4896_v3 = vadd.f32 %v25815_v4, %v4188_v24  ;;  %v5604_v29 = vadd.f32 %v21394_v20, %v25818_v57 }
 0x309   :  { %v6500_v10 = vld [vmem:[#allocation2 + $0xa8] sm:$0xff]  ;;  %v6501_v49 = vld [vmem:[#allocation2 + $0xb0] sm:$0xff]  ;;  %6438 = vst.msk [vmem:[#allocation2 + $0xd9] sm:$0xff] %vm26_vm0, %v6373_v17  ;;  %v6376_v61 = vadd.f32 %v21459_v2, %v6305_v48  ;;  %v6304_v38 = vadd.f32 %v6057_v27, %v5597_v32  ;;  %17033 = vmatprep.mubr.msk.f32.mxu1 %vm26_vm0, %v6565_v45 }
 0x30a   :  { %17131 = vmatprep.mubr.msk.f32.mxu0 %vm26_vm0, %v6500_v10  ;;  %v16946_v51 = vpop.f32.mrf.mxu0  ;;  %17034 = vmatmul.mubr.msk.f32.gmra.mxu1 %vm26_vm0, %v6566_v50  ;;  %v6568_v21 = vld [vmem:[#allocation2 + $0xc9] sm:$0xff]  ;;  %v25821_v50 = vld [vmem:[#allocation58_spill] sm:$0xff] }
 0x30b   :  { %17132 = vmatmul.mubr.msk.f32.gmra.mxu0 %vm26_vm0, %v6501_v49  ;;  %6441 = vst.msk [vmem:[#allocation2 + $0xf9] sm:$0xff] %vm26_vm0, %v6376_v61  ;;  %v6375_v28 = vadd.f32 %v21459_v2, %v6304_v38  ;;  %v6307_v13 = vadd.f32 %v16946_v51, %v5600_v54  ;;  %v25817_v19 = vld [vmem:[#allocation56_spill] sm:$0xff]  ;;  %v5603_v49 = vadd.f32 %v21401_v33, %v4896_v3  ;;  %v25819_v20 = vld [vmem:[#allocation29_spill] sm:$0xff]  ;;  %v25820_v38 = vld [vmem:[#allocation59_spill] sm:$0xff] }
 0x30c   :  { %v6067_v23 = vpop.f32.mrf.mxu0  ;;  %v6567_v52 = vld [vmem:[#allocation2 + $0xc1] sm:$0xff]  ;;  %v4190_v32 = vadd.f32 %v25817_v19, %v25816_v37  ;;  %v4192_v51 = vadd.f32 %v25821_v50, %v25820_v38  ;;  %v5606_v33 = vadd.f32 %v21408_v42, %v25822_v12  ;;  %v25823_v42 = vld [vmem:[#allocation30_spill] sm:$0xff]  ;;  %v25830_v38 = vld [vmem:[#allocation77_spill] sm:$0xff] }
 0x30d   :  { %v6502_v46 = vld [vmem:[#allocation2 + $0xc0] sm:$0xff]  ;;  %v6503_v30 = vld [vmem:[#allocation2 + $0xc8] sm:$0xff]  ;;  %6440 = vst.msk [vmem:[#allocation2 + $0xf1] sm:$0xff] %vm26_vm0, %v6375_v28  ;;  %v6378_v55 = vadd.f32 %v21459_v2, %v6307_v13  ;;  %v6306_v11 = vadd.f32 %v6067_v23, %v5599_v0  ;;  %17036 = vmatprep.mubr.msk.f32.mxu1 %vm26_vm0, %v6567_v52  ;;  %v21643_v0 = vpop.f32.mrf.mxu1 }
 0x30e   :  { %17134 = vmatprep.mubr.msk.f32.mxu0 %vm26_vm0, %v6502_v46  ;;  %v16949_v58 = vpop.f32.mrf.mxu0  ;;  %17037 = vmatmul.mubr.msk.f32.gmra.mxu1 %vm26_vm0, %v6568_v21  ;;  %v6570_v45 = vld [vmem:[#allocation2 + $0xe1] sm:$0xff]  ;;  %v4898_v35 = vadd.f32 %v25819_v20, %v4190_v32 }
 0x30f   :  { %17135 = vmatmul.mubr.msk.f32.gmra.mxu0 %vm26_vm0, %v6503_v30  ;;  %6443 = vst.msk [vmem:[#allocation2 + $0x111] sm:$0xff] %vm26_vm0, %v6378_v55  ;;  %v6377_v43 = vadd.f32 %v21459_v2, %v6306_v11  ;;  %v6309_v60 = vadd.f32 %v16949_v58, %v5602_v59  ;;  %v4900_v30 = vadd.f32 %v25823_v42, %v4192_v51  ;;  %v25824_v55 = vld [vmem:[#allocation62_spill] sm:$0xff]  ;;  %v25825_v11 = vld [vmem:[#allocation60_spill] sm:$0xff]  ;;  %v21665_v58 = vpop.f32.mrf.mxu1 }
 0x310   :  { %v6077_v41 = vpop.f32.mrf.mxu0  ;;  %v6569_v17 = vld [vmem:[#allocation2 + $0xd9] sm:$0xff]  ;;  %v5605_v46 = vadd.f32 %v21415_v53, %v4898_v35  ;;  %v4194_v21 = vadd.f32 %v25825_v11, %v25824_v55 }
 0x311   :  { %v21623_v48 = vld [vmem:[#allocation2 + $0xd8] sm:$0xff]  ;;  %v21625_v5 = vld [vmem:[#allocation2 + $0xe0] sm:$0xff]  ;;  %6442 = vst.msk [vmem:[#allocation2 + $0x109] sm:$0xff] %vm26_vm0, %v6377_v43  ;;  %v6380_v1 = vadd.f32 %v21459_v2, %v6309_v60  ;;  %v6308_v27 = vadd.f32 %v6077_v41, %v5601_v31  ;;  %17039 = vmatprep.mubr.msk.f32.mxu1 %vm26_vm0, %v6569_v17  ;;  %v25826_v60 = vld [vmem:[#allocation76_spill] sm:$0xff]  ;;  %v5607_v17 = vadd.f32 %v21429_v39, %v4900_v30 }
 0x312   :  { %17137 = vmatprep.mubr.msk.f32.mxu0 %vm26_vm0, %v21623_v48  ;;  %v16952_v10 = vpop.f32.mrf.mxu0  ;;  %17040 = vmatmul.mubr.msk.f32.gmra.mxu1 %vm26_vm0, %v6570_v45  ;;  %v6572_v23 = vld [vmem:[#allocation2 + $0xf9] sm:$0xff]  ;;  %v5608_v53 = vadd.f32 %v21422_v25, %v25826_v60  ;;  %v25827_v25 = vld [vmem:[#allocation32_spill] sm:$0xff]  ;;  %v25829_v45 = vld [vmem:[#allocation61_spill] sm:$0xff]  ;;  %v5610_v39 = vadd.f32 %v21436_v63, %v25830_v38 }
 0x313   :  { %17138 = vmatmul.mubr.msk.f32.gmra.mxu0 %vm26_vm0, %v21625_v5  ;;  %6445 = vst.msk [vmem:[#allocation2 + $0x129] sm:$0xff] %vm26_vm0, %v6380_v1  ;;  %v6379_v54 = vadd.f32 %v21459_v2, %v6308_v27  ;;  %v6311_v61 = vadd.f32 %v16952_v10, %v5604_v29  ;;  %v4902_v57 = vadd.f32 %v25827_v25, %v4194_v21  ;;  %v25828_v27 = vld [vmem:[#allocation63_spill] sm:$0xff]  ;;  %v25831_v63 = vld [vmem:[#allocation34_spill] sm:$0xff] }
 0x314   :  { %v6087_v26 = vpop.f32.mrf.mxu0  ;;  %v6571_v36 = vld [vmem:[#allocation2 + $0xf1] sm:$0xff]  ;;  %v4196_v10 = vadd.f32 %v25829_v45, %v25828_v27  ;;  %v25834_v11 = vld [vmem:[#allocation31_spill] sm:$0xff] }
 0x315   :  { %v21645_v28 = vld [vmem:[#allocation2 + $0xf0] sm:$0xff]  ;;  %v21647_v13 = vld [vmem:[#allocation2 + $0xf8] sm:$0xff]  ;;  %6444 = vst.msk [vmem:[#allocation2 + $0x121] sm:$0xff] %vm26_vm0, %v6379_v54  ;;  %v6382_v56 = vadd.f32 %v21459_v2, %v6311_v61  ;;  %v6310_v24 = vadd.f32 %v6087_v26, %v5603_v49  ;;  %17042 = vmatprep.mubr.msk.f32.mxu1 %vm26_vm0, %v6571_v36  ;;  %v21687_v49 = vpop.f32.mrf.mxu1  ;;  %v5609_v12 = vadd.f32 %v21443_v7, %v4902_v57  ;;  %v25835_v7 = vld [vmem:[#allocation92_spill] sm:$0xff] }
 0x316   :  { %17140 = vmatprep.mubr.msk.f32.mxu0 %vm26_vm0, %v21645_v28  ;;  %v16955_v52 = vpop.f32.mrf.mxu0  ;;  %17043 = vmatmul.mubr.msk.f32.gmra.mxu1 %vm26_vm0, %v6572_v23  ;;  %v6574_v32 = vld [vmem:[#allocation2 + $0x111] sm:$0xff]  ;;  %v5612_v21 = vadd.f32 %v25835_v7, %v25834_v11  ;;  %v25837_v25 = vld [vmem:[#allocation67_spill] sm:$0xff] }
 0x317   :  { %17141 = vmatmul.mubr.msk.f32.gmra.mxu0 %vm26_vm0, %v21647_v13  ;;  %6447 = vst.msk [vmem:[#allocation2 + $0x141] sm:$0xff] %vm26_vm0, %v6382_v56  ;;  %v6381_v40 = vadd.f32 %v21459_v2, %v6310_v24  ;;  %v6313_v59 = vadd.f32 %v16955_v52, %v5606_v33  ;;  %v4904_v33 = vadd.f32 %v25831_v63, %v4196_v10  ;;  %v25832_v23 = vld [vmem:[#allocation66_spill] sm:$0xff]  ;;  %v25833_v52 = vld [vmem:[#allocation64_spill] sm:$0xff]  ;;  %v21709_v42 = vpop.f32.mrf.mxu1  ;;  %v25838_v57 = vld [vmem:[#allocation65_spill] sm:$0xff] }
 0x318   :  { %v6097_v31 = vpop.f32.mrf.mxu0  ;;  %v6573_v4 = vld [vmem:[#allocation2 + $0x109] sm:$0xff] }
 0x319   :  { %v21667_v3 = vld [vmem:[#allocation2 + $0x108] sm:$0xff]  ;;  %v21669_v43 = vld [vmem:[#allocation2 + $0x110] sm:$0xff]  ;;  %6446 = vst.msk [vmem:[#allocation2 + $0x139] sm:$0xff] %vm26_vm0, %v6381_v40  ;;  %v6384_v37 = vadd.f32 %v21459_v2, %v6313_v59  ;;  %v6312_v19 = vadd.f32 %v6097_v31, %v5605_v46  ;;  %17045 = vmatprep.mubr.msk.f32.mxu1 %vm26_vm0, %v6573_v4  ;;  %v4198_v46 = vadd.f32 %v25833_v52, %v25832_v23 }
 0x31a   :  { %17143 = vmatprep.mubr.msk.f32.mxu0 %vm26_vm0, %v21667_v3  ;;  %v16958_v41 = vpop.f32.mrf.mxu0  ;;  %17046 = vmatmul.mubr.msk.f32.gmra.mxu1 %vm26_vm0, %v6574_v32  ;;  %v6576_v26 = vld [vmem:[#allocation2 + $0x129] sm:$0xff] }
 0x31b   :  { %17144 = vmatmul.mubr.msk.f32.gmra.mxu0 %vm26_vm0, %v21669_v43  ;;  %6449 = vst.msk [vmem:[#allocation2 + $0x159] sm:$0xff] %vm26_vm0, %v6384_v37  ;;  %v6383_v29 = vadd.f32 %v21459_v2, %v6312_v19  ;;  %v6315_v1 = vadd.f32 %v16958_v41, %v5608_v53  ;;  %v5611_v37 = vadd.f32 %v21463_v6, %v4904_v33  ;;  %v25836_v19 = vld [vmem:[#allocation35_spill] sm:$0xff]  ;;  %v6583_v33 = vld [vmem:[#allocation2 + $0x1b1] sm:$0xff]  ;;  %v25842_v23 = vld [vmem:[#allocation68_spill] sm:$0xff] }
 0x31c   :  { %v6107_v20 = vpop.f32.mrf.mxu0  ;;  %v6575_v35 = vld [vmem:[#allocation2 + $0x121] sm:$0xff]  ;;  %v4906_v32 = vadd.f32 %v25836_v19, %v4198_v46 }
 0x31d   :  { %v21689_v54 = vld [vmem:[#allocation2 + $0x120] sm:$0xff]  ;;  %v21691_v61 = vld [vmem:[#allocation2 + $0x128] sm:$0xff]  ;;  %6448 = vst.msk [vmem:[#allocation2 + $0x151] sm:$0xff] %vm26_vm0, %v6383_v29  ;;  %v6386_v50 = vadd.f32 %v21459_v2, %v6315_v1  ;;  %v6314_v51 = vadd.f32 %v6107_v20, %v5607_v17  ;;  %17048 = vmatprep.mubr.msk.f32.mxu1 %vm26_vm0, %v6575_v35  ;;  %v4200_v29 = vadd.f32 %v25838_v57, %v25837_v25  ;;  %v21731_v1 = vpop.f32.mrf.mxu1  ;;  %v25839_v35 = vld [vmem:[#allocation33_spill] sm:$0xff] }
 0x31e   :  { %17146 = vmatprep.mubr.msk.f32.mxu0 %vm26_vm0, %v21689_v54  ;;  %v16961_v36 = vpop.f32.mrf.mxu0  ;;  %17049 = vmatmul.mubr.msk.f32.gmra.mxu1 %vm26_vm0, %v6576_v26  ;;  %v6578_v60 = vld [vmem:[#allocation2 + $0x141] sm:$0xff]  ;;  %v5614_v6 = vadd.f32 %v21472_v14, %v25839_v35  ;;  %v5613_v14 = vadd.f32 %v21485_v62, %v4906_v32  ;;  %v6519_v25 = vld [vmem:[#allocation2 + $0x1b8] sm:$0xff] }
 0x31f   :  { %17147 = vmatmul.mubr.msk.f32.gmra.mxu0 %vm26_vm0, %v21691_v61  ;;  %6451 = vst.msk [vmem:[#allocation2 + $0x171] sm:$0xff] %vm26_vm0, %v6386_v50  ;;  %v6385_v56 = vadd.f32 %v21459_v2, %v6314_v51  ;;  %v6317_v24 = vadd.f32 %v16961_v36, %v5610_v39  ;;  %v25840_v51 = vld [vmem:[#allocation3_spill] sm:$0xff]  ;;  %v21753_v46 = vpop.f32.mrf.mxu1  ;;  %v25847_v35 = vld [vmem:[#allocation38_spill] sm:$0xff] }
 0x320   :  { %v6117_v30 = vpop.f32.mrf.mxu0  ;;  %v6577_v40 = vld [vmem:[#allocation2 + $0x139] sm:$0xff]  ;;  %v4908_v26 = vadd.f32 %v25840_v51, %v4200_v29  ;;  %v25845_v29 = vld [vmem:[#allocation5_spill] sm:$0xff] }
 0x321   :  { %v21711_v59 = vld [vmem:[#allocation2 + $0x138] sm:$0xff]  ;;  %v21713_v55 = vld [vmem:[#allocation2 + $0x140] sm:$0xff]  ;;  %6450 = vst.msk [vmem:[#allocation2 + $0x169] sm:$0xff] %vm26_vm0, %v6385_v56  ;;  %v6388_v31 = vadd.f32 %v21459_v2, %v6317_v24  ;;  %v6316_v4 = vadd.f32 %v6117_v30, %v5609_v12  ;;  %17051 = vmatprep.mubr.msk.f32.mxu1 %vm26_vm0, %v6577_v40  ;;  %v6518_v56 = vld [vmem:[#allocation2 + $0x1b0] sm:$0xff] }
 0x322   :  { %17149 = vmatprep.mubr.msk.f32.mxu0 %vm26_vm0, %v21711_v59  ;;  %v16964_v53 = vpop.f32.mrf.mxu0  ;;  %17052 = vmatmul.mubr.msk.f32.gmra.mxu1 %vm26_vm0, %v6578_v60  ;;  %v6580_v50 = vld [vmem:[#allocation2 + $0x159] sm:$0xff]  ;;  %v25841_v24 = vld [vmem:[#allocation69_spill] sm:$0xff] }
 0x323   :  { %17150 = vmatmul.mubr.msk.f32.gmra.mxu0 %vm26_vm0, %v21713_v55  ;;  %6453 = vst.msk [vmem:[#allocation2 + $0x189] sm:$0xff] %vm26_vm0, %v6388_v31  ;;  %v6387_v41 = vadd.f32 %v21459_v2, %v6316_v4  ;;  %v6319_v17 = vadd.f32 %v16964_v53, %v5612_v21  ;;  %v4202_v52 = vadd.f32 %v25842_v23, %v25841_v24  ;;  %v25843_v21 = vld [vmem:[#allocation36_spill] sm:$0xff] }
 0x324   :  { %v6127_v27 = vpop.f32.mrf.mxu0  ;;  %v6579_v45 = vld [vmem:[#allocation2 + $0x151] sm:$0xff]  ;;  %v5616_v62 = vadd.f32 %v21498_v22, %v25843_v21  ;;  %v5615_v53 = vadd.f32 %v21512_v44, %v4908_v26  ;;  %v21775_v44 = vpop.f32.mrf.mxu1  ;;  %v25848_v26 = vld [vmem:[#allocation40_spill] sm:$0xff] }
 0x325   :  { %v21733_v10 = vld [vmem:[#allocation2 + $0x150] sm:$0xff]  ;;  %v21735_v20 = vld [vmem:[#allocation2 + $0x158] sm:$0xff]  ;;  %6452 = vst.msk [vmem:[#allocation2 + $0x181] sm:$0xff] %vm26_vm0, %v6387_v41  ;;  %v6390_v38 = vadd.f32 %v21459_v2, %v6319_v17  ;;  %v6318_v39 = vadd.f32 %v6127_v27, %v5611_v37  ;;  %17054 = vmatprep.mubr.msk.f32.mxu1 %vm26_vm0, %v6579_v45  ;;  %v25846_v27 = vld [vmem:[#allocation4_spill] sm:$0xff] }
 0x326   :  { %17152 = vmatprep.mubr.msk.f32.mxu0 %vm26_vm0, %v21733_v10  ;;  %v16967_v36 = vpop.f32.mrf.mxu0  ;;  %17055 = vmatmul.mubr.msk.f32.gmra.mxu1 %vm26_vm0, %v6580_v50  ;;  %v6582_v60 = vld [vmem:[#allocation2 + $0x171] sm:$0xff]  ;;  %v6584_v17 = vld [vmem:[#allocation2 + $0x1b9] sm:$0xff]  ;;  %v4204_v45 = vadd.f32 %v25846_v27, %v25845_v29 }
 0x327   :  { %17153 = vmatmul.mubr.msk.f32.gmra.mxu0 %vm26_vm0, %v21735_v20  ;;  %6455 = vst.msk [vmem:[#allocation2 + $0x1d1] sm:$0xff] %vm26_vm0, %v6390_v38  ;;  %v6389_v12 = vadd.f32 %v21459_v2, %v6318_v39  ;;  %v6321_v63 = vadd.f32 %v16967_v36, %v5614_v6  ;;  %v25844_v22 = vld [vmem:[#allocation37_spill] sm:$0xff]  ;;  %v5618_v6 = vadd.f32 %v21526_v18, %v25847_v35  ;;  %v25849_v18 = vld [vmem:[#allocation71_spill] sm:$0xff] }
 0x328   :  { %v6137_v30 = vpop.f32.mrf.mxu0  ;;  %v6581_v40 = vld [vmem:[#allocation2 + $0x169] sm:$0xff]  ;;  %v4910_v19 = vadd.f32 %v25844_v22, %v4202_v52  ;;  %v4912_v36 = vadd.f32 %v25848_v26, %v4204_v45 }
 0x329   :  { %v21755_v11 = vld [vmem:[#allocation2 + $0x168] sm:$0xff]  ;;  %v21757_v7 = vld [vmem:[#allocation2 + $0x170] sm:$0xff]  ;;  %6454 = vst.msk [vmem:[#allocation2 + $0x1c9] sm:$0xff] %vm26_vm0, %v6389_v12  ;;  %v6392_v31 = vadd.f32 %v21459_v2, %v6321_v63  ;;  %v6320_v4 = vadd.f32 %v6137_v30, %v5613_v14  ;;  %17057 = vmatprep.mubr.msk.f32.mxu1 %vm26_vm0, %v6581_v40  ;;  %v25850_v63 = vld [vmem:[#allocation70_spill] sm:$0xff] }
 0x32a   :  { %17155 = vmatprep.mubr.msk.f32.mxu0 %vm26_vm0, %v21755_v11  ;;  %v16970_v37 = vpop.f32.mrf.mxu0  ;;  %17058 = vmatmul.mubr.msk.f32.gmra.mxu1 %vm26_vm0, %v6582_v60  ;;  %v5617_v51 = vadd.f32 %v21540_v34, %v4910_v19  ;;  %v25851_v40 = vld [vmem:[#allocation39_spill] sm:$0xff]  ;;  %v5619_v60 = vadd.f32 %v21573_v47, %v4912_v36  ;;  %v25853_v19 = vld [vmem:[#allocation72_spill] sm:$0xff]  ;;  %v25855_v45 = vld [vmem:[#allocation41_spill] sm:$0xff] }
 0x32b   :  { %17156 = vmatmul.mubr.msk.f32.gmra.mxu0 %vm26_vm0, %v21757_v7  ;;  %6457 = vst.msk [vmem:[#allocation2 + $0x1e9] sm:$0xff] %vm26_vm0, %v6392_v31  ;;  %v6391_v32 = vadd.f32 %v21459_v2, %v6320_v4  ;;  %v6323_v41 = vadd.f32 %v16970_v37, %v5616_v62  ;;  %17060 = vmatprep.mubr.msk.f32.mxu1 %vm26_vm0, %v6583_v33 }
 0x32c   :  { %17158 = vmatprep.mubr.msk.f32.mxu0 %vm26_vm0, %v6518_v56  ;;  %v6147_v57 = vpop.f32.mrf.mxu0  ;;  %v4206_v33 = vadd.f32 %v25850_v63, %v25849_v18  ;;  %v21791_v56 = vpop.f32.mrf.mxu1  ;;  %v5620_v34 = vadd.f32 %v21556_v15, %v25851_v40  ;;  %v25852_v15 = vld [vmem:[#allocation42_spill] sm:$0xff]  ;;  %v5622_v47 = vadd.f32 %v21589_v8, %v25855_v45  ;;  %v25856_v8 = vld [vmem:[#allocation44_spill] sm:$0xff] }
 0x32d   :  { %6456 = vst.msk [vmem:[#allocation2 + $0x1e1] sm:$0xff] %vm26_vm0, %v6391_v32  ;;  %v6394_v38 = vadd.f32 %v21459_v2, %v6323_v41  ;;  %v6322_v39 = vadd.f32 %v6147_v57, %v5615_v53  ;;  %v25854_v32 = vld [vmem:[#allocation6_spill] sm:$0xff] }
 0x32e   :  { %17061 = vmatmul.mubr.msk.f32.gmra.mxu1 %vm26_vm0, %v6584_v17  ;;  %v6586_v31 = vld [vmem:[#allocation2 + $0x1d1] sm:$0xff]  ;;  %v4914_v53 = vadd.f32 %v25852_v15, %v4206_v33  ;;  %v4208_v41 = vadd.f32 %v25854_v32, %v25853_v19  ;;  %v21813_v17 = vpop.f32.mrf.mxu1  ;;  %v25862_v19 = vld [vmem:[#allocation75_spill] sm:$0xff] }
 0x32f   :  { %v16973_v50 = vpop.f32.mrf.mxu0  ;;  %17159 = vmatmul.mubr.msk.f32.gmra.mxu0 %vm26_vm0, %v6519_v25  ;;  %6459 = vst.msk [vmem:[#allocation2 + $0x201] sm:$0xff] %vm26_vm0, %v6394_v38  ;;  %v6393_v14 = vadd.f32 %v21459_v2, %v6322_v39 }
 0x330   :  { %v6325_v12 = vadd.f32 %v16973_v50, %v5618_v6  ;;  %v6585_v23 = vld [vmem:[#allocation2 + $0x1c9] sm:$0xff]  ;;  %v5621_v50 = vadd.f32 %v21605_v9, %v4914_v53  ;;  %v21835_v63 = vpop.f32.mrf.mxu1 }
 0x331   :  { %v6157_v24 = vpop.f32.mrf.mxu0  ;;  %v21793_v52 = vld [vmem:[#allocation2 + $0x1c8] sm:$0xff]  ;;  %v21795_v30 = vld [vmem:[#allocation2 + $0x1d0] sm:$0xff]  ;;  %6458 = vst.msk [vmem:[#allocation2 + $0x1f9] sm:$0xff] %vm26_vm0, %v6393_v14  ;;  %17063 = vmatprep.mubr.msk.f32.mxu1 %vm26_vm0, %v6585_v23  ;;  %v25857_v14 = vld [vmem:[#allocation74_spill] sm:$0xff] }
 0x332   :  { %v6396_v21 = vadd.f32 %v21459_v2, %v6325_v12  ;;  %v6324_v62 = vadd.f32 %v6157_v24, %v5617_v51  ;;  %17161 = vmatprep.mubr.msk.f32.mxu0 %vm26_vm0, %v21793_v52  ;;  %17064 = vmatmul.mubr.msk.f32.gmra.mxu1 %vm26_vm0, %v6586_v31  ;;  %v6588_v38 = vld [vmem:[#allocation2 + $0x1e9] sm:$0xff]  ;;  %v4916_v51 = vadd.f32 %v25856_v8, %v4208_v41  ;;  %v21857_v41 = vpop.f32.mrf.mxu1 }
 0x333   :  { %v16976_v4 = vpop.f32.mrf.mxu0  ;;  %17162 = vmatmul.mubr.msk.f32.gmra.mxu0 %vm26_vm0, %v21795_v30  ;;  %v25858_v12 = vld [vmem:[#allocation73_spill] sm:$0xff] }
 0x334   :  { %6461 = vst.msk [vmem:[#allocation2 + $0x219] sm:$0xff] %vm26_vm0, %v6396_v21  ;;  %v6395_v37 = vadd.f32 %v21459_v2, %v6324_v62  ;;  %v6327_v22 = vadd.f32 %v16976_v4, %v5620_v34  ;;  %v6587_v57 = vld [vmem:[#allocation2 + $0x1e1] sm:$0xff]  ;;  %v4210_v18 = vadd.f32 %v25858_v12, %v25857_v14  ;;  %v25865_v14 = vld [vmem:[#allocation9_spill] sm:$0xff] }
 0x335   :  { %v6167_v25 = vpop.f32.mrf.mxu0  ;;  %v21815_v29 = vld [vmem:[#allocation2 + $0x1e0] sm:$0xff]  ;;  %v21817_v27 = vld [vmem:[#allocation2 + $0x1e8] sm:$0xff]  ;;  %17066 = vmatprep.mubr.msk.f32.mxu1 %vm26_vm0, %v6587_v57 }
 0x336   :  { %6460 = vst.msk [vmem:[#allocation2 + $0x211] sm:$0xff] %vm26_vm0, %v6395_v37  ;;  %v6398_v35 = vadd.f32 %v21459_v2, %v6327_v22  ;;  %v6326_v6 = vadd.f32 %v6167_v25, %v5619_v60  ;;  %17164 = vmatprep.mubr.msk.f32.mxu0 %vm26_vm0, %v21815_v29  ;;  %17067 = vmatmul.mubr.msk.f32.gmra.mxu1 %vm26_vm0, %v6588_v38  ;;  %v25859_v34 = vld [vmem:[#allocation43_spill] sm:$0xff]  ;;  %v25866_v12 = vld [vmem:[#allocation8_spill] sm:$0xff] }
 0x337   :  { %v16979_v39 = vpop.f32.mrf.mxu0  ;;  %17165 = vmatmul.mubr.msk.f32.gmra.mxu0 %vm26_vm0, %v21817_v27  ;;  %v5624_v9 = vadd.f32 %v21621_v16, %v25859_v34  ;;  %v6590_v31 = vld [vmem:[#allocation2 + $0x201] sm:$0xff]  ;;  %v5623_v60 = vadd.f32 %v21643_v0, %v4916_v51 }
 0x338   :  { %6463 = vst.msk [vmem:[#allocation2 + $0x231] sm:$0xff] %vm26_vm0, %v6398_v35  ;;  %v6397_v26 = vadd.f32 %v21459_v2, %v6326_v6  ;;  %v6329_v36 = vadd.f32 %v16979_v39, %v5622_v47  ;;  %v6589_v24 = vld [vmem:[#allocation2 + $0x1f9] sm:$0xff]  ;;  %v25860_v16 = vld [vmem:[#allocation48_spill] sm:$0xff]  ;;  %v25863_v35 = vld [vmem:[#allocation45_spill] sm:$0xff] }
 0x339   :  { %v6177_v33 = vpop.f32.mrf.mxu0  ;;  %v21837_v23 = vld [vmem:[#allocation2 + $0x1f8] sm:$0xff]  ;;  %v21839_v40 = vld [vmem:[#allocation2 + $0x200] sm:$0xff]  ;;  %17069 = vmatprep.mubr.msk.f32.mxu1 %vm26_vm0, %v6589_v24  ;;  %v4918_v15 = vadd.f32 %v25860_v16, %v4210_v18  ;;  %v5626_v0 = vadd.f32 %v21665_v58, %v25863_v35  ;;  %v4214_v18 = vadd.f32 %v25866_v12, %v25865_v14 }
 0x33a   :  { %6462 = vst.msk [vmem:[#allocation2 + $0x229] sm:$0xff] %vm26_vm0, %v6397_v26  ;;  %v6400_v21 = vadd.f32 %v21459_v2, %v6329_v36  ;;  %v6328_v62 = vadd.f32 %v6177_v33, %v5621_v50  ;;  %17167 = vmatprep.mubr.msk.f32.mxu0 %vm26_vm0, %v21837_v23  ;;  %17070 = vmatmul.mubr.msk.f32.gmra.mxu1 %vm26_vm0, %v6590_v31  ;;  %v25861_v22 = vld [vmem:[#allocation7_spill] sm:$0xff]  ;;  %v25864_v58 = vld [vmem:[#allocation78_spill] sm:$0xff]  ;;  %v21879_v33 = vpop.f32.mrf.mxu1 }
 0x33b   :  { %v16982_v4 = vpop.f32.mrf.mxu0  ;;  %17168 = vmatmul.mubr.msk.f32.gmra.mxu0 %vm26_vm0, %v21839_v40  ;;  %v4212_v32 = vadd.f32 %v25862_v19, %v25861_v22  ;;  %v6592_v39 = vld [vmem:[#allocation2 + $0x219] sm:$0xff]  ;;  %v5625_v8 = vadd.f32 %v21687_v49, %v4918_v15 }
 0x33c   :  { %6465 = vst.msk [vmem:[#allocation2 + $0x249] sm:$0xff] %vm26_vm0, %v6400_v21  ;;  %v6399_v53 = vadd.f32 %v21459_v2, %v6328_v62  ;;  %v6331_v37 = vadd.f32 %v16982_v4, %v5624_v9  ;;  %v25867_v62 = vld [vmem:[#allocation51_spill] sm:$0xff] }
 0x33d   :  { %v6187_v25 = vpop.f32.mrf.mxu0  ;;  %v6591_v57 = vld [vmem:[#allocation2 + $0x211] sm:$0xff]  ;;  %v4920_v51 = vadd.f32 %v25864_v58, %v4212_v32  ;;  %v5628_v49 = vadd.f32 %v21709_v42, %v25867_v62  ;;  %v25868_v42 = vld [vmem:[#allocation80_spill] sm:$0xff]  ;;  %v25869_v19 = vld [vmem:[#allocation11_spill] sm:$0xff] }
 0x33e   :  { %v21859_v45 = vld [vmem:[#allocation2 + $0x210] sm:$0xff]  ;;  %v21861_v47 = vld [vmem:[#allocation2 + $0x218] sm:$0xff]  ;;  %6464 = vst.msk [vmem:[#allocation2 + $0x241] sm:$0xff] %vm26_vm0, %v6399_v53  ;;  %v6402_v6 = vadd.f32 %v21459_v2, %v6331_v37  ;;  %v6330_v38 = vadd.f32 %v6187_v25, %v5623_v60  ;;  %17072 = vmatprep.mubr.msk.f32.mxu1 %vm26_vm0, %v6591_v57  ;;  %v4922_v53 = vadd.f32 %v25868_v42, %v4214_v18  ;;  %v21901_v57 = vpop.f32.mrf.mxu1 }
 0x33f   :  { %17170 = vmatprep.mubr.msk.f32.mxu0 %vm26_vm0, %v21859_v45  ;;  %v16985_v50 = vpop.f32.mrf.mxu0  ;;  %17073 = vmatmul.mubr.msk.f32.gmra.mxu1 %vm26_vm0, %v6592_v39  ;;  %v6594_v60 = vld [vmem:[#allocation2 + $0x231] sm:$0xff]  ;;  %v5627_v15 = vadd.f32 %v21731_v1, %v4920_v51  ;;  %v25871_v39 = vld [vmem:[#allocation79_spill] sm:$0xff] }
 0x340   :  { %17171 = vmatmul.mubr.msk.f32.gmra.mxu0 %vm26_vm0, %v21861_v47  ;;  %6467 = vst.msk [vmem:[#allocation2 + $0x261] sm:$0xff] %vm26_vm0, %v6402_v6  ;;  %v6401_v26 = vadd.f32 %v21459_v2, %v6330_v38  ;;  %v6333_v36 = vadd.f32 %v16985_v50, %v5626_v0  ;;  %v25870_v32 = vld [vmem:[#allocation10_spill] sm:$0xff]  ;;  %v5630_v1 = vadd.f32 %v21753_v46, %v25871_v39  ;;  %v25873_v18 = vld [vmem:[#allocation13_spill] sm:$0xff]  ;;  %v21923_v62 = vpop.f32.mrf.mxu1 }
 0x341   :  { %v6197_v24 = vpop.f32.mrf.mxu0  ;;  %v6593_v34 = vld [vmem:[#allocation2 + $0x229] sm:$0xff]  ;;  %v4216_v25 = vadd.f32 %v25870_v32, %v25869_v19  ;;  %v25872_v46 = vld [vmem:[#allocation82_spill] sm:$0xff] }
 0x342   :  { %v21881_v9 = vld [vmem:[#allocation2 + $0x228] sm:$0xff]  ;;  %v21883_v21 = vld [vmem:[#allocation2 + $0x230] sm:$0xff]  ;;  %6466 = vst.msk [vmem:[#allocation2 + $0x259] sm:$0xff] %vm26_vm0, %v6401_v26  ;;  %v6404_v31 = vadd.f32 %v21459_v2, %v6333_v36  ;;  %v6332_v4 = vadd.f32 %v6197_v24, %v5625_v8  ;;  %17075 = vmatprep.mubr.msk.f32.mxu1 %vm26_vm0, %v6593_v34  ;;  %v5629_v26 = vadd.f32 %v21775_v44, %v4922_v53 }
 0x343   :  { %17173 = vmatprep.mubr.msk.f32.mxu0 %vm26_vm0, %v21881_v9  ;;  %v16988_v16 = vpop.f32.mrf.mxu0  ;;  %17076 = vmatmul.mubr.msk.f32.gmra.mxu1 %vm26_vm0, %v6594_v60  ;;  %v6596_v58 = vld [vmem:[#allocation2 + $0x249] sm:$0xff]  ;;  %v4924_v36 = vadd.f32 %v25872_v46, %v4216_v25 }
 0x344   :  { %17174 = vmatmul.mubr.msk.f32.gmra.mxu0 %vm26_vm0, %v21883_v21  ;;  %6469 = vst.msk [vmem:[#allocation2 + $0x279] sm:$0xff] %vm26_vm0, %v6404_v31  ;;  %v6403_v37 = vadd.f32 %v21459_v2, %v6332_v4  ;;  %v6335_v22 = vadd.f32 %v16988_v16, %v5628_v49  ;;  %v25874_v24 = vld [vmem:[#allocation12_spill] sm:$0xff]  ;;  %v25875_v16 = vld [vmem:[#allocation81_spill] sm:$0xff] }
 0x345   :  { %v6207_v35 = vpop.f32.mrf.mxu0  ;;  %v6595_v0 = vld [vmem:[#allocation2 + $0x241] sm:$0xff]  ;;  %v4218_v34 = vadd.f32 %v25874_v24, %v25873_v18  ;;  %v5632_v44 = vadd.f32 %v21791_v56, %v25875_v16 }
 0x346   :  { %v21903_v6 = vld [vmem:[#allocation2 + $0x240] sm:$0xff]  ;;  %v21905_v38 = vld [vmem:[#allocation2 + $0x248] sm:$0xff]  ;;  %6468 = vst.msk [vmem:[#allocation2 + $0x271] sm:$0xff] %vm26_vm0, %v6403_v37  ;;  %v6406_v50 = vadd.f32 %v21459_v2, %v6335_v22  ;;  %v6334_v8 = vadd.f32 %v6207_v35, %v5627_v15  ;;  %17078 = vmatprep.mubr.msk.f32.mxu1 %vm26_vm0, %v6595_v0  ;;  %v5631_v22 = vadd.f32 %v21813_v17, %v4924_v36  ;;  %v25878_v0 = vld [vmem:[#allocation14_spill] sm:$0xff] }
 0x347   :  { %17176 = vmatprep.mubr.msk.f32.mxu0 %vm26_vm0, %v21903_v6  ;;  %v16991_v51 = vpop.f32.mrf.mxu0  ;;  %17079 = vmatmul.mubr.msk.f32.gmra.mxu1 %vm26_vm0, %v6596_v58  ;;  %v6598_v53 = vld [vmem:[#allocation2 + $0x261] sm:$0xff] }
 0x348   :  { %17177 = vmatmul.mubr.msk.f32.gmra.mxu0 %vm26_vm0, %v21905_v38  ;;  %6471 = vst.msk [vmem:[#allocation2 + $0x291] sm:$0xff] %vm26_vm0, %v6406_v50  ;;  %v6405_v14 = vadd.f32 %v21459_v2, %v6334_v8  ;;  %v6337_v12 = vadd.f32 %v16991_v51, %v5630_v1  ;;  %v25876_v56 = vld [vmem:[#allocation84_spill] sm:$0xff]  ;;  %v25877_v35 = vld [vmem:[#allocation15_spill] sm:$0xff]  ;;  %v5550_v1 = vpop.f32.mrf.mxu1 }
 0x349   :  { %v6217_v49 = vpop.f32.mrf.mxu0  ;;  %v6597_v31 = vld [vmem:[#allocation2 + $0x259] sm:$0xff]  ;;  %v4926_v19 = vadd.f32 %v25876_v56, %v4218_v34  ;;  %v4220_v39 = vadd.f32 %v25878_v0, %v25877_v35  ;;  %v25882_v16 = vld [vmem:[#allocation16_spill] sm:$0xff]  ;;  %v25883_v56 = vld [vmem:[#allocation85_spill] sm:$0xff] }
 0x34a   :  { %v21925_v4 = vld [vmem:[#allocation2 + $0x258] sm:$0xff]  ;;  %v21927_v60 = vld [vmem:[#allocation2 + $0x260] sm:$0xff]  ;;  %6470 = vst.msk [vmem:[#allocation2 + $0x289] sm:$0xff] %vm26_vm0, %v6405_v14  ;;  %v6408_v15 = vadd.f32 %v21459_v2, %v6337_v12  ;;  %v6336_v42 = vadd.f32 %v6217_v49, %v5629_v26  ;;  %17081 = vmatprep.mubr.msk.f32.mxu1 %vm26_vm0, %v6597_v31  ;;  %v25881_v31 = vld [vmem:[#allocation17_spill] sm:$0xff] }
 0x34b   :  { %17179 = vmatprep.mubr.msk.f32.mxu0 %vm26_vm0, %v21925_v4  ;;  %v16994_v37 = vpop.f32.mrf.mxu0  ;;  %17082 = vmatmul.mubr.msk.f32.gmra.mxu1 %vm26_vm0, %v6598_v53  ;;  %v21945_v2 = vld [vmem:[%s25374_s2] ss:$0 sm:$0xff]  ;;  %v5633_v18 = vadd.f32 %v21857_v41, %v4926_v19  ;;  %v5636_v41 = vadd.f32 %v21879_v33, %v25883_v56  ;;  %v25884_v33 = vld [vmem:[#allocation88_spill] sm:$0xff] }
 0x34c   :  { %17180 = vmatmul.mubr.msk.f32.gmra.mxu0 %vm26_vm0, %v21927_v60  ;;  %6473 = vst.msk [vmem:[#allocation2 + $0x2a9] sm:$0xff] %vm26_vm0, %v6408_v15  ;;  %v6407_v32 = vadd.f32 %v21945_v2, %v6336_v42  ;;  %v6339_v25 = vadd.f32 %v16994_v37, %v5632_v44  ;;  %v25879_v51 = vld [vmem:[#allocation83_spill] sm:$0xff]  ;;  %v4222_v44 = vadd.f32 %v25882_v16, %v25881_v31  ;;  %v16908_v15 = vpop.f32.mrf.mxu1 }
 0x34d   :  { %v6227_v50 = vpop.f32.mrf.mxu0  ;;  %v6599_v8 = vld [vmem:[#allocation2 + $0x271] sm:$0xff]  ;;  %v5634_v26 = vadd.f32 %v21835_v63, %v25879_v51  ;;  %v6600_v14 = vld [vmem:[#allocation2 + $0x279] sm:$0xff] }
 0x34e   :  { %v21950_v58 = vld [vmem:[#allocation2 + $0x270] sm:$0xff]  ;;  %v21952_v17 = vld [vmem:[#allocation2 + $0x278] sm:$0xff]  ;;  %6472 = vst.msk [vmem:[#allocation2 + $0x2a1] sm:$0xff] %vm26_vm0, %v6407_v32  ;;  %v6410_v46 = vadd.f32 %v21945_v2, %v6339_v25  ;;  %v6338_v36 = vadd.f32 %v6227_v50, %v5631_v22  ;;  %17084 = vmatprep.mubr.msk.f32.mxu1 %vm26_vm0, %v6599_v8  ;;  %v25885_v51 = vld [vmem:[#allocation19_spill] sm:$0xff] }
 0x34f   :  { %17182 = vmatprep.mubr.msk.f32.mxu0 %vm26_vm0, %v21950_v58  ;;  %v16997_v12 = vpop.f32.mrf.mxu0  ;;  %17085 = vmatmul.mubr.msk.f32.gmra.mxu1 %vm26_vm0, %v6600_v14  ;;  %v25880_v63 = vld [vmem:[#allocation86_spill] sm:$0xff] }
 0x350   :  { %17183 = vmatmul.mubr.msk.f32.gmra.mxu0 %vm26_vm0, %v21952_v17  ;;  %v4928_v24 = vadd.f32 %v25880_v63, %v4220_v39  ;;  %6475 = vst.msk [vmem:[#allocation2 + $0x2c1] sm:$0xff] %vm26_vm0, %v6410_v46  ;;  %v6409_v34 = vadd.f32 %v21945_v2, %v6338_v36  ;;  %v6341_v49 = vadd.f32 %v16997_v12, %v5634_v26  ;;  %v6602_v25 = vld [vmem:[#allocation2 + $0x291] sm:$0xff]  ;;  %v5560_v36 = vpop.f32.mrf.mxu1 }
 0x351   :  { %v6237_v42 = vpop.f32.mrf.mxu0  ;;  %v6601_v53 = vld [vmem:[#allocation2 + $0x289] sm:$0xff]  ;;  %v4930_v39 = vadd.f32 %v25884_v33, %v4222_v44  ;;  %v25886_v26 = vld [vmem:[#allocation18_spill] sm:$0xff] }
 0x352   :  { %v21970_v37 = vld [vmem:[#allocation2 + $0x288] sm:$0xff]  ;;  %v21972_v22 = vld [vmem:[#allocation2 + $0x290] sm:$0xff]  ;;  %6474 = vst.msk [vmem:[#allocation2 + $0x2b9] sm:$0xff] %vm26_vm0, %v6409_v34  ;;  %v6412_v19 = vadd.f32 %v21945_v2, %v6341_v49  ;;  %v6340_v32 = vadd.f32 %v6237_v42, %v5633_v18  ;;  %17087 = vmatprep.mubr.msk.f32.mxu1 %vm26_vm0, %v6601_v53  ;;  %v5635_v0 = vadd.f32 %v21901_v57, %v4928_v24  ;;  %v25887_v34 = vld [vmem:[#allocation87_spill] sm:$0xff] }
 0x353   :  { %17185 = vmatprep.mubr.msk.f32.mxu0 %vm26_vm0, %v21970_v37  ;;  %v17000_v35 = vpop.f32.mrf.mxu0  ;;  %17088 = vmatmul.mubr.msk.f32.gmra.mxu1 %vm26_vm0, %v6602_v25  ;;  %v4224_v46 = vadd.f32 %v25886_v26, %v25885_v51  ;;  %v5638_v57 = vadd.f32 %v21923_v62, %v25887_v34  ;;  %v6604_v31 = vld [vmem:[#allocation2 + $0x2a9] sm:$0xff]  ;;  %v5637_v44 = vadd.f32 %v5550_v1, %v4930_v39  ;;  %v25888_v42 = vld [vmem:[#allocation90_spill] sm:$0xff]  ;;  %v16911_v25 = vpop.f32.mrf.mxu1 }
 0x354   :  { %17186 = vmatmul.mubr.msk.f32.gmra.mxu0 %vm26_vm0, %v21972_v22  ;;  %6477 = vst.msk [vmem:[#allocation2 + $0x2d9] sm:$0xff] %vm26_vm0, %v6412_v19  ;;  %v6411_v50 = vadd.f32 %v21945_v2, %v6340_v32  ;;  %v6343_v8 = vadd.f32 %v17000_v35, %v5636_v41  ;;  %v25889_v41 = vld [vmem:[#allocation21_spill] sm:$0xff]  ;;  %v25890_v19 = vld [vmem:[#allocation20_spill] sm:$0xff] }
 0x355   :  { %v6247_v14 = vpop.f32.mrf.mxu0  ;;  %v6603_v12 = vld [vmem:[#allocation2 + $0x2a1] sm:$0xff]  ;;  %v4932_v62 = vadd.f32 %v25888_v42, %v4224_v46  ;;  %v4226_v32 = vadd.f32 %v25890_v19, %v25889_v41 }
 0x356   :  { %v21990_v18 = vld [vmem:[#allocation2 + $0x2a0] sm:$0xff]  ;;  %v21992_v63 = vld [vmem:[#allocation2 + $0x2a8] sm:$0xff]  ;;  %6476 = vst.msk [vmem:[#allocation2 + $0x2d1] sm:$0xff] %vm26_vm0, %v6411_v50  ;;  %v6414_v24 = vadd.f32 %v21945_v2, %v6343_v8  ;;  %v6342_v49 = vadd.f32 %v6247_v14, %v5635_v0  ;;  %17090 = vmatprep.mubr.msk.f32.mxu1 %vm26_vm0, %v6603_v12  ;;  %v25891_v8 = vld [vmem:[#allocation89_spill] sm:$0xff] }
 0x357   :  { %17188 = vmatprep.mubr.msk.f32.mxu0 %vm26_vm0, %v21990_v18  ;;  %v17003_v16 = vpop.f32.mrf.mxu0  ;;  %17091 = vmatmul.mubr.msk.f32.gmra.mxu1 %vm26_vm0, %v6604_v31  ;;  %v5640_v51 = vadd.f32 %v16908_v15, %v25891_v8  ;;  %v6606_v26 = vld [vmem:[#allocation2 + $0x2c1] sm:$0xff]  ;;  %v5639_v14 = vadd.f32 %v5560_v36, %v4932_v62  ;;  %v25892_v12 = vld [vmem:[#allocation93_spill] sm:$0xff] }
 0x358   :  { %17189 = vmatmul.mubr.msk.f32.gmra.mxu0 %vm26_vm0, %v21992_v63  ;;  %6479 = vst.msk [vmem:[#allocation2 + $0x2f1] sm:$0xff] %vm26_vm0, %v6414_v24  ;;  %v6413_v53 = vadd.f32 %v21945_v2, %v6342_v49  ;;  %v6345_v56 = vadd.f32 %v17003_v16, %v5638_v57  ;;  %v4934_v15 = vadd.f32 %v25892_v12, %v4226_v32  ;;  %v5570_v24 = vpop.f32.mrf.mxu1  ;;  %v25893_v42 = vld [vmem:[#allocation91_spill] sm:$0xff] }
 0x359   :  { %v6257_v35 = vpop.f32.mrf.mxu0  ;;  %v6605_v0 = vld [vmem:[#allocation2 + $0x2b9] sm:$0xff] }
 0x35a   :  { %v22009_v33 = vld [vmem:[#allocation2 + $0x2b8] sm:$0xff]  ;;  %v22011_v50 = vld [vmem:[#allocation2 + $0x2c0] sm:$0xff]  ;;  %6478 = vst.msk [vmem:[#allocation2 + $0x2e9] sm:$0xff] %vm26_vm0, %v6413_v53  ;;  %v6416_v1 = vadd.f32 %v21945_v2, %v6345_v56  ;;  %v6344_v39 = vadd.f32 %v6257_v35, %v5637_v44  ;;  %17093 = vmatprep.mubr.msk.f32.mxu1 %vm26_vm0, %v6605_v0  ;;  %v5642_v53 = vadd.f32 %v16911_v25, %v25893_v42 }
 0x35b   :  { %17191 = vmatprep.mubr.msk.f32.mxu0 %vm26_vm0, %v22009_v33  ;;  %v17006_v46 = vpop.f32.mrf.mxu0  ;;  %17094 = vmatmul.mubr.msk.f32.gmra.mxu1 %vm26_vm0, %v6606_v26  ;;  %v6608_v56 = vld [vmem:[#allocation2 + $0x2d9] sm:$0xff]  ;;  %v5641_v19 = vadd.f32 %v5570_v24, %v4934_v15 }
 0x35c   :  { %17192 = vmatmul.mubr.msk.f32.gmra.mxu0 %vm26_vm0, %v22011_v50  ;;  %6481 = vst.msk [vmem:[#allocation2 + $0x309] sm:$0xff] %vm26_vm0, %v6416_v1  ;;  %v6415_v34 = vadd.f32 %v21945_v2, %v6344_v39  ;;  %v6347_v57 = vadd.f32 %v17006_v46, %v5640_v51  ;;  %v17014_v46 = vpop.f32.mrf.mxu1 }
 0x35d   :  { %v6267_v49 = vpop.f32.mrf.mxu0  ;;  %v6607_v31 = vld [vmem:[#allocation2 + $0x2d1] sm:$0xff] }
 0x35e   :  { %v22025_v16 = vld [vmem:[#allocation2 + $0x2d0] sm:$0xff]  ;;  %v22027_v44 = vld [vmem:[#allocation2 + $0x2d8] sm:$0xff]  ;;  %6480 = vst.msk [vmem:[#allocation2 + $0x301] sm:$0xff] %vm26_vm0, %v6415_v34  ;;  %v6418_v36 = vadd.f32 %v21945_v2, %v6347_v57  ;;  %v6346_v62 = vadd.f32 %v6267_v49, %v5639_v14  ;;  %17096 = vmatprep.mubr.msk.f32.mxu1 %vm26_vm0, %v6607_v31 }
 0x35f   :  { %17194 = vmatprep.mubr.msk.f32.mxu0 %vm26_vm0, %v22025_v16  ;;  %v17009_v41 = vpop.f32.mrf.mxu0  ;;  %17097 = vmatmul.mubr.msk.f32.gmra.mxu1 %vm26_vm0, %v6608_v56  ;;  %v6610_v26 = vld [vmem:[#allocation2 + $0x2f1] sm:$0xff] }
 0x360   :  { %17195 = vmatmul.mubr.msk.f32.gmra.mxu0 %vm26_vm0, %v22027_v44  ;;  %6483 = vst.msk [vmem:[#allocation2 + $0x321] sm:$0xff] %vm26_vm0, %v6418_v36  ;;  %v6417_v32 = vadd.f32 %v21945_v2, %v6346_v62  ;;  %v6349_v25 = vadd.f32 %v17009_v41, %v5642_v53  ;;  %v17896_v62 = vld [vmem:[#allocation2 + $0x18] sm:$0xff]  ;;  %v7772_v56 = vld [vmem:[#allocation2 + $0xa] sm:$0xff] }
 0x361   :  { %v6277_v35 = vpop.f32.mrf.mxu0  ;;  %v6609_v0 = vld [vmem:[#allocation2 + $0x2e9] sm:$0xff] }
 0x362   :  { %v22040_v8 = vld [vmem:[#allocation2 + $0x2e8] sm:$0xff]  ;;  %v22042_v51 = vld [vmem:[#allocation2 + $0x2f0] sm:$0xff]  ;;  %6482 = vst.msk [vmem:[#allocation2 + $0x319] sm:$0xff] %vm26_vm0, %v6417_v32  ;;  %v6420_v1 = vadd.f32 %v21945_v2, %v6349_v25  ;;  %v6348_v39 = vadd.f32 %v6277_v35, %v5641_v19  ;;  %17099 = vmatprep.mubr.msk.f32.mxu1 %vm26_vm0, %v6609_v0  ;;  %v17897_v19 = vld [vmem:[#allocation2 + $0x20] sm:$0xff] }
 0x363   :  { %17197 = vmatprep.mubr.msk.f32.mxu0 %vm26_vm0, %v22040_v8  ;;  %17100 = vmatmul.mubr.msk.f32.gmra.mxu1 %vm26_vm0, %v6610_v26  ;;  %v17112_v14 = vpop.f32.mrf.mxu0  ;;  %v6612_v49 = vld [vmem:[#allocation2 + $0x309] sm:$0xff]  ;;  %v22084_v32 = vld [vmem:[#allocation2 + $0x1a] sm:$0xff]  ;;  %v22103_v26 = vld [vmem:[#allocation2 + $0x32] sm:$0xff] }
 0x364   :  { %17198 = vmatmul.mubr.msk.f32.gmra.mxu0 %vm26_vm0, %v22042_v51  ;;  %6485 = vst.msk [vmem:[#allocation2 + $0x339] sm:$0xff] %vm26_vm0, %v6420_v1  ;;  %v6419_v12 = vadd.f32 %v21945_v2, %v6348_v39  ;;  %v22054_v15 = vadd.f32 %v17112_v14, %v17014_v46  ;;  %v7771_v2 = vld [vmem:[#allocation2 + $0x2] sm:$0xff]  ;;  %v17898_v25 = vld [vmem:[#allocation2 + $0x30] sm:$0xff]  ;;  %v17900_v39 = vld [vmem:[#allocation2 + $0x38] sm:$0xff] }
 0x365   :  { %v6611_v34 = vld [vmem:[#allocation2 + $0x301] sm:$0xff]  ;;  %v22092_v35 = vld [vmem:[%s25373_s3 + $0x30] sm:$0xff] }
 0x366   :  { %25894 = vst [vmem:[#allocation47_spill] sm:$0xff] %v22054_v15  ;;  %v22056_v57 = vld [vmem:[#allocation2 + $0x300] sm:$0xff]  ;;  %v22058_v24 = vld [vmem:[#allocation2 + $0x308] sm:$0xff]  ;;  %6484 = vst.msk [vmem:[#allocation2 + $0x331] sm:$0xff] %vm26_vm0, %v6419_v12  ;;  %17102 = vmatprep.mubr.msk.f32.mxu1 %vm26_vm0, %v6611_v34 }
 0x367   :  { %17200 = vmatprep.mubr.msk.f32.mxu0 %vm26_vm0, %v22056_v57  ;;  %17103 = vmatmul.mubr.msk.f32.gmra.mxu1 %vm26_vm0, %v6612_v49  ;;  %v6614_v36 = vld [vmem:[#allocation2 + $0x321] sm:$0xff]  ;;  %v17902_v12 = vld [vmem:[#allocation2 + $0x50] sm:$0xff] }
 0x368   :  { %17201 = vmatmul.mubr.msk.f32.gmra.mxu0 %vm26_vm0, %v22058_v24  ;;  %v14697_v41 = vld [vmem:[%s25373_s3 + $0x28] sm:$0xff]  ;;  %v17899_v0 = vld [vmem:[%s25373_s3 + $0x20] sm:$0xff] }
 0x369   :  { %v6613_v31 = vld [vmem:[#allocation2 + $0x319] sm:$0xff]  ;;  %17500 = vmatprep.subr.mxu0 %v14697_v41  ;;  %v22097_v1 = vld [vmem:[#allocation2 + $0x22] sm:$0xff]  ;;  %v22113_v34 = vld [vmem:[#allocation2 + $0x4a] sm:$0xff] }
 0x36a   :  { %v22067_v42 = vld [vmem:[#allocation2 + $0x318] sm:$0xff]  ;;  %v22069_v53 = vld [vmem:[#allocation2 + $0x320] sm:$0xff]  ;;  %17105 = vmatprep.mubr.msk.f32.mxu1 %vm26_vm0, %v6613_v31  ;;  %v17901_v46 = vld [vmem:[#allocation2 + $0x48] sm:$0xff] }
 0x36b   :  { %17203 = vmatprep.mubr.msk.f32.mxu0 %vm26_vm0, %v22067_v42  ;;  %17106 = vmatmul.mubr.msk.f32.gmra.mxu1 %vm26_vm0, %v6614_v36  ;;  %v22108_v14 = vld [vmem:[#allocation2 + $0x3a] sm:$0xff]  ;;  %v17904_v31 = vld [vmem:[#allocation2 + $0x68] sm:$0xff] }
 0x36c   :  { %17204 = vmatmul.mubr.msk.f32.gmra.mxu0 %vm26_vm0, %v22069_v53  ;;  %17208 = vmatprep.mubr.msk.f32.mxu1 %vm26_vm0, %v7771_v2  ;;  %v17903_v49 = vld [vmem:[#allocation2 + $0x60] sm:$0xff]  ;;  %v22118_v2 = vld [vmem:[#allocation2 + $0x52] sm:$0xff] }
 0x36d   :  { %17306 = vmatprep.mubr.msk.f32.mxu0 %vm26_vm0, %v17896_v62  ;;  %v22123_v36 = vld [vmem:[#allocation2 + $0x62] sm:$0xff]  ;;  %v17905_v62 = vld [vmem:[#allocation2 + $0x78] sm:$0xff] }
 0x36e   :  { %v8508_v15 = vld [vmem:[#allocation2 + $0x180] sm:$0xff] }
 0x36f   :  { %17209 = vmatmul.mubr.msk.f32.vlgmr.msra.gmra.mxu1 %vm26_vm0, %v7772_v56  ;;  %v22128_v56 = vld [vmem:[#allocation2 + $0x6a] sm:$0xff] }
 0x370   :  { %17307 = vmatmul.mubr.msk.f32.vlgmr.msra.gmra.mxu0 %vm26_vm0, %v17897_v19  ;;  %17211 = vmatprep.mubr.msk.f32.mxu1 %vm26_vm0, %v22084_v32  ;;  %v22133_v19 = vld [vmem:[#allocation2 + $0x7a] sm:$0xff] }
 0x371   :  { %17309 = vmatprep.mubr.msk.f32.mxu0 %vm26_vm0, %v17898_v25  ;;  %17403 = vmatpush3.msra.mxu1 %v17899_v0  ;;  %v17907_v25 = vld [vmem:[#allocation2 + $0x90] sm:$0xff]  ;;  %v22138_v0 = vld [vmem:[#allocation2 + $0x82] sm:$0xff] }
 0x372   :  { %17501 = vmatpush3.msra.mxu0 %v14697_v41  ;;  %17598 = vmatprep.subr.mxu1 %v22092_v35  ;;  %v17906_v41 = vld [vmem:[#allocation2 + $0x80] sm:$0xff] }
 0x373   :  { %17212 = vmatmul.mubr.msk.f32.gmra.mxu1 %vm26_vm0, %v22097_v1 }
 0x374   :  { %17310 = vmatmul.mubr.msk.f32.gmra.mxu0 %vm26_vm0, %v17900_v39  ;;  %17214 = vmatprep.mubr.msk.f32.mxu1 %vm26_vm0, %v22103_v26  ;;  %v17908_v39 = vld [vmem:[#allocation2 + $0x98] sm:$0xff] }
 0x375   :  { %17312 = vmatprep.mubr.msk.f32.mxu0 %vm26_vm0, %v17901_v46  ;;  %v22143_v46 = vld [vmem:[#allocation2 + $0x92] sm:$0xff] }
 0x377   :  { %17215 = vmatmul.mubr.msk.f32.gmra.mxu1 %vm26_vm0, %v22108_v14 }
 0x378   :  { %17313 = vmatmul.mubr.msk.f32.gmra.mxu0 %vm26_vm0, %v17902_v12  ;;  %17217 = vmatprep.mubr.msk.f32.mxu1 %vm26_vm0, %v22113_v34  ;;  %v17909_v12 = vld [vmem:[#allocation2 + $0xa8] sm:$0xff] }
 0x379   :  { %17315 = vmatprep.mubr.msk.f32.mxu0 %vm26_vm0, %v17903_v49  ;;  %v22148_v49 = vld [vmem:[#allocation2 + $0x9a] sm:$0xff] }
 0x37b   :  { %17218 = vmatmul.mubr.msk.f32.gmra.mxu1 %vm26_vm0, %v22118_v2 }
 0x37c   :  { %17316 = vmatmul.mubr.msk.f32.gmra.mxu0 %vm26_vm0, %v17904_v31  ;;  %17220 = vmatprep.mubr.msk.f32.mxu1 %vm26_vm0, %v22123_v36  ;;  %v17910_v31 = vld [vmem:[#allocation2 + $0xb0] sm:$0xff] }
 0x37d   :  { %17318 = vmatprep.mubr.msk.f32.mxu0 %vm26_vm0, %v17905_v62  ;;  %v22153_v62 = vld [vmem:[#allocation2 + $0xaa] sm:$0xff] }
 0x37f   :  { %17221 = vmatmul.mubr.msk.f32.gmra.mxu1 %vm26_vm0, %v22128_v56 }
 0x380   :  { %17319 = vmatmul.mubr.msk.f32.gmra.mxu0 %vm26_vm0, %v17906_v41  ;;  %17223 = vmatprep.mubr.msk.f32.mxu1 %vm26_vm0, %v22133_v19  ;;  %v17911_v41 = vld [vmem:[#allocation2 + $0xc0] sm:$0xff] }
 0x381   :  { %17321 = vmatprep.mubr.msk.f32.mxu0 %vm26_vm0, %v17907_v25  ;;  %v22158_v25 = vld [vmem:[#allocation2 + $0xb2] sm:$0xff] }
 0x383   :  { %17224 = vmatmul.mubr.msk.f32.gmra.mxu1 %vm26_vm0, %v22138_v0 }
 0x384   :  { %17322 = vmatmul.mubr.msk.f32.gmra.mxu0 %vm26_vm0, %v17908_v39  ;;  %17226 = vmatprep.mubr.msk.f32.mxu1 %vm26_vm0, %v22143_v46  ;;  %v17912_v39 = vld [vmem:[#allocation2 + $0xc8] sm:$0xff] }
 0x385   :  { %17324 = vmatprep.mubr.msk.f32.mxu0 %vm26_vm0, %v17909_v12  ;;  %v22163_v12 = vld [vmem:[#allocation2 + $0xc2] sm:$0xff] }
 0x387   :  { %17227 = vmatmul.mubr.msk.f32.gmra.mxu1 %vm26_vm0, %v22148_v49 }
 0x388   :  { %17325 = vmatmul.mubr.msk.f32.gmra.mxu0 %vm26_vm0, %v17910_v31  ;;  %17229 = vmatprep.mubr.msk.f32.mxu1 %vm26_vm0, %v22153_v62  ;;  %v22169_v31 = vld [vmem:[#allocation2 + $0xca] sm:$0xff] }
 0x389   :  { %17327 = vmatprep.mubr.msk.f32.mxu0 %vm26_vm0, %v17911_v41  ;;  %v22175_v41 = vld [vmem:[#allocation2 + $0xda] sm:$0xff] }
 0x38b   :  { %17230 = vmatmul.mubr.msk.f32.gmra.mxu1 %vm26_vm0, %v22158_v25 }
 0x38c   :  { %17328 = vmatmul.mubr.msk.f32.gmra.mxu0 %vm26_vm0, %v17912_v39  ;;  %17232 = vmatprep.mubr.msk.f32.mxu1 %vm26_vm0, %v22163_v12  ;;  %v22181_v39 = vld [vmem:[#allocation2 + $0xe2] sm:$0xff] }
 0x38d   :  { %17330 = vmatprep.mubr.msk.f32.mxu0 %vm26_vm0, %v21623_v48  ;;  %v22187_v48 = vld [vmem:[#allocation2 + $0xf2] sm:$0xff] }
 0x38f   :  { %17233 = vmatmul.mubr.msk.f32.gmra.mxu1 %vm26_vm0, %v22169_v31 }
 0x390   :  { %17331 = vmatmul.mubr.msk.f32.gmra.mxu0 %vm26_vm0, %v21625_v5  ;;  %17235 = vmatprep.mubr.msk.f32.mxu1 %vm26_vm0, %v22175_v41  ;;  %v22193_v5 = vld [vmem:[#allocation2 + $0xfa] sm:$0xff] }
 0x391   :  { %17333 = vmatprep.mubr.msk.f32.mxu0 %vm26_vm0, %v21645_v28  ;;  %v22199_v28 = vld [vmem:[#allocation2 + $0x10a] sm:$0xff] }
 0x393   :  { %17236 = vmatmul.mubr.msk.f32.gmra.mxu1 %vm26_vm0, %v22181_v39 }
 0x394   :  { %17334 = vmatmul.mubr.msk.f32.gmra.mxu0 %vm26_vm0, %v21647_v13  ;;  %17238 = vmatprep.mubr.msk.f32.mxu1 %vm26_vm0, %v22187_v48  ;;  %v22205_v13 = vld [vmem:[#allocation2 + $0x112] sm:$0xff] }
 0x395   :  { %17336 = vmatprep.mubr.msk.f32.mxu0 %vm26_vm0, %v21667_v3  ;;  %v22211_v3 = vld [vmem:[#allocation2 + $0x122] sm:$0xff] }
 0x397   :  { %17239 = vmatmul.mubr.msk.f32.gmra.mxu1 %vm26_vm0, %v22193_v5 }
 0x398   :  { %17337 = vmatmul.mubr.msk.f32.gmra.mxu0 %vm26_vm0, %v21669_v43  ;;  %17241 = vmatprep.mubr.msk.f32.mxu1 %vm26_vm0, %v22199_v28  ;;  %v22217_v43 = vld [vmem:[#allocation2 + $0x12a] sm:$0xff] }
 0x399   :  { %17339 = vmatprep.mubr.msk.f32.mxu0 %vm26_vm0, %v21689_v54  ;;  %v22223_v54 = vld [vmem:[#allocation2 + $0x13a] sm:$0xff] }
 0x39b   :  { %17242 = vmatmul.mubr.msk.f32.gmra.mxu1 %vm26_vm0, %v22205_v13 }
 0x39c   :  { %17340 = vmatmul.mubr.msk.f32.gmra.mxu0 %vm26_vm0, %v21691_v61  ;;  %17244 = vmatprep.mubr.msk.f32.mxu1 %vm26_vm0, %v22211_v3  ;;  %v22229_v61 = vld [vmem:[#allocation2 + $0x142] sm:$0xff] }
 0x39d   :  { %17342 = vmatprep.mubr.msk.f32.mxu0 %vm26_vm0, %v21711_v59  ;;  %v22235_v59 = vld [vmem:[#allocation2 + $0x152] sm:$0xff] }
 0x39e   :  { %25895 = vst [vmem:[#allocation46_spill] sm:$0xff] %v22235_v59 }
 0x39f   :  { %17245 = vmatmul.mubr.msk.f32.gmra.mxu1 %vm26_vm0, %v22217_v43 }
 0x3a0   :  { %17343 = vmatmul.mubr.msk.f32.gmra.mxu0 %vm26_vm0, %v21713_v55  ;;  %17247 = vmatprep.mubr.msk.f32.mxu1 %vm26_vm0, %v22223_v54  ;;  %v22241_v55 = vld [vmem:[#allocation2 + $0x15a] sm:$0xff] }
 0x3a1   :  { %17345 = vmatprep.mubr.msk.f32.mxu0 %vm26_vm0, %v21733_v10  ;;  %25896 = vst [vmem:[#allocation50_spill] sm:$0xff] %v22241_v55  ;;  %v22247_v10 = vld [vmem:[#allocation2 + $0x16a] sm:$0xff] }
 0x3a2   :  { %25897 = vst [vmem:[#allocation49_spill] sm:$0xff] %v22247_v10 }
 0x3a3   :  { %17248 = vmatmul.mubr.msk.f32.gmra.mxu1 %vm26_vm0, %v22229_v61 }
 0x3a4   :  { %17346 = vmatmul.mubr.msk.f32.gmra.mxu0 %vm26_vm0, %v21735_v20  ;;  %17250 = vmatprep.mubr.msk.f32.mxu1 %vm26_vm0, %v22235_v59  ;;  %v7803_v20 = vld [vmem:[#allocation2 + $0x1b2] sm:$0xff] }
 0x3a5   :  { %17348 = vmatprep.mubr.msk.f32.mxu0 %vm26_vm0, %v21755_v11  ;;  %v22252_v59 = vld [vmem:[#allocation2 + $0x172] sm:$0xff]  ;;  %v8509_v11 = vld [vmem:[#allocation2 + $0x188] sm:$0xff] }
 0x3a6   :  { %25898 = vst [vmem:[#allocation23_spill] sm:$0xff] %v22252_v59 }
 0x3a7   :  { %17251 = vmatmul.mubr.msk.f32.gmra.mxu1 %vm26_vm0, %v22241_v55 }
 0x3a8   :  { %17349 = vmatmul.mubr.msk.f32.gmra.mxu0 %vm26_vm0, %v21757_v7  ;;  %17253 = vmatprep.mubr.msk.f32.mxu1 %vm26_vm0, %v22247_v10  ;;  %v7804_v7 = vld [vmem:[#allocation2 + $0x1ba] sm:$0xff] }
 0x3a9   :  { %17351 = vmatprep.mubr.msk.f32.mxu0 %vm26_vm0, %v8508_v15  ;;  %v22263_v15 = vld [vmem:[#allocation2 + $0x1ca] sm:$0xff] }
 0x3aa   :  { %25899 = vst [vmem:[#allocation53_spill] sm:$0xff] %v22263_v15 }
 0x3ab   :  { %17254 = vmatmul.mubr.msk.f32.gmra.mxu1 %vm26_vm0, %v22252_v59  ;;  %v22271_v59 = vpop.f32.mrf.mxu0 }
 0x3ac   :  { %17352 = vmatmul.mubr.msk.f32.gmra.mxu0 %vm26_vm0, %v8509_v11  ;;  %17256 = vmatprep.mubr.msk.f32.mxu1 %vm26_vm0, %v7803_v20  ;;  %v22269_v11 = vpop.f32.mrf.mxu1  ;;  %25901 = vst [vmem:[#allocation22_spill] sm:$0xff] %v22271_v59 }
 0x3ad   :  { %17354 = vmatprep.mubr.msk.f32.mxu0 %vm26_vm0, %v21793_v52  ;;  %25900 = vst [vmem:[#allocation52_spill] sm:$0xff] %v22269_v11  ;;  %v22273_v52 = vld [vmem:[#allocation2 + $0x1d2] sm:$0xff] }
 0x3ae   :  { %25902 = vst [vmem:[#allocation25_spill] sm:$0xff] %v22273_v52 }
 0x3af   :  { %17257 = vmatmul.mubr.msk.f32.gmra.mxu1 %vm26_vm0, %v7804_v7 }
 0x3b0   :  { %17355 = vmatmul.mubr.msk.f32.gmra.mxu0 %vm26_vm0, %v21795_v30  ;;  %17259 = vmatprep.mubr.msk.f32.mxu1 %vm26_vm0, %v22263_v15  ;;  %v22279_v30 = vld [vmem:[#allocation2 + $0x1e2] sm:$0xff]  ;;  %v22289_v15 = vld [vmem:[#allocation2 + $0x1ea] sm:$0xff] }
 0x3b1   :  { %17357 = vmatprep.mubr.msk.f32.mxu0 %vm26_vm0, %v21815_v29 }
 0x3b2   :  { %v17017_v20 = vpop.f32.mrf.mxu1 }
 0x3b3   :  { %v17115_v10 = vpop.f32.mrf.mxu0  ;;  %17260 = vmatmul.mubr.msk.f32.gmra.mxu1 %vm26_vm0, %v22273_v52 }
 0x3b4   :  { %17358 = vmatmul.mubr.msk.f32.gmra.mxu0 %vm26_vm0, %v21817_v27  ;;  %v22281_v7 = vadd.f32 %v17115_v10, %v17017_v20  ;;  %17262 = vmatprep.mubr.msk.f32.mxu1 %vm26_vm0, %v22279_v30  ;;  %v6885_v29 = vpop.f32.mrf.mxu1  ;;  %v22295_v27 = vld [vmem:[#allocation2 + $0x1fa] sm:$0xff] }
 0x3b5   :  { %17360 = vmatprep.mubr.msk.f32.mxu0 %vm26_vm0, %v21837_v23  ;;  %v7462_v59 = vpop.f32.mrf.mxu0 }
 0x3b6   :  { %25903 = vst [vmem:[#allocation55_spill] sm:$0xff] %v22281_v7  ;;  %v22287_v11 = vadd.f32 %v7462_v59, %v6885_v29  ;;  %v17020_v52 = vpop.f32.mrf.mxu1  ;;  %v22305_v29 = vld [vmem:[#allocation2 + $0x202] sm:$0xff] }
 0x3b7   :  { %v17118_v55 = vpop.f32.mrf.mxu0  ;;  %17263 = vmatmul.mubr.msk.f32.gmra.mxu1 %vm26_vm0, %v22289_v15 }
 0x3b8   :  { %25904 = vst [vmem:[#allocation54_spill] sm:$0xff] %v22287_v11  ;;  %17361 = vmatmul.mubr.msk.f32.gmra.mxu0 %vm26_vm0, %v21839_v40  ;;  %v22297_v10 = vadd.f32 %v17118_v55, %v17020_v52  ;;  %17265 = vmatprep.mubr.msk.f32.mxu1 %vm26_vm0, %v22295_v27  ;;  %v6895_v23 = vpop.f32.mrf.mxu1  ;;  %v22311_v40 = vld [vmem:[#allocation2 + $0x212] sm:$0xff] }
 0x3b9   :  { %17363 = vmatprep.mubr.msk.f32.mxu0 %vm26_vm0, %v21859_v45  ;;  %v7472_v59 = vpop.f32.mrf.mxu0 }
 0x3ba   :  { %25905 = vst [vmem:[#allocation24_spill] sm:$0xff] %v22297_v10  ;;  %v22303_v20 = vadd.f32 %v7472_v59, %v6895_v23  ;;  %v17023_v11 = vpop.f32.mrf.mxu1  ;;  %v22321_v59 = vld [vmem:[#allocation2 + $0x21a] sm:$0xff] }
 0x3bb   :  { %v17121_v7 = vpop.f32.mrf.mxu0  ;;  %17266 = vmatmul.mubr.msk.f32.gmra.mxu1 %vm26_vm0, %v22305_v29 }
 0x3bc   :  { %25906 = vst [vmem:[#allocation28_spill] sm:$0xff] %v22303_v20  ;;  %17364 = vmatmul.mubr.msk.f32.gmra.mxu0 %vm26_vm0, %v21861_v47  ;;  %v22313_v55 = vadd.f32 %v17121_v7, %v17023_v11  ;;  %17268 = vmatprep.mubr.msk.f32.mxu1 %vm26_vm0, %v22311_v40  ;;  %v6905_v45 = vpop.f32.mrf.mxu1  ;;  %v22327_v47 = vld [vmem:[#allocation2 + $0x22a] sm:$0xff] }
 0x3bd   :  { %17366 = vmatprep.mubr.msk.f32.mxu0 %vm26_vm0, %v21881_v9  ;;  %v7482_v52 = vpop.f32.mrf.mxu0 }
 0x3be   :  { %25907 = vst [vmem:[#allocation57_spill] sm:$0xff] %v22313_v55  ;;  %v22319_v23 = vadd.f32 %v7482_v52, %v6905_v45  ;;  %v17026_v20 = vpop.f32.mrf.mxu1  ;;  %v22337_v52 = vld [vmem:[#allocation2 + $0x232] sm:$0xff] }
 0x3bf   :  { %v17124_v10 = vpop.f32.mrf.mxu0  ;;  %17269 = vmatmul.mubr.msk.f32.gmra.mxu1 %vm26_vm0, %v22321_v59 }
 0x3c0   :  { %25908 = vst [vmem:[#allocation56_spill] sm:$0xff] %v22319_v23  ;;  %17367 = vmatmul.mubr.msk.f32.gmra.mxu0 %vm26_vm0, %v21883_v21  ;;  %v22329_v11 = vadd.f32 %v17124_v10, %v17026_v20  ;;  %17271 = vmatprep.mubr.msk.f32.mxu1 %vm26_vm0, %v22327_v47  ;;  %v6915_v9 = vpop.f32.mrf.mxu1  ;;  %v22343_v21 = vld [vmem:[#allocation2 + $0x242] sm:$0xff] }
 0x3c1   :  { %17369 = vmatprep.mubr.msk.f32.mxu0 %vm26_vm0, %v21903_v6  ;;  %v7492_v7 = vpop.f32.mrf.mxu0 }
 0x3c2   :  { %25909 = vst [vmem:[#allocation26_spill] sm:$0xff] %v22329_v11  ;;  %v22335_v45 = vadd.f32 %v7492_v7, %v6915_v9  ;;  %v17029_v23 = vpop.f32.mrf.mxu1  ;;  %v22353_v7 = vld [vmem:[#allocation2 + $0x24a] sm:$0xff] }
 0x3c3   :  { %v17127_v55 = vpop.f32.mrf.mxu0  ;;  %17272 = vmatmul.mubr.msk.f32.gmra.mxu1 %vm26_vm0, %v22337_v52 }
 0x3c4   :  { %25910 = vst [vmem:[#allocation29_spill] sm:$0xff] %v22335_v45  ;;  %17370 = vmatmul.mubr.msk.f32.gmra.mxu0 %vm26_vm0, %v21905_v38  ;;  %v22345_v10 = vadd.f32 %v17127_v55, %v17029_v23  ;;  %17274 = vmatprep.mubr.msk.f32.mxu1 %vm26_vm0, %v22343_v21  ;;  %v6925_v6 = vpop.f32.mrf.mxu1  ;;  %v22359_v38 = vld [vmem:[#allocation2 + $0x25a] sm:$0xff] }
 0x3c5   :  { %17372 = vmatprep.mubr.msk.f32.mxu0 %vm26_vm0, %v21925_v4  ;;  %v7502_v20 = vpop.f32.mrf.mxu0 }
 0x3c6   :  { %25911 = vst [vmem:[#allocation59_spill] sm:$0xff] %v22345_v10  ;;  %v22351_v9 = vadd.f32 %v7502_v20, %v6925_v6  ;;  %v17032_v45 = vpop.f32.mrf.mxu1  ;;  %v22369_v20 = vld [vmem:[#allocation2 + $0x262] sm:$0xff] }
 0x3c7   :  { %v17130_v11 = vpop.f32.mrf.mxu0  ;;  %17275 = vmatmul.mubr.msk.f32.gmra.mxu1 %vm26_vm0, %v22353_v7 }
 0x3c8   :  { %25912 = vst [vmem:[#allocation58_spill] sm:$0xff] %v22351_v9  ;;  %17373 = vmatmul.mubr.msk.f32.gmra.mxu0 %vm26_vm0, %v21927_v60  ;;  %v22361_v55 = vadd.f32 %v17130_v11, %v17032_v45  ;;  %17277 = vmatprep.mubr.msk.f32.mxu1 %vm26_vm0, %v22359_v38  ;;  %v6935_v4 = vpop.f32.mrf.mxu1  ;;  %v22375_v60 = vld [vmem:[#allocation2 + $0x272] sm:$0xff] }
 0x3c9   :  { %17375 = vmatprep.mubr.msk.f32.mxu0 %vm26_vm0, %v21950_v58  ;;  %v7512_v23 = vpop.f32.mrf.mxu0 }
 0x3ca   :  { %25913 = vst [vmem:[#allocation27_spill] sm:$0xff] %v22361_v55  ;;  %v22367_v6 = vadd.f32 %v7512_v23, %v6935_v4  ;;  %v17035_v9 = vpop.f32.mrf.mxu1  ;;  %v22385_v23 = vld [vmem:[#allocation2 + $0x27a] sm:$0xff] }
 0x3cb   :  { %v17133_v10 = vpop.f32.mrf.mxu0  ;;  %17278 = vmatmul.mubr.msk.f32.gmra.mxu1 %vm26_vm0, %v22369_v20 }
 0x3cc   :  { %25914 = vst [vmem:[#allocation30_spill] sm:$0xff] %v22367_v6  ;;  %17376 = vmatmul.mubr.msk.f32.gmra.mxu0 %vm26_vm0, %v21952_v17  ;;  %v22377_v11 = vadd.f32 %v17133_v10, %v17035_v9  ;;  %17280 = vmatprep.mubr.msk.f32.mxu1 %vm26_vm0, %v22375_v60  ;;  %v6945_v58 = vpop.f32.mrf.mxu1  ;;  %v22391_v17 = vld [vmem:[#allocation2 + $0x28a] sm:$0xff] }
 0x3cd   :  { %17378 = vmatprep.mubr.msk.f32.mxu0 %vm26_vm0, %v21970_v37  ;;  %v7522_v45 = vpop.f32.mrf.mxu0 }
 0x3ce   :  { %25915 = vst [vmem:[#allocation62_spill] sm:$0xff] %v22377_v11  ;;  %v22383_v4 = vadd.f32 %v7522_v45, %v6945_v58  ;;  %v17038_v6 = vpop.f32.mrf.mxu1  ;;  %v22401_v45 = vld [vmem:[#allocation2 + $0x292] sm:$0xff] }
 0x3cf   :  { %v17136_v55 = vpop.f32.mrf.mxu0  ;;  %17281 = vmatmul.mubr.msk.f32.gmra.mxu1 %vm26_vm0, %v22385_v23 }
 0x3d0   :  { %25916 = vst [vmem:[#allocation60_spill] sm:$0xff] %v22383_v4  ;;  %17379 = vmatmul.mubr.msk.f32.gmra.mxu0 %vm26_vm0, %v21972_v22  ;;  %v22393_v10 = vadd.f32 %v17136_v55, %v17038_v6  ;;  %17283 = vmatprep.mubr.msk.f32.mxu1 %vm26_vm0, %v22391_v17  ;;  %v6955_v37 = vpop.f32.mrf.mxu1  ;;  %v22407_v22 = vld [vmem:[#allocation2 + $0x2a2] sm:$0xff] }
 0x3d1   :  { %17381 = vmatprep.mubr.msk.f32.mxu0 %vm26_vm0, %v21990_v18  ;;  %v7532_v9 = vpop.f32.mrf.mxu0 }
 0x3d2   :  { %25917 = vst [vmem:[#allocation76_spill] sm:$0xff] %v22393_v10  ;;  %v22399_v58 = vadd.f32 %v7532_v9, %v6955_v37  ;;  %v17041_v4 = vpop.f32.mrf.mxu1  ;;  %v22417_v9 = vld [vmem:[#allocation2 + $0x2aa] sm:$0xff] }
 0x3d3   :  { %v17139_v11 = vpop.f32.mrf.mxu0  ;;  %17284 = vmatmul.mubr.msk.f32.gmra.mxu1 %vm26_vm0, %v22401_v45 }
 0x3d4   :  { %25918 = vst [vmem:[#allocation32_spill] sm:$0xff] %v22399_v58  ;;  %17382 = vmatmul.mubr.msk.f32.gmra.mxu0 %vm26_vm0, %v21992_v63  ;;  %v22409_v55 = vadd.f32 %v17139_v11, %v17041_v4  ;;  %17286 = vmatprep.mubr.msk.f32.mxu1 %vm26_vm0, %v22407_v22  ;;  %v6965_v18 = vpop.f32.mrf.mxu1  ;;  %v22423_v63 = vld [vmem:[#allocation2 + $0x2ba] sm:$0xff] }
 0x3d5   :  { %17384 = vmatprep.mubr.msk.f32.mxu0 %vm26_vm0, %v22009_v33  ;;  %v7542_v6 = vpop.f32.mrf.mxu0 }
 0x3d6   :  { %25919 = vst [vmem:[#allocation63_spill] sm:$0xff] %v22409_v55  ;;  %v22415_v37 = vadd.f32 %v7542_v6, %v6965_v18  ;;  %v17044_v58 = vpop.f32.mrf.mxu1  ;;  %v22433_v6 = vld [vmem:[#allocation2 + $0x2c2] sm:$0xff] }
 0x3d7   :  { %v17142_v10 = vpop.f32.mrf.mxu0  ;;  %17287 = vmatmul.mubr.msk.f32.gmra.mxu1 %vm26_vm0, %v22417_v9 }
 0x3d8   :  { %25920 = vst [vmem:[#allocation61_spill] sm:$0xff] %v22415_v37  ;;  %17385 = vmatmul.mubr.msk.f32.gmra.mxu0 %vm26_vm0, %v22011_v50  ;;  %v22425_v11 = vadd.f32 %v17142_v10, %v17044_v58  ;;  %17289 = vmatprep.mubr.msk.f32.mxu1 %vm26_vm0, %v22423_v63  ;;  %v6975_v33 = vpop.f32.mrf.mxu1  ;;  %v22439_v50 = vld [vmem:[#allocation2 + $0x2d2] sm:$0xff] }
 0x3d9   :  { %17387 = vmatprep.mubr.msk.f32.mxu0 %vm26_vm0, %v22025_v16  ;;  %v7552_v4 = vpop.f32.mrf.mxu0 }
 0x3da   :  { %25921 = vst [vmem:[#allocation77_spill] sm:$0xff] %v22425_v11  ;;  %v22431_v18 = vadd.f32 %v7552_v4, %v6975_v33  ;;  %v17047_v37 = vpop.f32.mrf.mxu1  ;;  %v22449_v4 = vld [vmem:[#allocation2 + $0x2da] sm:$0xff] }
 0x3db   :  { %v17145_v55 = vpop.f32.mrf.mxu0  ;;  %17290 = vmatmul.mubr.msk.f32.gmra.mxu1 %vm26_vm0, %v22433_v6 }
 0x3dc   :  { %25922 = vst [vmem:[#allocation34_spill] sm:$0xff] %v22431_v18  ;;  %17388 = vmatmul.mubr.msk.f32.gmra.mxu0 %vm26_vm0, %v22027_v44  ;;  %v22441_v10 = vadd.f32 %v17145_v55, %v17047_v37  ;;  %17292 = vmatprep.mubr.msk.f32.mxu1 %vm26_vm0, %v22439_v50  ;;  %v6985_v16 = vpop.f32.mrf.mxu1  ;;  %v22455_v44 = vld [vmem:[#allocation2 + $0x2ea] sm:$0xff] }
 0x3dd   :  { %17390 = vmatprep.mubr.msk.f32.mxu0 %vm26_vm0, %v22040_v8  ;;  %v7562_v58 = vpop.f32.mrf.mxu0 }
 0x3de   :  { %25923 = vst [vmem:[#allocation66_spill] sm:$0xff] %v22441_v10  ;;  %v22447_v33 = vadd.f32 %v7562_v58, %v6985_v16  ;;  %v17050_v18 = vpop.f32.mrf.mxu1  ;;  %v22465_v58 = vld [vmem:[#allocation2 + $0x2f2] sm:$0xff] }
 0x3df   :  { %v17148_v11 = vpop.f32.mrf.mxu0  ;;  %17293 = vmatmul.mubr.msk.f32.gmra.mxu1 %vm26_vm0, %v22449_v4 }
 0x3e0   :  { %25924 = vst [vmem:[#allocation64_spill] sm:$0xff] %v22447_v33  ;;  %17391 = vmatmul.mubr.msk.f32.gmra.mxu0 %vm26_vm0, %v22042_v51  ;;  %v22457_v55 = vadd.f32 %v17148_v11, %v17050_v18  ;;  %17295 = vmatprep.mubr.msk.f32.mxu1 %vm26_vm0, %v22455_v44  ;;  %v6995_v8 = vpop.f32.mrf.mxu1  ;;  %v22471_v51 = vld [vmem:[#allocation2 + $0x302] sm:$0xff] }
 0x3e1   :  { %17393 = vmatprep.mubr.msk.f32.mxu0 %vm26_vm0, %v22056_v57  ;;  %v7572_v37 = vpop.f32.mrf.mxu0  ;;  %25927 = vst [vmem:[#allocation35_spill] sm:$0xff] %v22471_v51 }
 0x3e2   :  { %25925 = vst [vmem:[#allocation31_spill] sm:$0xff] %v22457_v55  ;;  %v22463_v16 = vadd.f32 %v7572_v37, %v6995_v8  ;;  %v17053_v33 = vpop.f32.mrf.mxu1  ;;  %v22481_v37 = vld [vmem:[#allocation2 + $0x30a] sm:$0xff] }
 0x3e3   :  { %v17151_v10 = vpop.f32.mrf.mxu0  ;;  %17296 = vmatmul.mubr.msk.f32.gmra.mxu1 %vm26_vm0, %v22465_v58  ;;  %25930 = vst [vmem:[#allocation33_spill] sm:$0xff] %v22481_v37 }
 0x3e4   :  { %25926 = vst [vmem:[#allocation92_spill] sm:$0xff] %v22463_v16  ;;  %17394 = vmatmul.mubr.msk.f32.gmra.mxu0 %vm26_vm0, %v22058_v24  ;;  %v22473_v11 = vadd.f32 %v17151_v10, %v17053_v33  ;;  %17298 = vmatprep.mubr.msk.f32.mxu1 %vm26_vm0, %v22471_v51  ;;  %v7005_v57 = vpop.f32.mrf.mxu1  ;;  %v22487_v24 = vld [vmem:[#allocation2 + $0x31a] sm:$0xff]  ;;  %v8540_v10 = vld [vmem:[#allocation2 + $0x330] sm:$0xff] }
 0x3e5   :  { %17396 = vmatprep.mubr.msk.f32.mxu0 %vm26_vm0, %v22067_v42  ;;  %v7582_v18 = vpop.f32.mrf.mxu0 }
 0x3e6   :  { %25928 = vst [vmem:[#allocation67_spill] sm:$0xff] %v22473_v11  ;;  %v22479_v8 = vadd.f32 %v7582_v18, %v7005_v57  ;;  %v17056_v16 = vpop.f32.mrf.mxu1  ;;  %v8541_v11 = vld [vmem:[#allocation2 + $0x338] sm:$0xff] }
 0x3e7   :  { %v17154_v55 = vpop.f32.mrf.mxu0  ;;  %17299 = vmatmul.mubr.msk.f32.gmra.mxu1 %vm26_vm0, %v22481_v37 }
 0x3e8   :  { %25929 = vst [vmem:[#allocation65_spill] sm:$0xff] %v22479_v8  ;;  %17397 = vmatmul.mubr.msk.f32.gmra.mxu0 %vm26_vm0, %v22069_v53  ;;  %v22489_v33 = vadd.f32 %v17154_v55, %v17056_v16  ;;  %17301 = vmatprep.mubr.msk.f32.mxu1 %vm26_vm0, %v22487_v24  ;;  %v7015_v42 = vpop.f32.mrf.mxu1  ;;  %v22496_v8 = vld [vmem:[#allocation2 + $0x322] sm:$0xff]  ;;  %v9185_v53 = vld [vmem:[#allocation2 + $0x19] sm:$0xff] }
 0x3e9   :  { %17399 = vmatprep.mubr.msk.f32.mxu0 %vm26_vm0, %v8540_v10  ;;  %v7592_v57 = vpop.f32.mrf.mxu0 }
 0x3ea   :  { %25931 = vst [vmem:[#allocation3_spill] sm:$0xff] %v22489_v33  ;;  %v22494_v18 = vadd.f32 %v7592_v57, %v7015_v42  ;;  %v17059_v37 = vpop.f32.mrf.mxu1  ;;  %v14827_v42 = vld [vmem:[%s25373_s3 + $0x38] sm:$0xff] }
 0x3eb   :  { %v17157_v51 = vpop.f32.mrf.mxu0  ;;  %17302 = vmatmul.mubr.msk.f32.gmra.mxu1 %vm26_vm0, %v22496_v8  ;;  %17696 = vmatprep.subr.mxu0 %v14827_v42 }
 0x3ec   :  { %25932 = vst [vmem:[#allocation69_spill] sm:$0xff] %v22494_v18  ;;  %17400 = vmatmul.mubr.msk.f32.gmra.mxu0 %vm26_vm0, %v8541_v11  ;;  %v22501_v55 = vadd.f32 %v17157_v51, %v17059_v37  ;;  %17404 = vmatprep.mubr.msk.f32.mxu1 %vm26_vm0, %v9185_v53  ;;  %v7025_v16 = vpop.f32.mrf.mxu1  ;;  %v9186_v18 = vld [vmem:[#allocation2 + $0x21] sm:$0xff]  ;;  %v22514_v51 = vld [vmem:[#allocation2 + $0x31] sm:$0xff] }
 0x3ed   :  { %17502 = vmatprep.mubr.msk.f32.mxu0 %vm26_vm0, %v22084_v32  ;;  %v7602_v10 = vpop.f32.mrf.mxu0 }
 0x3ee   :  { %v22509_v57 = vadd.f32 %v7602_v10, %v7025_v16  ;;  %v17062_v33 = vpop.f32.mrf.mxu1 }
 0x3ef   :  { %v17160_v11 = vpop.f32.mrf.mxu0  ;;  %17405 = vmatmul.mubr.msk.f32.vlgmr.msra.gmra.mxu1 %vm26_vm0, %v9186_v18  ;;  %v22525_v18 = vld [vmem:[#allocation2 + $0x39] sm:$0xff] }
 0x3f0   :  { %17503 = vmatmul.mubr.msk.f32.vlgmr.msra.gmra.mxu0 %vm26_vm0, %v22097_v1  ;;  %v22516_v32 = vadd.f32 %v17160_v11, %v17062_v33  ;;  %17407 = vmatprep.mubr.msk.f32.mxu1 %vm26_vm0, %v22514_v51  ;;  %v7035_v37 = vpop.f32.mrf.mxu1  ;;  %v22530_v1 = vld [vmem:[%s25373_s3 + $0x40] sm:$0xff] }
 0x3f1   :  { %17505 = vmatprep.mubr.msk.f32.mxu0 %vm26_vm0, %v22103_v26  ;;  %17599 = vmatpush3.msra.mxu1 %v22092_v35  ;;  %v7612_v53 = vpop.f32.mrf.mxu0  ;;  %v22536_v35 = vld [vmem:[#allocation2 + $0x49] sm:$0xff] }
 0x3f2   :  { %17697 = vmatpush3.msra.mxu0 %v14827_v42  ;;  %v22523_v16 = vadd.f32 %v7612_v53, %v7035_v37  ;;  %v17065_v33 = vpop.f32.mrf.mxu1  ;;  %17794 = vmatprep.subr.mxu1 %v22530_v1  ;;  %v22547_v53 = vld [vmem:[#allocation2 + $0x51] sm:$0xff] }
 0x3f3   :  { %v17163_v10 = vpop.f32.mrf.mxu0  ;;  %17408 = vmatmul.mubr.msk.f32.gmra.mxu1 %vm26_vm0, %v22525_v18  ;;  %25936 = vst [vmem:[#allocation5_spill] sm:$0xff] %v22547_v53 }
 0x3f4   :  { %25933 = vst [vmem:[#allocation68_spill] sm:$0xff] %v22523_v16  ;;  %17506 = vmatmul.mubr.msk.f32.gmra.mxu0 %vm26_vm0, %v22108_v14  ;;  %v22538_v26 = vadd.f32 %v17163_v10, %v17065_v33  ;;  %17410 = vmatprep.mubr.msk.f32.mxu1 %vm26_vm0, %v22536_v35  ;;  %v7045_v42 = vpop.f32.mrf.mxu1  ;;  %v22553_v33 = vld [vmem:[#allocation2 + $0x61] sm:$0xff] }
 0x3f5   :  { %17508 = vmatprep.mubr.msk.f32.mxu0 %vm26_vm0, %v22113_v34  ;;  %v7622_v11 = vpop.f32.mrf.mxu0 }
 0x3f6   :  { %25934 = vst [vmem:[#allocation36_spill] sm:$0xff] %v22538_v26  ;;  %v22545_v37 = vadd.f32 %v7622_v11, %v7045_v42  ;;  %v17068_v16 = vpop.f32.mrf.mxu1 }
 0x3f7   :  { %v17166_v14 = vpop.f32.mrf.mxu0  ;;  %17411 = vmatmul.mubr.msk.f32.gmra.mxu1 %vm26_vm0, %v22547_v53 }
 0x3f8   :  { %25935 = vst [vmem:[#allocation37_spill] sm:$0xff] %v22545_v37  ;;  %17509 = vmatmul.mubr.msk.f32.gmra.mxu0 %vm26_vm0, %v22118_v2  ;;  %v22555_v10 = vadd.f32 %v17166_v14, %v17068_v16  ;;  %17413 = vmatprep.mubr.msk.f32.mxu1 %vm26_vm0, %v22553_v33  ;;  %v7055_v34 = vpop.f32.mrf.mxu1  ;;  %v22563_v37 = vld [vmem:[#allocation2 + $0x69] sm:$0xff]  ;;  %v22569_v2 = vld [vmem:[#allocation2 + $0x79] sm:$0xff] }
 0x3f9   :  { %17511 = vmatprep.mubr.msk.f32.mxu0 %vm26_vm0, %v22123_v36  ;;  %v7632_v42 = vpop.f32.mrf.mxu0 }
 0x3fa   :  { %25937 = vst [vmem:[#allocation4_spill] sm:$0xff] %v22555_v10  ;;  %v22561_v11 = vadd.f32 %v7632_v42, %v7055_v34  ;;  %v17071_v26 = vpop.f32.mrf.mxu1  ;;  %v22579_v42 = vld [vmem:[#allocation2 + $0x81] sm:$0xff] }
 0x3fb   :  { %v17169_v53 = vpop.f32.mrf.mxu0  ;;  %17414 = vmatmul.mubr.msk.f32.gmra.mxu1 %vm26_vm0, %v22563_v37 }
 0x3fc   :  { %25938 = vst [vmem:[#allocation38_spill] sm:$0xff] %v22561_v11  ;;  %17512 = vmatmul.mubr.msk.f32.gmra.mxu0 %vm26_vm0, %v22128_v56  ;;  %v22571_v16 = vadd.f32 %v17169_v53, %v17071_v26  ;;  %17416 = vmatprep.mubr.msk.f32.mxu1 %vm26_vm0, %v22569_v2  ;;  %v7065_v36 = vpop.f32.mrf.mxu1  ;;  %v22585_v56 = vld [vmem:[#allocation2 + $0x91] sm:$0xff] }
 0x3fd   :  { %17514 = vmatprep.mubr.msk.f32.mxu0 %vm26_vm0, %v22133_v19  ;;  %v7642_v14 = vpop.f32.mrf.mxu0 }
 0x3fe   :  { %25939 = vst [vmem:[#allocation40_spill] sm:$0xff] %v22571_v16  ;;  %v22577_v34 = vadd.f32 %v7642_v14, %v7065_v36  ;;  %v22595_v14 = vld [vmem:[#allocation2 + $0x99] sm:$0xff] }
 0x3ff   :  { %v17074_v11 = vpop.f32.mrf.mxu1  ;;  %17417 = vmatmul.mubr.msk.f32.gmra.mxu1 %vm26_vm0, %v22579_v42 }
 0x400   :  { %25940 = vst [vmem:[#allocation71_spill] sm:$0xff] %v22577_v34  ;;  %v17172_v10 = vpop.f32.mrf.mxu0  ;;  %17515 = vmatmul.mubr.msk.f32.gmra.mxu0 %vm26_vm0, %v22138_v0  ;;  %17419 = vmatprep.mubr.msk.f32.mxu1 %vm26_vm0, %v22585_v56  ;;  %v22601_v0 = vld [vmem:[#allocation2 + $0xa9] sm:$0xff] }
 0x401   :  { %v22587_v26 = vadd.f32 %v17172_v10, %v17074_v11  ;;  %17517 = vmatprep.mubr.msk.f32.mxu0 %vm26_vm0, %v22143_v46  ;;  %v7075_v19 = vpop.f32.mrf.mxu1 }
 0x402   :  { %v7652_v53 = vpop.f32.mrf.mxu0 }
 0x403   :  { %25941 = vst [vmem:[#allocation70_spill] sm:$0xff] %v22587_v26  ;;  %v22593_v36 = vadd.f32 %v7652_v53, %v7075_v19  ;;  %v17077_v34 = vpop.f32.mrf.mxu1  ;;  %17420 = vmatmul.mubr.msk.f32.gmra.mxu1 %vm26_vm0, %v22595_v14  ;;  %v22611_v53 = vld [vmem:[#allocation2 + $0xb1] sm:$0xff] }
 0x404   :  { %v17175_v16 = vpop.f32.mrf.mxu0  ;;  %17518 = vmatmul.mubr.msk.f32.gmra.mxu0 %vm26_vm0, %v22148_v49  ;;  %17422 = vmatprep.mubr.msk.f32.mxu1 %vm26_vm0, %v22601_v0  ;;  %v22617_v49 = vld [vmem:[#allocation2 + $0xc1] sm:$0xff] }
 0x405   :  { %25942 = vst [vmem:[#allocation39_spill] sm:$0xff] %v22593_v36  ;;  %v22603_v10 = vadd.f32 %v17175_v16, %v17077_v34  ;;  %17520 = vmatprep.mubr.msk.f32.mxu0 %vm26_vm0, %v22153_v62  ;;  %v7085_v46 = vpop.f32.mrf.mxu1 }
 0x406   :  { %v7662_v11 = vpop.f32.mrf.mxu0 }
 0x407   :  { %25943 = vst [vmem:[#allocation42_spill] sm:$0xff] %v22603_v10  ;;  %v22609_v19 = vadd.f32 %v7662_v11, %v7085_v46  ;;  %v17080_v36 = vpop.f32.mrf.mxu1  ;;  %17423 = vmatmul.mubr.msk.f32.gmra.mxu1 %vm26_vm0, %v22611_v53  ;;  %v22627_v11 = vld [vmem:[#allocation2 + $0xc9] sm:$0xff] }
 0x408   :  { %v17178_v26 = vpop.f32.mrf.mxu0  ;;  %17521 = vmatmul.mubr.msk.f32.gmra.mxu0 %vm26_vm0, %v22158_v25  ;;  %17425 = vmatprep.mubr.msk.f32.mxu1 %vm26_vm0, %v22617_v49  ;;  %v22633_v25 = vld [vmem:[#allocation2 + $0xd9] sm:$0xff] }
 0x409   :  { %25944 = vst [vmem:[#allocation72_spill] sm:$0xff] %v22609_v19  ;;  %v22619_v16 = vadd.f32 %v17178_v26, %v17080_v36  ;;  %17523 = vmatprep.mubr.msk.f32.mxu0 %vm26_vm0, %v22163_v12  ;;  %v7095_v62 = vpop.f32.mrf.mxu1 }
 0x40a   :  { %v7672_v34 = vpop.f32.mrf.mxu0 }
 0x40b   :  { %25945 = vst [vmem:[#allocation6_spill] sm:$0xff] %v22619_v16  ;;  %v22625_v46 = vadd.f32 %v7672_v34, %v7095_v62  ;;  %v17083_v19 = vpop.f32.mrf.mxu1  ;;  %17426 = vmatmul.mubr.msk.f32.gmra.mxu1 %vm26_vm0, %v22627_v11  ;;  %v22643_v34 = vld [vmem:[#allocation2 + $0xe1] sm:$0xff] }
 0x40c   :  { %v17181_v10 = vpop.f32.mrf.mxu0  ;;  %17524 = vmatmul.mubr.msk.f32.gmra.mxu0 %vm26_vm0, %v22169_v31  ;;  %17428 = vmatprep.mubr.msk.f32.mxu1 %vm26_vm0, %v22633_v25  ;;  %v22649_v31 = vld [vmem:[#allocation2 + $0xf1] sm:$0xff] }
 0x40d   :  { %25946 = vst [vmem:[#allocation41_spill] sm:$0xff] %v22625_v46  ;;  %v22635_v26 = vadd.f32 %v17181_v10, %v17083_v19  ;;  %17526 = vmatprep.mubr.msk.f32.mxu0 %vm26_vm0, %v22175_v41  ;;  %v7105_v12 = vpop.f32.mrf.mxu1 }
 0x40e   :  { %v7682_v36 = vpop.f32.mrf.mxu0 }
 0x40f   :  { %25947 = vst [vmem:[#allocation44_spill] sm:$0xff] %v22635_v26  ;;  %v22641_v62 = vadd.f32 %v7682_v36, %v7105_v12  ;;  %v17086_v46 = vpop.f32.mrf.mxu1  ;;  %17429 = vmatmul.mubr.msk.f32.gmra.mxu1 %vm26_vm0, %v22643_v34  ;;  %v22659_v36 = vld [vmem:[#allocation2 + $0xf9] sm:$0xff] }
 0x410   :  { %v17184_v16 = vpop.f32.mrf.mxu0  ;;  %17527 = vmatmul.mubr.msk.f32.gmra.mxu0 %vm26_vm0, %v22181_v39  ;;  %17431 = vmatprep.mubr.msk.f32.mxu1 %vm26_vm0, %v22649_v31  ;;  %v22665_v39 = vld [vmem:[#allocation2 + $0x109] sm:$0xff] }
 0x411   :  { %25948 = vst [vmem:[#allocation74_spill] sm:$0xff] %v22641_v62  ;;  %v22651_v10 = vadd.f32 %v17184_v16, %v17086_v46  ;;  %17529 = vmatprep.mubr.msk.f32.mxu0 %vm26_vm0, %v22187_v48  ;;  %v7115_v41 = vpop.f32.mrf.mxu1 }
 0x412   :  { %v7692_v19 = vpop.f32.mrf.mxu0 }
 0x413   :  { %25949 = vst [vmem:[#allocation73_spill] sm:$0xff] %v22651_v10  ;;  %v22657_v12 = vadd.f32 %v7692_v19, %v7115_v41  ;;  %v17089_v62 = vpop.f32.mrf.mxu1  ;;  %17432 = vmatmul.mubr.msk.f32.gmra.mxu1 %vm26_vm0, %v22659_v36  ;;  %v22675_v19 = vld [vmem:[#allocation2 + $0x111] sm:$0xff] }
 0x414   :  { %v17187_v26 = vpop.f32.mrf.mxu0  ;;  %17530 = vmatmul.mubr.msk.f32.gmra.mxu0 %vm26_vm0, %v22193_v5  ;;  %17434 = vmatprep.mubr.msk.f32.mxu1 %vm26_vm0, %v22665_v39  ;;  %v22681_v5 = vld [vmem:[#allocation2 + $0x121] sm:$0xff] }
 0x415   :  { %25950 = vst [vmem:[#allocation43_spill] sm:$0xff] %v22657_v12  ;;  %v22667_v16 = vadd.f32 %v17187_v26, %v17089_v62  ;;  %17532 = vmatprep.mubr.msk.f32.mxu0 %vm26_vm0, %v22199_v28  ;;  %v7125_v48 = vpop.f32.mrf.mxu1  ;;  %25953 = vst [vmem:[#allocation75_spill] sm:$0xff] %v22681_v5 }
 0x416   :  { %v7702_v46 = vpop.f32.mrf.mxu0 }
 0x417   :  { %25951 = vst [vmem:[#allocation48_spill] sm:$0xff] %v22667_v16  ;;  %v22673_v41 = vadd.f32 %v7702_v46, %v7125_v48  ;;  %v17092_v12 = vpop.f32.mrf.mxu1  ;;  %17435 = vmatmul.mubr.msk.f32.gmra.mxu1 %vm26_vm0, %v22675_v19  ;;  %v22691_v46 = vld [vmem:[#allocation2 + $0x129] sm:$0xff] }
 0x418   :  { %v17190_v10 = vpop.f32.mrf.mxu0  ;;  %17533 = vmatmul.mubr.msk.f32.gmra.mxu0 %vm26_vm0, %v22205_v13  ;;  %17437 = vmatprep.mubr.msk.f32.mxu1 %vm26_vm0, %v22681_v5  ;;  %25956 = vst [vmem:[#allocation9_spill] sm:$0xff] %v22691_v46  ;;  %v22697_v13 = vld [vmem:[#allocation2 + $0x139] sm:$0xff] }
 0x419   :  { %25952 = vst [vmem:[#allocation7_spill] sm:$0xff] %v22673_v41  ;;  %v22683_v26 = vadd.f32 %v17190_v10, %v17092_v12  ;;  %17535 = vmatprep.mubr.msk.f32.mxu0 %vm26_vm0, %v22211_v3  ;;  %v7135_v28 = vpop.f32.mrf.mxu1  ;;  %25957 = vst [vmem:[#allocation8_spill] sm:$0xff] %v22697_v13 }
 0x41a   :  { %v7712_v62 = vpop.f32.mrf.mxu0 }
 0x41b   :  { %25954 = vst [vmem:[#allocation45_spill] sm:$0xff] %v22683_v26  ;;  %v22689_v48 = vadd.f32 %v7712_v62, %v7135_v28  ;;  %v17095_v41 = vpop.f32.mrf.mxu1  ;;  %17438 = vmatmul.mubr.msk.f32.gmra.mxu1 %vm26_vm0, %v22691_v46  ;;  %v22707_v62 = vld [vmem:[#allocation2 + $0x141] sm:$0xff] }
 0x41c   :  { %v17193_v16 = vpop.f32.mrf.mxu0  ;;  %17536 = vmatmul.mubr.msk.f32.gmra.mxu0 %vm26_vm0, %v22217_v43  ;;  %17440 = vmatprep.mubr.msk.f32.mxu1 %vm26_vm0, %v22697_v13  ;;  %25960 = vst [vmem:[#allocation11_spill] sm:$0xff] %v22707_v62  ;;  %v22713_v43 = vld [vmem:[#allocation2 + $0x151] sm:$0xff] }
 0x41d   :  { %25955 = vst [vmem:[#allocation78_spill] sm:$0xff] %v22689_v48  ;;  %v22699_v10 = vadd.f32 %v17193_v16, %v17095_v41  ;;  %17538 = vmatprep.mubr.msk.f32.mxu0 %vm26_vm0, %v22223_v54  ;;  %v7145_v3 = vpop.f32.mrf.mxu1  ;;  %25961 = vst [vmem:[#allocation10_spill] sm:$0xff] %v22713_v43  ;;  %v25963_v54 = vld [vmem:[#allocation46_spill] sm:$0xff] }
 0x41e   :  { %v7722_v12 = vpop.f32.mrf.mxu0 }
 0x41f   :  { %25958 = vst [vmem:[#allocation51_spill] sm:$0xff] %v22699_v10  ;;  %v22705_v28 = vadd.f32 %v7722_v12, %v7145_v3  ;;  %v17098_v48 = vpop.f32.mrf.mxu1  ;;  %17441 = vmatmul.mubr.msk.f32.gmra.mxu1 %vm26_vm0, %v22707_v62 }
 0x420   :  { %v17196_v26 = vpop.f32.mrf.mxu0  ;;  %17539 = vmatmul.mubr.msk.f32.gmra.mxu0 %vm26_vm0, %v22229_v61  ;;  %17443 = vmatprep.mubr.msk.f32.mxu1 %vm26_vm0, %v22713_v43  ;;  %v25966_v61 = vld [vmem:[#allocation50_spill] sm:$0xff] }
 0x421   :  { %25959 = vst [vmem:[#allocation80_spill] sm:$0xff] %v22705_v28  ;;  %v22715_v16 = vadd.f32 %v17196_v26, %v17098_v48  ;;  %17541 = vmatprep.mubr.msk.f32.mxu0 %vm26_vm0, %v25963_v54  ;;  %v7155_v41 = vpop.f32.mrf.mxu1  ;;  %v22723_v28 = vld [vmem:[#allocation2 + $0x159] sm:$0xff]  ;;  %v22729_v26 = vld [vmem:[#allocation2 + $0x169] sm:$0xff] }
 0x422   :  { %v7732_v3 = vpop.f32.mrf.mxu0  ;;  %25965 = vst [vmem:[#allocation13_spill] sm:$0xff] %v22723_v28  ;;  %25967 = vst [vmem:[#allocation12_spill] sm:$0xff] %v22729_v26  ;;  %v25969_v54 = vld [vmem:[#allocation49_spill] sm:$0xff] }
 0x423   :  { %25962 = vst [vmem:[#allocation79_spill] sm:$0xff] %v22715_v16  ;;  %v22721_v12 = vadd.f32 %v7732_v3, %v7155_v41  ;;  %v17101_v10 = vpop.f32.mrf.mxu1  ;;  %17444 = vmatmul.mubr.msk.f32.gmra.mxu1 %vm26_vm0, %v22723_v28  ;;  %v22739_v16 = vld [vmem:[#allocation2 + $0x171] sm:$0xff] }
 0x424   :  { %v17199_v62 = vpop.f32.mrf.mxu0  ;;  %17542 = vmatmul.mubr.msk.f32.gmra.mxu0 %vm26_vm0, %v25966_v61  ;;  %17446 = vmatprep.mubr.msk.f32.mxu1 %vm26_vm0, %v22729_v26  ;;  %25971 = vst [vmem:[#allocation15_spill] sm:$0xff] %v22739_v16  ;;  %v25972_v61 = vld [vmem:[#allocation23_spill] sm:$0xff] }
 0x425   :  { %25964 = vst [vmem:[#allocation82_spill] sm:$0xff] %v22721_v12  ;;  %v22731_v48 = vadd.f32 %v17199_v62, %v17101_v10  ;;  %17544 = vmatprep.mubr.msk.f32.mxu0 %vm26_vm0, %v25969_v54  ;;  %v7165_v41 = vpop.f32.mrf.mxu1  ;;  %v22745_v10 = vld [vmem:[#allocation2 + $0x181] sm:$0xff] }
 0x426   :  { %v7742_v3 = vpop.f32.mrf.mxu0  ;;  %25973 = vst [vmem:[#allocation14_spill] sm:$0xff] %v22745_v10  ;;  %v9922_v62 = vld [vmem:[#allocation2 + $0x182] sm:$0xff] }
 0x427   :  { %25968 = vst [vmem:[#allocation81_spill] sm:$0xff] %v22731_v48  ;;  %v22737_v12 = vadd.f32 %v7742_v3, %v7165_v41  ;;  %v17104_v28 = vpop.f32.mrf.mxu1  ;;  %17447 = vmatmul.mubr.msk.f32.gmra.mxu1 %vm26_vm0, %v22739_v16  ;;  %v9923_v16 = vld [vmem:[#allocation2 + $0x18a] sm:$0xff] }
 0x428   :  { %v17202_v43 = vpop.f32.mrf.mxu0  ;;  %17545 = vmatmul.mubr.msk.f32.gmra.mxu0 %vm26_vm0, %v25972_v61  ;;  %17449 = vmatprep.mubr.msk.f32.mxu1 %vm26_vm0, %v22745_v10  ;;  %v25978_v61 = vld [vmem:[#allocation53_spill] sm:$0xff] }
 0x429   :  { %25970 = vst [vmem:[#allocation84_spill] sm:$0xff] %v22737_v12  ;;  %v22747_v48 = vadd.f32 %v17202_v43, %v17104_v28  ;;  %17547 = vmatprep.mubr.msk.f32.mxu0 %vm26_vm0, %v9922_v62  ;;  %v7175_v54 = vpop.f32.mrf.mxu1  ;;  %v22754_v12 = vld [vmem:[#allocation2 + $0x189] sm:$0xff] }
 0x42a   :  { %v7752_v41 = vpop.f32.mrf.mxu0  ;;  %25976 = vst [vmem:[#allocation17_spill] sm:$0xff] %v22754_v12  ;;  %v9217_v28 = vld [vmem:[#allocation2 + $0x1c9] sm:$0xff] }
 0x42b   :  { %25974 = vst [vmem:[#allocation83_spill] sm:$0xff] %v22747_v48  ;;  %v22752_v3 = vadd.f32 %v7752_v41, %v7175_v54  ;;  %v17107_v26 = vpop.f32.mrf.mxu1  ;;  %17450 = vmatmul.mubr.msk.f32.gmra.mxu1 %vm26_vm0, %v22754_v12  ;;  %v25980_v12 = vld [vmem:[#allocation25_spill] sm:$0xff] }
 0x42c   :  { %v17205_v13 = vpop.f32.mrf.mxu0  ;;  %17548 = vmatmul.mubr.msk.f32.gmra.mxu0 %vm26_vm0, %v9923_v16  ;;  %17452 = vmatprep.mubr.msk.f32.mxu1 %vm26_vm0, %v9217_v28  ;;  %v22769_v16 = vld [vmem:[#allocation2 + $0x1e1] sm:$0xff] }
 0x42d   :  { %25975 = vst [vmem:[#allocation86_spill] sm:$0xff] %v22752_v3  ;;  %v22759_v43 = vadd.f32 %v17205_v13, %v17107_v26  ;;  %17550 = vmatprep.mubr.msk.f32.mxu0 %vm26_vm0, %v25978_v61  ;;  %v7185_v62 = vpop.f32.mrf.mxu1  ;;  %v9218_v3 = vld [vmem:[#allocation2 + $0x1d1] sm:$0xff]  ;;  %v25981_v13 = vld [vmem:[#allocation52_spill] sm:$0xff] }
 0x42e   :  { %v7762_v54 = vpop.f32.mrf.mxu0  ;;  %v25982_v26 = vld [vmem:[#allocation22_spill] sm:$0xff] }
 0x42f   :  { %25977 = vst [vmem:[#allocation16_spill] sm:$0xff] %v22759_v43  ;;  %v22764_v41 = vadd.f32 %v7762_v54, %v7185_v62  ;;  %v17210_v48 = vpop.f32.mrf.mxu1  ;;  %17453 = vmatmul.mubr.msk.f32.gmra.mxu1 %vm26_vm0, %v9218_v3  ;;  %v7453_v28 = vadd.f32 %v25982_v26, %v25981_v13  ;;  %v25983_v43 = vld [vmem:[#allocation47_spill] sm:$0xff] }
 0x430   :  { %v17308_v10 = vpop.f32.mrf.mxu0  ;;  %17551 = vmatmul.mubr.msk.f32.gmra.mxu0 %vm26_vm0, %v25980_v12  ;;  %v8415_v46 = vadd.f32 %v17210_v48, %v25983_v43  ;;  %17455 = vmatprep.mubr.msk.f32.mxu1 %vm26_vm0, %v22769_v16  ;;  %v22786_v48 = vld [vmem:[#allocation2 + $0x1f9] sm:$0xff] }
 0x431   :  { %25979 = vst [vmem:[#allocation85_spill] sm:$0xff] %v22764_v41  ;;  %17553 = vmatprep.mubr.msk.f32.mxu0 %vm26_vm0, %v22279_v30  ;;  %v8095_v61 = vpop.f32.mrf.mxu1  ;;  %v22780_v41 = vld [vmem:[#allocation2 + $0x1e9] sm:$0xff]  ;;  %v25986_v30 = vld [vmem:[#allocation55_spill] sm:$0xff] }
 0x432   :  { %v8802_v62 = vpop.f32.mrf.mxu0  ;;  %v22778_v54 = vadd.f32 %v17308_v10, %v8415_v46  ;;  %v8414_v3 = vadd.f32 %v8095_v61, %v7453_v28  ;;  %25985 = vst [vmem:[#allocation19_spill] sm:$0xff] %v22780_v41  ;;  %v25988_v28 = vld [vmem:[#allocation54_spill] sm:$0xff] }
 0x433   :  { %v17213_v12 = vpop.f32.mrf.mxu1  ;;  %17456 = vmatmul.mubr.msk.f32.gmra.mxu1 %vm26_vm0, %v22780_v41 }
 0x434   :  { %25984 = vst [vmem:[#allocation88_spill] sm:$0xff] %v22778_v54  ;;  %v17311_v5 = vpop.f32.mrf.mxu0  ;;  %17554 = vmatmul.mubr.msk.f32.gmra.mxu0 %vm26_vm0, %v22289_v15  ;;  %v22788_v43 = vadd.f32 %v8802_v62, %v8414_v3  ;;  %v8417_v13 = vadd.f32 %v17213_v12, %v25986_v30  ;;  %17458 = vmatprep.mubr.msk.f32.mxu1 %vm26_vm0, %v22786_v48  ;;  %v22798_v54 = vld [vmem:[#allocation2 + $0x201] sm:$0xff]  ;;  %v22804_v62 = vld [vmem:[#allocation2 + $0x211] sm:$0xff] }
 0x435   :  { %17556 = vmatprep.mubr.msk.f32.mxu0 %vm26_vm0, %v22295_v27  ;;  %v8105_v46 = vpop.f32.mrf.mxu1  ;;  %25989 = vst [vmem:[#allocation87_spill] sm:$0xff] %v22798_v54  ;;  %v25990_v27 = vld [vmem:[#allocation24_spill] sm:$0xff] }
 0x436   :  { %v8812_v10 = vpop.f32.mrf.mxu0  ;;  %v22795_v26 = vadd.f32 %v17311_v5, %v8417_v13  ;;  %v8416_v61 = vadd.f32 %v8105_v46, %v25988_v28  ;;  %v25992_v46 = vld [vmem:[#allocation28_spill] sm:$0xff] }
 0x437   :  { %v17216_v15 = vpop.f32.mrf.mxu1  ;;  %17459 = vmatmul.mubr.msk.f32.gmra.mxu1 %vm26_vm0, %v22798_v54 }
 0x438   :  { %25987 = vst [vmem:[#allocation18_spill] sm:$0xff] %v22795_v26  ;;  %v17314_v41 = vpop.f32.mrf.mxu0  ;;  %17557 = vmatmul.mubr.msk.f32.gmra.mxu0 %vm26_vm0, %v22305_v29  ;;  %v22806_v3 = vadd.f32 %v8812_v10, %v8416_v61  ;;  %v8419_v12 = vadd.f32 %v17216_v15, %v25990_v27  ;;  %17461 = vmatprep.mubr.msk.f32.mxu1 %vm26_vm0, %v22804_v62  ;;  %v22816_v26 = vld [vmem:[#allocation2 + $0x219] sm:$0xff]  ;;  %v22822_v10 = vld [vmem:[#allocation2 + $0x229] sm:$0xff] }
 0x439   :  { %17559 = vmatprep.mubr.msk.f32.mxu0 %vm26_vm0, %v22311_v40  ;;  %v8115_v5 = vpop.f32.mrf.mxu1  ;;  %25993 = vst [vmem:[#allocation21_spill] sm:$0xff] %v22816_v26  ;;  %v25994_v40 = vld [vmem:[#allocation57_spill] sm:$0xff] }
 0x43a   :  { %v8822_v30 = vpop.f32.mrf.mxu0  ;;  %v22813_v13 = vadd.f32 %v17314_v41, %v8419_v12  ;;  %v8418_v28 = vadd.f32 %v8115_v5, %v25992_v46  ;;  %v25996_v5 = vld [vmem:[#allocation56_spill] sm:$0xff] }
 0x43b   :  { %v17219_v29 = vpop.f32.mrf.mxu1  ;;  %17462 = vmatmul.mubr.msk.f32.gmra.mxu1 %vm26_vm0, %v22816_v26 }
 0x43c   :  { %25991 = vst [vmem:[#allocation90_spill] sm:$0xff] %v22813_v13  ;;  %v17317_v54 = vpop.f32.mrf.mxu0  ;;  %17560 = vmatmul.mubr.msk.f32.gmra.mxu0 %vm26_vm0, %v22321_v59  ;;  %v22824_v61 = vadd.f32 %v8822_v30, %v8418_v28  ;;  %v8421_v15 = vadd.f32 %v17219_v29, %v25994_v40  ;;  %17464 = vmatprep.mubr.msk.f32.mxu1 %vm26_vm0, %v22822_v10  ;;  %v22834_v13 = vld [vmem:[#allocation2 + $0x231] sm:$0xff]  ;;  %v22840_v30 = vld [vmem:[#allocation2 + $0x241] sm:$0xff] }
 0x43d   :  { %17562 = vmatprep.mubr.msk.f32.mxu0 %vm26_vm0, %v22327_v47  ;;  %v8125_v41 = vpop.f32.mrf.mxu1  ;;  %25997 = vst [vmem:[#allocation89_spill] sm:$0xff] %v22834_v13  ;;  %v25998_v47 = vld [vmem:[#allocation26_spill] sm:$0xff] }
 0x43e   :  { %v8832_v27 = vpop.f32.mrf.mxu0  ;;  %v22831_v12 = vadd.f32 %v17317_v54, %v8421_v15  ;;  %v8420_v46 = vadd.f32 %v8125_v41, %v25996_v5  ;;  %v26000_v41 = vld [vmem:[#allocation29_spill] sm:$0xff] }
 0x43f   :  { %v17222_v59 = vpop.f32.mrf.mxu1  ;;  %17465 = vmatmul.mubr.msk.f32.gmra.mxu1 %vm26_vm0, %v22834_v13 }
 0x440   :  { %25995 = vst [vmem:[#allocation20_spill] sm:$0xff] %v22831_v12  ;;  %v17320_v26 = vpop.f32.mrf.mxu0  ;;  %17563 = vmatmul.mubr.msk.f32.gmra.mxu0 %vm26_vm0, %v22337_v52  ;;  %v22842_v28 = vadd.f32 %v8832_v27, %v8420_v46  ;;  %v8423_v29 = vadd.f32 %v17222_v59, %v25998_v47  ;;  %17467 = vmatprep.mubr.msk.f32.mxu1 %vm26_vm0, %v22840_v30  ;;  %v22852_v12 = vld [vmem:[#allocation2 + $0x249] sm:$0xff]  ;;  %v22858_v27 = vld [vmem:[#allocation2 + $0x259] sm:$0xff] }
 0x441   :  { %17565 = vmatprep.mubr.msk.f32.mxu0 %vm26_vm0, %v22343_v21  ;;  %v8135_v54 = vpop.f32.mrf.mxu1  ;;  %26001 = vst [vmem:[#allocation91_spill] sm:$0xff] %v22852_v12  ;;  %v26002_v21 = vld [vmem:[#allocation59_spill] sm:$0xff] }
 0x442   :  { %v8842_v40 = vpop.f32.mrf.mxu0  ;;  %v22849_v15 = vadd.f32 %v17320_v26, %v8423_v29  ;;  %v8422_v5 = vadd.f32 %v8135_v54, %v26000_v41  ;;  %v26004_v54 = vld [vmem:[#allocation58_spill] sm:$0xff] }
 0x443   :  { %v17225_v52 = vpop.f32.mrf.mxu1  ;;  %17468 = vmatmul.mubr.msk.f32.gmra.mxu1 %vm26_vm0, %v22852_v12 }
 0x444   :  { %25999 = vst [vmem:[#allocation93_spill] sm:$0xff] %v22849_v15  ;;  %v17323_v13 = vpop.f32.mrf.mxu0  ;;  %17566 = vmatmul.mubr.msk.f32.gmra.mxu0 %vm26_vm0, %v22353_v7  ;;  %v22860_v46 = vadd.f32 %v8842_v40, %v8422_v5  ;;  %v8425_v59 = vadd.f32 %v17225_v52, %v26002_v21  ;;  %17470 = vmatprep.mubr.msk.f32.mxu1 %vm26_vm0, %v22858_v27  ;;  %v22870_v15 = vld [vmem:[#allocation2 + $0x261] sm:$0xff]  ;;  %v22876_v40 = vld [vmem:[#allocation2 + $0x271] sm:$0xff] }
 0x445   :  { %17568 = vmatprep.mubr.msk.f32.mxu0 %vm26_vm0, %v22359_v38  ;;  %v8145_v26 = vpop.f32.mrf.mxu1  ;;  %26005 = vst [vmem:[#allocation50_spill] sm:$0xff] %v22870_v15  ;;  %v26006_v38 = vld [vmem:[#allocation27_spill] sm:$0xff] }
 0x446   :  { %v8852_v47 = vpop.f32.mrf.mxu0  ;;  %v22867_v29 = vadd.f32 %v17323_v13, %v8425_v59  ;;  %v8424_v41 = vadd.f32 %v8145_v26, %v26004_v54  ;;  %v26008_v26 = vld [vmem:[#allocation30_spill] sm:$0xff] }
 0x447   :  { %v17228_v7 = vpop.f32.mrf.mxu1  ;;  %17471 = vmatmul.mubr.msk.f32.gmra.mxu1 %vm26_vm0, %v22870_v15 }
 0x448   :  { %26003 = vst [vmem:[#allocation46_spill] sm:$0xff] %v22867_v29  ;;  %v17326_v12 = vpop.f32.mrf.mxu0  ;;  %17569 = vmatmul.mubr.msk.f32.gmra.mxu0 %vm26_vm0, %v22369_v20  ;;  %v22878_v5 = vadd.f32 %v8852_v47, %v8424_v41  ;;  %v8427_v52 = vadd.f32 %v17228_v7, %v26006_v38  ;;  %17473 = vmatprep.mubr.msk.f32.mxu1 %vm26_vm0, %v22876_v40  ;;  %v22888_v29 = vld [vmem:[#allocation2 + $0x279] sm:$0xff]  ;;  %v22894_v47 = vld [vmem:[#allocation2 + $0x289] sm:$0xff] }
 0x449   :  { %17571 = vmatprep.mubr.msk.f32.mxu0 %vm26_vm0, %v22375_v60  ;;  %v8155_v13 = vpop.f32.mrf.mxu1  ;;  %26009 = vst [vmem:[#allocation23_spill] sm:$0xff] %v22888_v29  ;;  %v26010_v60 = vld [vmem:[#allocation62_spill] sm:$0xff] }
 0x44a   :  { %v8862_v21 = vpop.f32.mrf.mxu0  ;;  %v22885_v59 = vadd.f32 %v17326_v12, %v8427_v52  ;;  %v8426_v54 = vadd.f32 %v8155_v13, %v26008_v26  ;;  %v26012_v13 = vld [vmem:[#allocation60_spill] sm:$0xff] }
 0x44b   :  { %v17231_v20 = vpop.f32.mrf.mxu1  ;;  %17474 = vmatmul.mubr.msk.f32.gmra.mxu1 %vm26_vm0, %v22888_v29 }
 0x44c   :  { %26007 = vst [vmem:[#allocation49_spill] sm:$0xff] %v22885_v59  ;;  %v17329_v15 = vpop.f32.mrf.mxu0  ;;  %17572 = vmatmul.mubr.msk.f32.gmra.mxu0 %vm26_vm0, %v22385_v23  ;;  %v22896_v41 = vadd.f32 %v8862_v21, %v8426_v54  ;;  %v8429_v7 = vadd.f32 %v17231_v20, %v26010_v60  ;;  %17476 = vmatprep.mubr.msk.f32.mxu1 %vm26_vm0, %v22894_v47  ;;  %v22906_v59 = vld [vmem:[#allocation2 + $0x291] sm:$0xff]  ;;  %v22912_v21 = vld [vmem:[#allocation2 + $0x2a1] sm:$0xff] }
 0x44d   :  { %17574 = vmatprep.mubr.msk.f32.mxu0 %vm26_vm0, %v22391_v17  ;;  %v8165_v12 = vpop.f32.mrf.mxu1  ;;  %26013 = vst [vmem:[#allocation25_spill] sm:$0xff] %v22906_v59  ;;  %v26014_v17 = vld [vmem:[#allocation76_spill] sm:$0xff] }
 0x44e   :  { %v8872_v38 = vpop.f32.mrf.mxu0  ;;  %v22903_v52 = vadd.f32 %v17329_v15, %v8429_v7  ;;  %v8428_v26 = vadd.f32 %v8165_v12, %v26012_v13  ;;  %v26016_v12 = vld [vmem:[#allocation32_spill] sm:$0xff] }
 0x44f   :  { %v17234_v23 = vpop.f32.mrf.mxu1  ;;  %17477 = vmatmul.mubr.msk.f32.gmra.mxu1 %vm26_vm0, %v22906_v59 }
 0x450   :  { %26011 = vst [vmem:[#allocation53_spill] sm:$0xff] %v22903_v52  ;;  %v17332_v29 = vpop.f32.mrf.mxu0  ;;  %17575 = vmatmul.mubr.msk.f32.gmra.mxu0 %vm26_vm0, %v22401_v45  ;;  %v22914_v54 = vadd.f32 %v8872_v38, %v8428_v26  ;;  %v8431_v20 = vadd.f32 %v17234_v23, %v26014_v17  ;;  %17479 = vmatprep.mubr.msk.f32.mxu1 %vm26_vm0, %v22912_v21  ;;  %v22924_v52 = vld [vmem:[#allocation2 + $0x2a9] sm:$0xff]  ;;  %v22930_v38 = vld [vmem:[#allocation2 + $0x2b9] sm:$0xff] }
 0x451   :  { %17577 = vmatprep.mubr.msk.f32.mxu0 %vm26_vm0, %v22407_v22  ;;  %v8175_v15 = vpop.f32.mrf.mxu1  ;;  %26017 = vst [vmem:[#allocation22_spill] sm:$0xff] %v22924_v52  ;;  %v26018_v22 = vld [vmem:[#allocation63_spill] sm:$0xff] }
 0x452   :  { %v8882_v60 = vpop.f32.mrf.mxu0  ;;  %v22921_v7 = vadd.f32 %v17332_v29, %v8431_v20  ;;  %v8430_v13 = vadd.f32 %v8175_v15, %v26016_v12  ;;  %v26020_v15 = vld [vmem:[#allocation61_spill] sm:$0xff] }
 0x453   :  { %v17237_v45 = vpop.f32.mrf.mxu1  ;;  %17480 = vmatmul.mubr.msk.f32.gmra.mxu1 %vm26_vm0, %v22924_v52 }
 0x454   :  { %26015 = vst [vmem:[#allocation52_spill] sm:$0xff] %v22921_v7  ;;  %v17335_v59 = vpop.f32.mrf.mxu0  ;;  %17578 = vmatmul.mubr.msk.f32.gmra.mxu0 %vm26_vm0, %v22417_v9  ;;  %v22932_v26 = vadd.f32 %v8882_v60, %v8430_v13  ;;  %v8433_v23 = vadd.f32 %v17237_v45, %v26018_v22  ;;  %17482 = vmatprep.mubr.msk.f32.mxu1 %vm26_vm0, %v22930_v38  ;;  %v22942_v7 = vld [vmem:[#allocation2 + $0x2c1] sm:$0xff]  ;;  %v22948_v60 = vld [vmem:[#allocation2 + $0x2d1] sm:$0xff] }
 0x455   :  { %17580 = vmatprep.mubr.msk.f32.mxu0 %vm26_vm0, %v22423_v63  ;;  %v8185_v29 = vpop.f32.mrf.mxu1  ;;  %26021 = vst [vmem:[#allocation55_spill] sm:$0xff] %v22942_v7  ;;  %v26022_v63 = vld [vmem:[#allocation77_spill] sm:$0xff] }
 0x456   :  { %v8892_v17 = vpop.f32.mrf.mxu0  ;;  %v22939_v20 = vadd.f32 %v17335_v59, %v8433_v23  ;;  %v8432_v12 = vadd.f32 %v8185_v29, %v26020_v15  ;;  %v26024_v29 = vld [vmem:[#allocation34_spill] sm:$0xff] }
 0x457   :  { %v17240_v9 = vpop.f32.mrf.mxu1  ;;  %17483 = vmatmul.mubr.msk.f32.gmra.mxu1 %vm26_vm0, %v22942_v7 }
 0x458   :  { %26019 = vst [vmem:[#allocation47_spill] sm:$0xff] %v22939_v20  ;;  %v17338_v52 = vpop.f32.mrf.mxu0  ;;  %17581 = vmatmul.mubr.msk.f32.gmra.mxu0 %vm26_vm0, %v22433_v6  ;;  %v22950_v13 = vadd.f32 %v8892_v17, %v8432_v12  ;;  %v8435_v45 = vadd.f32 %v17240_v9, %v26022_v63  ;;  %17485 = vmatprep.mubr.msk.f32.mxu1 %vm26_vm0, %v22948_v60  ;;  %v22960_v20 = vld [vmem:[#allocation2 + $0x2d9] sm:$0xff]  ;;  %v22966_v17 = vld [vmem:[#allocation2 + $0x2e9] sm:$0xff] }
 0x459   :  { %17583 = vmatprep.mubr.msk.f32.mxu0 %vm26_vm0, %v22439_v50  ;;  %v8195_v59 = vpop.f32.mrf.mxu1  ;;  %26025 = vst [vmem:[#allocation24_spill] sm:$0xff] %v22960_v20  ;;  %v26027_v50 = vld [vmem:[#allocation66_spill] sm:$0xff] }
 0x45a   :  { %v8902_v22 = vpop.f32.mrf.mxu0  ;;  %v22957_v23 = vadd.f32 %v17338_v52, %v8435_v45  ;;  %v8434_v15 = vadd.f32 %v8195_v59, %v26024_v29  ;;  %v26029_v59 = vld [vmem:[#allocation64_spill] sm:$0xff] }
 0x45b   :  { %v17243_v6 = vpop.f32.mrf.mxu1  ;;  %17486 = vmatmul.mubr.msk.f32.gmra.mxu1 %vm26_vm0, %v22960_v20 }
 0x45c   :  { %26023 = vst [vmem:[#allocation54_spill] sm:$0xff] %v22957_v23  ;;  %v17341_v7 = vpop.f32.mrf.mxu0  ;;  %17584 = vmatmul.mubr.msk.f32.gmra.mxu0 %vm26_vm0, %v22449_v4  ;;  %v22968_v12 = vadd.f32 %v8902_v22, %v8434_v15  ;;  %v8437_v9 = vadd.f32 %v17243_v6, %v26027_v50  ;;  %17488 = vmatprep.mubr.msk.f32.mxu1 %vm26_vm0, %v22966_v17  ;;  %v22978_v23 = vld [vmem:[#allocation2 + $0x2f1] sm:$0xff]  ;;  %v22984_v22 = vld [vmem:[#allocation2 + $0x301] sm:$0xff] }
 0x45d   :  { %17586 = vmatprep.mubr.msk.f32.mxu0 %vm26_vm0, %v22455_v44  ;;  %v8205_v52 = vpop.f32.mrf.mxu1  ;;  %26030 = vst [vmem:[#allocation56_spill] sm:$0xff] %v22978_v23  ;;  %v26032_v44 = vld [vmem:[#allocation31_spill] sm:$0xff] }
 0x45e   :  { %26026 = vst [vmem:[#allocation28_spill] sm:$0xff] %v22968_v12  ;;  %v8912_v63 = vpop.f32.mrf.mxu0  ;;  %v22975_v45 = vadd.f32 %v17341_v7, %v8437_v9  ;;  %v8436_v29 = vadd.f32 %v8205_v52, %v26029_v59  ;;  %v26033_v7 = vld [vmem:[#allocation35_spill] sm:$0xff]  ;;  %v26035_v59 = vld [vmem:[#allocation92_spill] sm:$0xff] }
 0x45f   :  { %v17246_v4 = vpop.f32.mrf.mxu1  ;;  %17489 = vmatmul.mubr.msk.f32.gmra.mxu1 %vm26_vm0, %v22978_v23  ;;  %v22996_v23 = vld [vmem:[#allocation2 + $0x309] sm:$0xff] }
 0x460   :  { %26028 = vst [vmem:[#allocation57_spill] sm:$0xff] %v22975_v45  ;;  %v17344_v20 = vpop.f32.mrf.mxu0  ;;  %17587 = vmatmul.mubr.msk.f32.gmra.mxu0 %vm26_vm0, %v22465_v58  ;;  %v22986_v15 = vadd.f32 %v8912_v63, %v8436_v29  ;;  %v8439_v6 = vadd.f32 %v17246_v4, %v26032_v44  ;;  %17491 = vmatprep.mubr.msk.f32.mxu1 %vm26_vm0, %v22984_v22  ;;  %26036 = vst [vmem:[#allocation59_spill] sm:$0xff] %v22996_v23  ;;  %v26037_v63 = vld [vmem:[#allocation33_spill] sm:$0xff]  ;;  %v23002_v29 = vld [vmem:[#allocation2 + $0x319] sm:$0xff] }
 0x461   :  { %17589 = vmatprep.mubr.msk.f32.mxu0 %vm26_vm0, %v26033_v7  ;;  %v8215_v50 = vpop.f32.mrf.mxu1  ;;  %26038 = vst [vmem:[#allocation58_spill] sm:$0xff] %v23002_v29  ;;  %v26040_v44 = vld [vmem:[#allocation67_spill] sm:$0xff] }
 0x462   :  { %26031 = vst [vmem:[#allocation26_spill] sm:$0xff] %v22986_v15  ;;  %v8922_v9 = vpop.f32.mrf.mxu0  ;;  %v22993_v52 = vadd.f32 %v17344_v20, %v8439_v6  ;;  %v8438_v45 = vadd.f32 %v8215_v50, %v26035_v59  ;;  %v26042_v59 = vld [vmem:[#allocation65_spill] sm:$0xff] }
 0x463   :  { %v17249_v58 = vpop.f32.mrf.mxu1  ;;  %17492 = vmatmul.mubr.msk.f32.gmra.mxu1 %vm26_vm0, %v22996_v23  ;;  %v23014_v23 = vld [vmem:[#allocation2 + $0x321] sm:$0xff] }
 0x464   :  { %26034 = vst [vmem:[#allocation29_spill] sm:$0xff] %v22993_v52  ;;  %v17347_v12 = vpop.f32.mrf.mxu0  ;;  %17590 = vmatmul.mubr.msk.f32.gmra.mxu0 %vm26_vm0, %v26037_v63  ;;  %v23004_v4 = vadd.f32 %v8922_v9, %v8438_v45  ;;  %v8441_v7 = vadd.f32 %v17249_v58, %v26040_v44  ;;  %17494 = vmatprep.mubr.msk.f32.mxu1 %vm26_vm0, %v23002_v29  ;;  %26043 = vst [vmem:[#allocation62_spill] sm:$0xff] %v23014_v23  ;;  %v23020_v45 = vld [vmem:[#allocation2 + $0x331] sm:$0xff]  ;;  %v26044_v58 = vld [vmem:[#allocation3_spill] sm:$0xff] }
 0x465   :  { %17592 = vmatprep.mubr.msk.f32.mxu0 %vm26_vm0, %v22487_v24  ;;  %v8225_v20 = vpop.f32.mrf.mxu1  ;;  %v9954_v9 = vld [vmem:[#allocation2 + $0x332] sm:$0xff] }
 0x466   :  { %26039 = vst [vmem:[#allocation27_spill] sm:$0xff] %v23004_v4  ;;  %v8932_v6 = vpop.f32.mrf.mxu0  ;;  %v23011_v50 = vadd.f32 %v17347_v12, %v8441_v7  ;;  %v8440_v52 = vadd.f32 %v8225_v20, %v26042_v59  ;;  %v26046_v59 = vld [vmem:[#allocation69_spill] sm:$0xff] }
 0x467   :  { %v17252_v63 = vpop.f32.mrf.mxu1  ;;  %17495 = vmatmul.mubr.msk.f32.gmra.mxu1 %vm26_vm0, %v23014_v23  ;;  %v23031_v23 = vld [vmem:[#allocation2 + $0x339] sm:$0xff] }
 0x468   :  { %26041 = vst [vmem:[#allocation30_spill] sm:$0xff] %v23011_v50  ;;  %v17350_v15 = vpop.f32.mrf.mxu0  ;;  %17593 = vmatmul.mubr.msk.f32.gmra.mxu0 %vm26_vm0, %v22496_v8  ;;  %v23022_v24 = vadd.f32 %v8932_v6, %v8440_v52  ;;  %v8443_v12 = vadd.f32 %v17252_v63, %v26044_v58  ;;  %17497 = vmatprep.mubr.msk.f32.mxu1 %vm26_vm0, %v23020_v45  ;;  %v9955_v8 = vld [vmem:[#allocation2 + $0x33a] sm:$0xff]  ;;  %v10600_v52 = vld [vmem:[#allocation2 + $0x30] sm:$0xff] }
 0x469   :  { %17595 = vmatprep.mubr.msk.f32.mxu0 %vm26_vm0, %v9954_v9  ;;  %v8235_v44 = vpop.f32.mrf.mxu1 }
 0x46a   :  { %v8942_v7 = vpop.f32.mrf.mxu0  ;;  %v23028_v20 = vadd.f32 %v17350_v15, %v8443_v12  ;;  %v8442_v50 = vadd.f32 %v8235_v44, %v26046_v59  ;;  %v10601_v44 = vld [vmem:[#allocation2 + $0x38] sm:$0xff] }
 0x46b   :  { %v17255_v4 = vpop.f32.mrf.mxu1  ;;  %17498 = vmatmul.mubr.msk.f32.gmra.mxu1 %vm26_vm0, %v23031_v23 }
 0x46c   :  { %26045 = vst [vmem:[#allocation60_spill] sm:$0xff] %v23028_v20  ;;  %v17353_v29 = vpop.f32.mrf.mxu0  ;;  %17596 = vmatmul.mubr.msk.f32.gmra.mxu0 %vm26_vm0, %v9955_v8  ;;  %v23036_v6 = vadd.f32 %v8942_v7, %v8442_v50  ;;  %v8445_v63 = vadd.f32 %v17255_v4, %v22501_v55  ;;  %17600 = vmatprep.mubr.msk.f32.mxu1 %vm26_vm0, %v10600_v52  ;;  %v10602_v55 = vld [vmem:[#allocation2 + $0x48] sm:$0xff]  ;;  %v10603_v52 = vld [vmem:[#allocation2 + $0x50] sm:$0xff] }
 0x46d   :  { %17698 = vmatprep.mubr.msk.f32.mxu0 %vm26_vm0, %v22514_v51  ;;  %v8245_v15 = vpop.f32.mrf.mxu1  ;;  %v26047_v7 = vld [vmem:[#allocation68_spill] sm:$0xff] }
 0x46e   :  { %v8952_v9 = vpop.f32.mrf.mxu0  ;;  %v23042_v58 = vadd.f32 %v17353_v29, %v8445_v63  ;;  %v8444_v12 = vadd.f32 %v8245_v15, %v22509_v57  ;;  %v26048_v15 = vld [vmem:[#allocation5_spill] sm:$0xff] }
 0x46f   :  { %v17258_v59 = vpop.f32.mrf.mxu1  ;;  %17601 = vmatmul.mubr.msk.f32.vlgmr.msra.gmra.mxu1 %vm26_vm0, %v10601_v44 }
 0x470   :  { %v17356_v20 = vpop.f32.mrf.mxu0  ;;  %17699 = vmatmul.mubr.msk.f32.vlgmr.msra.gmra.mxu0 %vm26_vm0, %v22525_v18  ;;  %v23048_v4 = vadd.f32 %v8952_v9, %v8444_v12  ;;  %v8447_v50 = vadd.f32 %v17258_v59, %v22516_v32  ;;  %17603 = vmatprep.mubr.msk.f32.mxu1 %vm26_vm0, %v10602_v55  ;;  %v10604_v32 = vld [vmem:[#allocation2 + $0x60] sm:$0xff]  ;;  %v26050_v59 = vld [vmem:[#allocation37_spill] sm:$0xff] }
 0x471   :  { %17701 = vmatprep.mubr.msk.f32.mxu0 %vm26_vm0, %v22536_v35  ;;  %17795 = vmatpush3.msra.mxu1 %v22530_v1  ;;  %v8255_v57 = vpop.f32.mrf.mxu1  ;;  %v26049_v35 = vld [vmem:[#allocation36_spill] sm:$0xff] }
 0x472   :  { %v8962_v51 = vpop.f32.mrf.mxu0  ;;  %v23055_v29 = vadd.f32 %v17356_v20, %v8447_v50  ;;  %v8446_v8 = vadd.f32 %v8255_v57, %v26047_v7  ;;  %v10605_v50 = vld [vmem:[#allocation2 + $0x68] sm:$0xff] }
 0x473   :  { %v17261_v18 = vpop.f32.mrf.mxu1  ;;  %17604 = vmatmul.mubr.msk.f32.gmra.mxu1 %vm26_vm0, %v10603_v52  ;;  %v26051_v52 = vld [vmem:[#allocation4_spill] sm:$0xff] }
 0x474   :  { %v17359_v63 = vpop.f32.mrf.mxu0  ;;  %17702 = vmatmul.mubr.msk.f32.gmra.mxu0 %vm26_vm0, %v26048_v15  ;;  %v23061_v9 = vadd.f32 %v8962_v51, %v8446_v8  ;;  %v8449_v12 = vadd.f32 %v17261_v18, %v26049_v35  ;;  %17606 = vmatprep.mubr.msk.f32.mxu1 %vm26_vm0, %v10604_v32  ;;  %v10606_v51 = vld [vmem:[#allocation2 + $0x78] sm:$0xff] }
 0x475   :  { %17704 = vmatprep.mubr.msk.f32.mxu0 %vm26_vm0, %v22553_v33  ;;  %v8265_v1 = vpop.f32.mrf.mxu1  ;;  %v26052_v32 = vld [vmem:[#allocation38_spill] sm:$0xff] }
 0x476   :  { %v8972_v20 = vpop.f32.mrf.mxu0  ;;  %v23067_v44 = vadd.f32 %v17359_v63, %v8449_v12  ;;  %v8448_v55 = vadd.f32 %v8265_v1, %v26050_v59  ;;  %v10607_v12 = vld [vmem:[#allocation2 + $0x80] sm:$0xff] }
 0x477   :  { %v17264_v57 = vpop.f32.mrf.mxu1  ;;  %17607 = vmatmul.mubr.msk.f32.gmra.mxu1 %vm26_vm0, %v10605_v50 }
 0x478   :  { %v17362_v7 = vpop.f32.mrf.mxu0  ;;  %17705 = vmatmul.mubr.msk.f32.gmra.mxu0 %vm26_vm0, %v22563_v37  ;;  %v23073_v8 = vadd.f32 %v8972_v20, %v8448_v55  ;;  %v8451_v18 = vadd.f32 %v17264_v57, %v26051_v52  ;;  %17609 = vmatprep.mubr.msk.f32.mxu1 %vm26_vm0, %v10606_v51  ;;  %v10608_v37 = vld [vmem:[#allocation2 + $0x90] sm:$0xff]  ;;  %v26053_v55 = vld [vmem:[#allocation40_spill] sm:$0xff]  ;;  %v26054_v51 = vld [vmem:[#allocation71_spill] sm:$0xff] }
 0x479   :  { %17707 = vmatprep.mubr.msk.f32.mxu0 %vm26_vm0, %v22569_v2  ;;  %v8275_v33 = vpop.f32.mrf.mxu1 }
 0x47a   :  { %v8982_v63 = vpop.f32.mrf.mxu0  ;;  %v23079_v15 = vadd.f32 %v17362_v7, %v8451_v18  ;;  %v8450_v35 = vadd.f32 %v8275_v33, %v26052_v32  ;;  %v10609_v18 = vld [vmem:[#allocation2 + $0x98] sm:$0xff] }
 0x47b   :  { %v17267_v1 = vpop.f32.mrf.mxu1  ;;  %17610 = vmatmul.mubr.msk.f32.gmra.mxu1 %vm26_vm0, %v10607_v12 }
 0x47c   :  { %v17365_v59 = vpop.f32.mrf.mxu0  ;;  %17708 = vmatmul.mubr.msk.f32.gmra.mxu0 %vm26_vm0, %v22579_v42  ;;  %v23085_v20 = vadd.f32 %v8982_v63, %v8450_v35  ;;  %v8453_v50 = vadd.f32 %v17267_v1, %v26053_v55  ;;  %17612 = vmatprep.mubr.msk.f32.mxu1 %vm26_vm0, %v10608_v37  ;;  %v10610_v42 = vld [vmem:[#allocation2 + $0xa8] sm:$0xff]  ;;  %v26055_v35 = vld [vmem:[#allocation70_spill] sm:$0xff]  ;;  %v26056_v37 = vld [vmem:[#allocation39_spill] sm:$0xff] }
 0x47d   :  { %17710 = vmatprep.mubr.msk.f32.mxu0 %vm26_vm0, %v22585_v56  ;;  %v8285_v2 = vpop.f32.mrf.mxu1 }
 0x47e   :  { %v8992_v57 = vpop.f32.mrf.mxu0  ;;  %v23091_v7 = vadd.f32 %v17365_v59, %v8453_v50  ;;  %v8452_v52 = vadd.f32 %v8285_v2, %v26054_v51  ;;  %v10611_v50 = vld [vmem:[#allocation2 + $0xb0] sm:$0xff] }
 0x47f   :  { %v17270_v33 = vpop.f32.mrf.mxu1  ;;  %17613 = vmatmul.mubr.msk.f32.gmra.mxu1 %vm26_vm0, %v10609_v18 }
 0x480   :  { %v17368_v32 = vpop.f32.mrf.mxu0  ;;  %17711 = vmatmul.mubr.msk.f32.gmra.mxu0 %vm26_vm0, %v22595_v14  ;;  %v23097_v63 = vadd.f32 %v8992_v57, %v8452_v52  ;;  %v8455_v12 = vadd.f32 %v17270_v33, %v26055_v35  ;;  %17615 = vmatprep.mubr.msk.f32.mxu1 %vm26_vm0, %v10610_v42  ;;  %v10612_v14 = vld [vmem:[#allocation2 + $0xc0] sm:$0xff]  ;;  %v26057_v52 = vld [vmem:[#allocation42_spill] sm:$0xff]  ;;  %v26058_v42 = vld [vmem:[#allocation72_spill] sm:$0xff] }
 0x481   :  { %17713 = vmatprep.mubr.msk.f32.mxu0 %vm26_vm0, %v22601_v0  ;;  %v8295_v56 = vpop.f32.mrf.mxu1 }
 0x482   :  { %v9002_v1 = vpop.f32.mrf.mxu0  ;;  %v23103_v59 = vadd.f32 %v17368_v32, %v8455_v12  ;;  %v8454_v55 = vadd.f32 %v8295_v56, %v26056_v37  ;;  %v10613_v12 = vld [vmem:[#allocation2 + $0xc8] sm:$0xff] }
 0x483   :  { %v17273_v2 = vpop.f32.mrf.mxu1  ;;  %17616 = vmatmul.mubr.msk.f32.gmra.mxu1 %vm26_vm0, %v10611_v50 }
 0x484   :  { %v17371_v51 = vpop.f32.mrf.mxu0  ;;  %17714 = vmatmul.mubr.msk.f32.gmra.mxu0 %vm26_vm0, %v22611_v53  ;;  %v23109_v57 = vadd.f32 %v9002_v1, %v8454_v55  ;;  %v8457_v18 = vadd.f32 %v17273_v2, %v26057_v52  ;;  %17618 = vmatprep.mubr.msk.f32.mxu1 %vm26_vm0, %v10612_v14  ;;  %v10614_v53 = vld [vmem:[#allocation2 + $0xd8] sm:$0xff]  ;;  %v26060_v14 = vld [vmem:[#allocation41_spill] sm:$0xff] }
 0x485   :  { %17716 = vmatprep.mubr.msk.f32.mxu0 %vm26_vm0, %v22617_v49  ;;  %v8305_v0 = vpop.f32.mrf.mxu1  ;;  %v26059_v55 = vld [vmem:[#allocation6_spill] sm:$0xff] }
 0x486   :  { %v9012_v33 = vpop.f32.mrf.mxu0  ;;  %v23115_v32 = vadd.f32 %v17371_v51, %v8457_v18  ;;  %v8456_v35 = vadd.f32 %v8305_v0, %v26058_v42  ;;  %v10615_v18 = vld [vmem:[#allocation2 + $0xe0] sm:$0xff] }
 0x487   :  { %v17276_v56 = vpop.f32.mrf.mxu1  ;;  %17619 = vmatmul.mubr.msk.f32.gmra.mxu1 %vm26_vm0, %v10613_v12 }
 0x488   :  { %v17374_v37 = vpop.f32.mrf.mxu0  ;;  %17717 = vmatmul.mubr.msk.f32.gmra.mxu0 %vm26_vm0, %v22627_v11  ;;  %v23121_v1 = vadd.f32 %v9012_v33, %v8456_v35  ;;  %v8459_v50 = vadd.f32 %v17276_v56, %v26059_v55  ;;  %17621 = vmatprep.mubr.msk.f32.mxu1 %vm26_vm0, %v10614_v53  ;;  %v10616_v11 = vld [vmem:[#allocation2 + $0xf0] sm:$0xff]  ;;  %v26061_v35 = vld [vmem:[#allocation44_spill] sm:$0xff]  ;;  %v26062_v53 = vld [vmem:[#allocation74_spill] sm:$0xff] }
 0x489   :  { %17719 = vmatprep.mubr.msk.f32.mxu0 %vm26_vm0, %v22633_v25  ;;  %v8315_v49 = vpop.f32.mrf.mxu1 }
 0x48a   :  { %v9022_v2 = vpop.f32.mrf.mxu0  ;;  %v23127_v51 = vadd.f32 %v17374_v37, %v8459_v50  ;;  %v8458_v52 = vadd.f32 %v8315_v49, %v26060_v14  ;;  %v10617_v50 = vld [vmem:[#allocation2 + $0xf8] sm:$0xff] }
 0x48b   :  { %v17279_v0 = vpop.f32.mrf.mxu1  ;;  %17622 = vmatmul.mubr.msk.f32.gmra.mxu1 %vm26_vm0, %v10615_v18 }
 0x48c   :  { %v17377_v42 = vpop.f32.mrf.mxu0  ;;  %17720 = vmatmul.mubr.msk.f32.gmra.mxu0 %vm26_vm0, %v22643_v34  ;;  %v23133_v33 = vadd.f32 %v9022_v2, %v8458_v52  ;;  %v8461_v12 = vadd.f32 %v17279_v0, %v26061_v35  ;;  %17624 = vmatprep.mubr.msk.f32.mxu1 %vm26_vm0, %v10616_v11  ;;  %v10618_v34 = vld [vmem:[#allocation2 + $0x108] sm:$0xff]  ;;  %v26063_v52 = vld [vmem:[#allocation73_spill] sm:$0xff]  ;;  %v26065_v11 = vld [vmem:[#allocation43_spill] sm:$0xff] }
 0x48d   :  { %17722 = vmatprep.mubr.msk.f32.mxu0 %vm26_vm0, %v22649_v31  ;;  %v8325_v25 = vpop.f32.mrf.mxu1 }
 0x48e   :  { %v9032_v56 = vpop.f32.mrf.mxu0  ;;  %v23139_v37 = vadd.f32 %v17377_v42, %v8461_v12  ;;  %v8460_v55 = vadd.f32 %v8325_v25, %v26062_v53  ;;  %v10619_v12 = vld [vmem:[#allocation2 + $0x110] sm:$0xff] }
 0x48f   :  { %v17282_v49 = vpop.f32.mrf.mxu1  ;;  %17625 = vmatmul.mubr.msk.f32.gmra.mxu1 %vm26_vm0, %v10617_v50 }
 0x490   :  { %v17380_v14 = vpop.f32.mrf.mxu0  ;;  %17723 = vmatmul.mubr.msk.f32.gmra.mxu0 %vm26_vm0, %v22659_v36  ;;  %v23145_v2 = vadd.f32 %v9032_v56, %v8460_v55  ;;  %v8463_v18 = vadd.f32 %v17282_v49, %v26063_v52  ;;  %17627 = vmatprep.mubr.msk.f32.mxu1 %vm26_vm0, %v10618_v34  ;;  %v10620_v36 = vld [vmem:[#allocation2 + $0x120] sm:$0xff]  ;;  %v26067_v55 = vld [vmem:[#allocation48_spill] sm:$0xff] }
 0x491   :  { %17725 = vmatprep.mubr.msk.f32.mxu0 %vm26_vm0, %v22665_v39  ;;  %v8335_v31 = vpop.f32.mrf.mxu1  ;;  %v26068_v39 = vld [vmem:[#allocation75_spill] sm:$0xff] }
 0x492   :  { %v9042_v0 = vpop.f32.mrf.mxu0  ;;  %v23151_v42 = vadd.f32 %v17380_v14, %v8463_v18  ;;  %v8462_v35 = vadd.f32 %v8335_v31, %v26065_v11  ;;  %v26070_v52 = vld [vmem:[#allocation7_spill] sm:$0xff]  ;;  %v10621_v31 = vld [vmem:[#allocation2 + $0x128] sm:$0xff] }
 0x493   :  { %v17285_v25 = vpop.f32.mrf.mxu1  ;;  %17628 = vmatmul.mubr.msk.f32.gmra.mxu1 %vm26_vm0, %v10619_v12 }
 0x494   :  { %26064 = vst [vmem:[#allocation76_spill] sm:$0xff] %v23151_v42  ;;  %v17383_v53 = vpop.f32.mrf.mxu0  ;;  %17726 = vmatmul.mubr.msk.f32.gmra.mxu0 %vm26_vm0, %v22675_v19  ;;  %v23157_v56 = vadd.f32 %v9042_v0, %v8462_v35  ;;  %v8465_v50 = vadd.f32 %v17285_v25, %v26067_v55  ;;  %17630 = vmatprep.mubr.msk.f32.mxu1 %vm26_vm0, %v10620_v36  ;;  %v26071_v19 = vld [vmem:[#allocation9_spill] sm:$0xff]  ;;  %v10622_v0 = vld [vmem:[#allocation2 + $0x138] sm:$0xff]  ;;  %v26074_v55 = vld [vmem:[#allocation8_spill] sm:$0xff] }
 0x495   :  { %17728 = vmatprep.mubr.msk.f32.mxu0 %vm26_vm0, %v26068_v39  ;;  %v8345_v49 = vpop.f32.mrf.mxu1  ;;  %v26073_v25 = vld [vmem:[#allocation45_spill] sm:$0xff] }
 0x496   :  { %26066 = vst [vmem:[#allocation32_spill] sm:$0xff] %v23157_v56  ;;  %v9052_v14 = vpop.f32.mrf.mxu0  ;;  %v23163_v34 = vadd.f32 %v17383_v53, %v8465_v50  ;;  %v8464_v18 = vadd.f32 %v8345_v49, %v26070_v52  ;;  %v26076_v49 = vld [vmem:[#allocation78_spill] sm:$0xff] }
 0x497   :  { %v17288_v11 = vpop.f32.mrf.mxu1  ;;  %17631 = vmatmul.mubr.msk.f32.gmra.mxu1 %vm26_vm0, %v10621_v31  ;;  %v10623_v31 = vld [vmem:[#allocation2 + $0x140] sm:$0xff] }
 0x498   :  { %26069 = vst [vmem:[#allocation63_spill] sm:$0xff] %v23163_v34  ;;  %v17386_v12 = vpop.f32.mrf.mxu0  ;;  %17729 = vmatmul.mubr.msk.f32.gmra.mxu0 %vm26_vm0, %v26071_v19  ;;  %v23169_v35 = vadd.f32 %v9052_v14, %v8464_v18  ;;  %v8467_v36 = vadd.f32 %v17288_v11, %v26073_v25  ;;  %17633 = vmatprep.mubr.msk.f32.mxu1 %vm26_vm0, %v10622_v0  ;;  %v26077_v14 = vld [vmem:[#allocation11_spill] sm:$0xff]  ;;  %v10624_v18 = vld [vmem:[#allocation2 + $0x150] sm:$0xff]  ;;  %v26080_v25 = vld [vmem:[#allocation10_spill] sm:$0xff] }
 0x499   :  { %17731 = vmatprep.mubr.msk.f32.mxu0 %vm26_vm0, %v26074_v55  ;;  %v8355_v53 = vpop.f32.mrf.mxu1  ;;  %v26079_v19 = vld [vmem:[#allocation51_spill] sm:$0xff] }
 0x49a   :  { %26072 = vst [vmem:[#allocation61_spill] sm:$0xff] %v23169_v35  ;;  %v9062_v50 = vpop.f32.mrf.mxu0  ;;  %v23175_v39 = vadd.f32 %v17386_v12, %v8467_v36  ;;  %v8466_v52 = vadd.f32 %v8355_v53, %v26076_v49  ;;  %v26082_v53 = vld [vmem:[#allocation80_spill] sm:$0xff] }
 0x49b   :  { %v17291_v34 = vpop.f32.mrf.mxu1  ;;  %17634 = vmatmul.mubr.msk.f32.gmra.mxu1 %vm26_vm0, %v10623_v31  ;;  %v10625_v31 = vld [vmem:[#allocation2 + $0x158] sm:$0xff] }
 0x49c   :  { %26075 = vst [vmem:[#allocation77_spill] sm:$0xff] %v23175_v39  ;;  %v17389_v56 = vpop.f32.mrf.mxu0  ;;  %17732 = vmatmul.mubr.msk.f32.gmra.mxu0 %vm26_vm0, %v26077_v14  ;;  %v23181_v11 = vadd.f32 %v9062_v50, %v8466_v52  ;;  %v8469_v0 = vadd.f32 %v17291_v34, %v26079_v19  ;;  %17636 = vmatprep.mubr.msk.f32.mxu1 %vm26_vm0, %v10624_v18  ;;  %v26083_v50 = vld [vmem:[#allocation13_spill] sm:$0xff]  ;;  %v10626_v34 = vld [vmem:[#allocation2 + $0x168] sm:$0xff]  ;;  %v26085_v14 = vld [vmem:[#allocation79_spill] sm:$0xff] }
 0x49d   :  { %17734 = vmatprep.mubr.msk.f32.mxu0 %vm26_vm0, %v26080_v25  ;;  %v8365_v12 = vpop.f32.mrf.mxu1  ;;  %v26086_v19 = vld [vmem:[#allocation12_spill] sm:$0xff] }
 0x49e   :  { %26078 = vst [vmem:[#allocation34_spill] sm:$0xff] %v23181_v11  ;;  %v9072_v36 = vpop.f32.mrf.mxu0  ;;  %v23187_v55 = vadd.f32 %v17389_v56, %v8469_v0  ;;  %v8468_v49 = vadd.f32 %v8365_v12, %v26082_v53  ;;  %v26088_v12 = vld [vmem:[#allocation82_spill] sm:$0xff] }
 0x49f   :  { %v17294_v39 = vpop.f32.mrf.mxu1  ;;  %17637 = vmatmul.mubr.msk.f32.gmra.mxu1 %vm26_vm0, %v10625_v31  ;;  %v10627_v31 = vld [vmem:[#allocation2 + $0x170] sm:$0xff] }
 0x4a0   :  { %26081 = vst [vmem:[#allocation66_spill] sm:$0xff] %v23187_v55  ;;  %v17392_v35 = vpop.f32.mrf.mxu0  ;;  %17735 = vmatmul.mubr.msk.f32.gmra.mxu0 %vm26_vm0, %v26083_v50  ;;  %v23193_v52 = vadd.f32 %v9072_v36, %v8468_v49  ;;  %v8471_v18 = vadd.f32 %v17294_v39, %v26085_v14  ;;  %17639 = vmatprep.mubr.msk.f32.mxu1 %vm26_vm0, %v10626_v34  ;;  %v26089_v36 = vld [vmem:[#allocation15_spill] sm:$0xff]  ;;  %v26091_v50 = vld [vmem:[#allocation81_spill] sm:$0xff]  ;;  %v26092_v14 = vld [vmem:[#allocation14_spill] sm:$0xff] }
 0x4a1   :  { %17737 = vmatprep.mubr.msk.f32.mxu0 %vm26_vm0, %v26086_v19  ;;  %v8375_v56 = vpop.f32.mrf.mxu1  ;;  %v10628_v39 = vld [vmem:[#allocation2 + $0x180] sm:$0xff]  ;;  %v10630_v19 = vld [vmem:[#allocation2 + $0x198] sm:$0xff] }
 0x4a2   :  { %26084 = vst [vmem:[#allocation64_spill] sm:$0xff] %v23193_v52  ;;  %v9082_v0 = vpop.f32.mrf.mxu0  ;;  %v23199_v25 = vadd.f32 %v17392_v35, %v8471_v18  ;;  %v8470_v53 = vadd.f32 %v8375_v56, %v26088_v12  ;;  %v11337_v56 = vld [vmem:[#allocation2 + $0x199] sm:$0xff]  ;;  %v10629_v52 = vld [vmem:[#allocation2 + $0x188] sm:$0xff] }
 0x4a3   :  { %v17297_v55 = vpop.f32.mrf.mxu1  ;;  %17640 = vmatmul.mubr.msk.f32.gmra.mxu1 %vm26_vm0, %v10627_v31  ;;  %v26094_v31 = vld [vmem:[#allocation84_spill] sm:$0xff] }
 0x4a4   :  { %26087 = vst [vmem:[#allocation31_spill] sm:$0xff] %v23199_v25  ;;  %v17395_v11 = vpop.f32.mrf.mxu0  ;;  %17738 = vmatmul.mubr.msk.f32.gmra.mxu0 %vm26_vm0, %v26089_v36  ;;  %v23205_v49 = vadd.f32 %v9082_v0, %v8470_v53  ;;  %v8473_v34 = vadd.f32 %v17297_v55, %v26091_v50  ;;  %17642 = vmatprep.mubr.msk.f32.mxu1 %vm26_vm0, %v10628_v39  ;;  %v26095_v0 = vld [vmem:[#allocation17_spill] sm:$0xff]  ;;  %v26096_v53 = vld [vmem:[#allocation83_spill] sm:$0xff] }
 0x4a5   :  { %17740 = vmatprep.mubr.msk.f32.mxu0 %vm26_vm0, %v26092_v14  ;;  %v8385_v35 = vpop.f32.mrf.mxu1  ;;  %v11338_v50 = vld [vmem:[#allocation2 + $0x1a1] sm:$0xff] }
 0x4a6   :  { %26090 = vst [vmem:[#allocation35_spill] sm:$0xff] %v23205_v49  ;;  %v9092_v18 = vpop.f32.mrf.mxu0  ;;  %v23211_v12 = vadd.f32 %v17395_v11, %v8473_v34  ;;  %v8472_v25 = vadd.f32 %v8385_v35, %v26094_v31  ;;  %v10631_v11 = vld [vmem:[#allocation2 + $0x1a0] sm:$0xff]  ;;  %v26097_v31 = vld [vmem:[#allocation86_spill] sm:$0xff] }
 0x4a7   :  { %v17300_v36 = vpop.f32.mrf.mxu1  ;;  %17643 = vmatmul.mubr.msk.f32.gmra.mxu1 %vm26_vm0, %v10629_v52 }
 0x4a8   :  { %26093 = vst [vmem:[#allocation92_spill] sm:$0xff] %v23211_v12  ;;  %v17398_v42 = vpop.f32.mrf.mxu0  ;;  %17741 = vmatmul.mubr.msk.f32.gmra.mxu0 %vm26_vm0, %v26095_v0  ;;  %v23217_v55 = vadd.f32 %v9092_v18, %v8472_v25  ;;  %v8475_v39 = vadd.f32 %v17300_v36, %v26096_v53  ;;  %17645 = vmatprep.mubr.msk.f32.mxu1 %vm26_vm0, %v10630_v19  ;;  %v10632_v25 = vld [vmem:[#allocation2 + $0x1e0] sm:$0xff]  ;;  %v26098_v19 = vld [vmem:[#allocation16_spill] sm:$0xff]  ;;  %v26099_v53 = vld [vmem:[#allocation85_spill] sm:$0xff] }
 0x4a9   :  { %17743 = vmatprep.mubr.msk.f32.mxu0 %vm26_vm0, %v11337_v56  ;;  %v8395_v34 = vpop.f32.mrf.mxu1 }
 0x4aa   :  { %v9102_v14 = vpop.f32.mrf.mxu0  ;;  %v23222_v35 = vadd.f32 %v17398_v42, %v8475_v39  ;;  %v8474_v12 = vadd.f32 %v8395_v34, %v26097_v31  ;;  %v10633_v34 = vld [vmem:[#allocation2 + $0x1e8] sm:$0xff] }
 0x4ab   :  { %v17303_v52 = vpop.f32.mrf.mxu1  ;;  %17646 = vmatmul.mubr.msk.f32.gmra.mxu1 %vm26_vm0, %v10631_v11 }
 0x4ac   :  { %v17401_v49 = vpop.f32.mrf.mxu0  ;;  %17744 = vmatmul.mubr.msk.f32.gmra.mxu0 %vm26_vm0, %v11338_v50  ;;  %v23227_v18 = vadd.f32 %v9102_v14, %v8474_v12  ;;  %v8477_v36 = vadd.f32 %v17303_v52, %v26098_v19  ;;  %17648 = vmatprep.mubr.msk.f32.mxu1 %vm26_vm0, %v10632_v25  ;;  %v26100_v12 = vld [vmem:[#allocation19_spill] sm:$0xff]  ;;  %v10634_v50 = vld [vmem:[#allocation2 + $0x1f8] sm:$0xff]  ;;  %v26101_v52 = vld [vmem:[#allocation88_spill] sm:$0xff] }
 0x4ad   :  { %17746 = vmatprep.mubr.msk.f32.mxu0 %vm26_vm0, %v22769_v16  ;;  %v8405_v42 = vpop.f32.mrf.mxu1 }
 0x4ae   :  { %v9112_v56 = vpop.f32.mrf.mxu0  ;;  %v23233_v0 = vadd.f32 %v17401_v49, %v8477_v36  ;;  %v8476_v39 = vadd.f32 %v8405_v42, %v26099_v53  ;;  %v10635_v42 = vld [vmem:[#allocation2 + $0x200] sm:$0xff] }
 0x4af   :  { %v17406_v11 = vpop.f32.mrf.mxu1  ;;  %17649 = vmatmul.mubr.msk.f32.gmra.mxu1 %vm26_vm0, %v10633_v34 }
 0x4b0   :  { %v17504_v31 = vpop.f32.mrf.mxu0  ;;  %17747 = vmatmul.mubr.msk.f32.gmra.mxu0 %vm26_vm0, %v26100_v12  ;;  %v23239_v14 = vadd.f32 %v9112_v56, %v8476_v39  ;;  %v9829_v25 = vadd.f32 %v17406_v11, %v26101_v52  ;;  %17651 = vmatprep.mubr.msk.f32.mxu1 %vm26_vm0, %v10634_v50  ;;  %v26102_v56 = vld [vmem:[#allocation87_spill] sm:$0xff]  ;;  %v10636_v39 = vld [vmem:[#allocation2 + $0x210] sm:$0xff]  ;;  %v26103_v12 = vld [vmem:[#allocation18_spill] sm:$0xff] }
 0x4b1   :  { %17749 = vmatprep.mubr.msk.f32.mxu0 %vm26_vm0, %v22786_v48  ;;  %v9509_v16 = vpop.f32.mrf.mxu1 }
 0x4b2   :  { %v10216_v49 = vpop.f32.mrf.mxu0  ;;  %v23245_v19 = vadd.f32 %v17504_v31, %v9829_v25  ;;  %v9828_v36 = vadd.f32 %v9509_v16, %v22788_v43  ;;  %v10637_v25 = vld [vmem:[#allocation2 + $0x218] sm:$0xff] }
 0x4b3   :  { %v17409_v53 = vpop.f32.mrf.mxu1  ;;  %17652 = vmatmul.mubr.msk.f32.gmra.mxu1 %vm26_vm0, %v10635_v42 }
 0x4b4   :  { %v17507_v34 = vpop.f32.mrf.mxu0  ;;  %17750 = vmatmul.mubr.msk.f32.gmra.mxu0 %vm26_vm0, %v26102_v56  ;;  %v23251_v11 = vadd.f32 %v10216_v49, %v9828_v36  ;;  %v9831_v50 = vadd.f32 %v17409_v53, %v26103_v12  ;;  %17654 = vmatprep.mubr.msk.f32.mxu1 %vm26_vm0, %v10636_v39  ;;  %v26104_v49 = vld [vmem:[#allocation21_spill] sm:$0xff]  ;;  %v10638_v36 = vld [vmem:[#allocation2 + $0x228] sm:$0xff]  ;;  %v26105_v56 = vld [vmem:[#allocation90_spill] sm:$0xff] }
 0x4b5   :  { %17752 = vmatprep.mubr.msk.f32.mxu0 %vm26_vm0, %v22804_v62  ;;  %v9519_v48 = vpop.f32.mrf.mxu1 }
 0x4b6   :  { %v10226_v43 = vpop.f32.mrf.mxu0  ;;  %v23257_v31 = vadd.f32 %v17507_v34, %v9831_v50  ;;  %v9830_v52 = vadd.f32 %v9519_v48, %v22806_v3  ;;  %v10639_v50 = vld [vmem:[#allocation2 + $0x230] sm:$0xff] }
 0x4b7   :  { %v17412_v16 = vpop.f32.mrf.mxu1  ;;  %17655 = vmatmul.mubr.msk.f32.gmra.mxu1 %vm26_vm0, %v10637_v25 }
 0x4b8   :  { %v17510_v42 = vpop.f32.mrf.mxu0  ;;  %17753 = vmatmul.mubr.msk.f32.gmra.mxu0 %vm26_vm0, %v26104_v49  ;;  %v23263_v53 = vadd.f32 %v10226_v43, %v9830_v52  ;;  %v9833_v39 = vadd.f32 %v17412_v16, %v26105_v56  ;;  %17657 = vmatprep.mubr.msk.f32.mxu1 %vm26_vm0, %v10638_v36  ;;  %v26106_v43 = vld [vmem:[#allocation89_spill] sm:$0xff]  ;;  %v10640_v52 = vld [vmem:[#allocation2 + $0x240] sm:$0xff]  ;;  %v26107_v49 = vld [vmem:[#allocation20_spill] sm:$0xff] }
 0x4b9   :  { %17755 = vmatprep.mubr.msk.f32.mxu0 %vm26_vm0, %v22822_v10  ;;  %v9529_v62 = vpop.f32.mrf.mxu1 }
 0x4ba   :  { %v10236_v3 = vpop.f32.mrf.mxu0  ;;  %v23269_v34 = vadd.f32 %v17510_v42, %v9833_v39  ;;  %v9832_v12 = vadd.f32 %v9529_v62, %v22824_v61  ;;  %v10641_v39 = vld [vmem:[#allocation2 + $0x248] sm:$0xff] }
 0x4bb   :  { %v17415_v48 = vpop.f32.mrf.mxu1  ;;  %17658 = vmatmul.mubr.msk.f32.gmra.mxu1 %vm26_vm0, %v10639_v50 }
 0x4bc   :  { %v17513_v25 = vpop.f32.mrf.mxu0  ;;  %17756 = vmatmul.mubr.msk.f32.gmra.mxu0 %vm26_vm0, %v26106_v43  ;;  %v23275_v16 = vadd.f32 %v10236_v3, %v9832_v12  ;;  %v9835_v36 = vadd.f32 %v17415_v48, %v26107_v49  ;;  %17660 = vmatprep.mubr.msk.f32.mxu1 %vm26_vm0, %v10640_v52  ;;  %v26108_v3 = vld [vmem:[#allocation91_spill] sm:$0xff]  ;;  %v10642_v12 = vld [vmem:[#allocation2 + $0x258] sm:$0xff]  ;;  %v26109_v43 = vld [vmem:[#allocation93_spill] sm:$0xff] }
 0x4bd   :  { %17758 = vmatprep.mubr.msk.f32.mxu0 %vm26_vm0, %v22840_v30  ;;  %v9539_v10 = vpop.f32.mrf.mxu1 }
 0x4be   :  { %v10246_v61 = vpop.f32.mrf.mxu0  ;;  %v23281_v42 = vadd.f32 %v17513_v25, %v9835_v36  ;;  %v9834_v56 = vadd.f32 %v9539_v10, %v22842_v28  ;;  %v10643_v36 = vld [vmem:[#allocation2 + $0x260] sm:$0xff] }
 0x4bf   :  { %v17418_v62 = vpop.f32.mrf.mxu1  ;;  %17661 = vmatmul.mubr.msk.f32.gmra.mxu1 %vm26_vm0, %v10641_v39 }
 0x4c0   :  { %v17516_v50 = vpop.f32.mrf.mxu0  ;;  %17759 = vmatmul.mubr.msk.f32.gmra.mxu0 %vm26_vm0, %v26108_v3  ;;  %v23287_v48 = vadd.f32 %v10246_v61, %v9834_v56  ;;  %v9837_v52 = vadd.f32 %v17418_v62, %v26109_v43  ;;  %17663 = vmatprep.mubr.msk.f32.mxu1 %vm26_vm0, %v10642_v12  ;;  %v26110_v61 = vld [vmem:[#allocation50_spill] sm:$0xff]  ;;  %v10644_v56 = vld [vmem:[#allocation2 + $0x270] sm:$0xff] }
 0x4c1   :  { %17761 = vmatprep.mubr.msk.f32.mxu0 %vm26_vm0, %v22858_v27  ;;  %v9549_v30 = vpop.f32.mrf.mxu1  ;;  %v26111_v3 = vld [vmem:[#allocation46_spill] sm:$0xff] }
 0x4c2   :  { %v10256_v28 = vpop.f32.mrf.mxu0  ;;  %v23293_v25 = vadd.f32 %v17516_v50, %v9837_v52  ;;  %v9836_v49 = vadd.f32 %v9549_v30, %v22860_v46  ;;  %v10645_v52 = vld [vmem:[#allocation2 + $0x278] sm:$0xff] }
 0x4c3   :  { %v17421_v10 = vpop.f32.mrf.mxu1  ;;  %17664 = vmatmul.mubr.msk.f32.gmra.mxu1 %vm26_vm0, %v10643_v36 }
 0x4c4   :  { %v17519_v39 = vpop.f32.mrf.mxu0  ;;  %17762 = vmatmul.mubr.msk.f32.gmra.mxu0 %vm26_vm0, %v26110_v61  ;;  %v23299_v62 = vadd.f32 %v10256_v28, %v9836_v49  ;;  %v9839_v12 = vadd.f32 %v17421_v10, %v26111_v3  ;;  %17666 = vmatprep.mubr.msk.f32.mxu1 %vm26_vm0, %v10644_v56  ;;  %v26112_v28 = vld [vmem:[#allocation23_spill] sm:$0xff]  ;;  %v10646_v49 = vld [vmem:[#allocation2 + $0x288] sm:$0xff]  ;;  %v26113_v61 = vld [vmem:[#allocation49_spill] sm:$0xff] }
 0x4c5   :  { %17764 = vmatprep.mubr.msk.f32.mxu0 %vm26_vm0, %v22876_v40  ;;  %v9559_v27 = vpop.f32.mrf.mxu1 }
 0x4c6   :  { %v10266_v46 = vpop.f32.mrf.mxu0  ;;  %v23305_v50 = vadd.f32 %v17519_v39, %v9839_v12  ;;  %v9838_v43 = vadd.f32 %v9559_v27, %v22878_v5  ;;  %v10647_v12 = vld [vmem:[#allocation2 + $0x290] sm:$0xff] }
 0x4c7   :  { %v17424_v30 = vpop.f32.mrf.mxu1  ;;  %17667 = vmatmul.mubr.msk.f32.gmra.mxu1 %vm26_vm0, %v10645_v52 }
 0x4c8   :  { %v17522_v36 = vpop.f32.mrf.mxu0  ;;  %17765 = vmatmul.mubr.msk.f32.gmra.mxu0 %vm26_vm0, %v26112_v28  ;;  %v23311_v10 = vadd.f32 %v10266_v46, %v9838_v43  ;;  %v9841_v56 = vadd.f32 %v17424_v30, %v26113_v61  ;;  %17669 = vmatprep.mubr.msk.f32.mxu1 %vm26_vm0, %v10646_v49  ;;  %v26114_v46 = vld [vmem:[#allocation25_spill] sm:$0xff]  ;;  %v10648_v43 = vld [vmem:[#allocation2 + $0x2a0] sm:$0xff] }
 0x4c9   :  { %17767 = vmatprep.mubr.msk.f32.mxu0 %vm26_vm0, %v22894_v47  ;;  %v9569_v40 = vpop.f32.mrf.mxu1  ;;  %v26115_v28 = vld [vmem:[#allocation53_spill] sm:$0xff] }
 0x4ca   :  { %v10276_v5 = vpop.f32.mrf.mxu0  ;;  %v23317_v39 = vadd.f32 %v17522_v36, %v9841_v56  ;;  %v9840_v3 = vadd.f32 %v9569_v40, %v22896_v41  ;;  %v10649_v56 = vld [vmem:[#allocation2 + $0x2a8] sm:$0xff] }
 0x4cb   :  { %v17427_v27 = vpop.f32.mrf.mxu1  ;;  %17670 = vmatmul.mubr.msk.f32.gmra.mxu1 %vm26_vm0, %v10647_v12 }
 0x4cc   :  { %v17525_v52 = vpop.f32.mrf.mxu0  ;;  %17768 = vmatmul.mubr.msk.f32.gmra.mxu0 %vm26_vm0, %v26114_v46  ;;  %v23323_v30 = vadd.f32 %v10276_v5, %v9840_v3  ;;  %v9843_v49 = vadd.f32 %v17427_v27, %v26115_v28  ;;  %17672 = vmatprep.mubr.msk.f32.mxu1 %vm26_vm0, %v10648_v43  ;;  %v26116_v5 = vld [vmem:[#allocation22_spill] sm:$0xff]  ;;  %v26117_v46 = vld [vmem:[#allocation52_spill] sm:$0xff] }
 0x4cd   :  { %17770 = vmatprep.mubr.msk.f32.mxu0 %vm26_vm0, %v22912_v21  ;;  %v9579_v47 = vpop.f32.mrf.mxu1  ;;  %v10650_v3 = vld [vmem:[#allocation2 + $0x2b8] sm:$0xff] }
 0x4ce   :  { %v10286_v41 = vpop.f32.mrf.mxu0  ;;  %v23329_v36 = vadd.f32 %v17525_v52, %v9843_v49  ;;  %v9842_v61 = vadd.f32 %v9579_v47, %v22914_v54  ;;  %v10651_v49 = vld [vmem:[#allocation2 + $0x2c0] sm:$0xff] }
 0x4cf   :  { %v17430_v40 = vpop.f32.mrf.mxu1  ;;  %17673 = vmatmul.mubr.msk.f32.gmra.mxu1 %vm26_vm0, %v10649_v56 }
 0x4d0   :  { %v17528_v12 = vpop.f32.mrf.mxu0  ;;  %17771 = vmatmul.mubr.msk.f32.gmra.mxu0 %vm26_vm0, %v26116_v5  ;;  %v23335_v27 = vadd.f32 %v10286_v41, %v9842_v61  ;;  %v9845_v43 = vadd.f32 %v17430_v40, %v26117_v46  ;;  %17675 = vmatprep.mubr.msk.f32.mxu1 %vm26_vm0, %v10650_v3  ;;  %v26118_v41 = vld [vmem:[#allocation55_spill] sm:$0xff]  ;;  %v10652_v61 = vld [vmem:[#allocation2 + $0x2d0] sm:$0xff] }
 0x4d1   :  { %17773 = vmatprep.mubr.msk.f32.mxu0 %vm26_vm0, %v22930_v38  ;;  %v9589_v21 = vpop.f32.mrf.mxu1  ;;  %v26119_v5 = vld [vmem:[#allocation47_spill] sm:$0xff] }
 0x4d2   :  { %v10296_v54 = vpop.f32.mrf.mxu0  ;;  %v23341_v52 = vadd.f32 %v17528_v12, %v9845_v43  ;;  %v9844_v28 = vadd.f32 %v9589_v21, %v22932_v26  ;;  %v10653_v43 = vld [vmem:[#allocation2 + $0x2d8] sm:$0xff] }
 0x4d3   :  { %v17433_v47 = vpop.f32.mrf.mxu1  ;;  %17676 = vmatmul.mubr.msk.f32.gmra.mxu1 %vm26_vm0, %v10651_v49 }
 0x4d4   :  { %v17531_v56 = vpop.f32.mrf.mxu0  ;;  %17774 = vmatmul.mubr.msk.f32.gmra.mxu0 %vm26_vm0, %v26118_v41  ;;  %v23347_v40 = vadd.f32 %v10296_v54, %v9844_v28  ;;  %v9847_v3 = vadd.f32 %v17433_v47, %v26119_v5  ;;  %17678 = vmatprep.mubr.msk.f32.mxu1 %vm26_vm0, %v10652_v61  ;;  %v26121_v54 = vld [vmem:[#allocation24_spill] sm:$0xff]  ;;  %v26122_v41 = vld [vmem:[#allocation54_spill] sm:$0xff] }
 0x4d5   :  { %17776 = vmatprep.mubr.msk.f32.mxu0 %vm26_vm0, %v22948_v60  ;;  %v9599_v38 = vpop.f32.mrf.mxu1  ;;  %v10654_v28 = vld [vmem:[#allocation2 + $0x2e8] sm:$0xff] }
 0x4d6   :  { %v10306_v26 = vpop.f32.mrf.mxu0  ;;  %v23353_v12 = vadd.f32 %v17531_v56, %v9847_v3  ;;  %v9846_v46 = vadd.f32 %v9599_v38, %v22950_v13  ;;  %v26124_v5 = vld [vmem:[#allocation28_spill] sm:$0xff]  ;;  %v10655_v38 = vld [vmem:[#allocation2 + $0x2f0] sm:$0xff] }
 0x4d7   :  { %v17436_v21 = vpop.f32.mrf.mxu1  ;;  %17679 = vmatmul.mubr.msk.f32.gmra.mxu1 %vm26_vm0, %v10653_v43 }
 0x4d8   :  { %26120 = vst [vmem:[#allocation33_spill] sm:$0xff] %v23353_v12  ;;  %v17534_v49 = vpop.f32.mrf.mxu0  ;;  %17777 = vmatmul.mubr.msk.f32.gmra.mxu0 %vm26_vm0, %v26121_v54  ;;  %v23359_v47 = vadd.f32 %v10306_v26, %v9846_v46  ;;  %v9849_v61 = vadd.f32 %v17436_v21, %v26122_v41  ;;  %17681 = vmatprep.mubr.msk.f32.mxu1 %vm26_vm0, %v10654_v28  ;;  %v26125_v26 = vld [vmem:[#allocation56_spill] sm:$0xff]  ;;  %v10656_v46 = vld [vmem:[#allocation2 + $0x300] sm:$0xff]  ;;  %v26127_v54 = vld [vmem:[#allocation57_spill] sm:$0xff] }
 0x4d9   :  { %17779 = vmatprep.mubr.msk.f32.mxu0 %vm26_vm0, %v22966_v17  ;;  %v9609_v60 = vpop.f32.mrf.mxu1 }
 0x4da   :  { %v10316_v13 = vpop.f32.mrf.mxu0  ;;  %v23365_v56 = vadd.f32 %v17534_v49, %v9849_v61  ;;  %v9848_v3 = vadd.f32 %v9609_v60, %v26124_v5  ;;  %v26129_v61 = vld [vmem:[#allocation26_spill] sm:$0xff]  ;;  %v10657_v5 = vld [vmem:[#allocation2 + $0x308] sm:$0xff] }
 0x4db   :  { %v17439_v43 = vpop.f32.mrf.mxu1  ;;  %17682 = vmatmul.mubr.msk.f32.gmra.mxu1 %vm26_vm0, %v10655_v38 }
 0x4dc   :  { %26123 = vst [vmem:[#allocation67_spill] sm:$0xff] %v23365_v56  ;;  %v17537_v12 = vpop.f32.mrf.mxu0  ;;  %17780 = vmatmul.mubr.msk.f32.gmra.mxu0 %vm26_vm0, %v26125_v26  ;;  %v23371_v21 = vadd.f32 %v10316_v13, %v9848_v3  ;;  %v9851_v28 = vadd.f32 %v17439_v43, %v26127_v54  ;;  %17684 = vmatprep.mubr.msk.f32.mxu1 %vm26_vm0, %v10656_v46  ;;  %v26130_v13 = vld [vmem:[#allocation59_spill] sm:$0xff]  ;;  %v10658_v3 = vld [vmem:[#allocation2 + $0x318] sm:$0xff]  ;;  %v26131_v26 = vld [vmem:[#allocation29_spill] sm:$0xff] }
 0x4dd   :  { %17782 = vmatprep.mubr.msk.f32.mxu0 %vm26_vm0, %v22984_v22  ;;  %v9619_v17 = vpop.f32.mrf.mxu1  ;;  %v26132_v22 = vld [vmem:[#allocation58_spill] sm:$0xff] }
 0x4de   :  { %26126 = vst [vmem:[#allocation65_spill] sm:$0xff] %v23371_v21  ;;  %v10326_v49 = vpop.f32.mrf.mxu0  ;;  %v23377_v41 = vadd.f32 %v17537_v12, %v9851_v28  ;;  %v9850_v60 = vadd.f32 %v9619_v17, %v26129_v61  ;;  %v26134_v17 = vld [vmem:[#allocation27_spill] sm:$0xff] }
 0x4df   :  { %v17442_v38 = vpop.f32.mrf.mxu1  ;;  %17685 = vmatmul.mubr.msk.f32.gmra.mxu1 %vm26_vm0, %v10657_v5  ;;  %v10659_v5 = vld [vmem:[#allocation2 + $0x320] sm:$0xff] }
 0x4e0   :  { %26128 = vst [vmem:[#allocation3_spill] sm:$0xff] %v23377_v41  ;;  %v17540_v56 = vpop.f32.mrf.mxu0  ;;  %17783 = vmatmul.mubr.msk.f32.gmra.mxu0 %vm26_vm0, %v26130_v13  ;;  %v23383_v43 = vadd.f32 %v10326_v49, %v9850_v60  ;;  %v9853_v46 = vadd.f32 %v17442_v38, %v26131_v26  ;;  %17687 = vmatprep.mubr.msk.f32.mxu1 %vm26_vm0, %v10658_v3  ;;  %v26135_v49 = vld [vmem:[#allocation62_spill] sm:$0xff]  ;;  %v10660_v60 = vld [vmem:[#allocation2 + $0x330] sm:$0xff] }
 0x4e1   :  { %17785 = vmatprep.mubr.msk.f32.mxu0 %vm26_vm0, %v26132_v22  ;;  %v9629_v12 = vpop.f32.mrf.mxu1  ;;  %v26136_v13 = vld [vmem:[#allocation30_spill] sm:$0xff]  ;;  %v11369_v22 = vld [vmem:[#allocation2 + $0x349] sm:$0xff] }
 0x4e2   :  { %v10336_v54 = vpop.f32.mrf.mxu0  ;;  %v23389_v28 = vadd.f32 %v17540_v56, %v9853_v46  ;;  %v9852_v61 = vadd.f32 %v9629_v12, %v26134_v17  ;;  %v10662_v46 = vld [vmem:[#allocation2 + $0x348] sm:$0xff] }
 0x4e3   :  { %v17445_v41 = vpop.f32.mrf.mxu1  ;;  %17688 = vmatmul.mubr.msk.f32.gmra.mxu1 %vm26_vm0, %v10659_v5  ;;  %v10661_v5 = vld [vmem:[#allocation2 + $0x338] sm:$0xff] }
 0x4e4   :  { %26133 = vst [vmem:[#allocation69_spill] sm:$0xff] %v23389_v28  ;;  %v17543_v21 = vpop.f32.mrf.mxu0  ;;  %17786 = vmatmul.mubr.msk.f32.gmra.mxu0 %vm26_vm0, %v26135_v49  ;;  %v23395_v38 = vadd.f32 %v10336_v54, %v9852_v61  ;;  %v9855_v3 = vadd.f32 %v17445_v41, %v26136_v13  ;;  %17690 = vmatprep.mubr.msk.f32.mxu1 %vm26_vm0, %v10660_v60  ;;  %v26137_v54 = vld [vmem:[#allocation60_spill] sm:$0xff]  ;;  %v10663_v61 = vld [vmem:[#allocation2 + $0x350] sm:$0xff] }
 0x4e5   :  { %17788 = vmatprep.mubr.msk.f32.mxu0 %vm26_vm0, %v23020_v45  ;;  %v9639_v56 = vpop.f32.mrf.mxu1 }
 0x4e6   :  { %v10346_v26 = vpop.f32.mrf.mxu0  ;;  %v23401_v12 = vadd.f32 %v17543_v21, %v9855_v3  ;;  %v9854_v17 = vadd.f32 %v9639_v56, %v23022_v24  ;;  %v11370_v21 = vld [vmem:[#allocation2 + $0x351] sm:$0xff] }
 0x4e7   :  { %v17448_v49 = vpop.f32.mrf.mxu1  ;;  %17691 = vmatmul.mubr.msk.f32.gmra.mxu1 %vm26_vm0, %v10661_v5 }
 0x4e8   :  { %v17546_v28 = vpop.f32.mrf.mxu0  ;;  %17789 = vmatmul.mubr.msk.f32.gmra.mxu0 %vm26_vm0, %v23031_v23  ;;  %v23407_v41 = vadd.f32 %v10346_v26, %v9854_v17  ;;  %v9857_v45 = vadd.f32 %v17448_v49, %v26137_v54  ;;  %17693 = vmatprep.mubr.msk.f32.mxu1 %vm26_vm0, %v10662_v46  ;;  %v12014_v23 = vld [vmem:[#allocation2 + $0x32] sm:$0xff] }
 0x4e9   :  { %17791 = vmatprep.mubr.msk.f32.mxu0 %vm26_vm0, %v11369_v22  ;;  %v9649_v60 = vpop.f32.mrf.mxu1 }
 0x4ea   :  { %v10356_v24 = vpop.f32.mrf.mxu0  ;;  %v23412_v13 = vadd.f32 %v17546_v28, %v9857_v45  ;;  %v9856_v3 = vadd.f32 %v9649_v60, %v23036_v6  ;;  %v12015_v6 = vld [vmem:[#allocation2 + $0x3a] sm:$0xff] }
 0x4eb   :  { %v17451_v56 = vpop.f32.mrf.mxu1  ;;  %17694 = vmatmul.mubr.msk.f32.gmra.mxu1 %vm26_vm0, %v10663_v61  ;;  %v12016_v61 = vld [vmem:[#allocation2 + $0x4a] sm:$0xff] }
 0x4ec   :  { %v17549_v5 = vpop.f32.mrf.mxu0  ;;  %17792 = vmatmul.mubr.msk.f32.gmra.mxu0 %vm26_vm0, %v11370_v21  ;;  %v23417_v26 = vadd.f32 %v10356_v24, %v9856_v3  ;;  %v9859_v46 = vadd.f32 %v17451_v56, %v23042_v58  ;;  %17796 = vmatprep.mubr.msk.f32.mxu1 %vm26_vm0, %v12014_v23 }
 0x4ed   :  { %v9659_v22 = vpop.f32.mrf.mxu1 }
 0x4ee   :  { %v10366_v17 = vpop.f32.mrf.mxu0  ;;  %v23421_v49 = vadd.f32 %v17549_v5, %v9859_v46  ;;  %v9858_v28 = vadd.f32 %v9659_v22, %v23048_v4  ;;  %v12017_v5 = vld [vmem:[#allocation2 + $0x52] sm:$0xff]  ;;  %v12018_v46 = vld [vmem:[#allocation2 + $0x62] sm:$0xff] }
 0x4ef   :  { %v17454_v54 = vpop.f32.mrf.mxu1  ;;  %17797 = vmatmul.mubr.msk.f32.vlgmr.msra.gmra.mxu1 %vm26_vm0, %v12015_v6 }
 0x4f0   :  { %v17552_v45 = vpop.f32.mrf.mxu0  ;;  %v23425_v60 = vadd.f32 %v10366_v17, %v9858_v28  ;;  %v9861_v21 = vadd.f32 %v17454_v54, %v23055_v29  ;;  %17799 = vmatprep.mubr.msk.f32.mxu1 %vm26_vm0, %v12016_v61 }
 0x4f1   :  { %v9669_v58 = vpop.f32.mrf.mxu1 }
 0x4f2   :  { %v10376_v24 = vpop.f32.mrf.mxu0  ;;  %v23429_v3 = vadd.f32 %v17552_v45, %v9861_v21  ;;  %v9860_v56 = vadd.f32 %v9669_v58, %v23061_v9  ;;  %v12019_v45 = vld [vmem:[#allocation2 + $0x6a] sm:$0xff]  ;;  %v12020_v21 = vld [vmem:[#allocation2 + $0x7a] sm:$0xff] }
 0x4f3   :  { %v17457_v4 = vpop.f32.mrf.mxu1  ;;  %17800 = vmatmul.mubr.msk.f32.gmra.mxu1 %vm26_vm0, %v12017_v5 }
 0x4f4   :  { %v17555_v23 = vpop.f32.mrf.mxu0  ;;  %v23433_v22 = vadd.f32 %v10376_v24, %v9860_v56  ;;  %v9863_v17 = vadd.f32 %v17457_v4, %v23067_v44  ;;  %17802 = vmatprep.mubr.msk.f32.mxu1 %vm26_vm0, %v12018_v46 }
 0x4f5   :  { %v9679_v29 = vpop.f32.mrf.mxu1 }
 0x4f6   :  { %v10386_v28 = vpop.f32.mrf.mxu0  ;;  %v23437_v6 = vadd.f32 %v17555_v23, %v9863_v17  ;;  %v9862_v54 = vadd.f32 %v9679_v29, %v23073_v8  ;;  %v12021_v23 = vld [vmem:[#allocation2 + $0x82] sm:$0xff]  ;;  %v12022_v17 = vld [vmem:[#allocation2 + $0x92] sm:$0xff] }
 0x4f7   :  { %v17460_v9 = vpop.f32.mrf.mxu1  ;;  %17803 = vmatmul.mubr.msk.f32.gmra.mxu1 %vm26_vm0, %v12019_v45 }
 0x4f8   :  { %v17558_v61 = vpop.f32.mrf.mxu0  ;;  %v23441_v58 = vadd.f32 %v10386_v28, %v9862_v54  ;;  %v9865_v24 = vadd.f32 %v17460_v9, %v23079_v15  ;;  %17805 = vmatprep.mubr.msk.f32.mxu1 %vm26_vm0, %v12020_v21 }
 0x4f9   :  { %v9689_v44 = vpop.f32.mrf.mxu1 }
 0x4fa   :  { %v10396_v56 = vpop.f32.mrf.mxu0  ;;  %v23445_v5 = vadd.f32 %v17558_v61, %v9865_v24  ;;  %v9864_v4 = vadd.f32 %v9689_v44, %v23085_v20  ;;  %v12023_v61 = vld [vmem:[#allocation2 + $0x9a] sm:$0xff]  ;;  %v12024_v24 = vld [vmem:[#allocation2 + $0xaa] sm:$0xff] }
 0x4fb   :  { %v17463_v8 = vpop.f32.mrf.mxu1  ;;  %17806 = vmatmul.mubr.msk.f32.gmra.mxu1 %vm26_vm0, %v12021_v23 }
 0x4fc   :  { %v17561_v46 = vpop.f32.mrf.mxu0  ;;  %v23449_v29 = vadd.f32 %v10396_v56, %v9864_v4  ;;  %v9867_v28 = vadd.f32 %v17463_v8, %v23091_v7  ;;  %17808 = vmatprep.mubr.msk.f32.mxu1 %vm26_vm0, %v12022_v17 }
 0x4fd   :  { %v9699_v15 = vpop.f32.mrf.mxu1 }
 0x4fe   :  { %v10406_v54 = vpop.f32.mrf.mxu0  ;;  %v23453_v45 = vadd.f32 %v17561_v46, %v9867_v28  ;;  %v9866_v9 = vadd.f32 %v9699_v15, %v23097_v63  ;;  %v12025_v46 = vld [vmem:[#allocation2 + $0xb2] sm:$0xff]  ;;  %v12026_v28 = vld [vmem:[#allocation2 + $0xc2] sm:$0xff] }
 0x4ff   :  { %v17466_v20 = vpop.f32.mrf.mxu1  ;;  %17809 = vmatmul.mubr.msk.f32.gmra.mxu1 %vm26_vm0, %v12023_v61 }
 0x500   :  { %v17564_v21 = vpop.f32.mrf.mxu0  ;;  %v23457_v44 = vadd.f32 %v10406_v54, %v9866_v9  ;;  %v9869_v56 = vadd.f32 %v17466_v20, %v23103_v59  ;;  %17811 = vmatprep.mubr.msk.f32.mxu1 %vm26_vm0, %v12024_v24 }
 0x501   :  { %v9709_v7 = vpop.f32.mrf.mxu1 }
 0x502   :  { %v10416_v4 = vpop.f32.mrf.mxu0  ;;  %v23461_v23 = vadd.f32 %v17564_v21, %v9869_v56  ;;  %v9868_v8 = vadd.f32 %v9709_v7, %v23109_v57  ;;  %v12027_v21 = vld [vmem:[#allocation2 + $0xca] sm:$0xff]  ;;  %v12028_v56 = vld [vmem:[#allocation2 + $0xda] sm:$0xff] }
 0x503   :  { %v17469_v63 = vpop.f32.mrf.mxu1  ;;  %17812 = vmatmul.mubr.msk.f32.gmra.mxu1 %vm26_vm0, %v12025_v46 }
 0x504   :  { %v17567_v17 = vpop.f32.mrf.mxu0  ;;  %v23465_v15 = vadd.f32 %v10416_v4, %v9868_v8  ;;  %v9871_v54 = vadd.f32 %v17469_v63, %v23115_v32  ;;  %17814 = vmatprep.mubr.msk.f32.mxu1 %vm26_vm0, %v12026_v28 }
 0x505   :  { %v9719_v59 = vpop.f32.mrf.mxu1 }
 0x506   :  { %v10426_v9 = vpop.f32.mrf.mxu0  ;;  %v23469_v61 = vadd.f32 %v17567_v17, %v9871_v54  ;;  %v9870_v20 = vadd.f32 %v9719_v59, %v23121_v1  ;;  %v12029_v17 = vld [vmem:[#allocation2 + $0xe2] sm:$0xff]  ;;  %v12030_v54 = vld [vmem:[#allocation2 + $0xf2] sm:$0xff] }
 0x507   :  { %v17472_v57 = vpop.f32.mrf.mxu1  ;;  %17815 = vmatmul.mubr.msk.f32.gmra.mxu1 %vm26_vm0, %v12027_v21 }
 0x508   :  { %v17570_v24 = vpop.f32.mrf.mxu0  ;;  %v23473_v7 = vadd.f32 %v10426_v9, %v9870_v20  ;;  %v9873_v4 = vadd.f32 %v17472_v57, %v23127_v51  ;;  %17817 = vmatprep.mubr.msk.f32.mxu1 %vm26_vm0, %v12028_v56 }
 0x509   :  { %v9729_v32 = vpop.f32.mrf.mxu1 }
 0x50a   :  { %v10436_v8 = vpop.f32.mrf.mxu0  ;;  %v23477_v46 = vadd.f32 %v17570_v24, %v9873_v4  ;;  %v9872_v63 = vadd.f32 %v9729_v32, %v23133_v33  ;;  %v12031_v24 = vld [vmem:[#allocation2 + $0xfa] sm:$0xff]  ;;  %v12032_v4 = vld [vmem:[#allocation2 + $0x10a] sm:$0xff] }
 0x50b   :  { %v17475_v1 = vpop.f32.mrf.mxu1  ;;  %17818 = vmatmul.mubr.msk.f32.gmra.mxu1 %vm26_vm0, %v12029_v17 }
 0x50c   :  { %v17573_v28 = vpop.f32.mrf.mxu0  ;;  %v23481_v59 = vadd.f32 %v10436_v8, %v9872_v63  ;;  %v9875_v9 = vadd.f32 %v17475_v1, %v23139_v37  ;;  %17820 = vmatprep.mubr.msk.f32.mxu1 %vm26_vm0, %v12030_v54  ;;  %v26140_v8 = vld [vmem:[#allocation76_spill] sm:$0xff] }
 0x50d   :  { %v9739_v51 = vpop.f32.mrf.mxu1 }
 0x50e   :  { %v10446_v20 = vpop.f32.mrf.mxu0  ;;  %v23485_v21 = vadd.f32 %v17573_v28, %v9875_v9  ;;  %v9874_v57 = vadd.f32 %v9739_v51, %v23145_v2  ;;  %v26142_v28 = vld [vmem:[#allocation32_spill] sm:$0xff]  ;;  %v12033_v9 = vld [vmem:[#allocation2 + $0x112] sm:$0xff] }
 0x50f   :  { %v17478_v33 = vpop.f32.mrf.mxu1  ;;  %17821 = vmatmul.mubr.msk.f32.gmra.mxu1 %vm26_vm0, %v12031_v24 }
 0x510   :  { %26138 = vst [vmem:[#allocation68_spill] sm:$0xff] %v23485_v21  ;;  %v17576_v56 = vpop.f32.mrf.mxu0  ;;  %v23489_v32 = vadd.f32 %v10446_v20, %v9874_v57  ;;  %v9877_v63 = vadd.f32 %v17478_v33, %v26140_v8  ;;  %17823 = vmatprep.mubr.msk.f32.mxu1 %vm26_vm0, %v12032_v4  ;;  %v12034_v21 = vld [vmem:[#allocation2 + $0x122] sm:$0xff] }
 0x511   :  { %v9749_v37 = vpop.f32.mrf.mxu1  ;;  %v26144_v20 = vld [vmem:[#allocation63_spill] sm:$0xff] }
 0x512   :  { %26139 = vst [vmem:[#allocation5_spill] sm:$0xff] %v23489_v32  ;;  %v10456_v17 = vpop.f32.mrf.mxu0  ;;  %v23493_v1 = vadd.f32 %v17576_v56, %v9877_v63  ;;  %v9876_v54 = vadd.f32 %v9749_v37, %v26142_v28  ;;  %v26146_v56 = vld [vmem:[#allocation61_spill] sm:$0xff]  ;;  %v12036_v32 = vld [vmem:[#allocation2 + $0x13a] sm:$0xff] }
 0x513   :  { %v17481_v2 = vpop.f32.mrf.mxu1  ;;  %17824 = vmatmul.mubr.msk.f32.gmra.mxu1 %vm26_vm0, %v12033_v9 }
 0x514   :  { %26141 = vst [vmem:[#allocation36_spill] sm:$0xff] %v23493_v1  ;;  %v17579_v51 = vpop.f32.mrf.mxu0  ;;  %v23497_v24 = vadd.f32 %v10456_v17, %v9876_v54  ;;  %v9879_v57 = vadd.f32 %v17481_v2, %v26144_v20  ;;  %17826 = vmatprep.mubr.msk.f32.mxu1 %vm26_vm0, %v12034_v21  ;;  %v12035_v1 = vld [vmem:[#allocation2 + $0x12a] sm:$0xff] }
 0x515   :  { %v9759_v33 = vpop.f32.mrf.mxu1  ;;  %v26148_v17 = vld [vmem:[#allocation77_spill] sm:$0xff] }
 0x516   :  { %26143 = vst [vmem:[#allocation37_spill] sm:$0xff] %v23497_v24  ;;  %v10466_v4 = vpop.f32.mrf.mxu0  ;;  %v23501_v8 = vadd.f32 %v17579_v51, %v9879_v57  ;;  %v9878_v63 = vadd.f32 %v9759_v33, %v26146_v56  ;;  %v26150_v51 = vld [vmem:[#allocation34_spill] sm:$0xff] }
 0x517   :  { %v17484_v37 = vpop.f32.mrf.mxu1  ;;  %17827 = vmatmul.mubr.msk.f32.gmra.mxu1 %vm26_vm0, %v12035_v1  ;;  %v12038_v24 = vld [vmem:[#allocation2 + $0x152] sm:$0xff] }
 0x518   :  { %26145 = vst [vmem:[#allocation4_spill] sm:$0xff] %v23501_v8  ;;  %v17582_v28 = vpop.f32.mrf.mxu0  ;;  %v23505_v9 = vadd.f32 %v10466_v4, %v9878_v63  ;;  %v9881_v54 = vadd.f32 %v17484_v37, %v26148_v17  ;;  %17829 = vmatprep.mubr.msk.f32.mxu1 %vm26_vm0, %v12036_v32  ;;  %v12037_v8 = vld [vmem:[#allocation2 + $0x142] sm:$0xff]  ;;  %v26152_v4 = vld [vmem:[#allocation66_spill] sm:$0xff] }
 0x519   :  { %v9769_v2 = vpop.f32.mrf.mxu1 }
 0x51a   :  { %26147 = vst [vmem:[#allocation38_spill] sm:$0xff] %v23505_v9  ;;  %v10476_v21 = vpop.f32.mrf.mxu0  ;;  %v23509_v20 = vadd.f32 %v17582_v28, %v9881_v54  ;;  %v9880_v57 = vadd.f32 %v9769_v2, %v26150_v51  ;;  %v26154_v28 = vld [vmem:[#allocation64_spill] sm:$0xff] }
 0x51b   :  { %v17487_v33 = vpop.f32.mrf.mxu1  ;;  %17830 = vmatmul.mubr.msk.f32.gmra.mxu1 %vm26_vm0, %v12037_v8  ;;  %v12040_v9 = vld [vmem:[#allocation2 + $0x16a] sm:$0xff] }
 0x51c   :  { %26149 = vst [vmem:[#allocation40_spill] sm:$0xff] %v23509_v20  ;;  %v17585_v56 = vpop.f32.mrf.mxu0  ;;  %v23513_v1 = vadd.f32 %v10476_v21, %v9880_v57  ;;  %v9883_v63 = vadd.f32 %v17487_v33, %v26152_v4  ;;  %17832 = vmatprep.mubr.msk.f32.mxu1 %vm26_vm0, %v12038_v24  ;;  %v12039_v20 = vld [vmem:[#allocation2 + $0x15a] sm:$0xff] }
 0x51d   :  { %v9779_v37 = vpop.f32.mrf.mxu1  ;;  %v26156_v21 = vld [vmem:[#allocation31_spill] sm:$0xff] }
 0x51e   :  { %26151 = vst [vmem:[#allocation71_spill] sm:$0xff] %v23513_v1  ;;  %v10486_v32 = vpop.f32.mrf.mxu0  ;;  %v23517_v17 = vadd.f32 %v17585_v56, %v9883_v63  ;;  %v9882_v54 = vadd.f32 %v9779_v37, %v26154_v28  ;;  %v26157_v56 = vld [vmem:[#allocation35_spill] sm:$0xff] }
 0x51f   :  { %v17490_v2 = vpop.f32.mrf.mxu1  ;;  %17833 = vmatmul.mubr.msk.f32.gmra.mxu1 %vm26_vm0, %v12039_v20  ;;  %v12042_v1 = vld [vmem:[#allocation2 + $0x182] sm:$0xff] }
 0x520   :  { %26153 = vst [vmem:[#allocation70_spill] sm:$0xff] %v23517_v17  ;;  %v17588_v51 = vpop.f32.mrf.mxu0  ;;  %v23521_v8 = vadd.f32 %v10486_v32, %v9882_v54  ;;  %v9885_v57 = vadd.f32 %v17490_v2, %v26156_v21  ;;  %17835 = vmatprep.mubr.msk.f32.mxu1 %vm26_vm0, %v12040_v9  ;;  %v12041_v17 = vld [vmem:[#allocation2 + $0x172] sm:$0xff]  ;;  %v26158_v32 = vld [vmem:[#allocation92_spill] sm:$0xff]  ;;  %v12044_v21 = vld [vmem:[#allocation2 + $0x19a] sm:$0xff] }
 0x521   :  { %v9789_v33 = vpop.f32.mrf.mxu1 }
 0x522   :  { %26155 = vst [vmem:[#allocation39_spill] sm:$0xff] %v23521_v8  ;;  %v10496_v24 = vpop.f32.mrf.mxu0  ;;  %v23525_v4 = vadd.f32 %v17588_v51, %v9885_v57  ;;  %v9884_v63 = vadd.f32 %v9789_v33, %v26157_v56  ;;  %v12043_v57 = vld [vmem:[#allocation2 + $0x18a] sm:$0xff] }
 0x523   :  { %v17493_v37 = vpop.f32.mrf.mxu1  ;;  %17836 = vmatmul.mubr.msk.f32.gmra.mxu1 %vm26_vm0, %v12041_v17 }
 0x524   :  { %v17591_v28 = vpop.f32.mrf.mxu0  ;;  %v23529_v20 = vadd.f32 %v10496_v24, %v9884_v63  ;;  %v9887_v54 = vadd.f32 %v17493_v37, %v26158_v32  ;;  %17838 = vmatprep.mubr.msk.f32.mxu1 %vm26_vm0, %v12042_v1  ;;  %v12045_v63 = vld [vmem:[#allocation2 + $0x1a2] sm:$0xff] }
 0x525   :  { %v9799_v2 = vpop.f32.mrf.mxu1 }
 0x526   :  { %v10506_v9 = vpop.f32.mrf.mxu0  ;;  %v23533_v8 = vadd.f32 %v17591_v28, %v9887_v54  ;;  %v9886_v51 = vadd.f32 %v9799_v2, %v23217_v55  ;;  %v12046_v2 = vld [vmem:[#allocation2 + $0x1e2] sm:$0xff] }
 0x527   :  { %v17496_v33 = vpop.f32.mrf.mxu1  ;;  %17839 = vmatmul.mubr.msk.f32.gmra.mxu1 %vm26_vm0, %v12043_v57 }
 0x528   :  { %26159 = vst [vmem:[#allocation42_spill] sm:$0xff] %v23533_v8  ;;  %v17594_v56 = vpop.f32.mrf.mxu0  ;;  %v23537_v17 = vadd.f32 %v10506_v9, %v9886_v51  ;;  %v9889_v24 = vadd.f32 %v17496_v33, %v23222_v35  ;;  %17841 = vmatprep.mubr.msk.f32.mxu1 %vm26_vm0, %v12044_v21  ;;  %v12047_v33 = vld [vmem:[#allocation2 + $0x1ea] sm:$0xff] }
 0x529   :  { %v9809_v1 = vpop.f32.mrf.mxu1 }
 0x52a   :  { %v10516_v37 = vpop.f32.mrf.mxu0  ;;  %v23541_v32 = vadd.f32 %v17594_v56, %v9889_v24  ;;  %v9888_v28 = vadd.f32 %v9809_v1, %v23227_v18  ;;  %v12048_v24 = vld [vmem:[#allocation2 + $0x1fa] sm:$0xff] }
 0x52b   :  { %v17499_v54 = vpop.f32.mrf.mxu1  ;;  %17842 = vmatmul.mubr.msk.f32.gmra.mxu1 %vm26_vm0, %v12045_v63 }
 0x52c   :  { %v17597_v55 = vpop.f32.mrf.mxu0  ;;  %v23545_v8 = vadd.f32 %v10516_v37, %v9888_v28  ;;  %v9891_v9 = vadd.f32 %v17499_v54, %v23233_v0  ;;  %17844 = vmatprep.mubr.msk.f32.mxu1 %vm26_vm0, %v12046_v2 }
 0x52d   :  { %v9819_v35 = vpop.f32.mrf.mxu1 }
 0x52e   :  { %v10526_v21 = vpop.f32.mrf.mxu0  ;;  %v23549_v51 = vadd.f32 %v17597_v55, %v9891_v9  ;;  %v9890_v57 = vadd.f32 %v9819_v35, %v23239_v14  ;;  %v12049_v14 = vld [vmem:[#allocation2 + $0x202] sm:$0xff]  ;;  %v12050_v55 = vld [vmem:[#allocation2 + $0x212] sm:$0xff] }
 0x52f   :  { %v17602_v56 = vpop.f32.mrf.mxu1  ;;  %17845 = vmatmul.mubr.msk.f32.gmra.mxu1 %vm26_vm0, %v12047_v33 }
 0x530   :  { %v23552_v18 = vpop.f32.mrf.mxu0  ;;  %v23555_v63 = vadd.f32 %v10526_v21, %v9890_v57  ;;  %v23558_v1 = vadd.f32 %v17602_v56, %v23245_v19  ;;  %17847 = vmatprep.mubr.msk.f32.mxu1 %vm26_vm0, %v12048_v24  ;;  %v12052_v57 = vld [vmem:[#allocation2 + $0x22a] sm:$0xff] }
 0x531   :  { %v10924_v0 = vpop.f32.mrf.mxu1 }
 0x532   :  { %v23562_v37 = vadd.f32 %v10924_v0, %v23251_v11  ;;  %v23564_v28 = vpop.f32.mrf.mxu0  ;;  %v12051_v11 = vld [vmem:[#allocation2 + $0x21a] sm:$0xff]  ;;  %v12053_v0 = vld [vmem:[#allocation2 + $0x232] sm:$0xff] }
 0x533   :  { %v17605_v54 = vpop.f32.mrf.mxu1  ;;  %17848 = vmatmul.mubr.msk.f32.gmra.mxu1 %vm26_vm0, %v12049_v14 }
 0x534   :  { %v23568_v2 = vadd.f32 %v17605_v54, %v23257_v31  ;;  %17850 = vmatprep.mubr.msk.f32.mxu1 %vm26_vm0, %v12050_v55  ;;  %v23571_v9 = vpop.f32.mrf.mxu0 }
 0x535   :  { %v10934_v19 = vpop.f32.mrf.mxu1 }
 0x536   :  { %v23574_v35 = vadd.f32 %v10934_v19, %v23263_v53  ;;  %v23581_v56 = vpop.f32.mrf.mxu0  ;;  %v12054_v53 = vld [vmem:[#allocation2 + $0x242] sm:$0xff] }
 0x537   :  { %v17608_v21 = vpop.f32.mrf.mxu1  ;;  %17851 = vmatmul.mubr.msk.f32.gmra.mxu1 %vm26_vm0, %v12051_v11  ;;  %v12055_v11 = vld [vmem:[#allocation2 + $0x24a] sm:$0xff] }
 0x538   :  { %v23578_v33 = vadd.f32 %v17608_v21, %v23269_v34  ;;  %17853 = vmatprep.mubr.msk.f32.mxu1 %vm26_vm0, %v12052_v57  ;;  %v23591_v55 = vpop.f32.mrf.mxu0 }
 0x539   :  { %v10944_v31 = vpop.f32.mrf.mxu1 }
 0x53a   :  { %v23584_v24 = vadd.f32 %v10944_v31, %v23275_v16  ;;  %v12056_v16 = vld [vmem:[#allocation2 + $0x25a] sm:$0xff]  ;;  %v23601_v31 = vpop.f32.mrf.mxu0 }
 0x53b   :  { %v17611_v14 = vpop.f32.mrf.mxu1  ;;  %17854 = vmatmul.mubr.msk.f32.gmra.mxu1 %vm26_vm0, %v12053_v0 }
 0x53c   :  { %v23588_v54 = vadd.f32 %v17611_v14, %v23281_v42  ;;  %17856 = vmatprep.mubr.msk.f32.mxu1 %vm26_vm0, %v12054_v53  ;;  %v12057_v14 = vld [vmem:[#allocation2 + $0x262] sm:$0xff] }
 0x53d   :  { %v10954_v34 = vpop.f32.mrf.mxu1 }
 0x53e   :  { %v23594_v19 = vadd.f32 %v10954_v34, %v23287_v48  ;;  %v12058_v48 = vld [vmem:[#allocation2 + $0x272] sm:$0xff] }
 0x53f   :  { %v17614_v21 = vpop.f32.mrf.mxu1  ;;  %17857 = vmatmul.mubr.msk.f32.gmra.mxu1 %vm26_vm0, %v12055_v11  ;;  %v23611_v11 = vpop.f32.mrf.mxu0 }
 0x540   :  { %v23598_v57 = vadd.f32 %v17614_v21, %v23293_v25  ;;  %17859 = vmatprep.mubr.msk.f32.mxu1 %vm26_vm0, %v12056_v16  ;;  %v12059_v16 = vld [vmem:[#allocation2 + $0x27a] sm:$0xff] }
 0x541   :  { %v10964_v42 = vpop.f32.mrf.mxu1 }
 0x542   :  { %26160 = vst [vmem:[#allocation72_spill] sm:$0xff] %v23598_v57  ;;  %v23604_v0 = vadd.f32 %v10964_v42, %v23299_v62  ;;  %v12060_v62 = vld [vmem:[#allocation2 + $0x28a] sm:$0xff] }
 0x543   :  { %v17617_v53 = vpop.f32.mrf.mxu1  ;;  %17860 = vmatmul.mubr.msk.f32.gmra.mxu1 %vm26_vm0, %v12057_v14  ;;  %v23621_v14 = vpop.f32.mrf.mxu0 }
 0x544   :  { %v23608_v34 = vadd.f32 %v17617_v53, %v23305_v50  ;;  %17862 = vmatprep.mubr.msk.f32.mxu1 %vm26_vm0, %v12058_v48  ;;  %v12061_v48 = vld [vmem:[#allocation2 + $0x292] sm:$0xff] }
 0x545   :  { %v10974_v25 = vpop.f32.mrf.mxu1 }
 0x546   :  { %26161 = vst [vmem:[#allocation6_spill] sm:$0xff] %v23608_v34  ;;  %v23614_v21 = vadd.f32 %v10974_v25, %v23311_v10  ;;  %v12062_v10 = vld [vmem:[#allocation2 + $0x2a2] sm:$0xff] }
 0x547   :  { %v17620_v57 = vpop.f32.mrf.mxu1  ;;  %17863 = vmatmul.mubr.msk.f32.gmra.mxu1 %vm26_vm0, %v12059_v16 }
 0x548   :  { %v23618_v42 = vadd.f32 %v17620_v57, %v23317_v39  ;;  %17865 = vmatprep.mubr.msk.f32.mxu1 %vm26_vm0, %v12060_v62  ;;  %v23631_v57 = vpop.f32.mrf.mxu0  ;;  %v12063_v62 = vld [vmem:[#allocation2 + $0x2aa] sm:$0xff] }
 0x549   :  { %v10984_v50 = vpop.f32.mrf.mxu1 }
 0x54a   :  { %26162 = vst [vmem:[#allocation41_spill] sm:$0xff] %v23618_v42  ;;  %v23624_v53 = vadd.f32 %v10984_v50, %v23323_v30  ;;  %v12064_v30 = vld [vmem:[#allocation2 + $0x2ba] sm:$0xff] }
 0x54b   :  { %v17623_v34 = vpop.f32.mrf.mxu1  ;;  %17866 = vmatmul.mubr.msk.f32.gmra.mxu1 %vm26_vm0, %v12061_v48 }
 0x54c   :  { %26163 = vst [vmem:[#allocation44_spill] sm:$0xff] %v23624_v53  ;;  %v23628_v25 = vadd.f32 %v17623_v34, %v23329_v36  ;;  %17868 = vmatprep.mubr.msk.f32.mxu1 %vm26_vm0, %v12062_v10  ;;  %v23641_v34 = vpop.f32.mrf.mxu0  ;;  %v12065_v10 = vld [vmem:[#allocation2 + $0x2c2] sm:$0xff] }
 0x54d   :  { %v10994_v39 = vpop.f32.mrf.mxu1 }
 0x54e   :  { %26164 = vst [vmem:[#allocation74_spill] sm:$0xff] %v23628_v25  ;;  %v23634_v16 = vadd.f32 %v10994_v39, %v23335_v27  ;;  %v12066_v27 = vld [vmem:[#allocation2 + $0x2d2] sm:$0xff] }
 0x54f   :  { %v17626_v42 = vpop.f32.mrf.mxu1  ;;  %17869 = vmatmul.mubr.msk.f32.gmra.mxu1 %vm26_vm0, %v12063_v62  ;;  %v26168_v39 = vld [vmem:[#allocation33_spill] sm:$0xff] }
 0x550   :  { %26165 = vst [vmem:[#allocation73_spill] sm:$0xff] %v23634_v16  ;;  %v23638_v50 = vadd.f32 %v17626_v42, %v23341_v52  ;;  %17871 = vmatprep.mubr.msk.f32.mxu1 %vm26_vm0, %v12064_v30  ;;  %v23651_v42 = vpop.f32.mrf.mxu0  ;;  %v12067_v30 = vld [vmem:[#allocation2 + $0x2da] sm:$0xff] }
 0x551   :  { %v11004_v36 = vpop.f32.mrf.mxu1 }
 0x552   :  { %26166 = vst [vmem:[#allocation43_spill] sm:$0xff] %v23638_v50  ;;  %v23644_v48 = vadd.f32 %v11004_v36, %v23347_v40  ;;  %v12068_v40 = vld [vmem:[#allocation2 + $0x2ea] sm:$0xff]  ;;  %v26171_v36 = vld [vmem:[#allocation67_spill] sm:$0xff] }
 0x553   :  { %v17629_v25 = vpop.f32.mrf.mxu1  ;;  %17872 = vmatmul.mubr.msk.f32.gmra.mxu1 %vm26_vm0, %v12065_v10  ;;  %v23661_v10 = vpop.f32.mrf.mxu0 }
 0x554   :  { %26167 = vst [vmem:[#allocation48_spill] sm:$0xff] %v23644_v48  ;;  %v23648_v16 = vadd.f32 %v17629_v25, %v26168_v39  ;;  %17874 = vmatprep.mubr.msk.f32.mxu1 %vm26_vm0, %v12066_v27  ;;  %v26173_v27 = vld [vmem:[#allocation65_spill] sm:$0xff] }
 0x555   :  { %v11014_v52 = vpop.f32.mrf.mxu1 }
 0x556   :  { %26169 = vst [vmem:[#allocation75_spill] sm:$0xff] %v23648_v16  ;;  %v23654_v62 = vadd.f32 %v11014_v52, %v23359_v47  ;;  %v12069_v16 = vld [vmem:[#allocation2 + $0x2f2] sm:$0xff]  ;;  %v12070_v47 = vld [vmem:[#allocation2 + $0x302] sm:$0xff] }
 0x557   :  { %v17632_v50 = vpop.f32.mrf.mxu1  ;;  %17875 = vmatmul.mubr.msk.f32.gmra.mxu1 %vm26_vm0, %v12067_v30  ;;  %v26175_v52 = vld [vmem:[#allocation3_spill] sm:$0xff]  ;;  %v23671_v30 = vpop.f32.mrf.mxu0 }
 0x558   :  { %26170 = vst [vmem:[#allocation7_spill] sm:$0xff] %v23654_v62  ;;  %v23658_v48 = vadd.f32 %v17632_v50, %v26171_v36  ;;  %17877 = vmatprep.mubr.msk.f32.mxu1 %vm26_vm0, %v12068_v40  ;;  %v12071_v36 = vld [vmem:[#allocation2 + $0x30a] sm:$0xff] }
 0x559   :  { %v11024_v25 = vpop.f32.mrf.mxu1 }
 0x55a   :  { %26172 = vst [vmem:[#allocation9_spill] sm:$0xff] %v23658_v48  ;;  %v23664_v39 = vadd.f32 %v11024_v25, %v26173_v27  ;;  %v12072_v25 = vld [vmem:[#allocation2 + $0x31a] sm:$0xff]  ;;  %v26177_v27 = vld [vmem:[#allocation69_spill] sm:$0xff] }
 0x55b   :  { %v17635_v53 = vpop.f32.mrf.mxu1  ;;  %17878 = vmatmul.mubr.msk.f32.gmra.mxu1 %vm26_vm0, %v12069_v16  ;;  %v23681_v16 = vpop.f32.mrf.mxu0 }
 0x55c   :  { %26174 = vst [vmem:[#allocation45_spill] sm:$0xff] %v23664_v39  ;;  %v23668_v62 = vadd.f32 %v17635_v53, %v26175_v52  ;;  %17880 = vmatprep.mubr.msk.f32.mxu1 %vm26_vm0, %v12070_v47  ;;  %v12073_v52 = vld [vmem:[#allocation2 + $0x322] sm:$0xff] }
 0x55d   :  { %v11034_v50 = vpop.f32.mrf.mxu1 }
 0x55e   :  { %26176 = vst [vmem:[#allocation8_spill] sm:$0xff] %v23668_v62  ;;  %v23674_v40 = vadd.f32 %v11034_v50, %v23383_v43  ;;  %v12074_v43 = vld [vmem:[#allocation2 + $0x332] sm:$0xff] }
 0x55f   :  { %v17638_v48 = vpop.f32.mrf.mxu1  ;;  %17881 = vmatmul.mubr.msk.f32.gmra.mxu1 %vm26_vm0, %v12071_v36  ;;  %v12076_v36 = vld [vmem:[#allocation2 + $0x34a] sm:$0xff] }
 0x560   :  { %v23678_v39 = vadd.f32 %v17638_v48, %v26177_v27  ;;  %17883 = vmatprep.mubr.msk.f32.mxu1 %vm26_vm0, %v12072_v25  ;;  %v23691_v27 = vpop.f32.mrf.mxu0 }
 0x561   :  { %v11044_v53 = vpop.f32.mrf.mxu1 }
 0x562   :  { %26178 = vst [vmem:[#allocation78_spill] sm:$0xff] %v23678_v39  ;;  %v23684_v47 = vadd.f32 %v11044_v53, %v23395_v38  ;;  %v12075_v39 = vld [vmem:[#allocation2 + $0x33a] sm:$0xff] }
 0x563   :  { %v17641_v62 = vpop.f32.mrf.mxu1  ;;  %17884 = vmatmul.mubr.msk.f32.gmra.mxu1 %vm26_vm0, %v12073_v52  ;;  %v23701_v52 = vpop.f32.mrf.mxu0 }
 0x564   :  { %v23688_v50 = vadd.f32 %v17641_v62, %v23401_v12  ;;  %17886 = vmatprep.mubr.msk.f32.mxu1 %vm26_vm0, %v12074_v43  ;;  %v12077_v12 = vld [vmem:[#allocation2 + $0x352] sm:$0xff] }
 0x565   :  { %v11054_v48 = vpop.f32.mrf.mxu1 }
 0x566   :  { %26179 = vst [vmem:[#allocation11_spill] sm:$0xff] %v23688_v50  ;;  %v23694_v25 = vadd.f32 %v11054_v48, %v23407_v41 }
 0x567   :  { %v17644_v38 = vpop.f32.mrf.mxu1  ;;  %17887 = vmatmul.mubr.msk.f32.gmra.mxu1 %vm26_vm0, %v12075_v39  ;;  %v23710_v39 = vpop.f32.mrf.mxu0 }
 0x568   :  { %26180 = vst [vmem:[#allocation51_spill] sm:$0xff] %v23694_v25  ;;  %v23698_v53 = vadd.f32 %v17644_v38, %v23412_v13  ;;  %17889 = vmatprep.mubr.msk.f32.mxu1 %vm26_vm0, %v12076_v36 }
 0x569   :  { %v11064_v62 = vpop.f32.mrf.mxu1  ;;  %v23718_v25 = vpop.f32.mrf.mxu0 }
 0x56a   :  { %26181 = vst [vmem:[#allocation10_spill] sm:$0xff] %v23698_v53  ;;  %v23704_v43 = vadd.f32 %v11064_v62, %v23417_v26 }
 0x56b   :  { %v17647_v50 = vpop.f32.mrf.mxu1  ;;  %17890 = vmatmul.mubr.msk.f32.gmra.mxu1 %vm26_vm0, %v12077_v12  ;;  %v23726_v62 = vpop.f32.mrf.mxu0 }
 0x56c   :  { %v23708_v41 = vadd.f32 %v17647_v50, %v23421_v49 }
 0x56d   :  { %v11074_v48 = vpop.f32.mrf.mxu1 }
 0x56e   :  { %v23713_v13 = vadd.f32 %v11074_v48, %v23425_v60 }
 0x56f   :  { %v17650_v36 = vpop.f32.mrf.mxu1 }
 0x570   :  { %26182 = vst [vmem:[#allocation80_spill] sm:$0xff] %v23713_v13  ;;  %v23716_v38 = vadd.f32 %v17650_v36, %v23429_v3  ;;  %v26214_v13 = vld [vmem:[#allocation39_spill] sm:$0xff] }
 0x571   :  { %v11084_v53 = vpop.f32.mrf.mxu1 }
 0x572   :  { %26183 = vst [vmem:[#allocation13_spill] sm:$0xff] %v23716_v38  ;;  %v23721_v26 = vadd.f32 %v11084_v53, %v23433_v22  ;;  %v23734_v38 = vpop.f32.mrf.mxu0 }
 0x573   :  { %v17653_v12 = vpop.f32.mrf.mxu1 }
 0x574   :  { %26184 = vst [vmem:[#allocation79_spill] sm:$0xff] %v23721_v26  ;;  %v23724_v49 = vadd.f32 %v17653_v12, %v23437_v6  ;;  %v26210_v26 = vld [vmem:[#allocation71_spill] sm:$0xff] }
 0x575   :  { %v11094_v50 = vpop.f32.mrf.mxu1 }
 0x576   :  { %26185 = vst [vmem:[#allocation12_spill] sm:$0xff] %v23724_v49  ;;  %v23729_v60 = vadd.f32 %v11094_v50, %v23441_v58  ;;  %v23742_v49 = vpop.f32.mrf.mxu0 }
 0x577   :  { %v17656_v48 = vpop.f32.mrf.mxu1 }
 0x578   :  { %26186 = vst [vmem:[#allocation82_spill] sm:$0xff] %v23729_v60  ;;  %v23732_v3 = vadd.f32 %v17656_v48, %v23445_v5  ;;  %v26207_v60 = vld [vmem:[#allocation38_spill] sm:$0xff] }
 0x579   :  { %v11104_v36 = vpop.f32.mrf.mxu1 }
 0x57a   :  { %26187 = vst [vmem:[#allocation15_spill] sm:$0xff] %v23732_v3  ;;  %v23737_v22 = vadd.f32 %v11104_v36, %v23449_v29  ;;  %v23750_v3 = vpop.f32.mrf.mxu0 }
 0x57b   :  { %v17659_v53 = vpop.f32.mrf.mxu1 }
 0x57c   :  { %26188 = vst [vmem:[#allocation81_spill] sm:$0xff] %v23737_v22  ;;  %v23740_v6 = vadd.f32 %v17659_v53, %v23453_v45  ;;  %v26203_v22 = vld [vmem:[#allocation37_spill] sm:$0xff] }
 0x57d   :  { %v11114_v12 = vpop.f32.mrf.mxu1 }
 0x57e   :  { %26189 = vst [vmem:[#allocation14_spill] sm:$0xff] %v23740_v6  ;;  %v23745_v58 = vadd.f32 %v11114_v12, %v23457_v44  ;;  %v23758_v6 = vpop.f32.mrf.mxu0 }
 0x57f   :  { %v17662_v50 = vpop.f32.mrf.mxu1 }
 0x580   :  { %26190 = vst [vmem:[#allocation84_spill] sm:$0xff] %v23745_v58  ;;  %v23748_v5 = vadd.f32 %v17662_v50, %v23461_v23  ;;  %v26199_v58 = vld [vmem:[#allocation5_spill] sm:$0xff] }
 0x581   :  { %v11124_v48 = vpop.f32.mrf.mxu1 }
 0x582   :  { %26191 = vst [vmem:[#allocation17_spill] sm:$0xff] %v23748_v5  ;;  %v23753_v29 = vadd.f32 %v11124_v48, %v23465_v15  ;;  %v23766_v5 = vpop.f32.mrf.mxu0 }
 0x583   :  { %v17665_v36 = vpop.f32.mrf.mxu1 }
 0x584   :  { %26192 = vst [vmem:[#allocation83_spill] sm:$0xff] %v23753_v29  ;;  %v23756_v45 = vadd.f32 %v17665_v36, %v23469_v61  ;;  %v26197_v29 = vld [vmem:[#allocation68_spill] sm:$0xff] }
 0x585   :  { %v11134_v53 = vpop.f32.mrf.mxu1 }
 0x586   :  { %26193 = vst [vmem:[#allocation86_spill] sm:$0xff] %v23756_v45  ;;  %v23761_v44 = vadd.f32 %v11134_v53, %v23473_v7  ;;  %v23774_v45 = vpop.f32.mrf.mxu0 }
 0x587   :  { %v17668_v12 = vpop.f32.mrf.mxu1 }
 0x588   :  { %26194 = vst [vmem:[#allocation16_spill] sm:$0xff] %v23761_v44  ;;  %v23764_v23 = vadd.f32 %v17668_v12, %v23477_v46  ;;  %v26201_v44 = vld [vmem:[#allocation36_spill] sm:$0xff] }
 0x589   :  { %v11144_v50 = vpop.f32.mrf.mxu1 }
 0x58a   :  { %26195 = vst [vmem:[#allocation85_spill] sm:$0xff] %v23764_v23  ;;  %v23769_v15 = vadd.f32 %v11144_v50, %v23481_v59  ;;  %v23782_v23 = vpop.f32.mrf.mxu0 }
 0x58b   :  { %v17671_v48 = vpop.f32.mrf.mxu1 }
 0x58c   :  { %26196 = vst [vmem:[#allocation19_spill] sm:$0xff] %v23769_v15  ;;  %v23772_v61 = vadd.f32 %v17671_v48, %v26197_v29  ;;  %v26205_v15 = vld [vmem:[#allocation4_spill] sm:$0xff] }
 0x58d   :  { %v11154_v36 = vpop.f32.mrf.mxu1 }
 0x58e   :  { %26198 = vst [vmem:[#allocation88_spill] sm:$0xff] %v23772_v61  ;;  %v23777_v7 = vadd.f32 %v11154_v36, %v26199_v58  ;;  %v23790_v61 = vpop.f32.mrf.mxu0 }
 0x58f   :  { %v17674_v53 = vpop.f32.mrf.mxu1 }
 0x590   :  { %26200 = vst [vmem:[#allocation87_spill] sm:$0xff] %v23777_v7  ;;  %v23780_v46 = vadd.f32 %v17674_v53, %v26201_v44  ;;  %v26208_v7 = vld [vmem:[#allocation40_spill] sm:$0xff] }
 0x591   :  { %v11164_v12 = vpop.f32.mrf.mxu1 }
 0x592   :  { %26202 = vst [vmem:[#allocation18_spill] sm:$0xff] %v23780_v46  ;;  %v23785_v59 = vadd.f32 %v11164_v12, %v26203_v22  ;;  %v23798_v46 = vpop.f32.mrf.mxu0 }
 0x593   :  { %v17677_v50 = vpop.f32.mrf.mxu1 }
 0x594   :  { %26204 = vst [vmem:[#allocation21_spill] sm:$0xff] %v23785_v59  ;;  %v23788_v29 = vadd.f32 %v17677_v50, %v26205_v15  ;;  %v26212_v59 = vld [vmem:[#allocation70_spill] sm:$0xff] }
 0x595   :  { %v11174_v48 = vpop.f32.mrf.mxu1 }
 0x596   :  { %26206 = vst [vmem:[#allocation90_spill] sm:$0xff] %v23788_v29  ;;  %v23793_v58 = vadd.f32 %v11174_v48, %v26207_v60  ;;  %v23806_v29 = vpop.f32.mrf.mxu0 }
 0x597   :  { %v17680_v36 = vpop.f32.mrf.mxu1 }
 0x598   :  { %v23796_v44 = vadd.f32 %v17680_v36, %v26208_v7 }
 0x599   :  { %v11184_v53 = vpop.f32.mrf.mxu1 }
 0x59a   :  { %26209 = vst [vmem:[#allocation89_spill] sm:$0xff] %v23796_v44  ;;  %v23801_v22 = vadd.f32 %v11184_v53, %v26210_v26  ;;  %v23814_v44 = vpop.f32.mrf.mxu0 }
 0x59b   :  { %v17683_v12 = vpop.f32.mrf.mxu1 }
 0x59c   :  { %26211 = vst [vmem:[#allocation20_spill] sm:$0xff] %v23801_v22  ;;  %v23804_v15 = vadd.f32 %v17683_v12, %v26212_v59  ;;  %v26216_v22 = vld [vmem:[#allocation42_spill] sm:$0xff] }
 0x59d   :  { %v11194_v50 = vpop.f32.mrf.mxu1 }
 0x59e   :  { %26213 = vst [vmem:[#allocation91_spill] sm:$0xff] %v23804_v15  ;;  %v23809_v60 = vadd.f32 %v11194_v50, %v26214_v13  ;;  %v23822_v15 = vpop.f32.mrf.mxu0 }
 0x59f   :  { %v17686_v48 = vpop.f32.mrf.mxu1 }
 0x5a0   :  { %v23812_v7 = vadd.f32 %v17686_v48, %v23525_v4 }
 0x5a1   :  { %v11204_v36 = vpop.f32.mrf.mxu1 }
 0x5a2   :  { %26215 = vst [vmem:[#allocation93_spill] sm:$0xff] %v23812_v7  ;;  %v23817_v26 = vadd.f32 %v11204_v36, %v23529_v20  ;;  %v23830_v7 = vpop.f32.mrf.mxu0 }
 0x5a3   :  { %v17689_v53 = vpop.f32.mrf.mxu1 }
 0x5a4   :  { %v23820_v59 = vadd.f32 %v17689_v53, %v26216_v22 }
 0x5a5   :  { %v11214_v12 = vpop.f32.mrf.mxu1 }
 0x5a6   :  { %26217 = vst [vmem:[#allocation50_spill] sm:$0xff] %v23820_v59  ;;  %v23825_v13 = vadd.f32 %v11214_v12, %v23537_v17  ;;  %v11951_v59 = vadd.f32 %v23552_v18, %v23558_v1  ;;  %v23840_v17 = vpop.f32.mrf.mxu0 }
 0x5a7   :  { %v17692_v50 = vpop.f32.mrf.mxu1 }
 0x5a8   :  { %v23828_v4 = vadd.f32 %v17692_v50, %v23541_v32  ;;  %v11950_v50 = vadd.f32 %v23564_v28, %v23562_v37  ;;  %v23854_v18 = vpop.f32.mrf.mxu0  ;;  %v11952_v28 = vadd.f32 %v23581_v56, %v23574_v35  ;;  %v11954_v56 = vadd.f32 %v23601_v31, %v23584_v24 }
 0x5a9   :  { %v11224_v48 = vpop.f32.mrf.mxu1 }
 0x5aa   :  { %26218 = vst [vmem:[#allocation46_spill] sm:$0xff] %v23828_v4  ;;  %v23833_v20 = vadd.f32 %v11224_v48, %v23545_v8  ;;  %v23850_v8 = vld [vmem:[%s25375_s4] ss:$0 sm:$0xff]  ;;  %v11953_v48 = vadd.f32 %v23571_v9, %v23568_v2 }
 0x5ab   :  { %v17695_v36 = vpop.f32.mrf.mxu1 }
 0x5ac   :  { %v23836_v22 = vadd.f32 %v17695_v36, %v23549_v51 }
 0x5ad   :  { %v11234_v53 = vpop.f32.mrf.mxu1 }
 0x5ae   :  { %26219 = vst [vmem:[#allocation23_spill] sm:$0xff] %v23836_v22  ;;  %v23843_v12 = vadd.f32 %v11234_v53, %v23555_v63 }
 0x5af   :  { %v17798_v32 = vpop.f32.mrf.mxu1 }
 0x5b0   :  { %26220 = vst [vmem:[#allocation49_spill] sm:$0xff] %v23843_v12  ;;  %v12658_v4 = vadd.f32 %v17798_v32, %v11951_v59  ;;  %v11955_v32 = vadd.f32 %v23591_v55, %v23578_v33  ;;  %v23866_v12 = vpop.f32.mrf.mxu0  ;;  %v11957_v55 = vadd.f32 %v23611_v11, %v23588_v54 }
 0x5b1   :  { %v12338_v51 = vpop.f32.mrf.mxu1 }
 0x5b2   :  { %v12657_v1 = vadd.f32 %v12338_v51, %v11950_v50  ;;  %v23857_v63 = vadd.f32 %v23850_v8, %v12658_v4 }
 0x5b3   :  { %v17801_v36 = vpop.f32.mrf.mxu1 }
 0x5b4   :  { %26221 = vst [vmem:[#allocation25_spill] sm:$0xff] %v23857_v63  ;;  %v23860_v53 = vadd.f32 %v23850_v8, %v12657_v1  ;;  %v12660_v37 = vadd.f32 %v17801_v36, %v11953_v48  ;;  %v12927_v4 = vmul.f32 %v23857_v63, %v23857_v63  ;;  %v12793_v48 = vsel %vm26_vm0, %v23857_v63, 0.0 }
 0x5b5   :  { %v12348_v59 = vpop.f32.mrf.mxu1 }
 0x5b6   :  { %26222 = vst [vmem:[#allocation53_spill] sm:$0xff] %v23860_v53  ;;  %v12926_v2 = vmul.f32 %v23860_v53, %v23860_v53  ;;  %v23871_v9 = vadd.f32 %v23850_v8, %v12660_v37  ;;  %v12792_v50 = vsel %vm26_vm0, %v23860_v53, 0.0  ;;  %v12659_v51 = vadd.f32 %v12348_v59, %v11952_v28  ;;  %v23889_v59 = vpop.f32.mrf.mxu0 }
 0x5b7   :  { %v17804_v35 = vpop.f32.mrf.mxu1  ;;  %v11956_v28 = vadd.f32 %v23621_v14, %v23594_v19  ;;  %v12794_v53 = vadd.f32 %v12793_v48, %v12792_v50  ;;  %v12991_v54 = vsel %vm26_vm0, %v12927_v4, 0.0  ;;  %v26225_v19 = vld [vmem:[#allocation72_spill] sm:$0xff]  ;;  %v11958_v4 = vadd.f32 %v23641_v34, %v23604_v0 }
 0x5b8   :  { %v12662_v33 = vadd.f32 %v17804_v35, %v11955_v32  ;;  %v12990_v1 = vsel %vm26_vm0, %v12926_v2, 0.0  ;;  %v23885_v36 = vadd.f32 %v23850_v8, %v12659_v51  ;;  %v12929_v24 = vmul.f32 %v23871_v9, %v23871_v9  ;;  %v23911_v63 = vpop.f32.mrf.mxu0 }
 0x5b9   :  { %v12358_v37 = vpop.f32.mrf.mxu1  ;;  %v11959_v14 = vadd.f32 %v23631_v57, %v26225_v19  ;;  %v12992_v50 = vadd.f32 %v12991_v54, %v12990_v1 }
 0x5ba   :  { %26223 = vst [vmem:[#allocation22_spill] sm:$0xff] %v23885_v36  ;;  %v12661_v31 = vadd.f32 %v12358_v37, %v11954_v56  ;;  %v12795_v11 = vsel %vm26_vm0, %v23885_v36, 0.0  ;;  %v12928_v32 = vmul.f32 %v23885_v36, %v23885_v36  ;;  %v23899_v2 = vadd.f32 %v23850_v8, %v12662_v33 }
 0x5bb   :  { %v17807_v51 = vpop.f32.mrf.mxu1  ;;  %v12796_v35 = vadd.f32 %v12795_v11, %v12794_v53  ;;  %v12797_v56 = vsel %vm26_vm0, %v23871_v9, 0.0  ;;  %v12995_v22 = vsel %vm26_vm0, %v12929_v24, 0.0  ;;  %v26226_v11 = vld [vmem:[#allocation6_spill] sm:$0xff] }
 0x5bc   :  { %26224 = vst [vmem:[#allocation52_spill] sm:$0xff] %v23899_v2  ;;  %v23904_v48 = vadd.f32 %v23850_v8, %v12661_v31  ;;  %v12993_v37 = vsel %vm26_vm0, %v12928_v32, 0.0  ;;  %v12664_v36 = vadd.f32 %v17807_v51, %v11957_v55  ;;  %v12931_v31 = vmul.f32 %v23899_v2, %v23899_v2 }
 0x5bd   :  { %v12368_v33 = vpop.f32.mrf.mxu1  ;;  %v12798_v57 = vadd.f32 %v12797_v56, %v12796_v35  ;;  %v12994_v1 = vadd.f32 %v12993_v37, %v12992_v50  ;;  %v11961_v32 = vadd.f32 %v23651_v42, %v26226_v11  ;;  %v11960_v50 = vadd.f32 %v23661_v10, %v23614_v21 }
 0x5be   :  { %v12799_v53 = vsel %vm26_vm0, %v23904_v48, 0.0  ;;  %v12930_v0 = vmul.f32 %v23904_v48, %v23904_v48  ;;  %v23921_v34 = vadd.f32 %v23850_v8, %v12664_v36  ;;  %v12663_v55 = vadd.f32 %v12368_v33, %v11956_v28  ;;  %v23933_v28 = vpop.f32.mrf.mxu0 }
 0x5bf   :  { %v17810_v54 = vpop.f32.mrf.mxu1  ;;  %v12996_v24 = vadd.f32 %v12995_v22, %v12994_v1  ;;  %v12800_v51 = vadd.f32 %v12799_v53, %v12798_v57  ;;  %v12801_v35 = vsel %vm26_vm0, %v23899_v2, 0.0  ;;  %v12999_v57 = vsel %vm26_vm0, %v12931_v31, 0.0 }
 0x5c0   :  { %v12666_v19 = vadd.f32 %v17810_v54, %v11959_v14  ;;  %v12997_v56 = vsel %vm26_vm0, %v12930_v0, 0.0  ;;  %v23931_v37 = vadd.f32 %v23850_v8, %v12663_v55  ;;  %v12933_v42 = vmul.f32 %v23921_v34, %v23921_v34  ;;  %v26228_v0 = vld [vmem:[#allocation41_spill] sm:$0xff]  ;;  %v26229_v54 = vld [vmem:[#allocation44_spill] sm:$0xff] }
 0x5c1   :  { %v12378_v36 = vpop.f32.mrf.mxu1  ;;  %v12998_v33 = vadd.f32 %v12997_v56, %v12996_v24  ;;  %v12802_v22 = vadd.f32 %v12801_v35, %v12800_v51  ;;  %v11963_v55 = vadd.f32 %v23671_v30, %v26228_v0  ;;  %v11962_v11 = vadd.f32 %v23681_v16, %v26229_v54  ;;  %v26233_v54 = vld [vmem:[#allocation73_spill] sm:$0xff] }
 0x5c2   :  { %26227 = vst [vmem:[#allocation55_spill] sm:$0xff] %v23931_v37  ;;  %v12665_v14 = vadd.f32 %v12378_v36, %v11958_v4  ;;  %v12803_v21 = vsel %vm26_vm0, %v23931_v37, 0.0  ;;  %v12932_v10 = vmul.f32 %v23931_v37, %v23931_v37  ;;  %v23943_v1 = vadd.f32 %v23850_v8, %v12666_v19  ;;  %v23955_v36 = vpop.f32.mrf.mxu0 }
 0x5c3   :  { %v17813_v53 = vpop.f32.mrf.mxu1  ;;  %v12804_v24 = vadd.f32 %v12803_v21, %v12802_v22  ;;  %v13000_v4 = vadd.f32 %v12999_v57, %v12998_v33  ;;  %v12805_v31 = vsel %vm26_vm0, %v23921_v34, 0.0  ;;  %v13003_v37 = vsel %vm26_vm0, %v12933_v42, 0.0 }
 0x5c4   :  { %v13001_v51 = vsel %vm26_vm0, %v12932_v10, 0.0  ;;  %v23953_v35 = vadd.f32 %v23850_v8, %v12665_v14  ;;  %v12668_v56 = vadd.f32 %v17813_v53, %v11961_v32  ;;  %v12935_v16 = vmul.f32 %v23943_v1, %v23943_v1 }
 0x5c5   :  { %v12388_v19 = vpop.f32.mrf.mxu1  ;;  %v13002_v30 = vadd.f32 %v13001_v51, %v13000_v4  ;;  %v12806_v0 = vadd.f32 %v12805_v31, %v12804_v24  ;;  %v11964_v24 = vadd.f32 %v23701_v52, %v26233_v54  ;;  %v12809_v4 = vsel %vm26_vm0, %v23943_v1, 0.0 }
 0x5c6   :  { %v12667_v2 = vadd.f32 %v12388_v19, %v11960_v50  ;;  %v12807_v33 = vsel %vm26_vm0, %v23953_v35, 0.0  ;;  %v12934_v22 = vmul.f32 %v23953_v35, %v23953_v35  ;;  %v23965_v14 = vadd.f32 %v23850_v8, %v12668_v56  ;;  %v26232_v50 = vld [vmem:[#allocation74_spill] sm:$0xff]  ;;  %v23977_v56 = vpop.f32.mrf.mxu0 }
 0x5c7   :  { %v17816_v32 = vpop.f32.mrf.mxu1  ;;  %v12808_v57 = vadd.f32 %v12807_v33, %v12806_v0  ;;  %v13004_v21 = vadd.f32 %v13003_v37, %v13002_v30  ;;  %v11965_v53 = vadd.f32 %v23691_v27, %v26232_v50  ;;  %v13007_v27 = vsel %vm26_vm0, %v12935_v16, 0.0  ;;  %v26234_v50 = vld [vmem:[#allocation43_spill] sm:$0xff] }
 0x5c8   :  { %26230 = vst [vmem:[#allocation47_spill] sm:$0xff] %v23965_v14  ;;  %v23968_v42 = vadd.f32 %v23850_v8, %v12667_v2  ;;  %v12670_v10 = vadd.f32 %v17816_v32, %v11963_v55  ;;  %v13005_v31 = vsel %vm26_vm0, %v12934_v22, 0.0  ;;  %v12937_v52 = vmul.f32 %v23965_v14, %v23965_v14 }
 0x5c9   :  { %v12398_v51 = vpop.f32.mrf.mxu1  ;;  %v13006_v19 = vadd.f32 %v13005_v31, %v13004_v21  ;;  %v12810_v37 = vadd.f32 %v12809_v4, %v12808_v57  ;;  %v11967_v54 = vadd.f32 %v23710_v39, %v26234_v50  ;;  %v26235_v4 = vld [vmem:[#allocation48_spill] sm:$0xff]  ;;  %v12813_v16 = vsel %vm26_vm0, %v23965_v14, 0.0 }
 0x5ca   :  { %26231 = vst [vmem:[#allocation24_spill] sm:$0xff] %v23968_v42  ;;  %v12811_v2 = vsel %vm26_vm0, %v23968_v42, 0.0  ;;  %v12936_v55 = vmul.f32 %v23968_v42, %v23968_v42  ;;  %v23987_v30 = vadd.f32 %v23850_v8, %v12670_v10  ;;  %v12669_v0 = vadd.f32 %v12398_v51, %v11962_v11  ;;  %v23999_v11 = vpop.f32.mrf.mxu0 }
 0x5cb   :  { %v17819_v33 = vpop.f32.mrf.mxu1  ;;  %v12812_v22 = vadd.f32 %v12811_v2, %v12810_v37  ;;  %v13008_v32 = vadd.f32 %v13007_v27, %v13006_v19  ;;  %v11966_v31 = vadd.f32 %v23718_v25, %v26235_v4  ;;  %v13011_v39 = vsel %vm26_vm0, %v12937_v52, 0.0 }
 0x5cc   :  { %v13009_v57 = vsel %vm26_vm0, %v12936_v55, 0.0  ;;  %v12672_v21 = vadd.f32 %v17819_v33, %v11965_v53  ;;  %v23997_v42 = vadd.f32 %v23850_v8, %v12669_v0  ;;  %v12939_v19 = vmul.f32 %v23987_v30, %v23987_v30  ;;  %v26237_v0 = vld [vmem:[#allocation75_spill] sm:$0xff] }
 0x5cd   :  { %v12408_v10 = vpop.f32.mrf.mxu1  ;;  %v13010_v51 = vadd.f32 %v13009_v57, %v13008_v32  ;;  %v12814_v53 = vadd.f32 %v12813_v16, %v12812_v22  ;;  %v11969_v33 = vadd.f32 %v23726_v62, %v26237_v0  ;;  %v26238_v32 = vld [vmem:[#allocation7_spill] sm:$0xff]  ;;  %v12817_v52 = vsel %vm26_vm0, %v23987_v30, 0.0 }
 0x5ce   :  { %26236 = vst [vmem:[#allocation54_spill] sm:$0xff] %v23997_v42  ;;  %v12671_v37 = vadd.f32 %v12408_v10, %v11964_v24  ;;  %v12815_v25 = vsel %vm26_vm0, %v23997_v42, 0.0  ;;  %v12938_v2 = vmul.f32 %v23997_v42, %v23997_v42  ;;  %v24009_v55 = vadd.f32 %v23850_v8, %v12672_v21  ;;  %v24021_v10 = vpop.f32.mrf.mxu0 }
 0x5cf   :  { %v17822_v27 = vpop.f32.mrf.mxu1  ;;  %v11968_v57 = vadd.f32 %v23734_v38, %v26238_v32  ;;  %v12816_v22 = vadd.f32 %v12815_v25, %v12814_v53  ;;  %v13012_v24 = vadd.f32 %v13011_v39, %v13010_v51  ;;  %v13015_v42 = vsel %vm26_vm0, %v12939_v19, 0.0  ;;  %v26240_v32 = vld [vmem:[#allocation45_spill] sm:$0xff] }
 0x5d0   :  { %v13013_v50 = vsel %vm26_vm0, %v12938_v2, 0.0  ;;  %v24019_v4 = vadd.f32 %v23850_v8, %v12671_v37  ;;  %v12674_v16 = vadd.f32 %v17822_v27, %v11967_v54  ;;  %v12941_v38 = vmul.f32 %v24009_v55, %v24009_v55 }
 0x5d1   :  { %v12418_v21 = vpop.f32.mrf.mxu1  ;;  %v13014_v62 = vadd.f32 %v13013_v50, %v13012_v24  ;;  %v12818_v0 = vadd.f32 %v12817_v52, %v12816_v22  ;;  %v11970_v22 = vadd.f32 %v23750_v3, %v26240_v32  ;;  %v12821_v24 = vsel %vm26_vm0, %v24009_v55, 0.0 }
 0x5d2   :  { %v12673_v14 = vadd.f32 %v12418_v21, %v11966_v31  ;;  %v12819_v51 = vsel %vm26_vm0, %v24019_v4, 0.0  ;;  %v12940_v53 = vmul.f32 %v24019_v4, %v24019_v4  ;;  %v24031_v37 = vadd.f32 %v23850_v8, %v12674_v16  ;;  %v26239_v31 = vld [vmem:[#allocation9_spill] sm:$0xff]  ;;  %v24043_v16 = vpop.f32.mrf.mxu0 }
 0x5d3   :  { %v17825_v54 = vpop.f32.mrf.mxu1  ;;  %v12820_v39 = vadd.f32 %v12819_v51, %v12818_v0  ;;  %v13016_v25 = vadd.f32 %v13015_v42, %v13014_v62  ;;  %v11971_v27 = vadd.f32 %v23742_v49, %v26239_v31  ;;  %v13019_v49 = vsel %vm26_vm0, %v12941_v38, 0.0  ;;  %v26241_v31 = vld [vmem:[#allocation8_spill] sm:$0xff] }
 0x5d4   :  { %v24034_v19 = vadd.f32 %v23850_v8, %v12673_v14  ;;  %v12676_v2 = vadd.f32 %v17825_v54, %v11969_v33  ;;  %v13017_v52 = vsel %vm26_vm0, %v12940_v53, 0.0  ;;  %v12943_v3 = vmul.f32 %v24031_v37, %v24031_v37 }
 0x5d5   :  { %v12428_v50 = vpop.f32.mrf.mxu1  ;;  %v13018_v21 = vadd.f32 %v13017_v52, %v13016_v25  ;;  %v12822_v42 = vadd.f32 %v12821_v24, %v12820_v39  ;;  %v11973_v32 = vadd.f32 %v23758_v6, %v26241_v31  ;;  %v11972_v24 = vadd.f32 %v23766_v5, %v23674_v40 }
 0x5d6   :  { %v12823_v14 = vsel %vm26_vm0, %v24034_v19, 0.0  ;;  %v12942_v33 = vmul.f32 %v24034_v19, %v24034_v19  ;;  %v24053_v62 = vadd.f32 %v23850_v8, %v12676_v2  ;;  %v12675_v0 = vadd.f32 %v12428_v50, %v11968_v57  ;;  %v24065_v57 = vpop.f32.mrf.mxu0 }
 0x5d7   :  { %v17828_v51 = vpop.f32.mrf.mxu1  ;;  %v12824_v53 = vadd.f32 %v12823_v14, %v12822_v42  ;;  %v13020_v54 = vadd.f32 %v13019_v49, %v13018_v21  ;;  %v12825_v38 = vsel %vm26_vm0, %v24031_v37, 0.0  ;;  %v13023_v6 = vsel %vm26_vm0, %v12943_v3, 0.0  ;;  %v26243_v49 = vld [vmem:[#allocation78_spill] sm:$0xff] }
 0x5d8   :  { %v13021_v39 = vsel %vm26_vm0, %v12942_v33, 0.0  ;;  %v12678_v25 = vadd.f32 %v17828_v51, %v11971_v27  ;;  %v24063_v52 = vadd.f32 %v23850_v8, %v12675_v0  ;;  %v12945_v21 = vmul.f32 %v24053_v62, %v24053_v62 }
 0x5d9   :  { %v12438_v2 = vpop.f32.mrf.mxu1  ;;  %v13022_v50 = vadd.f32 %v13021_v39, %v13020_v54  ;;  %v12826_v27 = vadd.f32 %v12825_v38, %v12824_v53  ;;  %v11975_v0 = vadd.f32 %v23774_v45, %v26243_v49  ;;  %v11974_v51 = vadd.f32 %v23782_v23, %v23684_v47  ;;  %v24087_v38 = vpop.f32.mrf.mxu0 }
 0x5da   :  { %26242 = vst [vmem:[#allocation28_spill] sm:$0xff] %v24063_v52  ;;  %v12677_v42 = vadd.f32 %v12438_v2, %v11970_v22  ;;  %v12827_v40 = vsel %vm26_vm0, %v24063_v52, 0.0  ;;  %v12944_v5 = vmul.f32 %v24063_v52, %v24063_v52  ;;  %v24075_v14 = vadd.f32 %v23850_v8, %v12678_v25 }
 0x5db   :  { %v17831_v33 = vpop.f32.mrf.mxu1  ;;  %v12828_v53 = vadd.f32 %v12827_v40, %v12826_v27  ;;  %v13024_v22 = vadd.f32 %v13023_v6, %v13022_v50  ;;  %v12829_v3 = vsel %vm26_vm0, %v24053_v62, 0.0  ;;  %v13027_v2 = vsel %vm26_vm0, %v12945_v21, 0.0 }
 0x5dc   :  { %v13025_v54 = vsel %vm26_vm0, %v12944_v5, 0.0  ;;  %v24085_v39 = vadd.f32 %v23850_v8, %v12677_v42  ;;  %v12680_v31 = vadd.f32 %v17831_v33, %v11973_v32  ;;  %v12947_v47 = vmul.f32 %v24075_v14, %v24075_v14  ;;  %v26245_v33 = vld [vmem:[#allocation51_spill] sm:$0xff] }
 0x5dd   :  { %v12448_v25 = vpop.f32.mrf.mxu1  ;;  %v13026_v45 = vadd.f32 %v13025_v54, %v13024_v22  ;;  %v12830_v49 = vadd.f32 %v12829_v3, %v12828_v53  ;;  %v11976_v53 = vadd.f32 %v23798_v46, %v26245_v33  ;;  %v12833_v22 = vsel %vm26_vm0, %v24075_v14, 0.0 }
 0x5de   :  { %v12679_v52 = vadd.f32 %v12448_v25, %v11972_v24  ;;  %v12831_v23 = vsel %vm26_vm0, %v24085_v39, 0.0  ;;  %v12946_v50 = vmul.f32 %v24085_v39, %v24085_v39  ;;  %v24097_v27 = vadd.f32 %v23850_v8, %v12680_v31  ;;  %v26244_v24 = vld [vmem:[#allocation11_spill] sm:$0xff]  ;;  %v24109_v31 = vpop.f32.mrf.mxu0 }
 0x5df   :  { %v17834_v32 = vpop.f32.mrf.mxu1  ;;  %v12832_v42 = vadd.f32 %v12831_v23, %v12830_v49  ;;  %v13028_v6 = vadd.f32 %v13027_v2, %v13026_v45  ;;  %v11977_v5 = vadd.f32 %v23790_v61, %v26244_v24  ;;  %v13031_v61 = vsel %vm26_vm0, %v12947_v47, 0.0  ;;  %v26246_v24 = vld [vmem:[#allocation10_spill] sm:$0xff] }
 0x5e0   :  { %v24100_v21 = vadd.f32 %v23850_v8, %v12679_v52  ;;  %v12682_v40 = vadd.f32 %v17834_v32, %v11975_v0  ;;  %v13029_v3 = vsel %vm26_vm0, %v12946_v50, 0.0  ;;  %v12949_v46 = vmul.f32 %v24097_v27, %v24097_v27 }
 0x5e1   :  { %v12458_v54 = vpop.f32.mrf.mxu1  ;;  %v13030_v25 = vadd.f32 %v13029_v3, %v13028_v6  ;;  %v12834_v2 = vadd.f32 %v12833_v22, %v12832_v42  ;;  %v11979_v33 = vadd.f32 %v23806_v29, %v26246_v24  ;;  %v11978_v22 = vadd.f32 %v23814_v44, %v23704_v43 }
 0x5e2   :  { %v12835_v52 = vsel %vm26_vm0, %v24100_v21, 0.0  ;;  %v12948_v0 = vmul.f32 %v24100_v21, %v24100_v21  ;;  %v24119_v45 = vadd.f32 %v23850_v8, %v12682_v40  ;;  %v12681_v49 = vadd.f32 %v12458_v54, %v11974_v51  ;;  %v24131_v51 = vpop.f32.mrf.mxu0 }
 0x5e3   :  { %v17837_v23 = vpop.f32.mrf.mxu1  ;;  %v12836_v50 = vadd.f32 %v12835_v52, %v12834_v2  ;;  %v13032_v32 = vadd.f32 %v13031_v61, %v13030_v25  ;;  %v12837_v47 = vsel %vm26_vm0, %v24097_v27, 0.0  ;;  %v13035_v29 = vsel %vm26_vm0, %v12949_v46, 0.0 }
 0x5e4   :  { %v13033_v42 = vsel %vm26_vm0, %v12948_v0, 0.0  ;;  %v12684_v6 = vadd.f32 %v17837_v23, %v11977_v5  ;;  %v24129_v3 = vadd.f32 %v23850_v8, %v12681_v49  ;;  %v12951_v25 = vmul.f32 %v24119_v45, %v24119_v45  ;;  %v26248_v49 = vld [vmem:[#allocation80_spill] sm:$0xff] }
 0x5e5   :  { %v12468_v40 = vpop.f32.mrf.mxu1  ;;  %v13034_v54 = vadd.f32 %v13033_v42, %v13032_v32  ;;  %v12838_v5 = vadd.f32 %v12837_v47, %v12836_v50  ;;  %v11981_v61 = vadd.f32 %v23822_v15, %v23708_v41  ;;  %v11980_v23 = vadd.f32 %v23830_v7, %v26248_v49  ;;  %v24153_v47 = vpop.f32.mrf.mxu0  ;;  %v26252_v49 = vld [vmem:[#allocation79_spill] sm:$0xff] }
 0x5e6   :  { %26247 = vst [vmem:[#allocation56_spill] sm:$0xff] %v24129_v3  ;;  %v12683_v2 = vadd.f32 %v12468_v40, %v11976_v53  ;;  %v12839_v43 = vsel %vm26_vm0, %v24129_v3, 0.0  ;;  %v12950_v44 = vmul.f32 %v24129_v3, %v24129_v3  ;;  %v24141_v52 = vadd.f32 %v23850_v8, %v12684_v6 }
 0x5e7   :  { %v17840_v0 = vpop.f32.mrf.mxu1  ;;  %v12840_v50 = vadd.f32 %v12839_v43, %v12838_v5  ;;  %v13036_v53 = vadd.f32 %v13035_v29, %v13034_v54  ;;  %v12841_v46 = vsel %vm26_vm0, %v24119_v45, 0.0  ;;  %v13039_v40 = vsel %vm26_vm0, %v12951_v25, 0.0 }
 0x5e8   :  { %v13037_v32 = vsel %vm26_vm0, %v12950_v44, 0.0  ;;  %v24151_v42 = vadd.f32 %v23850_v8, %v12683_v2  ;;  %v12686_v24 = vadd.f32 %v17840_v0, %v11979_v33  ;;  %v12953_v7 = vmul.f32 %v24141_v52, %v24141_v52 }
 0x5e9   :  { %v12478_v6 = vpop.f32.mrf.mxu1  ;;  %v13038_v41 = vadd.f32 %v13037_v32, %v13036_v53  ;;  %v12842_v15 = vadd.f32 %v12841_v46, %v12840_v50  ;;  %v11982_v50 = vadd.f32 %v23854_v18, %v26252_v49  ;;  %v12845_v53 = vsel %vm26_vm0, %v24141_v52, 0.0 }
 0x5ea   :  { %v12685_v3 = vadd.f32 %v12478_v6, %v11978_v22  ;;  %v12843_v54 = vsel %vm26_vm0, %v24151_v42, 0.0  ;;  %v12952_v5 = vmul.f32 %v24151_v42, %v24151_v42  ;;  %v24163_v2 = vadd.f32 %v23850_v8, %v12686_v24  ;;  %v26251_v22 = vld [vmem:[#allocation13_spill] sm:$0xff]  ;;  %v24175_v24 = vpop.f32.mrf.mxu0 }
 0x5eb   :  { %v17843_v33 = vpop.f32.mrf.mxu1  ;;  %v12844_v29 = vadd.f32 %v12843_v54, %v12842_v15  ;;  %v13040_v43 = vadd.f32 %v13039_v40, %v13038_v41  ;;  %v11983_v0 = vadd.f32 %v23840_v17, %v26251_v22  ;;  %v13043_v17 = vsel %vm26_vm0, %v12953_v7, 0.0  ;;  %v26253_v22 = vld [vmem:[#allocation12_spill] sm:$0xff] }
 0x5ec   :  { %26249 = vst [vmem:[#allocation57_spill] sm:$0xff] %v24163_v2  ;;  %v24166_v25 = vadd.f32 %v23850_v8, %v12685_v3  ;;  %v12688_v44 = vadd.f32 %v17843_v33, %v11981_v61  ;;  %v13041_v46 = vsel %vm26_vm0, %v12952_v5, 0.0  ;;  %v12955_v18 = vmul.f32 %v24163_v2, %v24163_v2 }
 0x5ed   :  { %v12488_v32 = vpop.f32.mrf.mxu1  ;;  %v13042_v6 = vadd.f32 %v13041_v46, %v13040_v43  ;;  %v12846_v40 = vadd.f32 %v12845_v53, %v12844_v29  ;;  %v11985_v49 = vadd.f32 %v23866_v12, %v26253_v22  ;;  %v26254_v53 = vld [vmem:[#allocation82_spill] sm:$0xff]  ;;  %v12849_v7 = vsel %vm26_vm0, %v24163_v2, 0.0 }
 0x5ee   :  { %26250 = vst [vmem:[#allocation26_spill] sm:$0xff] %v24166_v25  ;;  %v12847_v3 = vsel %vm26_vm0, %v24166_v25, 0.0  ;;  %v12954_v61 = vmul.f32 %v24166_v25, %v24166_v25  ;;  %v24185_v41 = vadd.f32 %v23850_v8, %v12688_v44  ;;  %v12687_v15 = vadd.f32 %v12488_v32, %v11980_v23  ;;  %v24197_v23 = vpop.f32.mrf.mxu0 }
 0x5ef   :  { %v17846_v54 = vpop.f32.mrf.mxu1  ;;  %v12848_v5 = vadd.f32 %v12847_v3, %v12846_v40  ;;  %v13044_v33 = vadd.f32 %v13043_v17, %v13042_v6  ;;  %v11984_v46 = vadd.f32 %v23889_v59, %v26254_v53  ;;  %v13047_v12 = vsel %vm26_vm0, %v12955_v18, 0.0 }
 0x5f0   :  { %v13045_v29 = vsel %vm26_vm0, %v12954_v61, 0.0  ;;  %v12690_v43 = vadd.f32 %v17846_v54, %v11983_v0  ;;  %v24195_v25 = vadd.f32 %v23850_v8, %v12687_v15  ;;  %v12957_v6 = vmul.f32 %v24185_v41, %v24185_v41  ;;  %v26256_v15 = vld [vmem:[#allocation15_spill] sm:$0xff] }
 0x5f1   :  { %v12498_v44 = vpop.f32.mrf.mxu1  ;;  %v13046_v32 = vadd.f32 %v13045_v29, %v13044_v33  ;;  %v12850_v0 = vadd.f32 %v12849_v7, %v12848_v5  ;;  %v11987_v54 = vadd.f32 %v23911_v63, %v26256_v15  ;;  %v26257_v33 = vld [vmem:[#allocation81_spill] sm:$0xff]  ;;  %v12853_v18 = vsel %vm26_vm0, %v24185_v41, 0.0 }
 0x5f2   :  { %26255 = vst [vmem:[#allocation59_spill] sm:$0xff] %v24195_v25  ;;  %v12689_v40 = vadd.f32 %v12498_v44, %v11982_v50  ;;  %v12851_v59 = vsel %vm26_vm0, %v24195_v25, 0.0  ;;  %v12956_v3 = vmul.f32 %v24195_v25, %v24195_v25  ;;  %v24207_v61 = vadd.f32 %v23850_v8, %v12690_v43  ;;  %v24219_v44 = vpop.f32.mrf.mxu0 }
 0x5f3   :  { %v17849_v17 = vpop.f32.mrf.mxu1  ;;  %v11986_v29 = vadd.f32 %v23933_v28, %v26257_v33  ;;  %v12852_v5 = vadd.f32 %v12851_v59, %v12850_v0  ;;  %v13048_v50 = vadd.f32 %v13047_v12, %v13046_v32  ;;  %v13051_v25 = vsel %vm26_vm0, %v12957_v6, 0.0  ;;  %v26261_v33 = vld [vmem:[#allocation84_spill] sm:$0xff] }
 0x5f4   :  { %v13049_v22 = vsel %vm26_vm0, %v12956_v3, 0.0  ;;  %v24217_v53 = vadd.f32 %v23850_v8, %v12689_v40  ;;  %v12692_v7 = vadd.f32 %v17849_v17, %v11985_v49  ;;  %v12959_v28 = vmul.f32 %v24207_v61, %v24207_v61 }
 0x5f5   :  { %v12508_v43 = vpop.f32.mrf.mxu1  ;;  %v13050_v63 = vadd.f32 %v13049_v22, %v13048_v50  ;;  %v12854_v15 = vadd.f32 %v12853_v18, %v12852_v5  ;;  %v11988_v5 = vadd.f32 %v23977_v56, %v26261_v33  ;;  %v12857_v50 = vsel %vm26_vm0, %v24207_v61, 0.0 }
 0x5f6   :  { %v12691_v2 = vadd.f32 %v12508_v43, %v11984_v46  ;;  %v12855_v32 = vsel %vm26_vm0, %v24217_v53, 0.0  ;;  %v12958_v0 = vmul.f32 %v24217_v53, %v24217_v53  ;;  %v24229_v40 = vadd.f32 %v23850_v8, %v12692_v7  ;;  %v26260_v46 = vld [vmem:[#allocation14_spill] sm:$0xff]  ;;  %v24241_v7 = vpop.f32.mrf.mxu0 }
 0x5f7   :  { %v17852_v49 = vpop.f32.mrf.mxu1  ;;  %v12856_v12 = vadd.f32 %v12855_v32, %v12854_v15  ;;  %v13052_v59 = vadd.f32 %v13051_v25, %v13050_v63  ;;  %v11989_v17 = vadd.f32 %v23955_v36, %v26260_v46  ;;  %v13055_v36 = vsel %vm26_vm0, %v12959_v28, 0.0  ;;  %v26262_v46 = vld [vmem:[#allocation17_spill] sm:$0xff] }
 0x5f8   :  { %26258 = vst [vmem:[#allocation29_spill] sm:$0xff] %v24229_v40  ;;  %v24232_v6 = vadd.f32 %v23850_v8, %v12691_v2  ;;  %v12694_v3 = vadd.f32 %v17852_v49, %v11987_v54  ;;  %v13053_v18 = vsel %vm26_vm0, %v12958_v0, 0.0  ;;  %v12961_v56 = vmul.f32 %v24229_v40, %v24229_v40 }
 0x5f9   :  { %v12518_v22 = vpop.f32.mrf.mxu1  ;;  %v13054_v43 = vadd.f32 %v13053_v18, %v13052_v59  ;;  %v12858_v25 = vadd.f32 %v12857_v50, %v12856_v12  ;;  %v11991_v33 = vadd.f32 %v23999_v11, %v26262_v46  ;;  %v26263_v50 = vld [vmem:[#allocation83_spill] sm:$0xff]  ;;  %v12861_v28 = vsel %vm26_vm0, %v24229_v40, 0.0 }
 0x5fa   :  { %26259 = vst [vmem:[#allocation58_spill] sm:$0xff] %v24232_v6  ;;  %v12859_v2 = vsel %vm26_vm0, %v24232_v6, 0.0  ;;  %v12960_v54 = vmul.f32 %v24232_v6, %v24232_v6  ;;  %v24251_v63 = vadd.f32 %v23850_v8, %v12694_v3  ;;  %v12693_v15 = vadd.f32 %v12518_v22, %v11986_v29  ;;  %v24263_v29 = vpop.f32.mrf.mxu0 }
 0x5fb   :  { %v17855_v32 = vpop.f32.mrf.mxu1  ;;  %v12860_v0 = vadd.f32 %v12859_v2, %v12858_v25  ;;  %v13056_v49 = vadd.f32 %v13055_v36, %v13054_v43  ;;  %v11990_v18 = vadd.f32 %v24021_v10, %v26263_v50  ;;  %v13059_v11 = vsel %vm26_vm0, %v12961_v56, 0.0 }
 0x5fc   :  { %v13057_v12 = vsel %vm26_vm0, %v12960_v54, 0.0  ;;  %v12696_v59 = vadd.f32 %v17855_v32, %v11989_v17  ;;  %v24261_v6 = vadd.f32 %v23850_v8, %v12693_v15  ;;  %v12963_v43 = vmul.f32 %v24251_v63, %v24251_v63  ;;  %v26265_v15 = vld [vmem:[#allocation86_spill] sm:$0xff] }
 0x5fd   :  { %v12528_v3 = vpop.f32.mrf.mxu1  ;;  %v13058_v22 = vadd.f32 %v13057_v12, %v13056_v49  ;;  %v12862_v17 = vadd.f32 %v12861_v28, %v12860_v0  ;;  %v11993_v32 = vadd.f32 %v24043_v16, %v26265_v15  ;;  %v26266_v49 = vld [vmem:[#allocation16_spill] sm:$0xff]  ;;  %v12865_v56 = vsel %vm26_vm0, %v24251_v63, 0.0 }
 0x5fe   :  { %26264 = vst [vmem:[#allocation27_spill] sm:$0xff] %v24261_v6  ;;  %v12695_v25 = vadd.f32 %v12528_v3, %v11988_v5  ;;  %v12863_v10 = vsel %vm26_vm0, %v24261_v6, 0.0  ;;  %v12962_v2 = vmul.f32 %v24261_v6, %v24261_v6  ;;  %v24273_v54 = vadd.f32 %v23850_v8, %v12696_v59  ;;  %v24285_v3 = vpop.f32.mrf.mxu0 }
 0x5ff   :  { %v17858_v36 = vpop.f32.mrf.mxu1  ;;  %v11992_v12 = vadd.f32 %v24065_v57, %v26266_v49  ;;  %v12864_v0 = vadd.f32 %v12863_v10, %v12862_v17  ;;  %v13060_v5 = vadd.f32 %v13059_v11, %v13058_v22  ;;  %v13063_v6 = vsel %vm26_vm0, %v12963_v43, 0.0  ;;  %v26270_v49 = vld [vmem:[#allocation19_spill] sm:$0xff] }
 0x600   :  { %v13061_v46 = vsel %vm26_vm0, %v12962_v2, 0.0  ;;  %v24283_v50 = vadd.f32 %v23850_v8, %v12695_v25  ;;  %v12698_v28 = vadd.f32 %v17858_v36, %v11991_v33  ;;  %v12965_v57 = vmul.f32 %v24273_v54, %v24273_v54 }
 0x601   :  { %v12538_v59 = vpop.f32.mrf.mxu1  ;;  %v13062_v16 = vadd.f32 %v13061_v46, %v13060_v5  ;;  %v12866_v15 = vadd.f32 %v12865_v56, %v12864_v0  ;;  %v11994_v0 = vadd.f32 %v24109_v31, %v26270_v49  ;;  %v12869_v5 = vsel %vm26_vm0, %v24273_v54, 0.0 }
 0x602   :  { %v12697_v40 = vadd.f32 %v12538_v59, %v11990_v18  ;;  %v12867_v22 = vsel %vm26_vm0, %v24283_v50, 0.0  ;;  %v12964_v17 = vmul.f32 %v24283_v50, %v24283_v50  ;;  %v24295_v25 = vadd.f32 %v23850_v8, %v12698_v28  ;;  %v26269_v18 = vld [vmem:[#allocation85_spill] sm:$0xff]  ;;  %v24307_v28 = vpop.f32.mrf.mxu0 }
 0x603   :  { %v17861_v33 = vpop.f32.mrf.mxu1  ;;  %v12868_v11 = vadd.f32 %v12867_v22, %v12866_v15  ;;  %v13064_v10 = vadd.f32 %v13063_v6, %v13062_v16  ;;  %v11995_v36 = vadd.f32 %v24087_v38, %v26269_v18  ;;  %v13067_v38 = vsel %vm26_vm0, %v12965_v57, 0.0  ;;  %v26271_v18 = vld [vmem:[#allocation88_spill] sm:$0xff] }
 0x604   :  { %26267 = vst [vmem:[#allocation62_spill] sm:$0xff] %v24295_v25  ;;  %v24298_v43 = vadd.f32 %v23850_v8, %v12697_v40  ;;  %v12700_v2 = vadd.f32 %v17861_v33, %v11993_v32  ;;  %v13065_v56 = vsel %vm26_vm0, %v12964_v17, 0.0  ;;  %v12967_v31 = vmul.f32 %v24295_v25, %v24295_v25 }
 0x605   :  { %v12548_v46 = vpop.f32.mrf.mxu1  ;;  %v13066_v59 = vadd.f32 %v13065_v56, %v13064_v10  ;;  %v12870_v6 = vadd.f32 %v12869_v5, %v12868_v11  ;;  %v11997_v49 = vadd.f32 %v24131_v51, %v26271_v18  ;;  %v26272_v5 = vld [vmem:[#allocation87_spill] sm:$0xff]  ;;  %v12873_v57 = vsel %vm26_vm0, %v24295_v25, 0.0 }
 0x606   :  { %26268 = vst [vmem:[#allocation30_spill] sm:$0xff] %v24298_v43  ;;  %v12871_v40 = vsel %vm26_vm0, %v24298_v43, 0.0  ;;  %v12966_v32 = vmul.f32 %v24298_v43, %v24298_v43  ;;  %v24317_v16 = vadd.f32 %v23850_v8, %v12700_v2  ;;  %v12699_v15 = vadd.f32 %v12548_v46, %v11992_v12  ;;  %v24329_v12 = vpop.f32.mrf.mxu0 }
 0x607   :  { %v17864_v22 = vpop.f32.mrf.mxu1  ;;  %v12872_v17 = vadd.f32 %v12871_v40, %v12870_v6  ;;  %v13068_v33 = vadd.f32 %v13067_v38, %v13066_v59  ;;  %v11996_v56 = vadd.f32 %v24153_v47, %v26272_v5  ;;  %v13071_v51 = vsel %vm26_vm0, %v12967_v31, 0.0 }
 0x608   :  { %v13069_v11 = vsel %vm26_vm0, %v12966_v32, 0.0  ;;  %v12702_v10 = vadd.f32 %v17864_v22, %v11995_v36  ;;  %v24327_v43 = vadd.f32 %v23850_v8, %v12699_v15  ;;  %v12969_v59 = vmul.f32 %v24317_v16, %v24317_v16  ;;  %v26274_v15 = vld [vmem:[#allocation18_spill] sm:$0xff] }
 0x609   :  { %v12558_v2 = vpop.f32.mrf.mxu1  ;;  %v13070_v46 = vadd.f32 %v13069_v11, %v13068_v33  ;;  %v12874_v36 = vadd.f32 %v12873_v57, %v12872_v17  ;;  %v11999_v22 = vadd.f32 %v24175_v24, %v26274_v15  ;;  %v26275_v33 = vld [vmem:[#allocation21_spill] sm:$0xff]  ;;  %v12877_v31 = vsel %vm26_vm0, %v24317_v16, 0.0 }
 0x60a   :  { %26273 = vst [vmem:[#allocation60_spill] sm:$0xff] %v24327_v43  ;;  %v12701_v6 = vadd.f32 %v12558_v2, %v11994_v0  ;;  %v12875_v47 = vsel %vm26_vm0, %v24327_v43, 0.0  ;;  %v12968_v40 = vmul.f32 %v24327_v43, %v24327_v43  ;;  %v24339_v32 = vadd.f32 %v23850_v8, %v12702_v10  ;;  %v24351_v2 = vpop.f32.mrf.mxu0 }
 0x60b   :  { %v17867_v38 = vpop.f32.mrf.mxu1  ;;  %v11998_v11 = vadd.f32 %v24197_v23, %v26275_v33  ;;  %v12876_v17 = vadd.f32 %v12875_v47, %v12874_v36  ;;  %v13072_v0 = vadd.f32 %v13071_v51, %v13070_v46  ;;  %v13075_v43 = vsel %vm26_vm0, %v12969_v59, 0.0 }
 0x60c   :  { %v13073_v18 = vsel %vm26_vm0, %v12968_v40, 0.0  ;;  %v24349_v5 = vadd.f32 %v23850_v8, %v12701_v6  ;;  %v12704_v57 = vadd.f32 %v17867_v38, %v11997_v49  ;;  %v12971_v23 = vmul.f32 %v24339_v32, %v24339_v32 }
 0x60d   :  { %v12568_v10 = vpop.f32.mrf.mxu1  ;;  %v13074_v24 = vadd.f32 %v13073_v18, %v13072_v0  ;;  %v12878_v15 = vadd.f32 %v12877_v31, %v12876_v17  ;;  %v12000_v33 = vadd.f32 %v24241_v7, %v23793_v58  ;;  %v12881_v17 = vsel %vm26_vm0, %v24339_v32, 0.0  ;;  %v11911_v18 = vpop.f32.mrf.mxu0 }
 0x60e   :  { %v12703_v25 = vadd.f32 %v12568_v10, %v11996_v56  ;;  %v12879_v46 = vsel %vm26_vm0, %v24349_v5, 0.0  ;;  %v12970_v36 = vmul.f32 %v24349_v5, %v24349_v5  ;;  %v24361_v6 = vadd.f32 %v23850_v8, %v12704_v57  ;;  %v26276_v56 = vld [vmem:[#allocation90_spill] sm:$0xff] }
 0x60f   :  { %v17870_v49 = vpop.f32.mrf.mxu1  ;;  %v12880_v51 = vadd.f32 %v12879_v46, %v12878_v15  ;;  %v13076_v47 = vadd.f32 %v13075_v43, %v13074_v24  ;;  %v12001_v38 = vadd.f32 %v24219_v44, %v26276_v56  ;;  %v13079_v44 = vsel %vm26_vm0, %v12971_v23, 0.0  ;;  %v26278_v56 = vld [vmem:[#allocation20_spill] sm:$0xff] }
 0x610   :  { %v24364_v59 = vadd.f32 %v23850_v8, %v12703_v25  ;;  %v12706_v40 = vadd.f32 %v17870_v49, %v11999_v22  ;;  %v13077_v0 = vsel %vm26_vm0, %v12970_v36, 0.0  ;;  %v12973_v58 = vmul.f32 %v24361_v6, %v24361_v6 }
 0x611   :  { %v12578_v31 = vpop.f32.mrf.mxu1  ;;  %v13078_v57 = vadd.f32 %v13077_v0, %v13076_v47  ;;  %v12882_v10 = vadd.f32 %v12881_v17, %v12880_v51  ;;  %v26277_v51 = vld [vmem:[#allocation89_spill] sm:$0xff]  ;;  %v12002_v17 = vadd.f32 %v24285_v3, %v26278_v56  ;;  %v12885_v23 = vsel %vm26_vm0, %v24361_v6, 0.0 }
 0x612   :  { %v12883_v25 = vsel %vm26_vm0, %v24364_v59, 0.0  ;;  %v12972_v43 = vmul.f32 %v24364_v59, %v24364_v59  ;;  %v24381_v7 = vadd.f32 %v23850_v8, %v12706_v40  ;;  %v12705_v22 = vadd.f32 %v12578_v31, %v11998_v11  ;;  %v17787_v11 = vpop.f32.mrf.mxu0 }
 0x613   :  { %v17873_v24 = vpop.f32.mrf.mxu1  ;;  %v12884_v15 = vadd.f32 %v12883_v25, %v12882_v10  ;;  %v13080_v46 = vadd.f32 %v13079_v44, %v13078_v57  ;;  %v12003_v47 = vadd.f32 %v24263_v29, %v26277_v51  ;;  %v13083_v25 = vsel %vm26_vm0, %v12973_v58, 0.0 }
 0x614   :  { %v13081_v36 = vsel %vm26_vm0, %v12972_v43, 0.0  ;;  %v12708_v49 = vadd.f32 %v17873_v24, %v12001_v38  ;;  %v24391_v0 = vadd.f32 %v23850_v8, %v12705_v22  ;;  %v12975_v57 = vmul.f32 %v24381_v7, %v24381_v7  ;;  %v26280_v22 = vld [vmem:[#allocation91_spill] sm:$0xff] }
 0x615   :  { %v12588_v40 = vpop.f32.mrf.mxu1  ;;  %v13082_v31 = vadd.f32 %v13081_v36, %v13080_v46  ;;  %v12886_v10 = vadd.f32 %v12885_v23, %v12884_v15  ;;  %v12005_v24 = vadd.f32 %v24307_v28, %v26280_v22  ;;  %v12004_v46 = vadd.f32 %v24329_v12, %v23809_v60  ;;  %v11921_v23 = vpop.f32.mrf.mxu0 }
 0x616   :  { %26279 = vst [vmem:[#allocation76_spill] sm:$0xff] %v24391_v0  ;;  %v12707_v38 = vadd.f32 %v12588_v40, %v12000_v33  ;;  %v12887_v29 = vsel %vm26_vm0, %v24391_v0, 0.0  ;;  %v12974_v3 = vmul.f32 %v24391_v0, %v24391_v0  ;;  %v24401_v43 = vadd.f32 %v23850_v8, %v12708_v49 }
 0x617   :  { %v17876_v44 = vpop.f32.mrf.mxu1  ;;  %v12888_v15 = vadd.f32 %v12887_v29, %v12886_v10  ;;  %v13084_v33 = vadd.f32 %v13083_v25, %v13082_v31  ;;  %v12889_v58 = vsel %vm26_vm0, %v24381_v7, 0.0  ;;  %v13087_v40 = vsel %vm26_vm0, %v12975_v57, 0.0 }
 0x618   :  { %v13085_v36 = vsel %vm26_vm0, %v12974_v3, 0.0  ;;  %v24411_v51 = vadd.f32 %v23850_v8, %v12707_v38  ;;  %v12710_v56 = vadd.f32 %v17876_v44, %v12003_v47  ;;  %v12977_v60 = vmul.f32 %v24401_v43, %v24401_v43 }
 0x619   :  { %v12598_v49 = vpop.f32.mrf.mxu1  ;;  %v13086_v0 = vadd.f32 %v13085_v36, %v13084_v33  ;;  %v12890_v28 = vadd.f32 %v12889_v58, %v12888_v15  ;;  %v12006_v44 = vadd.f32 %v11911_v18, %v23817_v26  ;;  %v12893_v15 = vsel %vm26_vm0, %v24401_v43, 0.0  ;;  %v17790_v36 = vpop.f32.mrf.mxu0 }
 0x61a   :  { %v12709_v22 = vadd.f32 %v12598_v49, %v12002_v17  ;;  %v12891_v12 = vsel %vm26_vm0, %v24411_v51, 0.0  ;;  %v12976_v31 = vmul.f32 %v24411_v51, %v24411_v51  ;;  %v24421_v10 = vadd.f32 %v23850_v8, %v12710_v56  ;;  %v26281_v17 = vld [vmem:[#allocation93_spill] sm:$0xff] }
 0x61b   :  { %v17879_v47 = vpop.f32.mrf.mxu1  ;;  %v12892_v38 = vadd.f32 %v12891_v12, %v12890_v28  ;;  %v13088_v25 = vadd.f32 %v13087_v40, %v13086_v0  ;;  %v12007_v3 = vadd.f32 %v24351_v2, %v26281_v17  ;;  %v13091_v40 = vsel %vm26_vm0, %v12977_v60, 0.0 }
 0x61c   :  { %v24424_v57 = vadd.f32 %v23850_v8, %v12709_v22  ;;  %v12712_v29 = vadd.f32 %v17879_v47, %v12005_v24  ;;  %v13089_v33 = vsel %vm26_vm0, %v12976_v31, 0.0  ;;  %v12979_v26 = vmul.f32 %v24421_v10, %v24421_v10 }
 0x61d   :  { %v12608_v58 = vpop.f32.mrf.mxu1  ;;  %v13090_v56 = vadd.f32 %v13089_v33, %v13088_v25  ;;  %v12894_v49 = vadd.f32 %v12893_v15, %v12892_v38  ;;  %v26282_v38 = vld [vmem:[#allocation50_spill] sm:$0xff]  ;;  %v12008_v17 = vadd.f32 %v11921_v23, %v23825_v13  ;;  %v12897_v60 = vsel %vm26_vm0, %v24421_v10, 0.0  ;;  %v24450_v15 = vld [vmem:[%s25375_s4] ss:$0 sm:$0xff] }
 0x61e   :  { %v12895_v0 = vsel %vm26_vm0, %v24424_v57, 0.0  ;;  %v12978_v24 = vmul.f32 %v24424_v57, %v24424_v57  ;;  %v24440_v2 = vadd.f32 %v23850_v8, %v12712_v29  ;;  %v12711_v18 = vadd.f32 %v12608_v58, %v12004_v46  ;;  %v11931_v29 = vpop.f32.mrf.mxu0 }
 0x61f   :  { %v17882_v28 = vpop.f32.mrf.mxu1  ;;  %v12896_v22 = vadd.f32 %v12895_v0, %v12894_v49  ;;  %v13092_v12 = vadd.f32 %v13091_v40, %v13090_v56  ;;  %v12009_v25 = vadd.f32 %v17787_v11, %v26282_v38  ;;  %v13095_v13 = vsel %vm26_vm0, %v12979_v26, 0.0 }
 0x620   :  { %v13093_v31 = vsel %vm26_vm0, %v12978_v24, 0.0  ;;  %v12714_v47 = vadd.f32 %v17882_v28, %v12007_v3  ;;  %v24453_v8 = vadd.f32 %v24450_v15, %v12711_v18  ;;  %v12981_v3 = vmul.f32 %v24440_v2, %v24440_v2  ;;  %v26285_v24 = vld [vmem:[#allocation46_spill] sm:$0xff]  ;;  %v17793_v28 = vpop.f32.mrf.mxu0 }
 0x621   :  { %v12618_v46 = vpop.f32.mrf.mxu1  ;;  %v13094_v33 = vadd.f32 %v13093_v31, %v13092_v12  ;;  %v12898_v11 = vadd.f32 %v12897_v60, %v12896_v22  ;;  %v12011_v40 = vadd.f32 %v17790_v36, %v26285_v24  ;;  %v12010_v18 = vadd.f32 %v11931_v29, %v23833_v20 }
 0x622   :  { %26283 = vst [vmem:[#allocation32_spill] sm:$0xff] %v24453_v8  ;;  %v12713_v58 = vadd.f32 %v12618_v46, %v12006_v44  ;;  %v12899_v23 = vsel %vm26_vm0, %v24453_v8, 0.0  ;;  %v12980_v56 = vmul.f32 %v24453_v8, %v24453_v8  ;;  %v24463_v49 = vadd.f32 %v24450_v15, %v12714_v47 }
 0x623   :  { %v17885_v0 = vpop.f32.mrf.mxu1  ;;  %v12900_v12 = vadd.f32 %v12899_v23, %v12898_v11  ;;  %v13096_v22 = vadd.f32 %v13095_v13, %v13094_v33  ;;  %v12901_v44 = vsel %vm26_vm0, %v24440_v2, 0.0  ;;  %v13099_v47 = vsel %vm26_vm0, %v12981_v3, 0.0 }
 0x624   :  { %26284 = vst [vmem:[#allocation63_spill] sm:$0xff] %v24463_v49  ;;  %v13097_v26 = vsel %vm26_vm0, %v12980_v56, 0.0  ;;  %v24471_v31 = vadd.f32 %v24450_v15, %v12713_v58  ;;  %v12716_v38 = vadd.f32 %v17885_v0, %v12009_v25  ;;  %v12983_v20 = vmul.f32 %v24463_v49, %v24463_v49  ;;  %v11941_v25 = vpop.f32.mrf.mxu0  ;;  %v26288_v56 = vld [vmem:[#allocation23_spill] sm:$0xff] }
 0x625   :  { %v12628_v60 = vpop.f32.mrf.mxu1  ;;  %v13098_v46 = vadd.f32 %v13097_v26, %v13096_v22  ;;  %v12902_v8 = vadd.f32 %v12901_v44, %v12900_v12  ;;  %v12013_v0 = vadd.f32 %v17793_v28, %v26288_v56  ;;  %v12905_v24 = vsel %vm26_vm0, %v24463_v49, 0.0 }
 0x626   :  { %v12715_v36 = vadd.f32 %v12628_v60, %v12008_v17  ;;  %v12903_v29 = vsel %vm26_vm0, %v24471_v31, 0.0  ;;  %v12982_v33 = vmul.f32 %v24471_v31, %v24471_v31  ;;  %v24481_v11 = vadd.f32 %v24450_v15, %v12716_v38 }
 0x627   :  { %v17888_v58 = vpop.f32.mrf.mxu1  ;;  %v12904_v13 = vadd.f32 %v12903_v29, %v12902_v8  ;;  %v13100_v23 = vadd.f32 %v13099_v47, %v13098_v46  ;;  %v13103_v28 = vsel %vm26_vm0, %v12983_v20, 0.0 }
 0x628   :  { %26286 = vst [vmem:[#allocation61_spill] sm:$0xff] %v24481_v11  ;;  %v24484_v3 = vadd.f32 %v24450_v15, %v12715_v36  ;;  %v12718_v17 = vadd.f32 %v17888_v58, %v12011_v40  ;;  %v13101_v12 = vsel %vm26_vm0, %v12982_v33, 0.0  ;;  %v12985_v22 = vmul.f32 %v24481_v11, %v24481_v11  ;;  %v26289_v40 = vld [vmem:[#allocation49_spill] sm:$0xff] }
 0x629   :  { %v12638_v44 = vpop.f32.mrf.mxu1  ;;  %v13102_v26 = vadd.f32 %v13101_v12, %v13100_v23  ;;  %v12906_v38 = vadd.f32 %v12905_v24, %v12904_v13  ;;  %v12012_v47 = vadd.f32 %v11941_v25, %v26289_v40  ;;  %v12909_v56 = vsel %vm26_vm0, %v24481_v11, 0.0 }
 0x62a   :  { %26287 = vst [vmem:[#allocation77_spill] sm:$0xff] %v24484_v3  ;;  %v12907_v8 = vsel %vm26_vm0, %v24484_v3, 0.0  ;;  %v12984_v60 = vmul.f32 %v24484_v3, %v24484_v3  ;;  %v24499_v46 = vadd.f32 %v24450_v15, %v12718_v17  ;;  %v12717_v36 = vadd.f32 %v12638_v44, %v12010_v18 }
 0x62b   :  { %v17891_v29 = vpop.f32.mrf.mxu1  ;;  %v12908_v33 = vadd.f32 %v12907_v8, %v12906_v38  ;;  %v13104_v58 = vadd.f32 %v13103_v28, %v13102_v26  ;;  %v13107_v25 = vsel %vm26_vm0, %v12985_v22, 0.0 }
 0x62c   :  { %v13105_v23 = vsel %vm26_vm0, %v12984_v60, 0.0  ;;  %v12720_v13 = vadd.f32 %v17891_v29, %v12013_v0  ;;  %v24505_v24 = vadd.f32 %v24450_v15, %v12717_v36  ;;  %v12987_v18 = vmul.f32 %v24499_v46, %v24499_v46 }
 0x62d   :  { %v12648_v12 = vpop.f32.mrf.mxu1  ;;  %v13106_v20 = vadd.f32 %v13105_v23, %v13104_v58  ;;  %v12910_v40 = vadd.f32 %v12909_v56, %v12908_v33  ;;  %v12913_v22 = vsel %vm26_vm0, %v24499_v46, 0.0 }
 0x62e   :  { %v12719_v17 = vadd.f32 %v12648_v12, %v12012_v47  ;;  %v12911_v44 = vsel %vm26_vm0, %v24505_v24, 0.0  ;;  %v12986_v0 = vmul.f32 %v24505_v24, %v24505_v24  ;;  %v24515_v26 = vadd.f32 %v24450_v15, %v12720_v13 }
 0x62f   :  { %v12912_v38 = vadd.f32 %v12911_v44, %v12910_v40  ;;  %v13108_v8 = vadd.f32 %v13107_v25, %v13106_v20  ;;  %v13111_v29 = vsel %vm26_vm0, %v12987_v18, 0.0 }
 0x630   :  { %v13109_v60 = vsel %vm26_vm0, %v12986_v0, 0.0  ;;  %v24521_v47 = vadd.f32 %v24450_v15, %v12719_v17  ;;  %v12989_v33 = vmul.f32 %v24515_v26, %v24515_v26  ;;  %v12917_v12 = vsel %vm26_vm0, %v24515_v26, 0.0 }
 0x631   :  { %v13110_v28 = vadd.f32 %v13109_v60, %v13108_v8  ;;  %v12914_v36 = vadd.f32 %v12913_v22, %v12912_v38 }
 0x632   :  { %v12915_v58 = vsel %vm26_vm0, %v24521_v47, 0.0  ;;  %v12988_v23 = vmul.f32 %v24521_v47, %v24521_v47  ;;  %v13115_v40 = vsel %vm26_vm0, %v12989_v33, 0.0  ;;  %v13134_v33 = vlaneseq }
 0x633   :  { %v12916_v13 = vadd.f32 %v12915_v58, %v12914_v36  ;;  %v13112_v56 = vadd.f32 %v13111_v29, %v13110_v28 }
 0x634   :  { %v13113_v15 = vsel %vm26_vm0, %v12988_v23, 0.0 }
 0x635   :  { %v12918_v25 = vadd.f32 %v12917_v12, %v12916_v13  ;;  %v13114_v20 = vadd.f32 %v13113_v15, %v13112_v56  ;;  %v24534_v15 = vshrl.u32 %v13134_v33, 7 }
 0x637   :  { %v12919_v17 = vrot.slane %v12918_v25, 4  ;;  %v13116_v18 = vadd.f32 %v13115_v40, %v13114_v20  ;;  %v25469_v20 = vsub.s32 0, %v24534_v15 }
 0x639   :  { %v12920_v44 = vadd.f32 %v12919_v17, %v12918_v25  ;;  %v13117_v0 = vrot.slane %v13116_v18, 4  ;;  %v13129_v25 = vld [vmem:[%s25376_s5] sm:$0x1] }
 0x63b   :  { %v12921_v38 = vrot.slane %v12920_v44, 2  ;;  %v13118_v8 = vadd.f32 %v13117_v0, %v13116_v18 }
 0x63d   :  { %v12922_v22 = vadd.f32 %v12921_v38, %v12920_v44  ;;  %v13119_v60 = vrot.slane %v13118_v8, 2  ;;  %v26290_v44 = vld [vmem:[#allocation53_spill] sm:$0xff] }
 0x63e   :  { %v26291_v38 = vld [vmem:[#allocation25_spill] sm:$0xff] }
 0x63f   :  { %v12923_v11 = vrot.slane %v12922_v22, 1  ;;  %v13120_v36 = vadd.f32 %v13119_v60, %v13118_v8 }
 0x641   :  { %v12924_v28 = vadd.f32 %v12923_v11, %v12922_v22  ;;  %v13121_v29 = vrot.slane %v13120_v36, 1  ;;  %v26292_v22 = vld [vmem:[#allocation22_spill] sm:$0xff] }
 0x643   :  { %v12925_v58 = vmul.f32 0.001953125, %v12924_v28  ;;  %v13122_v3 = vadd.f32 %v13121_v29, %v13120_v36  ;;  %v26293_v29 = vld [vmem:[#allocation52_spill] sm:$0xff] }
 0x645   :  { %v13123_v49 = vmul.f32 0.001953125, %v13122_v3  ;;  %v13124_v23 = vmul.f32 %v12925_v58, %v12925_v58  ;;  %v24543_v3 = vld [vmem:[%s25377_s6] sm:$0x1] }
 0x647   :  { %v13125_v13 = vsub.f32 %v13123_v49, %v13124_v23  ;;  %v26294_v23 = vld [vmem:[#allocation55_spill] sm:$0xff] }
 0x649   :  { %v13126_v56 = vmax.f32 %v13125_v13, 0.0 }
 0x64b   :  { %v13127_v12 = vadd.f32 1e-05, %v13126_v56 }
 0x64d   :  { %17893 = vrsqrt.f32 %v13127_v12  ;;  %v26295_v12 = vld [vmem:[#allocation24_spill] sm:$0xff] }
 0x65a   :  { %v17894_v40 = vpop.eup %17893 }
 0x65b   :  { %v13130_v11 = vmul.f32 %v17894_v40, %v13129_v25  ;;  %v26296_v25 = vld [vmem:[#allocation47_spill] sm:$0xff] }
 0x65d   :  { %v24545_v49 = vmul.f32 %v13130_v11, %v12925_v58  ;;  %v24549_v17 = vrot.slane %v13130_v11, %v25469_v20  ;;  %v26297_v11 = vld [vmem:[#allocation54_spill] sm:$0xff]  ;;  %v26307_v20 = vld [vmem:[#allocation27_spill] sm:$0xff] }
 0x65f   :  { %v13133_v18 = vsub.f32 %v24543_v3, %v24545_v49  ;;  %v24555_v0 = vmul.f32 %v24549_v17, %v26290_v44  ;;  %v24559_v8 = vmul.f32 %v24549_v17, %v26291_v38  ;;  %v24563_v60 = vmul.f32 %v24549_v17, %v26292_v22  ;;  %v26298_v38 = vld [vmem:[#allocation28_spill] sm:$0xff] }
 0x660   :  { %v24567_v36 = vmul.f32 %v24549_v17, %v23871_v9  ;;  %v24571_v28 = vmul.f32 %v24549_v17, %v23904_v48  ;;  %v24575_v58 = vmul.f32 %v24549_v17, %v26293_v29  ;;  %v24579_v13 = vmul.f32 %v24549_v17, %v26294_v23  ;;  %v26299_v29 = vld [vmem:[#allocation56_spill] sm:$0xff]  ;;  %v26300_v23 = vld [vmem:[#allocation26_spill] sm:$0xff] }
 0x661   :  { %v24583_v56 = vmul.f32 %v24549_v17, %v23921_v34  ;;  %v24587_v9 = vmul.f32 %v24549_v17, %v23953_v35  ;;  %v24591_v48 = vmul.f32 %v24549_v17, %v23943_v1  ;;  %v24595_v33 = vmul.f32 %v24549_v17, %v26295_v12  ;;  %v26301_v12 = vld [vmem:[#allocation57_spill] sm:$0xff] }
 0x662   :  { %v24599_v40 = vmul.f32 %v24549_v17, %v26296_v25  ;;  %v24603_v34 = vmul.f32 %v24549_v17, %v26297_v11  ;;  %v24607_v35 = vmul.f32 %v24549_v17, %v23987_v30  ;;  %v24611_v1 = vmul.f32 %v24549_v17, %v24019_v4  ;;  %v26302_v11 = vld [vmem:[#allocation59_spill] sm:$0xff] }
 0x663   :  { %v24615_v3 = vmul.f32 %v24549_v17, %v24009_v55  ;;  %v24619_v49 = vmul.f32 %v24549_v17, %v24034_v19  ;;  %v24623_v44 = vmul.f32 %v24549_v17, %v24031_v37  ;;  %v24627_v30 = vmul.f32 %v24549_v17, %v26298_v38 }
 0x664   :  { %v24631_v4 = vmul.f32 %v24549_v17, %v24053_v62  ;;  %v24635_v55 = vmul.f32 %v24549_v17, %v24085_v39  ;;  %v24639_v19 = vmul.f32 %v24549_v17, %v24075_v14  ;;  %v24643_v37 = vmul.f32 %v24549_v17, %v24100_v21 }
 0x665   :  { %v24647_v22 = vmul.f32 %v24549_v17, %v24097_v27  ;;  %v24651_v62 = vmul.f32 %v24549_v17, %v26299_v29  ;;  %v24655_v39 = vmul.f32 %v24549_v17, %v24119_v45  ;;  %v24659_v14 = vmul.f32 %v24549_v17, %v24151_v42  ;;  %v26303_v29 = vld [vmem:[#allocation58_spill] sm:$0xff] }
 0x666   :  { %v24663_v21 = vmul.f32 %v24549_v17, %v24141_v52  ;;  %v24667_v27 = vmul.f32 %v24549_v17, %v26300_v23  ;;  %v24671_v25 = vmul.f32 %v24549_v17, %v26301_v12  ;;  %v24675_v45 = vmul.f32 %v24549_v17, %v26302_v11  ;;  %v26305_v12 = vld [vmem:[#allocation29_spill] sm:$0xff] }
 0x667   :  { %v24679_v42 = vmul.f32 %v24549_v17, %v24185_v41  ;;  %v24683_v52 = vmul.f32 %v24549_v17, %v24217_v53  ;;  %v24687_v38 = vmul.f32 %v24549_v17, %v24207_v61  ;;  %v24691_v23 = vmul.f32 %v24549_v17, %v26303_v29 }
 0x668   :  { %v24695_v11 = vmul.f32 %v24549_v17, %v26305_v12  ;;  %v24699_v41 = vmul.f32 %v24549_v17, %v26307_v20  ;;  %v24703_v53 = vmul.f32 %v24549_v17, %v24251_v63  ;;  %v24707_v61 = vmul.f32 %v24549_v17, %v24283_v50 }
 0x669   :  { %26304 = vst [vmem:[#allocation34_spill] sm:$0xff] %v24691_v23  ;;  %v24711_v29 = vmul.f32 %v24549_v17, %v24273_v54  ;;  %v26309_v23 = vld [vmem:[#allocation30_spill] sm:$0xff]  ;;  %v24727_v50 = vmul.f32 %v24549_v17, %v24317_v16  ;;  %v24731_v54 = vmul.f32 %v24549_v17, %v24349_v5  ;;  %v24751_v5 = vmul.f32 %v24549_v17, %v24381_v7 }
 0x66a   :  { %26306 = vst [vmem:[#allocation66_spill] sm:$0xff] %v24695_v11  ;;  %26308 = vst [vmem:[#allocation64_spill] sm:$0xff] %v24699_v41  ;;  %v24715_v12 = vmul.f32 %v24549_v17, %v26309_v23  ;;  %v26310_v11 = vld [vmem:[#allocation62_spill] sm:$0xff]  ;;  %v26311_v41 = vld [vmem:[#allocation60_spill] sm:$0xff]  ;;  %v24735_v23 = vmul.f32 %v24549_v17, %v24339_v32  ;;  %v24755_v32 = vmul.f32 %v24549_v17, %v24411_v51 }
 0x66b   :  { %v24719_v20 = vmul.f32 %v24549_v17, %v26310_v11  ;;  %v24723_v63 = vmul.f32 %v24549_v17, %v26311_v41  ;;  %v24739_v11 = vmul.f32 %v24549_v17, %v24364_v59  ;;  %v24743_v41 = vmul.f32 %v24549_v17, %v24361_v6 }
 0x66c   :  { %v24759_v59 = vmul.f32 %v24549_v17, %v24401_v43  ;;  %v24763_v6 = vmul.f32 %v24549_v17, %v24424_v57  ;;  %v24771_v7 = vmul.f32 %v24549_v17, %v24505_v24  ;;  %v24775_v51 = vmul.f32 %v24549_v17, %v24499_v46 }
 0x66d   :  { %26312 = vst [vmem:[#allocation31_spill] sm:$0xff] %v24723_v63  ;;  %v26313_v63 = vld [vmem:[#allocation76_spill] sm:$0xff]  ;;  %v24779_v43 = vmul.f32 %v24549_v17, %v24521_v47  ;;  %v26321_v24 = vsub.s32 0, %v24534_v15  ;;  %v13194_v46 = vmul.f32 %v24549_v17, %v24471_v31 }
 0x66e   :  { %v24747_v16 = vmul.f32 %v24549_v17, %v26313_v63  ;;  %26314 = vst [vmem:[#allocation35_spill] sm:$0xff] %v24759_v59  ;;  %26315 = vst [vmem:[#allocation92_spill] sm:$0xff] %v24763_v6  ;;  %v24767_v63 = vmul.f32 %v24549_v17, %v24421_v10  ;;  %v26320_v59 = vld [vmem:[#allocation32_spill] sm:$0xff]  ;;  %v13193_v6 = vmul.f32 %v24549_v17, %v24440_v2 }
 0x66f   :  { %26317 = vst [vmem:[#allocation67_spill] sm:$0xff] %v24771_v7  ;;  %26318 = vst [vmem:[#allocation65_spill] sm:$0xff] %v24775_v51  ;;  %v13192_v57 = vmul.f32 %v24549_v17, %v26320_v59  ;;  %v24787_v10 = vmul.f32 %v24549_v17, %v24515_v26  ;;  %v24791_v7 = vrot.slane %v13133_v18, %v26321_v24  ;;  %v26322_v51 = vld [vmem:[#allocation63_spill] sm:$0xff] }
 0x670   :  { %26316 = vst [vmem:[#allocation33_spill] sm:$0xff] %v24767_v63  ;;  %26319 = vst [vmem:[#allocation3_spill] sm:$0xff] %v24779_v43  ;;  %v13195_v47 = vmul.f32 %v24549_v17, %v26322_v51  ;;  %v26323_v43 = vld [vmem:[#allocation77_spill] sm:$0xff] }
 0x671   :  { %v13196_v59 = vmul.f32 %v24549_v17, %v26323_v43  ;;  %v26324_v63 = vld [vmem:[#allocation61_spill] sm:$0xff]  ;;  %v24803_v26 = vadd.f32 %v24791_v7, %v24555_v0  ;;  %v24807_v15 = vadd.f32 %v24791_v7, %v24559_v8  ;;  %v24811_v31 = vadd.f32 %v24791_v7, %v24563_v60  ;;  %v26327_v43 = vld [vmem:[#allocation64_spill] sm:$0xff] }
 0x672   :  { %v13197_v2 = vmul.f32 %v24549_v17, %v26324_v63  ;;  %v24815_v18 = vadd.f32 %v24791_v7, %v24567_v36  ;;  %v24819_v51 = vadd.f32 %v24791_v7, %v24571_v28  ;;  %v24823_v17 = vadd.f32 %v24791_v7, %v24575_v58  ;;  %v26326_v63 = vld [vmem:[#allocation66_spill] sm:$0xff] }
 0x673   :  { %v24827_v0 = vadd.f32 %v24791_v7, %v24579_v13  ;;  %v24831_v8 = vadd.f32 %v24791_v7, %v24583_v56  ;;  %v24835_v60 = vadd.f32 %v24791_v7, %v24587_v9  ;;  %v24839_v36 = vadd.f32 %v24791_v7, %v24591_v48 }
 0x674   :  { %v24843_v28 = vadd.f32 %v24791_v7, %v24595_v33  ;;  %v24847_v58 = vadd.f32 %v24791_v7, %v24599_v40  ;;  %v24851_v13 = vadd.f32 %v24791_v7, %v24603_v34  ;;  %v24855_v56 = vadd.f32 %v24791_v7, %v24607_v35 }
 0x675   :  { %v24859_v9 = vadd.f32 %v24791_v7, %v24611_v1  ;;  %v24863_v48 = vadd.f32 %v24791_v7, %v24615_v3  ;;  %v24867_v33 = vadd.f32 %v24791_v7, %v24619_v49  ;;  %v24871_v40 = vadd.f32 %v24791_v7, %v24623_v44 }
 0x676   :  { %v24875_v34 = vadd.f32 %v24791_v7, %v24627_v30  ;;  %v24879_v35 = vadd.f32 %v24791_v7, %v24631_v4  ;;  %v24883_v1 = vadd.f32 %v24791_v7, %v24635_v55  ;;  %v24887_v3 = vadd.f32 %v24791_v7, %v24639_v19 }
 0x677   :  { %v24891_v49 = vadd.f32 %v24791_v7, %v24643_v37  ;;  %v24895_v44 = vadd.f32 %v24791_v7, %v24647_v22  ;;  %v24899_v30 = vadd.f32 %v24791_v7, %v24651_v62  ;;  %v24903_v4 = vadd.f32 %v24791_v7, %v24655_v39 }
 0x678   :  { %v24907_v55 = vadd.f32 %v24791_v7, %v24659_v14  ;;  %v24911_v19 = vadd.f32 %v24791_v7, %v24663_v21  ;;  %v24915_v37 = vadd.f32 %v24791_v7, %v24667_v27  ;;  %v24919_v22 = vadd.f32 %v24791_v7, %v24671_v25  ;;  %v26325_v27 = vld [vmem:[#allocation34_spill] sm:$0xff] }
 0x679   :  { %v24923_v62 = vadd.f32 %v24791_v7, %v24675_v45  ;;  %v24927_v39 = vadd.f32 %v24791_v7, %v24679_v42  ;;  %v24931_v14 = vadd.f32 %v24791_v7, %v24683_v52  ;;  %v24935_v21 = vadd.f32 %v24791_v7, %v24687_v38 }
 0x67a   :  { %v24939_v25 = vadd.f32 %v24791_v7, %v26325_v27  ;;  %v24943_v45 = vadd.f32 %v24791_v7, %v26326_v63  ;;  %v24947_v42 = vadd.f32 %v24791_v7, %v26327_v43  ;;  %v24951_v52 = vadd.f32 %v24791_v7, %v24703_v53  ;;  %v26328_v43 = vld [vmem:[#allocation31_spill] sm:$0xff] }
 0x67b   :  { %v24955_v38 = vadd.f32 %v24791_v7, %v24707_v61  ;;  %v24959_v24 = vadd.f32 %v24791_v7, %v24711_v29  ;;  %v24963_v27 = vadd.f32 %v24791_v7, %v24715_v12  ;;  %v24967_v63 = vadd.f32 %v24791_v7, %v24719_v20 }
 0x67c   :  { %v24971_v53 = vadd.f32 %v24791_v7, %v26328_v43  ;;  %v24975_v61 = vadd.f32 %v24791_v7, %v24727_v50  ;;  %v24979_v29 = vadd.f32 %v24791_v7, %v24731_v54  ;;  %v24983_v12 = vadd.f32 %v24791_v7, %v24735_v23 }
 0x67d   :  { %v24987_v20 = vadd.f32 %v24791_v7, %v24739_v11  ;;  %v24991_v43 = vadd.f32 %v24791_v7, %v24743_v41  ;;  %v24995_v50 = vadd.f32 %v24791_v7, %v24747_v16  ;;  %v24999_v54 = vadd.f32 %v24791_v7, %v24751_v5 }
 0x67e   :  { %26329 = vst [vmem:[#allocation69_spill] sm:$0xff] %v24983_v12  ;;  %v25003_v23 = vadd.f32 %v24791_v7, %v24755_v32  ;;  %v26333_v12 = vld [vmem:[#allocation35_spill] sm:$0xff]  ;;  %v25021_v5 = vadd.f32 %v24791_v7, %v13193_v6  ;;  %v25024_v32 = vadd.f32 %v24791_v7, %v13194_v46 }
 0x67f   :  { %26330 = vst [vmem:[#allocation68_spill] sm:$0xff] %v24987_v20  ;;  %26331 = vst [vmem:[#allocation5_spill] sm:$0xff] %v24991_v43  ;;  %v25007_v11 = vadd.f32 %v24791_v7, %v26333_v12  ;;  %v26335_v20 = vld [vmem:[#allocation92_spill] sm:$0xff]  ;;  %v26336_v43 = vld [vmem:[#allocation33_spill] sm:$0xff]  ;;  %v25027_v12 = vadd.f32 %v24791_v7, %v13195_v47  ;;  %v25049_v47 = vadd.f32 %v24791_v7, %v24787_v10  ;;  %v13282_v10 = vmax.f32 %v24843_v28, 0.0 }
 0x680   :  { %26332 = vst [vmem:[#allocation36_spill] sm:$0xff] %v24995_v50  ;;  %v25011_v41 = vadd.f32 %v24791_v7, %v26335_v20  ;;  %v25015_v16 = vadd.f32 %v24791_v7, %v26336_v43  ;;  %v25018_v50 = vadd.f32 %v24791_v7, %v13192_v57  ;;  %26338 = vst [vmem:[#allocation38_spill] sm:$0xff] %v25021_v5  ;;  %v26340_v43 = vld [vmem:[#allocation67_spill] sm:$0xff]  ;;  %v26342_v57 = vld [vmem:[#allocation65_spill] sm:$0xff]  ;;  %v13293_v28 = vmax.f32 %v24887_v3, 0.0 }
 0x681   :  { %26334 = vst [vmem:[#allocation37_spill] sm:$0xff] %v25007_v11  ;;  %v25030_v11 = vadd.f32 %v24791_v7, %v13196_v59  ;;  %v25033_v20 = vadd.f32 %v24791_v7, %v13197_v2  ;;  %v25041_v6 = vadd.f32 %v24791_v7, %v26342_v57  ;;  %v26344_v5 = vld [vmem:[#allocation3_spill] sm:$0xff]  ;;  %v13272_v59 = vmax.f32 %v24803_v26, 0.0  ;;  %13346 = vst.msk [vmem:[%s25378_s7 + $0x50] sm:$0xff] %vm26_vm0, %v13282_v10 }
 0x682   :  { %26337 = vst [vmem:[#allocation4_spill] sm:$0xff] %v25015_v16  ;;  %v25037_v16 = vadd.f32 %v24791_v7, %v26340_v43  ;;  %v25045_v46 = vadd.f32 %v24791_v7, %v26344_v5  ;;  %v13273_v2 = vmax.f32 %v24807_v15, 0.0  ;;  %v13275_v43 = vmax.f32 %v24815_v18, 0.0  ;;  %13357 = vst.msk [vmem:[%s25378_s7 + $0xa8] sm:$0xff] %vm26_vm0, %v13293_v28 }
 0x683   :  { %26339 = vst [vmem:[#allocation40_spill] sm:$0xff] %v25033_v20  ;;  %26343 = vst [vmem:[#allocation70_spill] sm:$0xff] %v25041_v6  ;;  %v13274_v20 = vmax.f32 %v24811_v31, 0.0  ;;  %v13277_v57 = vmax.f32 %v24823_v17, 0.0  ;;  %v13278_v6 = vmax.f32 %v24827_v0, 0.0  ;;  %v13279_v5 = vmax.f32 %v24831_v8, 0.0 }
 0x684   :  { %26341 = vst [vmem:[#allocation71_spill] sm:$0xff] %v25037_v16  ;;  %26345 = vst [vmem:[#allocation39_spill] sm:$0xff] %v25045_v46  ;;  %v13276_v16 = vmax.f32 %v24819_v51, 0.0  ;;  %v13280_v46 = vmax.f32 %v24835_v60, 0.0  ;;  %v13281_v7 = vmax.f32 %v24839_v36, 0.0  ;;  %v13283_v26 = vmax.f32 %v24847_v58, 0.0 }
 0x685   :  { %13336 = vst.msk [vmem:[%s25378_s7] sm:$0xff] %vm26_vm0, %v13272_v59  ;;  %13337 = vst.msk [vmem:[%s25378_s7 + $0x8] sm:$0xff] %vm26_vm0, %v13273_v2  ;;  %v13284_v15 = vmax.f32 %v24851_v13, 0.0  ;;  %v13285_v31 = vmax.f32 %v24855_v56, 0.0  ;;  %v13286_v18 = vmax.f32 %v24859_v9, 0.0  ;;  %v13287_v51 = vmax.f32 %v24863_v48, 0.0 }
 0x686   :  { %13338 = vst.msk [vmem:[%s25378_s7 + $0x10] sm:$0xff] %vm26_vm0, %v13274_v20  ;;  %13339 = vst.msk [vmem:[%s25378_s7 + $0x18] sm:$0xff] %vm26_vm0, %v13275_v43  ;;  %v13288_v17 = vmax.f32 %v24867_v33, 0.0  ;;  %v13289_v0 = vmax.f32 %v24871_v40, 0.0  ;;  %v13290_v8 = vmax.f32 %v24875_v34, 0.0  ;;  %v13291_v60 = vmax.f32 %v24879_v35, 0.0 }
 0x687   :  { %13340 = vst.msk [vmem:[%s25378_s7 + $0x20] sm:$0xff] %vm26_vm0, %v13276_v16  ;;  %13341 = vst.msk [vmem:[%s25378_s7 + $0x28] sm:$0xff] %vm26_vm0, %v13277_v57  ;;  %v13292_v36 = vmax.f32 %v24883_v1, 0.0  ;;  %v13294_v58 = vmax.f32 %v24891_v49, 0.0  ;;  %v13295_v13 = vmax.f32 %v24895_v44, 0.0  ;;  %v13296_v56 = vmax.f32 %v24899_v30, 0.0 }
 0x688   :  { %13342 = vst.msk [vmem:[%s25378_s7 + $0x30] sm:$0xff] %vm26_vm0, %v13278_v6  ;;  %13343 = vst.msk [vmem:[%s25378_s7 + $0x38] sm:$0xff] %vm26_vm0, %v13279_v5  ;;  %v13297_v9 = vmax.f32 %v24903_v4, 0.0  ;;  %v13298_v48 = vmax.f32 %v24907_v55, 0.0  ;;  %v13299_v33 = vmax.f32 %v24911_v19, 0.0  ;;  %v13300_v40 = vmax.f32 %v24915_v37, 0.0 }
 0x689   :  { %13344 = vst.msk [vmem:[%s25378_s7 + $0x40] sm:$0xff] %vm26_vm0, %v13280_v46  ;;  %13345 = vst.msk [vmem:[%s25378_s7 + $0x48] sm:$0xff] %vm26_vm0, %v13281_v7  ;;  %v13301_v34 = vmax.f32 %v24919_v22, 0.0  ;;  %v13302_v35 = vmax.f32 %v24923_v62, 0.0  ;;  %v13303_v1 = vmax.f32 %v24927_v39, 0.0  ;;  %v13304_v3 = vmax.f32 %v24931_v14, 0.0 }
 0x68a   :  { %13347 = vst.msk [vmem:[%s25378_s7 + $0x58] sm:$0xff] %vm26_vm0, %v13283_v26  ;;  %13348 = vst.msk [vmem:[%s25378_s7 + $0x60] sm:$0xff] %vm26_vm0, %v13284_v15  ;;  %v13305_v49 = vmax.f32 %v24935_v21, 0.0  ;;  %v13306_v44 = vmax.f32 %v24939_v25, 0.0  ;;  %v13307_v30 = vmax.f32 %v24943_v45, 0.0  ;;  %v13308_v4 = vmax.f32 %v24947_v42, 0.0 }
 0x68b   :  { %13349 = vst.msk [vmem:[%s25378_s7 + $0x68] sm:$0xff] %vm26_vm0, %v13285_v31  ;;  %13350 = vst.msk [vmem:[%s25378_s7 + $0x70] sm:$0xff] %vm26_vm0, %v13286_v18  ;;  %v13309_v55 = vmax.f32 %v24951_v52, 0.0  ;;  %v13310_v19 = vmax.f32 %v24955_v38, 0.0  ;;  %v13311_v37 = vmax.f32 %v24959_v24, 0.0  ;;  %v13312_v22 = vmax.f32 %v24963_v27, 0.0 }
 0x68c   :  { %13351 = vst.msk [vmem:[%s25378_s7 + $0x78] sm:$0xff] %vm26_vm0, %v13287_v51  ;;  %13352 = vst.msk [vmem:[%s25378_s7 + $0x80] sm:$0xff] %vm26_vm0, %v13288_v17  ;;  %v13313_v62 = vmax.f32 %v24967_v63, 0.0  ;;  %v13314_v39 = vmax.f32 %v24971_v53, 0.0  ;;  %v13315_v14 = vmax.f32 %v24975_v61, 0.0  ;;  %v13316_v21 = vmax.f32 %v24979_v29, 0.0 }
 0x68d   :  { %13353 = vst.msk [vmem:[%s25378_s7 + $0x88] sm:$0xff] %vm26_vm0, %v13289_v0  ;;  %13354 = vst.msk [vmem:[%s25378_s7 + $0x90] sm:$0xff] %vm26_vm0, %v13290_v8  ;;  %v26346_v25 = vld [vmem:[#allocation69_spill] sm:$0xff]  ;;  %v26347_v42 = vld [vmem:[#allocation68_spill] sm:$0xff]  ;;  %v13321_v53 = vmax.f32 %v24999_v54, 0.0  ;;  %v13322_v61 = vmax.f32 %v25003_v23, 0.0 }
 0x68e   :  { %13355 = vst.msk [vmem:[%s25378_s7 + $0x98] sm:$0xff] %vm26_vm0, %v13291_v60  ;;  %13356 = vst.msk [vmem:[%s25378_s7 + $0xa0] sm:$0xff] %vm26_vm0, %v13292_v36  ;;  %v13317_v45 = vmax.f32 %v26346_v25, 0.0  ;;  %v13318_v52 = vmax.f32 %v26347_v42, 0.0  ;;  %v26348_v38 = vld [vmem:[#allocation5_spill] sm:$0xff]  ;;  %v26349_v27 = vld [vmem:[#allocation36_spill] sm:$0xff] }
 0x68f   :  { %13358 = vst.msk [vmem:[%s25378_s7 + $0xb0] sm:$0xff] %vm26_vm0, %v13294_v58  ;;  %13359 = vst.msk [vmem:[%s25378_s7 + $0xb8] sm:$0xff] %vm26_vm0, %v13295_v13  ;;  %v13319_v24 = vmax.f32 %v26348_v38, 0.0  ;;  %v13320_v63 = vmax.f32 %v26349_v27, 0.0  ;;  %v26350_v29 = vld [vmem:[#allocation37_spill] sm:$0xff]  ;;  %v13324_v54 = vmax.f32 %v25011_v41, 0.0 }
 0x690   :  { %13360 = vst.msk [vmem:[%s25378_s7 + $0xc0] sm:$0xff] %vm26_vm0, %v13296_v56  ;;  %13361 = vst.msk [vmem:[%s25378_s7 + $0xc8] sm:$0xff] %vm26_vm0, %v13297_v9  ;;  %v13323_v16 = vmax.f32 %v26350_v29, 0.0  ;;  %v26351_v23 = vld [vmem:[#allocation4_spill] sm:$0xff]  ;;  %v13326_v6 = vmax.f32 %v25018_v50, 0.0  ;;  %v26352_v46 = vld [vmem:[#allocation38_spill] sm:$0xff] }
 0x691   :  { %13362 = vst.msk [vmem:[%s25378_s7 + $0xd0] sm:$0xff] %vm26_vm0, %v13298_v48  ;;  %13363 = vst.msk [vmem:[%s25378_s7 + $0xd8] sm:$0xff] %vm26_vm0, %v13299_v33  ;;  %v13325_v20 = vmax.f32 %v26351_v23, 0.0  ;;  %v13327_v59 = vmax.f32 %v26352_v46, 0.0  ;;  %v13328_v50 = vmax.f32 %v25024_v32, 0.0  ;;  %v13329_v41 = vmax.f32 %v25027_v12, 0.0 }
 0x692   :  { %13364 = vst.msk [vmem:[%s25378_s7 + $0xe0] sm:$0xff] %vm26_vm0, %v13300_v40  ;;  %13365 = vst.msk [vmem:[%s25378_s7 + $0xe8] sm:$0xff] %vm26_vm0, %v13301_v34  ;;  %v13330_v2 = vmax.f32 %v25030_v11, 0.0  ;;  %v26353_v43 = vld [vmem:[#allocation40_spill] sm:$0xff]  ;;  %v26354_v11 = vld [vmem:[#allocation71_spill] sm:$0xff]  ;;  %v13335_v26 = vmax.f32 %v25049_v47, 0.0 }
 0x693   :  { %13366 = vst.msk [vmem:[%s25378_s7 + $0xf0] sm:$0xff] %vm26_vm0, %v13302_v35  ;;  %13367 = vst.msk [vmem:[%s25378_s7 + $0xf8] sm:$0xff] %vm26_vm0, %v13303_v1  ;;  %v13331_v57 = vmax.f32 %v26353_v43, 0.0  ;;  %v13332_v32 = vmax.f32 %v26354_v11, 0.0  ;;  %v26355_v12 = vld [vmem:[#allocation70_spill] sm:$0xff]  ;;  %v26356_v7 = vld [vmem:[#allocation39_spill] sm:$0xff] }
 0x694   :  { %13368 = vst.msk [vmem:[%s25378_s7 + $0x100] sm:$0xff] %vm26_vm0, %v13304_v3  ;;  %13369 = vst.msk [vmem:[%s25378_s7 + $0x108] sm:$0xff] %vm26_vm0, %v13305_v49  ;;  %v13333_v5 = vmax.f32 %v26355_v12, 0.0  ;;  %v13334_v10 = vmax.f32 %v26356_v7, 0.0 }
 0x695   :  { %13370 = vst.msk [vmem:[%s25378_s7 + $0x110] sm:$0xff] %vm26_vm0, %v13306_v44  ;;  %13371 = vst.msk [vmem:[%s25378_s7 + $0x118] sm:$0xff] %vm26_vm0, %v13307_v30 }
 0x696   :  { %13372 = vst.msk [vmem:[%s25378_s7 + $0x120] sm:$0xff] %vm26_vm0, %v13308_v4  ;;  %13373 = vst.msk [vmem:[%s25378_s7 + $0x128] sm:$0xff] %vm26_vm0, %v13309_v55 }
 0x697   :  { %13374 = vst.msk [vmem:[%s25378_s7 + $0x130] sm:$0xff] %vm26_vm0, %v13310_v19  ;;  %13375 = vst.msk [vmem:[%s25378_s7 + $0x138] sm:$0xff] %vm26_vm0, %v13311_v37 }
 0x698   :  { %13376 = vst.msk [vmem:[%s25378_s7 + $0x140] sm:$0xff] %vm26_vm0, %v13312_v22  ;;  %13377 = vst.msk [vmem:[%s25378_s7 + $0x148] sm:$0xff] %vm26_vm0, %v13313_v62 }
 0x699   :  { %13378 = vst.msk [vmem:[%s25378_s7 + $0x150] sm:$0xff] %vm26_vm0, %v13314_v39  ;;  %13379 = vst.msk [vmem:[%s25378_s7 + $0x158] sm:$0xff] %vm26_vm0, %v13315_v14 }
 0x69a   :  { %13380 = vst.msk [vmem:[%s25378_s7 + $0x160] sm:$0xff] %vm26_vm0, %v13316_v21  ;;  %13381 = vst.msk [vmem:[%s25378_s7 + $0x168] sm:$0xff] %vm26_vm0, %v13317_v45 }
 0x69b   :  { %13382 = vst.msk [vmem:[%s25378_s7 + $0x170] sm:$0xff] %vm26_vm0, %v13318_v52  ;;  %13383 = vst.msk [vmem:[%s25378_s7 + $0x178] sm:$0xff] %vm26_vm0, %v13319_v24 }
 0x69c   :  { %13384 = vst.msk [vmem:[%s25378_s7 + $0x180] sm:$0xff] %vm26_vm0, %v13320_v63  ;;  %13385 = vst.msk [vmem:[%s25378_s7 + $0x188] sm:$0xff] %vm26_vm0, %v13321_v53 }
 0x69d   :  { %13386 = vst.msk [vmem:[%s25378_s7 + $0x190] sm:$0xff] %vm26_vm0, %v13322_v61  ;;  %13387 = vst.msk [vmem:[%s25378_s7 + $0x198] sm:$0xff] %vm26_vm0, %v13323_v16 }
 0x69e   :  { %13388 = vst.msk [vmem:[%s25378_s7 + $0x1a0] sm:$0xff] %vm26_vm0, %v13324_v54  ;;  %13389 = vst.msk [vmem:[%s25378_s7 + $0x1a8] sm:$0xff] %vm26_vm0, %v13325_v20 }
 0x69f   :  { %13390 = vst.msk [vmem:[%s25378_s7 + $0x1b0] sm:$0xff] %vm26_vm0, %v13326_v6  ;;  %13391 = vst.msk [vmem:[%s25378_s7 + $0x1b8] sm:$0xff] %vm26_vm0, %v13327_v59 }
 0x6a0   :  { %13392 = vst.msk [vmem:[%s25378_s7 + $0x1c0] sm:$0xff] %vm26_vm0, %v13328_v50  ;;  %13393 = vst.msk [vmem:[%s25378_s7 + $0x1c8] sm:$0xff] %vm26_vm0, %v13329_v41 }
 0x6a1   :  { %13394 = vst.msk [vmem:[%s25378_s7 + $0x1d0] sm:$0xff] %vm26_vm0, %v13330_v2  ;;  %13395 = vst.msk [vmem:[%s25378_s7 + $0x1d8] sm:$0xff] %vm26_vm0, %v13331_v57 }
 0x6a2   :  { %13396 = vst.msk [vmem:[%s25378_s7 + $0x1e0] sm:$0xff] %vm26_vm0, %v13332_v32  ;;  %13397 = vst.msk [vmem:[%s25378_s7 + $0x1e8] sm:$0xff] %vm26_vm0, %v13333_v5 }
 0x6a3   :  { %13398 = vst.msk [vmem:[%s25378_s7 + $0x1f0] sm:$0xff] %vm26_vm0, %v13334_v10  ;;  %13399 = vst.msk [vmem:[%s25378_s7 + $0x1f8] sm:$0xff] %vm26_vm0, %v13335_v26 }

</bundles_post_ra>
